<compile_context>
chip_gen: v5e
topology: v5e:2x2
jax: 0.10.0
libtpu: 0.0.40
codegen_flags: <defaults>
</compile_context>

<pallas_src>
import functools
import math

import jax
import jax.numpy as jnp
from jax.experimental import pallas as pl
from jax.experimental.pallas import tpu as pltpu


# ------------------------------ fused kernel ------------------------------- #

def _disc_fwd_kernel(*refs, meta):
    """Whole Discriminator forward for one batch sample, VMEM resident.

    refs = (x_ref, *param_refs, o_ref).  `meta` is a static tuple of per-layer
    descriptors (kind, kernel size, activation, whether a stride-selection
    matrix follows).
    """
    x_ref, o_ref = refs[0], refs[-1]
    p_refs = refs[1:-1]

    x = x_ref[0].astype(jnp.float32)            # (C, L), length on lanes
    i = 0
    for m in meta:
        kind = m["kind"]
        if kind == "dw":
            # Depthwise conv (groups == channels) on the VPU:
            # y[c, t] = b[c] + sum_j w[c, j] * x[c, t + j]
            w_ref, b_ref = p_refs[i], p_refs[i + 1]
            i += 2
            k = m["k"]
            _, l_in = x.shape
            lz = l_in - k + 1
            z = w_ref[0] * x[:, 0:lz]           # (C,1) * (C,Lz)
            for j in range(1, k):
                z = z + w_ref[j] * x[:, j:j + lz]
            x = z + b_ref[...]                  # bias, no BN / activation here
        elif kind == "conv":
            # Conv as sum over taps of (C_out, C_in) @ (C_in, Lz) MXU matmuls
            # at stride-1 positions, then stride-2 subsample via a 0/1
            # selection matmul (keeps L lane-dense, no strided lane access).
            w_ref, s_ref = p_refs[i], p_refs[i + 1]
            i += 2
            sel_ref = None
            if m["sel"]:
                sel_ref = p_refs[i]
                i += 1
            k = m["k"]
            _, l_in = x.shape
            lz = l_in - k + 1
            xm = x.astype(jnp.bfloat16)
            z = jnp.dot(w_ref[0], xm[:, 0:lz],
                        preferred_element_type=jnp.float32)
            for j in range(1, k):
                z = z + jnp.dot(w_ref[j], xm[:, j:j + lz],
                                preferred_element_type=jnp.float32)
            if sel_ref is not None:
                z = jnp.dot(z.astype(jnp.bfloat16), sel_ref[...],
                            preferred_element_type=jnp.float32)
            z = z + s_ref[...]                  # conv bias + folded BN shift
            if m["leaky"]:
                z = jnp.where(z >= 0, z, 0.2 * z)
            x = z
        else:  # "reduce": final Conv1d collapsing to a single scalar (C_out=1)
            w_ref, b_ref = p_refs[i], p_refs[i + 1]
            i += 2
            prod = w_ref[...] * x               # (C_in, k) elementwise
            y = jnp.sum(prod, axis=1, keepdims=True)         # (C_in, 1)
            y = jnp.sum(y, axis=0, keepdims=True) + b_ref[...]  # (1, 1)
            x = y
    o_ref[...] = x.reshape(o_ref.shape).astype(o_ref.dtype)


# ------------------------------- wrapper ----------------------------------- #

def _const_map(ndim):
    zeros = (0,) * ndim
    return lambda i: zeros


def build_forward(meta, out_cl):
    c_o, l_o = out_cl

    @jax.jit
    def forward(x, *flat):
        n, c, l = x.shape
        kernel = functools.partial(_disc_fwd_kernel, meta=meta)
        in_specs = [pl.BlockSpec((1, c, l), lambda i: (i, 0, 0))]
        in_specs += [pl.BlockSpec(a.shape, _const_map(a.ndim)) for a in flat]
        out = pl.pallas_call(
            kernel,
            out_shape=jax.ShapeDtypeStruct((n, c_o, l_o), jnp.float32),
            grid=(n,),
            in_specs=in_specs,
            out_specs=pl.BlockSpec((1, c_o, l_o), lambda i: (i, 0, 0)),
            compiler_params=pltpu.CompilerParams(
                dimension_semantics=("parallel",)),
        )(x, *flat)
        return out.reshape(n, -1)               # disc_pred.view(len(pred), -1)

    return forward


# ---------------------------- parameter setup ------------------------------ #

def init_conv(key, c_in, c_out, k, groups=1):
    # PyTorch-style uniform(-1/sqrt(fan_in), 1/sqrt(fan_in)) init, deterministic.
    fan_in = (c_in // groups) * k
    bound = 1.0 / math.sqrt(fan_in)
    kw, kb = jax.random.split(key)
    w = jax.random.uniform(kw, (c_out, c_in // groups, k), jnp.float32, -bound, bound)
    b = jax.random.uniform(kb, (c_out,), jnp.float32, -bound, bound)
    return w, b


def _fold_bn(w, b, bn):
    # Fold eval-mode BatchNorm1d into conv weight (scale) and shift.
    if bn is None:
        return w, b
    gamma, beta, mean, var, eps = bn
    s = gamma / jnp.sqrt(var + eps)
    return w * s[:, None, None], (b - mean) * s + beta


def _conv_taps(w):
    # (C_out, C_in, k) -> (k, C_out, C_in): per-tap GEMM weights.
    return jnp.transpose(w, (2, 0, 1))


def _sel_matrix(l_in, k, stride):
    # 0/1 matrix selecting strided positions of the stride-1 conv result.
    lz = l_in - k + 1
    l_out = (l_in - k) // stride + 1
    if l_out == lz:
        return None, l_out
    p = jnp.arange(lz)[:, None]
    t = jnp.arange(l_out)[None, :]
    return (p == stride * t).astype(jnp.bfloat16), l_out


def make_model(key, im_chan=6, hidden_dim=32, length=384):
    keys = jax.random.split(key, 16)
    eps = 1e-5

    def bn(c):
        return (jnp.ones((c,), jnp.float32), jnp.zeros((c,), jnp.float32),
                jnp.zeros((c,), jnp.float32), jnp.ones((c,), jnp.float32), eps)

    flat, meta = [], []
    l = length

    # block 1: depthwise Conv1d(6,6,3,groups=6) -> Conv1d(6,32,1) -> BN -> LeakyReLU
    w_dw, b_dw = init_conv(keys[0], im_chan, im_chan, 3, groups=im_chan)
    flat += [jnp.transpose(w_dw, (2, 0, 1)).astype(jnp.float32),   # (k, C, 1)
             b_dw[:, None].astype(jnp.float32)]
    meta.append(dict(kind="dw", k=3))
    l = l - 3 + 1

    w_pw, b_pw = init_conv(keys[1], im_chan, hidden_dim, 1)
    w_pw, sh_pw = _fold_bn(w_pw, b_pw, bn(hidden_dim))
    flat += [_conv_taps(w_pw).astype(jnp.bfloat16),
             sh_pw[:, None].astype(jnp.float32)]
    meta.append(dict(kind="conv", k=1, sel=False, leaky=True))

    # blocks 2..7: Conv1d(kernel, stride=2) + BN + LeakyReLU
    specs = [
        (hidden_dim,     hidden_dim * 2, 5),
        (hidden_dim * 2, hidden_dim * 4, 3),
        (hidden_dim * 4, hidden_dim * 4, 4),
        (hidden_dim * 4, hidden_dim * 4, 3),
        (hidden_dim * 4, hidden_dim * 4, 4),
        (hidden_dim * 4, hidden_dim * 8, 4),
    ]
    for idx, (ci, co, k) in enumerate(specs):
        w, b = init_conv(keys[2 + idx], ci, co, k)
        w, sh = _fold_bn(w, b, bn(co))
        sel, l_out = _sel_matrix(l, k, 2)
        flat += [_conv_taps(w).astype(jnp.bfloat16),
                 sh[:, None].astype(jnp.float32)]
        if sel is not None:
            flat.append(sel)
        meta.append(dict(kind="conv", k=k, sel=sel is not None, leaky=True))
        l = l_out

    # final: Conv1d(256, 1, 4, 2), no BN / activation
    w_f, b_f = init_conv(keys[8], hidden_dim * 8, 1, 4)
    l_out = (l - 4) // 2 + 1
    if l_out == 1:
        flat += [w_f[0].astype(jnp.float32),                # (C_in, k)
                 b_f.reshape(1, 1).astype(jnp.float32)]
        meta.append(dict(kind="reduce"))
    else:
        sel, l_out = _sel_matrix(l, 4, 2)
        flat += [_conv_taps(w_f).astype(jnp.bfloat16),
                 b_f[:, None].astype(jnp.float32)]
        if sel is not None:
            flat.append(sel)
        meta.append(dict(kind="conv", k=4, sel=sel is not None, leaky=False))
    l = l_out

    return flat, tuple(meta), (1, l)
    # TODO(synk): training-mode Dropout / BatchNorm batch-stats are stochastic /
    # stateful; this implements eval (inference) semantics.


# --------------------------------- main ------------------------------------ #

if __name__ == "__main__":
    key = jax.random.PRNGKey(0)
    kx, kp = jax.random.split(key)
    # smallest length that survives all 8 no-padding conv blocks down to L=1
    N, C, L = 2, 6, 384
    x = jax.random.normal(kx, (N, C, L), jnp.float32)

    flat, meta, out_cl = make_model(kp, im_chan=C, hidden_dim=32, length=L)
    forward = build_forward(meta, out_cl)

    out = forward(x, *flat)
    jax.block_until_ready(out)
    assert out.shape == (N, 1), out.shape
    assert out.dtype == jnp.float32
    print("KERNEL_OK")
</pallas_src>

<mosaic_0001>
module attributes {stable_mosaic.version = 11 : i64} {
  func.func @_disc_fwd_kernel(%arg0: i32, %arg1: memref<1x6x384xf32, #tpu.memory_space<vmem>>, %arg2: memref<3x6x1xf32, #tpu.memory_space<vmem>>, %arg3: memref<6x1xf32, #tpu.memory_space<vmem>>, %arg4: memref<1x32x6xbf16, #tpu.memory_space<vmem>>, %arg5: memref<32x1xf32, #tpu.memory_space<vmem>>, %arg6: memref<5x64x32xbf16, #tpu.memory_space<vmem>>, %arg7: memref<64x1xf32, #tpu.memory_space<vmem>>, %arg8: memref<378x189xbf16, #tpu.memory_space<vmem>>, %arg9: memref<3x128x64xbf16, #tpu.memory_space<vmem>>, %arg10: memref<128x1xf32, #tpu.memory_space<vmem>>, %arg11: memref<187x94xbf16, #tpu.memory_space<vmem>>, %arg12: memref<4x128x128xbf16, #tpu.memory_space<vmem>>, %arg13: memref<128x1xf32, #tpu.memory_space<vmem>>, %arg14: memref<91x46xbf16, #tpu.memory_space<vmem>>, %arg15: memref<3x128x128xbf16, #tpu.memory_space<vmem>>, %arg16: memref<128x1xf32, #tpu.memory_space<vmem>>, %arg17: memref<44x22xbf16, #tpu.memory_space<vmem>>, %arg18: memref<4x128x128xbf16, #tpu.memory_space<vmem>>, %arg19: memref<128x1xf32, #tpu.memory_space<vmem>>, %arg20: memref<19x10xbf16, #tpu.memory_space<vmem>>, %arg21: memref<4x256x128xbf16, #tpu.memory_space<vmem>>, %arg22: memref<256x1xf32, #tpu.memory_space<vmem>>, %arg23: memref<7x4xbf16, #tpu.memory_space<vmem>>, %arg24: memref<256x4xf32, #tpu.memory_space<vmem>>, %arg25: memref<1x1xf32, #tpu.memory_space<vmem>>, %arg26: memref<1x1x1xf32, #tpu.memory_space<vmem>>) attributes {dimension_semantics = [#tpu.dimension_semantics<parallel>], iteration_bounds = array<i64: 2>, scalar_prefetch = 0 : i64, scratch_operands = 0 : i64, tpu.core_type = #tpu.core_type<tc>, window_params = [{transform_indices = @transform_0, window_bounds = array<i64: 1, 6, 384>}, {pipeline_mode = #tpu.pipeline_mode<synchronous>, transform_indices = @transform_1, window_bounds = array<i64: 3, 6, 1>}, {pipeline_mode = #tpu.pipeline_mode<synchronous>, transform_indices = @transform_2, window_bounds = array<i64: 6, 1>}, {pipeline_mode = #tpu.pipeline_mode<synchronous>, transform_indices = @transform_3, window_bounds = array<i64: 1, 32, 6>}, {pipeline_mode = #tpu.pipeline_mode<synchronous>, transform_indices = @transform_4, window_bounds = array<i64: 32, 1>}, {pipeline_mode = #tpu.pipeline_mode<synchronous>, transform_indices = @transform_5, window_bounds = array<i64: 5, 64, 32>}, {pipeline_mode = #tpu.pipeline_mode<synchronous>, transform_indices = @transform_6, window_bounds = array<i64: 64, 1>}, {pipeline_mode = #tpu.pipeline_mode<synchronous>, transform_indices = @transform_7, window_bounds = array<i64: 378, 189>}, {pipeline_mode = #tpu.pipeline_mode<synchronous>, transform_indices = @transform_8, window_bounds = array<i64: 3, 128, 64>}, {pipeline_mode = #tpu.pipeline_mode<synchronous>, transform_indices = @transform_9, window_bounds = array<i64: 128, 1>}, {pipeline_mode = #tpu.pipeline_mode<synchronous>, transform_indices = @transform_10, window_bounds = array<i64: 187, 94>}, {pipeline_mode = #tpu.pipeline_mode<synchronous>, transform_indices = @transform_11, window_bounds = array<i64: 4, 128, 128>}, {pipeline_mode = #tpu.pipeline_mode<synchronous>, transform_indices = @transform_12, window_bounds = array<i64: 128, 1>}, {pipeline_mode = #tpu.pipeline_mode<synchronous>, transform_indices = @transform_13, window_bounds = array<i64: 91, 46>}, {pipeline_mode = #tpu.pipeline_mode<synchronous>, transform_indices = @transform_14, window_bounds = array<i64: 3, 128, 128>}, {pipeline_mode = #tpu.pipeline_mode<synchronous>, transform_indices = @transform_15, window_bounds = array<i64: 128, 1>}, {pipeline_mode = #tpu.pipeline_mode<synchronous>, transform_indices = @transform_16, window_bounds = array<i64: 44, 22>}, {pipeline_mode = #tpu.pipeline_mode<synchronous>, transform_indices = @transform_17, window_bounds = array<i64: 4, 128, 128>}, {pipeline_mode = #tpu.pipeline_mode<synchronous>, transform_indices = @transform_18, window_bounds = array<i64: 128, 1>}, {pipeline_mode = #tpu.pipeline_mode<synchronous>, transform_indices = @transform_19, window_bounds = array<i64: 19, 10>}, {pipeline_mode = #tpu.pipeline_mode<synchronous>, transform_indices = @transform_20, window_bounds = array<i64: 4, 256, 128>}, {pipeline_mode = #tpu.pipeline_mode<synchronous>, transform_indices = @transform_21, window_bounds = array<i64: 256, 1>}, {pipeline_mode = #tpu.pipeline_mode<synchronous>, transform_indices = @transform_22, window_bounds = array<i64: 7, 4>}, {pipeline_mode = #tpu.pipeline_mode<synchronous>, transform_indices = @transform_23, window_bounds = array<i64: 256, 4>}, {pipeline_mode = #tpu.pipeline_mode<synchronous>, transform_indices = @transform_24, window_bounds = array<i64: 1, 1>}, {transform_indices = @transform_25, window_bounds = array<i64: 1, 1, 1>}]} {
    %c0 = arith.constant 0 : index
    %c0_0 = arith.constant 0 : index
    %c0_1 = arith.constant 0 : index
    %0 = vector.load %arg1[%c0, %c0_0, %c0_1] : memref<1x6x384xf32, #tpu.memory_space<vmem>>, vector<1x6x384xf32>
    %1 = vector.shape_cast %0 : vector<1x6x384xf32> to vector<6x384xf32>
    %c0_2 = arith.constant 0 : index
    %c0_3 = arith.constant 0 : index
    %c0_4 = arith.constant 0 : index
    %2 = vector.load %arg2[%c0_2, %c0_3, %c0_4] : memref<3x6x1xf32, #tpu.memory_space<vmem>>, vector<1x6x1xf32>
    %3 = vector.shape_cast %2 : vector<1x6x1xf32> to vector<6x1xf32>
    %4 = vector.extract_strided_slice %1 {offsets = [0, 0], sizes = [6, 382], strides = [1, 1]} : vector<6x384xf32> to vector<6x382xf32>
    %5 = vector.broadcast %3 : vector<6x1xf32> to vector<6x382xf32>
    %6 = arith.mulf %5, %4 : vector<6x382xf32>
    %c1 = arith.constant 1 : index
    %c0_5 = arith.constant 0 : index
    %c0_6 = arith.constant 0 : index
    %7 = vector.load %arg2[%c1, %c0_5, %c0_6] : memref<3x6x1xf32, #tpu.memory_space<vmem>>, vector<1x6x1xf32>
    %8 = vector.shape_cast %7 : vector<1x6x1xf32> to vector<6x1xf32>
    %9 = vector.extract_strided_slice %1 {offsets = [0, 1], sizes = [6, 382], strides = [1, 1]} : vector<6x384xf32> to vector<6x382xf32>
    %10 = vector.broadcast %8 : vector<6x1xf32> to vector<6x382xf32>
    %11 = arith.mulf %10, %9 : vector<6x382xf32>
    %12 = arith.addf %6, %11 : vector<6x382xf32>
    %c2 = arith.constant 2 : index
    %c0_7 = arith.constant 0 : index
    %c0_8 = arith.constant 0 : index
    %13 = vector.load %arg2[%c2, %c0_7, %c0_8] : memref<3x6x1xf32, #tpu.memory_space<vmem>>, vector<1x6x1xf32>
    %14 = vector.shape_cast %13 : vector<1x6x1xf32> to vector<6x1xf32>
    %15 = vector.extract_strided_slice %1 {offsets = [0, 2], sizes = [6, 382], strides = [1, 1]} : vector<6x384xf32> to vector<6x382xf32>
    %16 = vector.broadcast %14 : vector<6x1xf32> to vector<6x382xf32>
    %17 = arith.mulf %16, %15 : vector<6x382xf32>
    %18 = arith.addf %12, %17 : vector<6x382xf32>
    %c0_9 = arith.constant 0 : index
    %c0_10 = arith.constant 0 : index
    %19 = vector.load %arg3[%c0_9, %c0_10] : memref<6x1xf32, #tpu.memory_space<vmem>>, vector<6x1xf32>
    %20 = vector.broadcast %19 : vector<6x1xf32> to vector<6x382xf32>
    %21 = arith.addf %18, %20 : vector<6x382xf32>
    %22 = arith.truncf %21 : vector<6x382xf32> to vector<6x382xbf16>
    %c0_11 = arith.constant 0 : index
    %c0_12 = arith.constant 0 : index
    %c0_13 = arith.constant 0 : index
    %23 = vector.load %arg4[%c0_11, %c0_12, %c0_13] : memref<1x32x6xbf16, #tpu.memory_space<vmem>>, vector<1x32x6xbf16>
    %24 = vector.shape_cast %23 : vector<1x32x6xbf16> to vector<32x6xbf16>
    %cst = arith.constant dense<0.000000e+00> : vector<32x382xf32>
    %25 = tpu.matmul %24, %22, %cst {dimension_numbers = #tpu.dot_dimension_numbers<[1], [0], [0], [1], [0, 0, 1, 1], [], []>} : vector<32x6xbf16>, vector<6x382xbf16>, vector<32x382xf32> -> vector<32x382xf32>
    %c0_14 = arith.constant 0 : index
    %c0_15 = arith.constant 0 : index
    %26 = vector.load %arg5[%c0_14, %c0_15] : memref<32x1xf32, #tpu.memory_space<vmem>>, vector<32x1xf32>
    %27 = vector.broadcast %26 : vector<32x1xf32> to vector<32x382xf32>
    %28 = arith.addf %25, %27 : vector<32x382xf32>
    %cst_16 = arith.constant 0.000000e+00 : f32
    %29 = vector.broadcast %cst_16 : f32 to vector<32x382xf32>
    %30 = arith.cmpf oge, %28, %29 : vector<32x382xf32>
    %cst_17 = arith.constant 2.000000e-01 : f32
    %31 = vector.broadcast %cst_17 : f32 to vector<32x382xf32>
    %32 = arith.mulf %31, %28 : vector<32x382xf32>
    %33 = arith.select %30, %28, %32 : vector<32x382xi1>, vector<32x382xf32>
    %34 = arith.truncf %33 : vector<32x382xf32> to vector<32x382xbf16>
    %c0_18 = arith.constant 0 : index
    %c0_19 = arith.constant 0 : index
    %c0_20 = arith.constant 0 : index
    %35 = vector.load %arg6[%c0_18, %c0_19, %c0_20] : memref<5x64x32xbf16, #tpu.memory_space<vmem>>, vector<1x64x32xbf16>
    %36 = vector.shape_cast %35 : vector<1x64x32xbf16> to vector<64x32xbf16>
    %37 = vector.extract_strided_slice %34 {offsets = [0, 0], sizes = [32, 378], strides = [1, 1]} : vector<32x382xbf16> to vector<32x378xbf16>
    %cst_21 = arith.constant dense<0.000000e+00> : vector<64x378xf32>
    %38 = tpu.matmul %36, %37, %cst_21 {dimension_numbers = #tpu.dot_dimension_numbers<[1], [0], [0], [1], [0, 0, 1, 1], [], []>} : vector<64x32xbf16>, vector<32x378xbf16>, vector<64x378xf32> -> vector<64x378xf32>
    %c1_22 = arith.constant 1 : index
    %c0_23 = arith.constant 0 : index
    %c0_24 = arith.constant 0 : index
    %39 = vector.load %arg6[%c1_22, %c0_23, %c0_24] : memref<5x64x32xbf16, #tpu.memory_space<vmem>>, vector<1x64x32xbf16>
    %40 = vector.shape_cast %39 : vector<1x64x32xbf16> to vector<64x32xbf16>
    %41 = vector.extract_strided_slice %34 {offsets = [0, 1], sizes = [32, 378], strides = [1, 1]} : vector<32x382xbf16> to vector<32x378xbf16>
    %cst_25 = arith.constant dense<0.000000e+00> : vector<64x378xf32>
    %42 = tpu.matmul %40, %41, %cst_25 {dimension_numbers = #tpu.dot_dimension_numbers<[1], [0], [0], [1], [0, 0, 1, 1], [], []>} : vector<64x32xbf16>, vector<32x378xbf16>, vector<64x378xf32> -> vector<64x378xf32>
    %43 = arith.addf %38, %42 : vector<64x378xf32>
    %c2_26 = arith.constant 2 : index
    %c0_27 = arith.constant 0 : index
    %c0_28 = arith.constant 0 : index
    %44 = vector.load %arg6[%c2_26, %c0_27, %c0_28] : memref<5x64x32xbf16, #tpu.memory_space<vmem>>, vector<1x64x32xbf16>
    %45 = vector.shape_cast %44 : vector<1x64x32xbf16> to vector<64x32xbf16>
    %46 = vector.extract_strided_slice %34 {offsets = [0, 2], sizes = [32, 378], strides = [1, 1]} : vector<32x382xbf16> to vector<32x378xbf16>
    %cst_29 = arith.constant dense<0.000000e+00> : vector<64x378xf32>
    %47 = tpu.matmul %45, %46, %cst_29 {dimension_numbers = #tpu.dot_dimension_numbers<[1], [0], [0], [1], [0, 0, 1, 1], [], []>} : vector<64x32xbf16>, vector<32x378xbf16>, vector<64x378xf32> -> vector<64x378xf32>
    %48 = arith.addf %43, %47 : vector<64x378xf32>
    %c3 = arith.constant 3 : index
    %c0_30 = arith.constant 0 : index
    %c0_31 = arith.constant 0 : index
    %49 = vector.load %arg6[%c3, %c0_30, %c0_31] : memref<5x64x32xbf16, #tpu.memory_space<vmem>>, vector<1x64x32xbf16>
    %50 = vector.shape_cast %49 : vector<1x64x32xbf16> to vector<64x32xbf16>
    %51 = vector.extract_strided_slice %34 {offsets = [0, 3], sizes = [32, 378], strides = [1, 1]} : vector<32x382xbf16> to vector<32x378xbf16>
    %cst_32 = arith.constant dense<0.000000e+00> : vector<64x378xf32>
    %52 = tpu.matmul %50, %51, %cst_32 {dimension_numbers = #tpu.dot_dimension_numbers<[1], [0], [0], [1], [0, 0, 1, 1], [], []>} : vector<64x32xbf16>, vector<32x378xbf16>, vector<64x378xf32> -> vector<64x378xf32>
    %53 = arith.addf %48, %52 : vector<64x378xf32>
    %c4 = arith.constant 4 : index
    %c0_33 = arith.constant 0 : index
    %c0_34 = arith.constant 0 : index
    %54 = vector.load %arg6[%c4, %c0_33, %c0_34] : memref<5x64x32xbf16, #tpu.memory_space<vmem>>, vector<1x64x32xbf16>
    %55 = vector.shape_cast %54 : vector<1x64x32xbf16> to vector<64x32xbf16>
    %56 = vector.extract_strided_slice %34 {offsets = [0, 4], sizes = [32, 378], strides = [1, 1]} : vector<32x382xbf16> to vector<32x378xbf16>
    %cst_35 = arith.constant dense<0.000000e+00> : vector<64x378xf32>
    %57 = tpu.matmul %55, %56, %cst_35 {dimension_numbers = #tpu.dot_dimension_numbers<[1], [0], [0], [1], [0, 0, 1, 1], [], []>} : vector<64x32xbf16>, vector<32x378xbf16>, vector<64x378xf32> -> vector<64x378xf32>
    %58 = arith.addf %53, %57 : vector<64x378xf32>
    %59 = arith.truncf %58 : vector<64x378xf32> to vector<64x378xbf16>
    %c0_36 = arith.constant 0 : index
    %c0_37 = arith.constant 0 : index
    %60 = vector.load %arg8[%c0_36, %c0_37] : memref<378x189xbf16, #tpu.memory_space<vmem>>, vector<378x189xbf16>
    %cst_38 = arith.constant dense<0.000000e+00> : vector<64x189xf32>
    %61 = tpu.matmul %59, %60, %cst_38 {dimension_numbers = #tpu.dot_dimension_numbers<[1], [0], [0], [1], [0, 0, 1, 1], [], []>} : vector<64x378xbf16>, vector<378x189xbf16>, vector<64x189xf32> -> vector<64x189xf32>
    %c0_39 = arith.constant 0 : index
    %c0_40 = arith.constant 0 : index
    %62 = vector.load %arg7[%c0_39, %c0_40] : memref<64x1xf32, #tpu.memory_space<vmem>>, vector<64x1xf32>
    %63 = vector.broadcast %62 : vector<64x1xf32> to vector<64x189xf32>
    %64 = arith.addf %61, %63 : vector<64x189xf32>
    %cst_41 = arith.constant 0.000000e+00 : f32
    %65 = vector.broadcast %cst_41 : f32 to vector<64x189xf32>
    %66 = arith.cmpf oge, %64, %65 : vector<64x189xf32>
    %cst_42 = arith.constant 2.000000e-01 : f32
    %67 = vector.broadcast %cst_42 : f32 to vector<64x189xf32>
    %68 = arith.mulf %67, %64 : vector<64x189xf32>
    %69 = arith.select %66, %64, %68 : vector<64x189xi1>, vector<64x189xf32>
    %70 = arith.truncf %69 : vector<64x189xf32> to vector<64x189xbf16>
    %c0_43 = arith.constant 0 : index
    %c0_44 = arith.constant 0 : index
    %c0_45 = arith.constant 0 : index
    %71 = vector.load %arg9[%c0_43, %c0_44, %c0_45] : memref<3x128x64xbf16, #tpu.memory_space<vmem>>, vector<1x128x64xbf16>
    %72 = vector.shape_cast %71 : vector<1x128x64xbf16> to vector<128x64xbf16>
    %73 = vector.extract_strided_slice %70 {offsets = [0, 0], sizes = [64, 187], strides = [1, 1]} : vector<64x189xbf16> to vector<64x187xbf16>
    %cst_46 = arith.constant dense<0.000000e+00> : vector<128x187xf32>
    %74 = tpu.matmul %72, %73, %cst_46 {dimension_numbers = #tpu.dot_dimension_numbers<[1], [0], [0], [1], [0, 0, 1, 1], [], []>} : vector<128x64xbf16>, vector<64x187xbf16>, vector<128x187xf32> -> vector<128x187xf32>
    %c1_47 = arith.constant 1 : index
    %c0_48 = arith.constant 0 : index
    %c0_49 = arith.constant 0 : index
    %75 = vector.load %arg9[%c1_47, %c0_48, %c0_49] : memref<3x128x64xbf16, #tpu.memory_space<vmem>>, vector<1x128x64xbf16>
    %76 = vector.shape_cast %75 : vector<1x128x64xbf16> to vector<128x64xbf16>
    %77 = vector.extract_strided_slice %70 {offsets = [0, 1], sizes = [64, 187], strides = [1, 1]} : vector<64x189xbf16> to vector<64x187xbf16>
    %cst_50 = arith.constant dense<0.000000e+00> : vector<128x187xf32>
    %78 = tpu.matmul %76, %77, %cst_50 {dimension_numbers = #tpu.dot_dimension_numbers<[1], [0], [0], [1], [0, 0, 1, 1], [], []>} : vector<128x64xbf16>, vector<64x187xbf16>, vector<128x187xf32> -> vector<128x187xf32>
    %79 = arith.addf %74, %78 : vector<128x187xf32>
    %c2_51 = arith.constant 2 : index
    %c0_52 = arith.constant 0 : index
    %c0_53 = arith.constant 0 : index
    %80 = vector.load %arg9[%c2_51, %c0_52, %c0_53] : memref<3x128x64xbf16, #tpu.memory_space<vmem>>, vector<1x128x64xbf16>
    %81 = vector.shape_cast %80 : vector<1x128x64xbf16> to vector<128x64xbf16>
    %82 = vector.extract_strided_slice %70 {offsets = [0, 2], sizes = [64, 187], strides = [1, 1]} : vector<64x189xbf16> to vector<64x187xbf16>
    %cst_54 = arith.constant dense<0.000000e+00> : vector<128x187xf32>
    %83 = tpu.matmul %81, %82, %cst_54 {dimension_numbers = #tpu.dot_dimension_numbers<[1], [0], [0], [1], [0, 0, 1, 1], [], []>} : vector<128x64xbf16>, vector<64x187xbf16>, vector<128x187xf32> -> vector<128x187xf32>
    %84 = arith.addf %79, %83 : vector<128x187xf32>
    %85 = arith.truncf %84 : vector<128x187xf32> to vector<128x187xbf16>
    %c0_55 = arith.constant 0 : index
    %c0_56 = arith.constant 0 : index
    %86 = vector.load %arg11[%c0_55, %c0_56] : memref<187x94xbf16, #tpu.memory_space<vmem>>, vector<187x94xbf16>
    %cst_57 = arith.constant dense<0.000000e+00> : vector<128x94xf32>
    %87 = tpu.matmul %85, %86, %cst_57 {dimension_numbers = #tpu.dot_dimension_numbers<[1], [0], [0], [1], [0, 0, 1, 1], [], []>} : vector<128x187xbf16>, vector<187x94xbf16>, vector<128x94xf32> -> vector<128x94xf32>
    %c0_58 = arith.constant 0 : index
    %c0_59 = arith.constant 0 : index
    %88 = vector.load %arg10[%c0_58, %c0_59] : memref<128x1xf32, #tpu.memory_space<vmem>>, vector<128x1xf32>
    %89 = vector.broadcast %88 : vector<128x1xf32> to vector<128x94xf32>
    %90 = arith.addf %87, %89 : vector<128x94xf32>
    %cst_60 = arith.constant 0.000000e+00 : f32
    %91 = vector.broadcast %cst_60 : f32 to vector<128x94xf32>
    %92 = arith.cmpf oge, %90, %91 : vector<128x94xf32>
    %cst_61 = arith.constant 2.000000e-01 : f32
    %93 = vector.broadcast %cst_61 : f32 to vector<128x94xf32>
    %94 = arith.mulf %93, %90 : vector<128x94xf32>
    %95 = arith.select %92, %90, %94 : vector<128x94xi1>, vector<128x94xf32>
    %96 = arith.truncf %95 : vector<128x94xf32> to vector<128x94xbf16>
    %c0_62 = arith.constant 0 : index
    %c0_63 = arith.constant 0 : index
    %c0_64 = arith.constant 0 : index
    %97 = vector.load %arg12[%c0_62, %c0_63, %c0_64] : memref<4x128x128xbf16, #tpu.memory_space<vmem>>, vector<1x128x128xbf16>
    %98 = vector.shape_cast %97 : vector<1x128x128xbf16> to vector<128x128xbf16>
    %99 = vector.extract_strided_slice %96 {offsets = [0, 0], sizes = [128, 91], strides = [1, 1]} : vector<128x94xbf16> to vector<128x91xbf16>
    %cst_65 = arith.constant dense<0.000000e+00> : vector<128x91xf32>
    %100 = tpu.matmul %98, %99, %cst_65 {dimension_numbers = #tpu.dot_dimension_numbers<[1], [0], [0], [1], [0, 0, 1, 1], [], []>} : vector<128x128xbf16>, vector<128x91xbf16>, vector<128x91xf32> -> vector<128x91xf32>
    %c1_66 = arith.constant 1 : index
    %c0_67 = arith.constant 0 : index
    %c0_68 = arith.constant 0 : index
    %101 = vector.load %arg12[%c1_66, %c0_67, %c0_68] : memref<4x128x128xbf16, #tpu.memory_space<vmem>>, vector<1x128x128xbf16>
    %102 = vector.shape_cast %101 : vector<1x128x128xbf16> to vector<128x128xbf16>
    %103 = vector.extract_strided_slice %96 {offsets = [0, 1], sizes = [128, 91], strides = [1, 1]} : vector<128x94xbf16> to vector<128x91xbf16>
    %cst_69 = arith.constant dense<0.000000e+00> : vector<128x91xf32>
    %104 = tpu.matmul %102, %103, %cst_69 {dimension_numbers = #tpu.dot_dimension_numbers<[1], [0], [0], [1], [0, 0, 1, 1], [], []>} : vector<128x128xbf16>, vector<128x91xbf16>, vector<128x91xf32> -> vector<128x91xf32>
    %105 = arith.addf %100, %104 : vector<128x91xf32>
    %c2_70 = arith.constant 2 : index
    %c0_71 = arith.constant 0 : index
    %c0_72 = arith.constant 0 : index
    %106 = vector.load %arg12[%c2_70, %c0_71, %c0_72] : memref<4x128x128xbf16, #tpu.memory_space<vmem>>, vector<1x128x128xbf16>
    %107 = vector.shape_cast %106 : vector<1x128x128xbf16> to vector<128x128xbf16>
    %108 = vector.extract_strided_slice %96 {offsets = [0, 2], sizes = [128, 91], strides = [1, 1]} : vector<128x94xbf16> to vector<128x91xbf16>
    %cst_73 = arith.constant dense<0.000000e+00> : vector<128x91xf32>
    %109 = tpu.matmul %107, %108, %cst_73 {dimension_numbers = #tpu.dot_dimension_numbers<[1], [0], [0], [1], [0, 0, 1, 1], [], []>} : vector<128x128xbf16>, vector<128x91xbf16>, vector<128x91xf32> -> vector<128x91xf32>
    %110 = arith.addf %105, %109 : vector<128x91xf32>
    %c3_74 = arith.constant 3 : index
    %c0_75 = arith.constant 0 : index
    %c0_76 = arith.constant 0 : index
    %111 = vector.load %arg12[%c3_74, %c0_75, %c0_76] : memref<4x128x128xbf16, #tpu.memory_space<vmem>>, vector<1x128x128xbf16>
    %112 = vector.shape_cast %111 : vector<1x128x128xbf16> to vector<128x128xbf16>
    %113 = vector.extract_strided_slice %96 {offsets = [0, 3], sizes = [128, 91], strides = [1, 1]} : vector<128x94xbf16> to vector<128x91xbf16>
    %cst_77 = arith.constant dense<0.000000e+00> : vector<128x91xf32>
    %114 = tpu.matmul %112, %113, %cst_77 {dimension_numbers = #tpu.dot_dimension_numbers<[1], [0], [0], [1], [0, 0, 1, 1], [], []>} : vector<128x128xbf16>, vector<128x91xbf16>, vector<128x91xf32> -> vector<128x91xf32>
    %115 = arith.addf %110, %114 : vector<128x91xf32>
    %116 = arith.truncf %115 : vector<128x91xf32> to vector<128x91xbf16>
    %c0_78 = arith.constant 0 : index
    %c0_79 = arith.constant 0 : index
    %117 = vector.load %arg14[%c0_78, %c0_79] : memref<91x46xbf16, #tpu.memory_space<vmem>>, vector<91x46xbf16>
    %cst_80 = arith.constant dense<0.000000e+00> : vector<128x46xf32>
    %118 = tpu.matmul %116, %117, %cst_80 {dimension_numbers = #tpu.dot_dimension_numbers<[1], [0], [0], [1], [0, 0, 1, 1], [], []>} : vector<128x91xbf16>, vector<91x46xbf16>, vector<128x46xf32> -> vector<128x46xf32>
    %c0_81 = arith.constant 0 : index
    %c0_82 = arith.constant 0 : index
    %119 = vector.load %arg13[%c0_81, %c0_82] : memref<128x1xf32, #tpu.memory_space<vmem>>, vector<128x1xf32>
    %120 = vector.broadcast %119 : vector<128x1xf32> to vector<128x46xf32>
    %121 = arith.addf %118, %120 : vector<128x46xf32>
    %cst_83 = arith.constant 0.000000e+00 : f32
    %122 = vector.broadcast %cst_83 : f32 to vector<128x46xf32>
    %123 = arith.cmpf oge, %121, %122 : vector<128x46xf32>
    %cst_84 = arith.constant 2.000000e-01 : f32
    %124 = vector.broadcast %cst_84 : f32 to vector<128x46xf32>
    %125 = arith.mulf %124, %121 : vector<128x46xf32>
    %126 = arith.select %123, %121, %125 : vector<128x46xi1>, vector<128x46xf32>
    %127 = arith.truncf %126 : vector<128x46xf32> to vector<128x46xbf16>
    %c0_85 = arith.constant 0 : index
    %c0_86 = arith.constant 0 : index
    %c0_87 = arith.constant 0 : index
    %128 = vector.load %arg15[%c0_85, %c0_86, %c0_87] : memref<3x128x128xbf16, #tpu.memory_space<vmem>>, vector<1x128x128xbf16>
    %129 = vector.shape_cast %128 : vector<1x128x128xbf16> to vector<128x128xbf16>
    %130 = vector.extract_strided_slice %127 {offsets = [0, 0], sizes = [128, 44], strides = [1, 1]} : vector<128x46xbf16> to vector<128x44xbf16>
    %cst_88 = arith.constant dense<0.000000e+00> : vector<128x44xf32>
    %131 = tpu.matmul %129, %130, %cst_88 {dimension_numbers = #tpu.dot_dimension_numbers<[1], [0], [0], [1], [0, 0, 1, 1], [], []>} : vector<128x128xbf16>, vector<128x44xbf16>, vector<128x44xf32> -> vector<128x44xf32>
    %c1_89 = arith.constant 1 : index
    %c0_90 = arith.constant 0 : index
    %c0_91 = arith.constant 0 : index
    %132 = vector.load %arg15[%c1_89, %c0_90, %c0_91] : memref<3x128x128xbf16, #tpu.memory_space<vmem>>, vector<1x128x128xbf16>
    %133 = vector.shape_cast %132 : vector<1x128x128xbf16> to vector<128x128xbf16>
    %134 = vector.extract_strided_slice %127 {offsets = [0, 1], sizes = [128, 44], strides = [1, 1]} : vector<128x46xbf16> to vector<128x44xbf16>
    %cst_92 = arith.constant dense<0.000000e+00> : vector<128x44xf32>
    %135 = tpu.matmul %133, %134, %cst_92 {dimension_numbers = #tpu.dot_dimension_numbers<[1], [0], [0], [1], [0, 0, 1, 1], [], []>} : vector<128x128xbf16>, vector<128x44xbf16>, vector<128x44xf32> -> vector<128x44xf32>
    %136 = arith.addf %131, %135 : vector<128x44xf32>
    %c2_93 = arith.constant 2 : index
    %c0_94 = arith.constant 0 : index
    %c0_95 = arith.constant 0 : index
    %137 = vector.load %arg15[%c2_93, %c0_94, %c0_95] : memref<3x128x128xbf16, #tpu.memory_space<vmem>>, vector<1x128x128xbf16>
    %138 = vector.shape_cast %137 : vector<1x128x128xbf16> to vector<128x128xbf16>
    %139 = vector.extract_strided_slice %127 {offsets = [0, 2], sizes = [128, 44], strides = [1, 1]} : vector<128x46xbf16> to vector<128x44xbf16>
    %cst_96 = arith.constant dense<0.000000e+00> : vector<128x44xf32>
    %140 = tpu.matmul %138, %139, %cst_96 {dimension_numbers = #tpu.dot_dimension_numbers<[1], [0], [0], [1], [0, 0, 1, 1], [], []>} : vector<128x128xbf16>, vector<128x44xbf16>, vector<128x44xf32> -> vector<128x44xf32>
    %141 = arith.addf %136, %140 : vector<128x44xf32>
    %142 = arith.truncf %141 : vector<128x44xf32> to vector<128x44xbf16>
    %c0_97 = arith.constant 0 : index
    %c0_98 = arith.constant 0 : index
    %143 = vector.load %arg17[%c0_97, %c0_98] : memref<44x22xbf16, #tpu.memory_space<vmem>>, vector<44x22xbf16>
    %cst_99 = arith.constant dense<0.000000e+00> : vector<128x22xf32>
    %144 = tpu.matmul %142, %143, %cst_99 {dimension_numbers = #tpu.dot_dimension_numbers<[1], [0], [0], [1], [0, 0, 1, 1], [], []>} : vector<128x44xbf16>, vector<44x22xbf16>, vector<128x22xf32> -> vector<128x22xf32>
    %c0_100 = arith.constant 0 : index
    %c0_101 = arith.constant 0 : index
    %145 = vector.load %arg16[%c0_100, %c0_101] : memref<128x1xf32, #tpu.memory_space<vmem>>, vector<128x1xf32>
    %146 = vector.broadcast %145 : vector<128x1xf32> to vector<128x22xf32>
    %147 = arith.addf %144, %146 : vector<128x22xf32>
    %cst_102 = arith.constant 0.000000e+00 : f32
    %148 = vector.broadcast %cst_102 : f32 to vector<128x22xf32>
    %149 = arith.cmpf oge, %147, %148 : vector<128x22xf32>
    %cst_103 = arith.constant 2.000000e-01 : f32
    %150 = vector.broadcast %cst_103 : f32 to vector<128x22xf32>
    %151 = arith.mulf %150, %147 : vector<128x22xf32>
    %152 = arith.select %149, %147, %151 : vector<128x22xi1>, vector<128x22xf32>
    %153 = arith.truncf %152 : vector<128x22xf32> to vector<128x22xbf16>
    %c0_104 = arith.constant 0 : index
    %c0_105 = arith.constant 0 : index
    %c0_106 = arith.constant 0 : index
    %154 = vector.load %arg18[%c0_104, %c0_105, %c0_106] : memref<4x128x128xbf16, #tpu.memory_space<vmem>>, vector<1x128x128xbf16>
    %155 = vector.shape_cast %154 : vector<1x128x128xbf16> to vector<128x128xbf16>
    %156 = vector.extract_strided_slice %153 {offsets = [0, 0], sizes = [128, 19], strides = [1, 1]} : vector<128x22xbf16> to vector<128x19xbf16>
    %cst_107 = arith.constant dense<0.000000e+00> : vector<128x19xf32>
    %157 = tpu.matmul %155, %156, %cst_107 {dimension_numbers = #tpu.dot_dimension_numbers<[1], [0], [0], [1], [0, 0, 1, 1], [], []>} : vector<128x128xbf16>, vector<128x19xbf16>, vector<128x19xf32> -> vector<128x19xf32>
    %c1_108 = arith.constant 1 : index
    %c0_109 = arith.constant 0 : index
    %c0_110 = arith.constant 0 : index
    %158 = vector.load %arg18[%c1_108, %c0_109, %c0_110] : memref<4x128x128xbf16, #tpu.memory_space<vmem>>, vector<1x128x128xbf16>
    %159 = vector.shape_cast %158 : vector<1x128x128xbf16> to vector<128x128xbf16>
    %160 = vector.extract_strided_slice %153 {offsets = [0, 1], sizes = [128, 19], strides = [1, 1]} : vector<128x22xbf16> to vector<128x19xbf16>
    %cst_111 = arith.constant dense<0.000000e+00> : vector<128x19xf32>
    %161 = tpu.matmul %159, %160, %cst_111 {dimension_numbers = #tpu.dot_dimension_numbers<[1], [0], [0], [1], [0, 0, 1, 1], [], []>} : vector<128x128xbf16>, vector<128x19xbf16>, vector<128x19xf32> -> vector<128x19xf32>
    %162 = arith.addf %157, %161 : vector<128x19xf32>
    %c2_112 = arith.constant 2 : index
    %c0_113 = arith.constant 0 : index
    %c0_114 = arith.constant 0 : index
    %163 = vector.load %arg18[%c2_112, %c0_113, %c0_114] : memref<4x128x128xbf16, #tpu.memory_space<vmem>>, vector<1x128x128xbf16>
    %164 = vector.shape_cast %163 : vector<1x128x128xbf16> to vector<128x128xbf16>
    %165 = vector.extract_strided_slice %153 {offsets = [0, 2], sizes = [128, 19], strides = [1, 1]} : vector<128x22xbf16> to vector<128x19xbf16>
    %cst_115 = arith.constant dense<0.000000e+00> : vector<128x19xf32>
    %166 = tpu.matmul %164, %165, %cst_115 {dimension_numbers = #tpu.dot_dimension_numbers<[1], [0], [0], [1], [0, 0, 1, 1], [], []>} : vector<128x128xbf16>, vector<128x19xbf16>, vector<128x19xf32> -> vector<128x19xf32>
    %167 = arith.addf %162, %166 : vector<128x19xf32>
    %c3_116 = arith.constant 3 : index
    %c0_117 = arith.constant 0 : index
    %c0_118 = arith.constant 0 : index
    %168 = vector.load %arg18[%c3_116, %c0_117, %c0_118] : memref<4x128x128xbf16, #tpu.memory_space<vmem>>, vector<1x128x128xbf16>
    %169 = vector.shape_cast %168 : vector<1x128x128xbf16> to vector<128x128xbf16>
    %170 = vector.extract_strided_slice %153 {offsets = [0, 3], sizes = [128, 19], strides = [1, 1]} : vector<128x22xbf16> to vector<128x19xbf16>
    %cst_119 = arith.constant dense<0.000000e+00> : vector<128x19xf32>
    %171 = tpu.matmul %169, %170, %cst_119 {dimension_numbers = #tpu.dot_dimension_numbers<[1], [0], [0], [1], [0, 0, 1, 1], [], []>} : vector<128x128xbf16>, vector<128x19xbf16>, vector<128x19xf32> -> vector<128x19xf32>
    %172 = arith.addf %167, %171 : vector<128x19xf32>
    %173 = arith.truncf %172 : vector<128x19xf32> to vector<128x19xbf16>
    %c0_120 = arith.constant 0 : index
    %c0_121 = arith.constant 0 : index
    %174 = vector.load %arg20[%c0_120, %c0_121] : memref<19x10xbf16, #tpu.memory_space<vmem>>, vector<19x10xbf16>
    %cst_122 = arith.constant dense<0.000000e+00> : vector<128x10xf32>
    %175 = tpu.matmul %173, %174, %cst_122 {dimension_numbers = #tpu.dot_dimension_numbers<[1], [0], [0], [1], [0, 0, 1, 1], [], []>} : vector<128x19xbf16>, vector<19x10xbf16>, vector<128x10xf32> -> vector<128x10xf32>
    %c0_123 = arith.constant 0 : index
    %c0_124 = arith.constant 0 : index
    %176 = vector.load %arg19[%c0_123, %c0_124] : memref<128x1xf32, #tpu.memory_space<vmem>>, vector<128x1xf32>
    %177 = vector.broadcast %176 : vector<128x1xf32> to vector<128x10xf32>
    %178 = arith.addf %175, %177 : vector<128x10xf32>
    %cst_125 = arith.constant 0.000000e+00 : f32
    %179 = vector.broadcast %cst_125 : f32 to vector<128x10xf32>
    %180 = arith.cmpf oge, %178, %179 : vector<128x10xf32>
    %cst_126 = arith.constant 2.000000e-01 : f32
    %181 = vector.broadcast %cst_126 : f32 to vector<128x10xf32>
    %182 = arith.mulf %181, %178 : vector<128x10xf32>
    %183 = arith.select %180, %178, %182 : vector<128x10xi1>, vector<128x10xf32>
    %184 = arith.truncf %183 : vector<128x10xf32> to vector<128x10xbf16>
    %c0_127 = arith.constant 0 : index
    %c0_128 = arith.constant 0 : index
    %c0_129 = arith.constant 0 : index
    %185 = vector.load %arg21[%c0_127, %c0_128, %c0_129] : memref<4x256x128xbf16, #tpu.memory_space<vmem>>, vector<1x256x128xbf16>
    %186 = vector.shape_cast %185 : vector<1x256x128xbf16> to vector<256x128xbf16>
    %187 = vector.extract_strided_slice %184 {offsets = [0, 0], sizes = [128, 7], strides = [1, 1]} : vector<128x10xbf16> to vector<128x7xbf16>
    %cst_130 = arith.constant dense<0.000000e+00> : vector<256x7xf32>
    %188 = tpu.matmul %186, %187, %cst_130 {dimension_numbers = #tpu.dot_dimension_numbers<[1], [0], [0], [1], [0, 0, 1, 1], [], []>} : vector<256x128xbf16>, vector<128x7xbf16>, vector<256x7xf32> -> vector<256x7xf32>
    %c1_131 = arith.constant 1 : index
    %c0_132 = arith.constant 0 : index
    %c0_133 = arith.constant 0 : index
    %189 = vector.load %arg21[%c1_131, %c0_132, %c0_133] : memref<4x256x128xbf16, #tpu.memory_space<vmem>>, vector<1x256x128xbf16>
    %190 = vector.shape_cast %189 : vector<1x256x128xbf16> to vector<256x128xbf16>
    %191 = vector.extract_strided_slice %184 {offsets = [0, 1], sizes = [128, 7], strides = [1, 1]} : vector<128x10xbf16> to vector<128x7xbf16>
    %cst_134 = arith.constant dense<0.000000e+00> : vector<256x7xf32>
    %192 = tpu.matmul %190, %191, %cst_134 {dimension_numbers = #tpu.dot_dimension_numbers<[1], [0], [0], [1], [0, 0, 1, 1], [], []>} : vector<256x128xbf16>, vector<128x7xbf16>, vector<256x7xf32> -> vector<256x7xf32>
    %193 = arith.addf %188, %192 : vector<256x7xf32>
    %c2_135 = arith.constant 2 : index
    %c0_136 = arith.constant 0 : index
    %c0_137 = arith.constant 0 : index
    %194 = vector.load %arg21[%c2_135, %c0_136, %c0_137] : memref<4x256x128xbf16, #tpu.memory_space<vmem>>, vector<1x256x128xbf16>
    %195 = vector.shape_cast %194 : vector<1x256x128xbf16> to vector<256x128xbf16>
    %196 = vector.extract_strided_slice %184 {offsets = [0, 2], sizes = [128, 7], strides = [1, 1]} : vector<128x10xbf16> to vector<128x7xbf16>
    %cst_138 = arith.constant dense<0.000000e+00> : vector<256x7xf32>
    %197 = tpu.matmul %195, %196, %cst_138 {dimension_numbers = #tpu.dot_dimension_numbers<[1], [0], [0], [1], [0, 0, 1, 1], [], []>} : vector<256x128xbf16>, vector<128x7xbf16>, vector<256x7xf32> -> vector<256x7xf32>
    %198 = arith.addf %193, %197 : vector<256x7xf32>
    %c3_139 = arith.constant 3 : index
    %c0_140 = arith.constant 0 : index
    %c0_141 = arith.constant 0 : index
    %199 = vector.load %arg21[%c3_139, %c0_140, %c0_141] : memref<4x256x128xbf16, #tpu.memory_space<vmem>>, vector<1x256x128xbf16>
    %200 = vector.shape_cast %199 : vector<1x256x128xbf16> to vector<256x128xbf16>
    %201 = vector.extract_strided_slice %184 {offsets = [0, 3], sizes = [128, 7], strides = [1, 1]} : vector<128x10xbf16> to vector<128x7xbf16>
    %cst_142 = arith.constant dense<0.000000e+00> : vector<256x7xf32>
    %202 = tpu.matmul %200, %201, %cst_142 {dimension_numbers = #tpu.dot_dimension_numbers<[1], [0], [0], [1], [0, 0, 1, 1], [], []>} : vector<256x128xbf16>, vector<128x7xbf16>, vector<256x7xf32> -> vector<256x7xf32>
    %203 = arith.addf %198, %202 : vector<256x7xf32>
    %204 = arith.truncf %203 : vector<256x7xf32> to vector<256x7xbf16>
    %c0_143 = arith.constant 0 : index
    %c0_144 = arith.constant 0 : index
    %205 = vector.load %arg23[%c0_143, %c0_144] : memref<7x4xbf16, #tpu.memory_space<vmem>>, vector<7x4xbf16>
    %cst_145 = arith.constant dense<0.000000e+00> : vector<256x4xf32>
    %206 = tpu.matmul %204, %205, %cst_145 {dimension_numbers = #tpu.dot_dimension_numbers<[1], [0], [0], [1], [0, 0, 1, 1], [], []>} : vector<256x7xbf16>, vector<7x4xbf16>, vector<256x4xf32> -> vector<256x4xf32>
    %c0_146 = arith.constant 0 : index
    %c0_147 = arith.constant 0 : index
    %207 = vector.load %arg22[%c0_146, %c0_147] : memref<256x1xf32, #tpu.memory_space<vmem>>, vector<256x1xf32>
    %208 = vector.broadcast %207 : vector<256x1xf32> to vector<256x4xf32>
    %209 = arith.addf %206, %208 : vector<256x4xf32>
    %cst_148 = arith.constant 0.000000e+00 : f32
    %210 = vector.broadcast %cst_148 : f32 to vector<256x4xf32>
    %211 = arith.cmpf oge, %209, %210 : vector<256x4xf32>
    %cst_149 = arith.constant 2.000000e-01 : f32
    %212 = vector.broadcast %cst_149 : f32 to vector<256x4xf32>
    %213 = arith.mulf %212, %209 : vector<256x4xf32>
    %214 = arith.select %211, %209, %213 : vector<256x4xi1>, vector<256x4xf32>
    %c0_150 = arith.constant 0 : index
    %c0_151 = arith.constant 0 : index
    %215 = vector.load %arg24[%c0_150, %c0_151] : memref<256x4xf32, #tpu.memory_space<vmem>>, vector<256x4xf32>
    %216 = arith.mulf %215, %214 : vector<256x4xf32>
    %cst_152 = arith.constant dense<0.000000e+00> : vector<256xf32>
    %217 = vector.multi_reduction <add>, %216, %cst_152 [1] : vector<256x4xf32> to vector<256xf32>
    %218 = vector.shape_cast %217 : vector<256xf32> to vector<256x1xf32>
    %cst_153 = arith.constant dense<0.000000e+00> : vector<1xf32>
    %219 = vector.multi_reduction <add>, %218, %cst_153 [0] : vector<256x1xf32> to vector<1xf32>
    %220 = vector.shape_cast %219 : vector<1xf32> to vector<1x1xf32>
    %c0_154 = arith.constant 0 : index
    %c0_155 = arith.constant 0 : index
    %221 = vector.load %arg25[%c0_154, %c0_155] : memref<1x1xf32, #tpu.memory_space<vmem>>, vector<1x1xf32>
    %222 = arith.addf %220, %221 : vector<1x1xf32>
    %223 = vector.shape_cast %222 : vector<1x1xf32> to vector<1x1x1xf32>
    %c0_156 = arith.constant 0 : index
    %c0_157 = arith.constant 0 : index
    %c0_158 = arith.constant 0 : index
    %224 = vector.load %arg26[%c0_156, %c0_157, %c0_158] : memref<1x1x1xf32, #tpu.memory_space<vmem>>, vector<1x1x1xf32>
    tpu.vector_store %arg26[%c0_156, %c0_157, %c0_158], %223 {strides = array<i32>} : memref<1x1x1xf32, #tpu.memory_space<vmem>>, vector<1x1x1xf32>,
    return
  }
  func.func @transform_0(%arg0: i32) -> (i32, i32, i32) {
    %c0_i32 = arith.constant 0 : i32
    %c0_i32_0 = arith.constant 0 : i32
    %c0_i32_1 = arith.constant 0 : i32
    return %arg0, %c0_i32, %c0_i32_0 : i32, i32, i32
  }
  func.func @transform_1(%arg0: i32) -> (i32, i32, i32) {
    %c0_i32 = arith.constant 0 : i32
    %c0_i32_0 = arith.constant 0 : i32
    %c0_i32_1 = arith.constant 0 : i32
    %c0_i32_2 = arith.constant 0 : i32
    return %c0_i32, %c0_i32_0, %c0_i32_1 : i32, i32, i32
  }
  func.func @transform_2(%arg0: i32) -> (i32, i32) {
    %c0_i32 = arith.constant 0 : i32
    %c0_i32_0 = arith.constant 0 : i32
    %c0_i32_1 = arith.constant 0 : i32
    return %c0_i32, %c0_i32_0 : i32, i32
  }
  func.func @transform_3(%arg0: i32) -> (i32, i32, i32) {
    %c0_i32 = arith.constant 0 : i32
    %c0_i32_0 = arith.constant 0 : i32
    %c0_i32_1 = arith.constant 0 : i32
    %c0_i32_2 = arith.constant 0 : i32
    return %c0_i32, %c0_i32_0, %c0_i32_1 : i32, i32, i32
  }
  func.func @transform_4(%arg0: i32) -> (i32, i32) {
    %c0_i32 = arith.constant 0 : i32
    %c0_i32_0 = arith.constant 0 : i32
    %c0_i32_1 = arith.constant 0 : i32
    return %c0_i32, %c0_i32_0 : i32, i32
  }
  func.func @transform_5(%arg0: i32) -> (i32, i32, i32) {
    %c0_i32 = arith.constant 0 : i32
    %c0_i32_0 = arith.constant 0 : i32
    %c0_i32_1 = arith.constant 0 : i32
    %c0_i32_2 = arith.constant 0 : i32
    return %c0_i32, %c0_i32_0, %c0_i32_1 : i32, i32, i32
  }
  func.func @transform_6(%arg0: i32) -> (i32, i32) {
    %c0_i32 = arith.constant 0 : i32
    %c0_i32_0 = arith.constant 0 : i32
    %c0_i32_1 = arith.constant 0 : i32
    return %c0_i32, %c0_i32_0 : i32, i32
  }
  func.func @transform_7(%arg0: i32) -> (i32, i32) {
    %c0_i32 = arith.constant 0 : i32
    %c0_i32_0 = arith.constant 0 : i32
    %c0_i32_1 = arith.constant 0 : i32
    return %c0_i32, %c0_i32_0 : i32, i32
  }
  func.func @transform_8(%arg0: i32) -> (i32, i32, i32) {
    %c0_i32 = arith.constant 0 : i32
    %c0_i32_0 = arith.constant 0 : i32
    %c0_i32_1 = arith.constant 0 : i32
    %c0_i32_2 = arith.constant 0 : i32
    return %c0_i32, %c0_i32_0, %c0_i32_1 : i32, i32, i32
  }
  func.func @transform_9(%arg0: i32) -> (i32, i32) {
    %c0_i32 = arith.constant 0 : i32
    %c0_i32_0 = arith.constant 0 : i32
    %c0_i32_1 = arith.constant 0 : i32
    return %c0_i32, %c0_i32_0 : i32, i32
  }
  func.func @transform_10(%arg0: i32) -> (i32, i32) {
    %c0_i32 = arith.constant 0 : i32
    %c0_i32_0 = arith.constant 0 : i32
    %c0_i32_1 = arith.constant 0 : i32
    return %c0_i32, %c0_i32_0 : i32, i32
  }
  func.func @transform_11(%arg0: i32) -> (i32, i32, i32) {
    %c0_i32 = arith.constant 0 : i32
    %c0_i32_0 = arith.constant 0 : i32
    %c0_i32_1 = arith.constant 0 : i32
    %c0_i32_2 = arith.constant 0 : i32
    return %c0_i32, %c0_i32_0, %c0_i32_1 : i32, i32, i32
  }
  func.func @transform_12(%arg0: i32) -> (i32, i32) {
    %c0_i32 = arith.constant 0 : i32
    %c0_i32_0 = arith.constant 0 : i32
    %c0_i32_1 = arith.constant 0 : i32
    return %c0_i32, %c0_i32_0 : i32, i32
  }
  func.func @transform_13(%arg0: i32) -> (i32, i32) {
    %c0_i32 = arith.constant 0 : i32
    %c0_i32_0 = arith.constant 0 : i32
    %c0_i32_1 = arith.constant 0 : i32
    return %c0_i32, %c0_i32_0 : i32, i32
  }
  func.func @transform_14(%arg0: i32) -> (i32, i32, i32) {
    %c0_i32 = arith.constant 0 : i32
    %c0_i32_0 = arith.constant 0 : i32
    %c0_i32_1 = arith.constant 0 : i32
    %c0_i32_2 = arith.constant 0 : i32
    return %c0_i32, %c0_i32_0, %c0_i32_1 : i32, i32, i32
  }
  func.func @transform_15(%arg0: i32) -> (i32, i32) {
    %c0_i32 = arith.constant 0 : i32
    %c0_i32_0 = arith.constant 0 : i32
    %c0_i32_1 = arith.constant 0 : i32
    return %c0_i32, %c0_i32_0 : i32, i32
  }
  func.func @transform_16(%arg0: i32) -> (i32, i32) {
    %c0_i32 = arith.constant 0 : i32
    %c0_i32_0 = arith.constant 0 : i32
    %c0_i32_1 = arith.constant 0 : i32
    return %c0_i32, %c0_i32_0 : i32, i32
  }
  func.func @transform_17(%arg0: i32) -> (i32, i32, i32) {
    %c0_i32 = arith.constant 0 : i32
    %c0_i32_0 = arith.constant 0 : i32
    %c0_i32_1 = arith.constant 0 : i32
    %c0_i32_2 = arith.constant 0 : i32
    return %c0_i32, %c0_i32_0, %c0_i32_1 : i32, i32, i32
  }
  func.func @transform_18(%arg0: i32) -> (i32, i32) {
    %c0_i32 = arith.constant 0 : i32
    %c0_i32_0 = arith.constant 0 : i32
    %c0_i32_1 = arith.constant 0 : i32
    return %c0_i32, %c0_i32_0 : i32, i32
  }
  func.func @transform_19(%arg0: i32) -> (i32, i32) {
    %c0_i32 = arith.constant 0 : i32
    %c0_i32_0 = arith.constant 0 : i32
    %c0_i32_1 = arith.constant 0 : i32
    return %c0_i32, %c0_i32_0 : i32, i32
  }
  func.func @transform_20(%arg0: i32) -> (i32, i32, i32) {
    %c0_i32 = arith.constant 0 : i32
    %c0_i32_0 = arith.constant 0 : i32
    %c0_i32_1 = arith.constant 0 : i32
    %c0_i32_2 = arith.constant 0 : i32
    return %c0_i32, %c0_i32_0, %c0_i32_1 : i32, i32, i32
  }
  func.func @transform_21(%arg0: i32) -> (i32, i32) {
    %c0_i32 = arith.constant 0 : i32
    %c0_i32_0 = arith.constant 0 : i32
    %c0_i32_1 = arith.constant 0 : i32
    return %c0_i32, %c0_i32_0 : i32, i32
  }
  func.func @transform_22(%arg0: i32) -> (i32, i32) {
    %c0_i32 = arith.constant 0 : i32
    %c0_i32_0 = arith.constant 0 : i32
    %c0_i32_1 = arith.constant 0 : i32
    return %c0_i32, %c0_i32_0 : i32, i32
  }
  func.func @transform_23(%arg0: i32) -> (i32, i32) {
    %c0_i32 = arith.constant 0 : i32
    %c0_i32_0 = arith.constant 0 : i32
    %c0_i32_1 = arith.constant 0 : i32
    return %c0_i32, %c0_i32_0 : i32, i32
  }
  func.func @transform_24(%arg0: i32) -> (i32, i32) {
    %c0_i32 = arith.constant 0 : i32
    %c0_i32_0 = arith.constant 0 : i32
    %c0_i32_1 = arith.constant 0 : i32
    return %c0_i32, %c0_i32_0 : i32, i32
  }
  func.func @transform_25(%arg0: i32) -> (i32, i32, i32) {
    %c0_i32 = arith.constant 0 : i32
    %c0_i32_0 = arith.constant 0 : i32
    %c0_i32_1 = arith.constant 0 : i32
    return %arg0, %c0_i32, %c0_i32_0 : i32, i32, i32
  }
}

</mosaic_0001>

<bundles_post_ra>
// kernel: forward.1
= control target key start
LH: loop header
LB: loop body
LE: loop exit
PB: predicated region body
PF: predicated region fallthrough
CT: control target
= control target key end

     0   :  { %s12269_s0 = inlined_call_operand.vmem [shape: f32[2,6,384], index: 0, kind: input, shape index: {}]   ;;  %s12270_s1 = inlined_call_operand.vmem [shape: f32[3,6,1], index: 1, kind: input, shape index: {}]   ;;  %s12271_s2 = inlined_call_operand.vmem [shape: f32[6,1], index: 2, kind: input, shape index: {}]   ;;  %s12272_s3 = inlined_call_operand.vmem [shape: bf16[1,32,6], index: 3, kind: input, shape index: {}]   ;;  %s12273_s4 = inlined_call_operand.vmem [shape: f32[32,1], index: 4, kind: input, shape index: {}]   ;;  %s12274_s5 = inlined_call_operand.vmem [shape: bf16[5,64,32], index: 5, kind: input, shape index: {}]   ;;  %s12275_s6 = inlined_call_operand.vmem [shape: f32[64,1], index: 6, kind: input, shape index: {}]   ;;  %s12276_s7 = inlined_call_operand.vmem [shape: bf16[378,189], index: 7, kind: input, shape index: {}]   ;;  %s12277_s8 = inlined_call_operand.vmem [shape: bf16[3,128,64], index: 8, kind: input, shape index: {}]   ;;  %s12278_s9 = inlined_call_operand.vmem [shape: f32[128,1], index: 9, kind: input, shape index: {}]   ;;  %s12279_s10 = inlined_call_operand.vmem [shape: bf16[187,94], index: 10, kind: input, shape index: {}]   ;;  %s12280_s11 = inlined_call_operand.vmem [shape: bf16[4,128,128], index: 11, kind: input, shape index: {}]   ;;  %s12281_s12 = inlined_call_operand.vmem [shape: f32[128,1], index: 12, kind: input, shape index: {}]   ;;  %s12282_s13 = inlined_call_operand.vmem [shape: bf16[91,46], index: 13, kind: input, shape index: {}]   ;;  %s12283_s14 = inlined_call_operand.vmem [shape: bf16[3,128,128], index: 14, kind: input, shape index: {}]   ;;  %s12284_s15 = inlined_call_operand.vmem [shape: f32[128,1], index: 15, kind: input, shape index: {}]   ;;  %s12285_s16 = inlined_call_operand.vmem [shape: bf16[44,22], index: 16, kind: input, shape index: {}]   ;;  %s12286_s17 = inlined_call_operand.vmem [shape: bf16[4,128,128], index: 17, kind: input, shape index: {}]   ;;  %s12287_s18 = inlined_call_operand.vmem [shape: f32[128,1], index: 18, kind: input, shape index: {}]   ;;  %s12288_s19 = inlined_call_operand.vmem [shape: bf16[19,10], index: 19, kind: input, shape index: {}]   ;;  %s12289_s20 = inlined_call_operand.vmem [shape: bf16[4,256,128], index: 20, kind: input, shape index: {}]   ;;  %s12290_s21 = inlined_call_operand.vmem [shape: f32[256,1], index: 21, kind: input, shape index: {}]   ;;  %s12291_s22 = inlined_call_operand.vmem [shape: bf16[7,4], index: 22, kind: input, shape index: {}]   ;;  %s12292_s23 = inlined_call_operand.vmem [shape: f32[256,4], index: 23, kind: input, shape index: {}]   ;;  %s12293_s24 = inlined_call_operand.<no memory space> [shape: f32[1,1], index: 24, kind: input, shape index: {}]   ;;  %s12294_s25 = inlined_call_operand.vmem [shape: f32[2,1,1], index: 25, kind: output, shape index: {}]  }
   0x1   :  { %12315 = sst [smem:[#allocation12_spill]] %s12269_s0  ;;  %v30_v0 = vstv %s12293_s24 }
   0x2   :  { %12316 = sst [smem:[#allocation13_spill]] %s12270_s1  ;;  %31 = vst [vmem:[#allocation2] sm:$0x1] %v30_v0 }
   0x3   :  { %12317 = sst [smem:[#allocation14_spill]] %s12271_s2 }
   0x4   :  { %12318 = sst [smem:[#allocation15_spill]] %s12272_s3 }
   0x5   :  { %12319 = sst [smem:[#allocation16_spill]] %s12273_s4 }
   0x6   :  { %12320 = sst [smem:[#allocation17_spill]] %s12274_s5 }
   0x7   :  { %12321 = sst [smem:[#allocation18_spill]] %s12275_s6  ;;  %s9719_s6 = smov 0  }
   0x8   :  { %12322 = sst [smem:[#allocation19_spill]] %s12276_s7 }
   0x9   :  { %12323 = sst [smem:[#allocation20_spill]] %s12277_s8 }
   0xa   :  { %12324 = sst [smem:[#allocation21_spill]] %s12278_s9 }
   0xb   :  { %12325 = sst [smem:[#allocation22_spill]] %s12279_s10 }
   0xc LB: > { %s7738_s30 = sadd.s32 4294967295, %s9578_s6   ;;  %p7742_p0 = scmp.ge.s32.totalorder %s9578_s6, 1  ;;  %s9578_s6 = sphi %s9719_s6, %s37_s6  }
   0xd   : > { %p689_p1 = scmp.lt.s32.totalorder %s9578_s6, 3 }
   0xf   : > { %p690_p2 = pnand %p7742_p0, %p689_p1 }
  0x11   : > { %693 = sbr.rel (%p690_p2) target bundleno = 4415 (0x113f), region = 120 }
  0x16   : > { %s12326_s26 = sld [smem:[#allocation13_spill]]  ;;  %v9580_v2 = vmov 0   ;;  %p755_p3 = scmp.lt.s32.totalorder %s7738_s30, 1  ;;  %vm795_vm0 = vcmask 1039360   ;;  %vm823_vm1 = vcmask 1031168   ;;  %vm889_vm2 = vcmask 1042432  }
  0x17   : > { %9569 = vset.pattern.permute.xlu0 %v9580_v2  ;;  %9570 = vset.pattern.permute.xlu1 %v9580_v2  ;;  %s12327_s5 = sld [smem:[#allocation12_spill]]  ;;  %s12305_s29 = smov 127   ;;  %vm882_vm3 = vcmask 48128  }
  0x18   : > { %9571 = vset.pattern.permute.xlu2 %v9580_v2  ;;  %s12359_s30 = smov (!%p755_p3, %s7738_s30), 1  ;;  %s12303_s2 = smov 126  }
  0x19   : > { %s9554_s4 = smul.u32 24, %s12359_s30  ;;  %s12328_s24 = sld [smem:[#allocation14_spill]] }
  0x1a   : > { %s12329_s27 = sld [smem:[#allocation16_spill]]  ;;  %s12307_s28 = smov 125  }
  0x1b   : > { %s12330_s1 = sld [smem:[#allocation15_spill]]  ;;  %s9584_s9 = smov 124  }
  0x1c   : > { %v7744_v1 = vld [vmem:[%s12326_s26 + $0x8] sm:$0x3f]  ;;  %v767_v3 = vld [vmem:[%s12326_s26] sm:$0x3f]  ;;  %v7745_v4 = vld [vmem:[%s12326_s26 + $0x10] sm:$0x3f] }
  0x1d   : > { %780 = vperm.xlu0 %9569, %v7744_v1   ;;  %770 = vperm.xlu1 %9570, %v767_v3   ;;  %s759_s0 = scalar_lea.vmem %s12327_s5, %s9554_s4  ;;  %s12331_s7 = sld [smem:[#allocation18_spill]] }
  0x1e   : > { %v765_v5 = vld [vmem:[%s759_s0 + $0x8] sm:$0x3f]  ;;  %v764_v6 = vld [vmem:[%s759_s0] sm:$0x3f]  ;;  %v766_v10 = vld [vmem:[%s759_s0 + $0x10] sm:$0x3f] }
  0x1f   : > { %v832_v15 = vld [vmem:[%s12328_s24] sm:$0x3f]  ;;  %s12355_s24 = sld [smem:[#allocation20_spill]]  ;;  %s12357_s8 = smov 125  }
  0x20   : > { %v850_v17 = vld [vmem:[%s12329_s27 + $0x10] sm:$0xff]  ;;  %v848_v18 = vld [vmem:[%s12329_s27] sm:$0xff]  ;;  %v849_v19 = vld [vmem:[%s12329_s27 + $0x8] sm:$0xff]  ;;  %s12356_s10 = sld [smem:[#allocation22_spill]] }
  0x21   : > { %v851_v30 = vld [vmem:[%s12329_s27 + $0x18] sm:$0xff]  ;;  %v9278_v51 = vld [vmem:[%s12330_s1] sm:$0xff]  ;;  %v9279_v52 = vld [vmem:[%s12330_s1 + $0x8] sm:$0xff]  ;;  %s12352_s1 = smov 127  }
  0x25   : > { %808 = vperm.xlu0 %9569, %v7745_v4  }
  0x8f   : > { %v781_v7 = vpop.permute.xlu0 %780  ;;  %v771_v21 = vpop.permute.xlu1 %770 }
  0x90   : > { %v784_v8 = vmul.f32 %v781_v7, %v765_v5  ;;  %v783_v9 = vmul.f32 %v781_v7, %v764_v6  ;;  %v785_v12 = vmul.f32 %v781_v7, %v766_v10  ;;  %v774_v25 = vmul.f32 %v771_v21, %v765_v5 }
  0x91   : > { %v775_v26 = vmul.f32 %v771_v21, %v766_v10  ;;  %v773_v32 = vmul.f32 %v771_v21, %v764_v6 }
  0x92   : > { %791 = vrot.lane.b32.xlu2 %v784_v8, %s12305_s29  ;;  %789 = vrot.lane.b32.xlu1 %v783_v9, %s12305_s29 }
  0x97   : > { %v809_v11 = vpop.permute.xlu0 %808 }
  0x98   : > { %v811_v13 = vmul.f32 %v809_v11, %v764_v6  ;;  %v812_v14 = vmul.f32 %v809_v11, %v765_v5  ;;  %v813_v16 = vmul.f32 %v809_v11, %v766_v10 }
  0x9a   : > { %793 = vrot.lane.b32.xlu2 %v785_v12, %s12305_s29  ;;  %817 = vrot.lane.b32.xlu0 %v811_v13, %s12303_s2 }
  0x9b   : > { %819 = vrot.lane.b32.xlu1 %v812_v14, %s12303_s2 }
  0xa2   : > { %821 = vrot.lane.b32.xlu2 %v813_v16, %s12303_s2  ;;  %835 = vperm.xlu0 %9569, %v832_v15  }
  0xa3   : > { %864 = vperm.xlu1 %9570, %v850_v17  }
  0xaa   : > { %854 = vperm.xlu0 %9569, %v848_v18   ;;  %869 = vperm.xlu2 %9571, %v851_v30  }
  0xab   : > { %859 = vperm.xlu1 %9570, %v849_v19  }
  0xec   : > { %v792_v20 = vpop.permute.xlu2 %791 }
  0xf4   : > { %v794_v23 = vpop.permute.xlu2 %793 }
  0xf5   : > { %v797_v28 = vsel %vm795_vm0, %v792_v20, %v794_v23  ;;  %v803_v36 = vadd.f32 %v794_v23, %v775_v26 }
  0xf6   : > { %v802_v35 = vadd.f32 %v797_v28, %v774_v25 }
  0xfc   : > { %v822_v31 = vpop.permute.xlu2 %821 }
  0xfd   : > { %v831_v38 = vadd.f32 %v822_v31, %v803_v36 }
 0x104   : > { %v790_v22 = vpop.permute.xlu1 %789 }
 0x105   : > { %v796_v29 = vsel %vm795_vm0, %v790_v22, %v792_v20 }
 0x106   : > { %v801_v37 = vadd.f32 %v796_v29, %v773_v32  ;;  %v870_v29 = vpop.permute.xlu2 %869 }
 0x10c   : > { %v818_v24 = vpop.permute.xlu0 %817 }
 0x10d   : > { %v820_v27 = vpop.permute.xlu1 %819 }
 0x10e   : > { %v824_v33 = vsel %vm823_vm1, %v818_v24, %v820_v27  ;;  %v825_v34 = vsel %vm823_vm1, %v820_v27, %v822_v31 }
 0x10f   : > { %v829_v39 = vadd.f32 %v824_v33, %v801_v37  ;;  %v830_v40 = vadd.f32 %v825_v34, %v802_v35 }
 0x114   : > { %v836_v41 = vpop.permute.xlu0 %835 }
 0x115   : > { %v838_v42 = vadd.f32 %v836_v41, %v829_v39  ;;  %v839_v43 = vadd.f32 %v836_v41, %v830_v40  ;;  %v840_v44 = vadd.f32 %v836_v41, %v831_v38  ;;  %v865_v53 = vpop.permute.xlu1 %864 }
 0x117   : > { %v841_v45 = vpack.c.bf16 %v838_v42, %v838_v42  ;;  %v842_v46 = vpack.c.bf16 %v839_v43, %v839_v43  ;;  %v843_v47 = vpack.c.bf16 %v840_v44, %v840_v44 }
 0x119   : > { %v891_v48 = vsel %vm889_vm2, %v841_v45, 0  ;;  %v894_v49 = vsel %vm889_vm2, %v842_v46, 0  ;;  %v897_v50 = vsel %vm889_vm2, %v843_v47, 0 }
 0x11a   : > { %906 = vmatpush.bf16.msra.mxu0 %v891_v48  ;;  %925 = vmatpush.bf16.msra.mxu1 %v894_v49 }
 0x11b   : > { %944 = vmatpush.bf16.msra.mxu2 %v897_v50 }
 0x11c   : > { %v855_v54 = vpop.permute.xlu0 %854 }
 0x11d   : > { %7754 = vmatmul.msk.bf16.vlgmr.msra.gmra.mxu0 %vm882_vm3, %v9278_v51  ;;  %7756 = vmatmul.msk.bf16.vlgmr.msra.gmra.mxu1 %vm882_vm3, %v9278_v51  ;;  %v860_v61 = vpop.permute.xlu1 %859 }
 0x11e   : > { %7758 = vmatmul.msk.bf16.vlgmr.msra.gmra.mxu2 %vm882_vm3, %v9278_v51 }
 0x12d   : > { %7755 = vmatmul.msk.bf16.gmra.mxu0 %vm882_vm3, %v9279_v52  ;;  %7757 = vmatmul.msk.bf16.gmra.mxu1 %vm882_vm3, %v9279_v52 }
 0x12e   : > { %7759 = vmatmul.msk.bf16.gmra.mxu2 %vm882_vm3, %v9279_v52  ;;  %vm1086_vm3 = vcmask 261120  }
 0x19a   : > { %v908_v55 = vpop.f32.mrf.mxu0  ;;  %v927_v56 = vpop.f32.mrf.mxu1 }
 0x19b   : > { %v909_v57 = vadd.f32 %v908_v55, %v855_v54  ;;  %v928_v58 = vadd.f32 %v927_v56, %v855_v54 }
 0x19d   : > { %v968_v59 = vmul.f32 0.2, %v909_v57  ;;  %vm956_vm4 = vcmp.ge.f32.partialorder %v909_v57, 0.0  ;;  %v969_v60 = vmul.f32 0.2, %v928_v58  ;;  %vm957_vm5 = vcmp.ge.f32.partialorder %v928_v58, 0.0 }
 0x19f   : > { %v980_v63 = vsel %vm956_vm4, %v909_v57, %v968_v59  ;;  %v981_v2 = vsel %vm957_vm5, %v928_v58, %v969_v60  ;;  %vm1527_vm4 = vcmask 1022976   ;;  %vm1702_vm5 = vcmask 1014784  }
 0x1a0   : > { %v9776_v8 = vpack.c.bf16 %v981_v2, %v980_v63 }
 0x1a1   : > { %v946_v62 = vpop.f32.mrf.mxu2 }
 0x1a2   : > { %v910_v0 = vpop.f32.mrf.mxu0  ;;  %v929_v1 = vpop.f32.mrf.mxu1  ;;  %v947_v3 = vadd.f32 %v946_v62, %v855_v54  ;;  %v1045_v14 = vunpack.c.l.b16 %v9776_v8  ;;  %v1046_v63 = vunpack.c.h.b16 %v9776_v8  ;;  %v1901_v8 = vld [vmem:[%s12331_s7 + $0x28] sm:$0xff] }
 0x1a3   : > { %v911_v4 = vadd.f32 %v910_v0, %v860_v61  ;;  %v930_v5 = vadd.f32 %v929_v1, %v860_v61 }
 0x1a4   : > { %v970_v9 = vmul.f32 0.2, %v947_v3  ;;  %vm958_vm8 = vcmp.ge.f32.partialorder %v947_v3, 0.0 }
 0x1a5   : > { %vm959_vm6 = vcmp.ge.f32.partialorder %v911_v4, 0.0  ;;  %v971_v6 = vmul.f32 0.2, %v911_v4  ;;  %vm960_vm7 = vcmp.ge.f32.partialorder %v930_v5, 0.0  ;;  %v972_v7 = vmul.f32 0.2, %v930_v5 }
 0x1a6   : > { %v982_v19 = vsel %vm958_vm8, %v947_v3, %v970_v9  ;;  %v1900_v3 = vld [vmem:[%s12331_s7 + $0x20] sm:$0xff]  ;;  %v1897_v9 = vld [vmem:[%s12331_s7 + $0x8] sm:$0xff] }
 0x1a7   : > { %v983_v10 = vsel %vm959_vm6, %v911_v4, %v971_v6  ;;  %v984_v11 = vsel %vm960_vm7, %v930_v5, %v972_v7  ;;  %v993_v26 = vpack.c.bf16 %v982_v19, %v982_v19  ;;  %v1899_v4 = vld [vmem:[%s12331_s7 + $0x18] sm:$0xff]  ;;  %v1902_v6 = vld [vmem:[%s12331_s7 + $0x30] sm:$0xff]  ;;  %vm2195_vm6 = vcmask 1044480  }
 0x1a8   : > { %v9778_v12 = vpack.c.bf16 %v984_v11, %v983_v10  ;;  %v1903_v5 = vld [vmem:[%s12331_s7 + $0x38] sm:$0xff]  ;;  %v1898_v7 = vld [vmem:[%s12331_s7 + $0x10] sm:$0xff]  ;;  %v1896_v10 = vld [vmem:[%s12331_s7] sm:$0xff]  ;;  %vm2182_vm7 = vcmask 998400   ;;  %s12353_s7 = smov 126  }
 0x1a9   : > { %v948_v13 = vpop.f32.mrf.mxu2  ;;  %v1047_v34 = vunpack.c.l.b16 %v993_v26 }
 0x1aa   : > { %v1048_v15 = vunpack.c.l.b16 %v9778_v12  ;;  %v949_v16 = vadd.f32 %v948_v13, %v860_v61  ;;  %v913_v17 = vpop.f32.mrf.mxu0  ;;  %v932_v18 = vpop.f32.mrf.mxu1  ;;  %v1049_v61 = vunpack.c.h.b16 %v9778_v12 }
 0x1ab   : > { %v914_v20 = vadd.f32 %v913_v17, %v865_v53  ;;  %v933_v21 = vadd.f32 %v932_v18, %v865_v53 }
 0x1ac   : > { %v9782_v22 = vpack.c.b16 %v1048_v15, %v1045_v14  ;;  %vm961_vm9 = vcmp.ge.f32.partialorder %v949_v16, 0.0  ;;  %v973_v23 = vmul.f32 0.2, %v949_v16  ;;  %v9799_v1 = vpack.c.b16 %v1049_v61, %v1046_v63 }
 0x1ad   : > { %v974_v24 = vmul.f32 0.2, %v914_v20  ;;  %v975_v25 = vmul.f32 0.2, %v933_v21  ;;  %vm962_vm10 = vcmp.ge.f32.partialorder %v914_v20, 0.0  ;;  %vm963_vm11 = vcmp.ge.f32.partialorder %v933_v21, 0.0 }
 0x1ae   : > { %v985_v27 = vsel %vm961_vm9, %v949_v16, %v973_v23  ;;  %1063 = vrot.lane.b32.xlu1 %v9782_v22, %s12305_s29 }
 0x1af   : > { %v995_v28 = vpack.c.bf16 %v985_v27, %v985_v27  ;;  %v986_v31 = vsel %vm962_vm10, %v914_v20, %v974_v24  ;;  %v987_v32 = vsel %vm963_vm11, %v933_v21, %v975_v25 }
 0x1b0   : > { %v996_v41 = vpack.c.bf16 %v987_v32, %v986_v31 }
 0x1b1   : > { %v1050_v30 = vunpack.c.l.b16 %v995_v28  ;;  %v951_v33 = vpop.f32.mrf.mxu2 }
 0x1b2   : > { %v915_v35 = vpop.f32.mrf.mxu0  ;;  %v934_v36 = vpop.f32.mrf.mxu1  ;;  %v952_v37 = vadd.f32 %v951_v33, %v865_v53  ;;  %v1051_v48 = vunpack.c.l.b16 %v996_v41  ;;  %v1052_v50 = vunpack.c.h.b16 %v996_v41 }
 0x1b3   : > { %v916_v38 = vadd.f32 %v915_v35, %v870_v29  ;;  %v935_v39 = vadd.f32 %v934_v36, %v870_v29  ;;  %v9786_v40 = vpack.c.b16 %v1050_v30, %v1047_v34 }
 0x1b4   : > { %v976_v44 = vmul.f32 0.2, %v952_v37  ;;  %vm964_vm14 = vcmp.ge.f32.partialorder %v952_v37, 0.0 }
 0x1b5   : > { %vm965_vm12 = vcmp.ge.f32.partialorder %v916_v38, 0.0  ;;  %v977_v42 = vmul.f32 0.2, %v916_v38  ;;  %vm966_vm13 = vcmp.ge.f32.partialorder %v935_v39, 0.0  ;;  %v978_v43 = vmul.f32 0.2, %v935_v39 }
 0x1b6   : > { %1067 = vrot.lane.b32.xlu1 %v9786_v40, %s12305_s29  ;;  %v988_v54 = vsel %vm964_vm14, %v952_v37, %v976_v44 }
 0x1b7   : > { %v989_v45 = vsel %vm965_vm12, %v916_v38, %v977_v42  ;;  %v990_v46 = vsel %vm966_vm13, %v935_v39, %v978_v43  ;;  %v997_v58 = vpack.c.bf16 %v988_v54, %v988_v54 }
 0x1b8   : > { %v998_v47 = vpack.c.bf16 %v990_v46, %v989_v45 }
 0x1b9   : > { %v953_v49 = vpop.f32.mrf.mxu2  ;;  %v1053_v0 = vunpack.c.l.b16 %v997_v58 }
 0x1ba   : > { %v1054_v51 = vunpack.c.l.b16 %v998_v47  ;;  %v1055_v52 = vunpack.c.h.b16 %v998_v47  ;;  %v954_v53 = vadd.f32 %v953_v49, %v870_v29 }
 0x1bc   : > { %v1060_v55 = vpack.c.b16 %v1054_v51, %v1051_v48  ;;  %v9790_v56 = vpack.c.b16 %v1055_v52, %v1052_v50  ;;  %vm967_vm15 = vcmp.ge.f32.partialorder %v954_v53, 0.0  ;;  %v979_v57 = vmul.f32 0.2, %v954_v53 }
 0x1be   : > { %v991_v59 = vsel %vm967_vm15, %v954_v53, %v979_v57  ;;  %1071 = vrot.lane.b32.xlu0 %v9790_v56, %s12305_s29  ;;  %1069 = vrot.lane.b32.xlu2 %v1060_v55, %s12305_s29 }
 0x1bf   : > { %v999_v60 = vpack.c.bf16 %v991_v59, %v991_v59  ;;  %1230 = vmatpush.bf16.msrb.mxu2 %v1060_v55  ;;  %1346 = vrot.lane.b32.xlu1 %v1060_v55, %s12303_s2 }
 0x1c1   : > { %v1056_v62 = vunpack.c.l.b16 %v999_v60 }
 0x1c3   : > { %1231 = vmatpush.bf16.msrb.mxu2 %v9782_v22  ;;  %v9801_v2 = vpack.c.b16 %v1056_v62, %v1053_v0 }
 0x1c6   : > { %1073 = vrot.lane.b32.xlu0 %v9801_v2, %s12305_s29  ;;  %1065 = vrot.lane.b32.xlu2 %v9799_v1, %s12305_s29 }
 0x1c7   : > { %1523 = vrot.lane.b32.xlu1 %v9790_v56, %s12307_s28 }
 0x1ce   : > { %1344 = vrot.lane.b32.xlu0 %v9786_v40, %s12303_s2  ;;  %1348 = vrot.lane.b32.xlu2 %v9790_v56, %s12303_s2 }
 0x1cf   : > { %1515 = vrot.lane.b32.xlu1 %v9782_v22, %s12307_s28 }
 0x1d6   : > { %1521 = vrot.lane.b32.xlu0 %v1060_v55, %s12307_s28  ;;  %1350 = vrot.lane.b32.xlu2 %v9801_v2, %s12303_s2 }
 0x1d7   : > { %1698 = vrot.lane.b32.xlu1 %v9790_v56, %s9584_s9 }
 0x1de   : > { %1342 = vrot.lane.b32.xlu0 %v9799_v1, %s12303_s2  ;;  %1340 = vrot.lane.b32.xlu2 %v9782_v22, %s12303_s2  ;;  %s12332_s2 = sld [smem:[#allocation17_spill]] }
 0x1df   : > { %1525 = vrot.lane.b32.xlu1 %v9801_v2, %s12307_s28 }
 0x1e4   : > { %v9860_v12 = vld [vmem:[%s12332_s2] sm:$0xff]  ;;  %v9867_v17 = vld [vmem:[%s12332_s2 + $0x8] sm:$0xff]  ;;  %v9881_v26 = vld [vmem:[%s12332_s2 + $0x10] sm:$0xff] }
 0x1e5   : > { %7812 = vmatmul.msk.bf16.vlgmr.msrb.gmra.mxu2 %vm1086_vm3, %v9860_v12  ;;  %v9284_v24 = vld [vmem:[%s12332_s2 + $0x20] sm:$0xff]  ;;  %v9285_v34 = vld [vmem:[%s12332_s2 + $0x28] sm:$0xff]  ;;  %v9900_v36 = vld [vmem:[%s12332_s2 + $0x18] sm:$0xff] }
 0x1e6   : > { %1696 = vrot.lane.b32.xlu0 %v1060_v55, %s9584_s9  ;;  %1517 = vrot.lane.b32.xlu2 %v9799_v1, %s12307_s28  ;;  %v9286_v46 = vld [vmem:[%s12332_s2 + $0x30] sm:$0xff]  ;;  %v9288_v48 = vld [vmem:[%s12332_s2 + $0x40] sm:$0xff] }
 0x1e7   : > { %1694 = vrot.lane.b32.xlu1 %v9786_v40, %s9584_s9  ;;  %v9287_v50 = vld [vmem:[%s12332_s2 + $0x38] sm:$0xff]  ;;  %v9289_v53 = vld [vmem:[%s12332_s2 + $0x48] sm:$0xff]  ;;  %v9292_v63 = vld [vmem:[%s12332_s2 + $0x60] sm:$0xff] }
 0x1e8   : > { %v9291_v62 = vld [vmem:[%s12332_s2 + $0x58] sm:$0xff] }
 0x1ee   : > { %1692 = vrot.lane.b32.xlu0 %v9799_v1, %s9584_s9  ;;  %1690 = vrot.lane.b32.xlu2 %v9782_v22, %s9584_s9 }
 0x1ef   : > { %1926 = vperm.xlu1 %9570, %v1900_v3  }
 0x1f5   : > { %7813 = vmatmul.msk.bf16.gmra.mxu2 %vm1086_vm3, %v9867_v17 }
 0x1f6   : > { %1519 = vrot.lane.b32.xlu0 %v9786_v40, %s12307_s28  ;;  %1700 = vrot.lane.b32.xlu2 %v9801_v2, %s9584_s9  ;;  %s12335_s9 = sld [smem:[#allocation19_spill]] }
 0x1f7   : > { %1921 = vperm.xlu1 %9570, %v1899_v4   ;;  %v9294_v4 = vld [vmem:[%s12332_s2 + $0x70] sm:$0xff]  ;;  %s12354_s28 = sld [smem:[#allocation21_spill]] }
 0x1fe   : > { %1941 = vperm.xlu0 %9569, %v1903_v5   ;;  %1936 = vperm.xlu2 %9571, %v1902_v6  }
 0x205   : > { %7814 = vmatmul.msk.bf16.gmra.mxu2 %vm1086_vm3, %v9881_v26 }
 0x206   : > { %1916 = vperm.xlu0 %9569, %v1898_v7   ;;  %1931 = vperm.xlu2 %9571, %v1901_v8  }
 0x20e   : > { %1911 = vperm.xlu0 %9569, %v1897_v9   ;;  %1906 = vperm.xlu2 %9571, %v1896_v10  }
 0x215   : > { %7815 = vmatmul.msk.bf16.gmra.mxu2 %vm1086_vm3, %v9900_v36 }
 0x218   : > { %v1070_v11 = vpop.permute.xlu2 %1069 }
 0x220   : > { %v1066_v13 = vpop.permute.xlu2 %1065  ;;  %v1064_v14 = vpop.permute.xlu1 %1063 }
 0x221   : > { %v1076_v23 = vsel %vm795_vm0, %v1064_v14, %v1066_v13 }
 0x228   : > { %v1349_v15 = vpop.permute.xlu2 %1348  ;;  %v1068_v16 = vpop.permute.xlu1 %1067 }
 0x229   : > { %v1077_v30 = vsel %vm795_vm0, %v1066_v13, %v1068_v16  ;;  %v9295_v13 = vld [vmem:[%s12332_s2 + $0x78] sm:$0xff] }
 0x230   : > { %v1072_v18 = vpop.permute.xlu0 %1071  ;;  %v1351_v19 = vpop.permute.xlu2 %1350 }
 0x231   : > { %v1347_v20 = vpop.permute.xlu1 %1346  ;;  %v1078_v21 = vsel %vm795_vm0, %v1070_v11, %v1072_v18  ;;  %v1356_v22 = vsel %vm823_vm1, %v1349_v15, %v1351_v19 }
 0x232   : > { %1105 = vmatpush.bf16.msra.mxu3 %v1078_v21  ;;  %1410 = vmatpush.bf16.msra.mxu2 %v1356_v22  ;;  %v1355_v29 = vsel %vm823_vm1, %v1347_v20, %v1349_v15 }
 0x236   : > { %1106 = vmatpush.bf16.msra.mxu3 %v1076_v23 }
 0x238   : > { %v1074_v25 = vpop.permute.xlu0 %1073  ;;  %v1341_v31 = vpop.permute.xlu2 %1340 }
 0x239   : > { %v1524_v27 = vpop.permute.xlu1 %1523  ;;  %7784 = vmatmul.msk.bf16.vlgmr.msra.gmra.mxu3 %vm1086_vm3, %v9284_v24  ;;  %1163 = vmatpush.bf16.msrb.mxu1 %v1074_v25  ;;  %v1079_v28 = vsel %vm795_vm0, %v1072_v18, %v1074_v25 }
 0x23a   : > { %1259 = vmatpush.bf16.msrb.mxu3 %v9790_v56  ;;  %1134 = vmatpush.bf16.msrb.mxu0 %v1079_v28  ;;  %v9290_v56 = vld [vmem:[%s12332_s2 + $0x50] sm:$0xff] }
 0x23d   : > { %1164 = vmatpush.bf16.msrb.mxu1 %v1068_v16 }
 0x23e   : > { %1260 = vmatpush.bf16.msrb.mxu3 %v9799_v1  ;;  %1135 = vmatpush.bf16.msrb.mxu0 %v1077_v30  ;;  %v9293_v1 = vld [vmem:[%s12332_s2 + $0x68] sm:$0xff] }
 0x240   : > { %v1345_v32 = vpop.permute.xlu0 %1344  ;;  %7792 = vmatmul.msk.bf16.vlgmr.msrb.gmra.mxu1 %vm1086_vm3, %v9284_v24  ;;  %v1518_v39 = vpop.permute.xlu2 %1517 }
 0x241   : > { %1381 = vmatpush.bf16.msra.mxu1 %v1355_v29  ;;  %v1516_v33 = vpop.permute.xlu1 %1515  ;;  %7788 = vmatmul.msk.bf16.vlgmr.msrb.gmra.mxu0 %vm1086_vm3, %v9284_v24 }
 0x242   : > { %1439 = vmatpush.bf16.msra.mxu3 %v1351_v19  ;;  %1288 = vmatpush.bf16.msra.mxu0 %v9801_v2 }
 0x246   : > { %1440 = vmatpush.bf16.msra.mxu3 %v1345_v32  ;;  %1289 = vmatpush.bf16.msra.mxu0 %v9786_v40  ;;  %v1528_v40 = vsel %vm1527_vm4, %v1516_v33, %v1518_v39 }
 0x248   : > { %v1522_v35 = vpop.permute.xlu0 %1521  ;;  %v1691_v54 = vpop.permute.xlu2 %1690 }
 0x249   : > { %v1530_v37 = vsel %vm1527_vm4, %v1522_v35, %v1524_v27  ;;  %v1699_v38 = vpop.permute.xlu1 %1698  ;;  %7785 = vmatmul.msk.bf16.gmra.mxu3 %vm1086_vm3, %v9285_v34 }
 0x24a   : > { %1556 = vmatpush.bf16.msrb.mxu0 %v1530_v37 }
 0x24e   : > { %1557 = vmatpush.bf16.msrb.mxu0 %v1528_v40 }
 0x250   : > { %v1343_v41 = vpop.permute.xlu0 %1342  ;;  %7793 = vmatmul.msk.bf16.gmra.mxu1 %vm1086_vm3, %v9285_v34  ;;  %v1701_v58 = vpop.permute.xlu2 %1700 }
 0x251   : > { %v1526_v42 = vpop.permute.xlu1 %1525  ;;  %7789 = vmatmul.msk.bf16.gmra.mxu0 %vm1086_vm3, %v9285_v34  ;;  %v1353_v43 = vsel %vm823_vm1, %v1341_v31, %v1343_v41  ;;  %v1354_v44 = vsel %vm823_vm1, %v1343_v41, %v1345_v32  ;;  %v1706_v59 = vsel %vm1702_vm5, %v1699_v38, %v1701_v58 }
 0x252   : > { %1382 = vmatpush.bf16.msra.mxu1 %v1353_v43  ;;  %1411 = vmatpush.bf16.msra.mxu2 %v1354_v44  ;;  %v1531_v45 = vsel %vm1527_vm4, %v1524_v27, %v1526_v42 }
 0x255   : > { %7852 = vmatmul.msk.bf16.vlgmr.msra.gmra.mxu2 %vm1086_vm3, %v9288_v48 }
 0x256   : > { %1585 = vmatpush.bf16.msrb.mxu1 %v1531_v45  ;;  %1614 = vmatpush.bf16.msrb.mxu2 %v1526_v42 }
 0x258   : > { %v1697_v47 = vpop.permute.xlu0 %1696 }
 0x259   : > { %7786 = vmatmul.msk.bf16.gmra.mxu3 %vm1086_vm3, %v9286_v46  ;;  %v1705_v55 = vsel %vm1702_vm5, %v1697_v47, %v1699_v38  ;;  %v1695_v60 = vpop.permute.xlu1 %1694 }
 0x260   : > { %v1693_v49 = vpop.permute.xlu0 %1692  ;;  %7794 = vmatmul.msk.bf16.gmra.mxu1 %vm1086_vm3, %v9286_v46 }
 0x261   : > { %7790 = vmatmul.msk.bf16.gmra.mxu0 %vm1086_vm3, %v9286_v46  ;;  %v1703_v57 = vsel %vm1702_vm5, %v1691_v54, %v1693_v49  ;;  %v1704_v61 = vsel %vm1702_vm5, %v1693_v49, %v1695_v60 }
 0x265   : > { %7853 = vmatmul.msk.bf16.gmra.mxu2 %vm1086_vm3, %v9289_v53 }
 0x268   : > { %v1520_v51 = vpop.permute.xlu0 %1519  ;;  %v1233_v0 = vpop.f32.mrf.mxu2 }
 0x269   : > { %7787 = vmatmul.msk.bf16.gmra.mxu3 %vm1086_vm3, %v9287_v50  ;;  %1615 = vmatpush.bf16.msrb.mxu2 %v1520_v51  ;;  %v1529_v52 = vsel %vm1527_vm4, %v1518_v39, %v1520_v51  ;;  %v9296_v39 = vld [vmem:[%s12332_s2 + $0x80] sm:$0xff] }
 0x26a   : > { %1586 = vmatpush.bf16.msrb.mxu1 %v1529_v52  ;;  %v9297_v52 = vld [vmem:[%s12332_s2 + $0x88] sm:$0xff] }
 0x270   : > { %7795 = vmatmul.msk.bf16.gmra.mxu1 %vm1086_vm3, %v9287_v50  ;;  %v9969_v2 = vpop.f32.mrf.mxu2 }
 0x271   : > { %7791 = vmatmul.msk.bf16.gmra.mxu0 %vm1086_vm3, %v9287_v50 }
 0x275   : > { %7854 = vmatmul.msk.bf16.gmra.mxu2 %vm1086_vm3, %v9290_v56 }
 0x278   : > { %v1238_v3 = vpop.f32.mrf.mxu2 }
 0x279   : > { %7816 = vmatmul.msk.bf16.vlgmr.msrb.gmra.mxu3 %vm1086_vm3, %v9860_v12 }
 0x27a   : > { %1731 = vmatpush.bf16.msrb.mxu3 %v1705_v55 }
 0x27e   : > { %1732 = vmatpush.bf16.msrb.mxu3 %v1703_v57 }
 0x280   : > { %7848 = vmatmul.msk.bf16.vlgmr.msra.gmra.mxu1 %vm1086_vm3, %v9288_v48  ;;  %v9981_v9 = vpop.f32.mrf.mxu2 }
 0x281   : > { %1789 = vmatpush.bf16.msra.mxu1 %v1701_v58  ;;  %7820 = vmatmul.msk.bf16.vlgmr.msra.gmra.mxu0 %vm1086_vm3, %v9860_v12 }
 0x282   : > { %1760 = vmatpush.bf16.msra.mxu0 %v1706_v59 }
 0x285   : > { %1790 = vmatpush.bf16.msra.mxu1 %v1695_v60  ;;  %7855 = vmatmul.msk.bf16.gmra.mxu2 %vm1086_vm3, %v9291_v62 }
 0x286   : > { %1761 = vmatpush.bf16.msra.mxu0 %v1704_v61 }
 0x288   : > { %v1243_v14 = vpop.f32.mrf.mxu2 }
 0x289   : > { %7817 = vmatmul.msk.bf16.gmra.mxu3 %vm1086_vm3, %v9867_v17 }
 0x290   : > { %7849 = vmatmul.msk.bf16.gmra.mxu1 %vm1086_vm3, %v9289_v53  ;;  %v9999_v20 = vpop.f32.mrf.mxu2 }
 0x291   : > { %7821 = vmatmul.msk.bf16.gmra.mxu0 %vm1086_vm3, %v9867_v17 }
 0x295   : > { %7892 = vmatmul.msk.bf16.vlgmr.msrb.gmra.mxu2 %vm1086_vm3, %v9292_v63 }
 0x298   : > { %v1248_v27 = vpop.f32.mrf.mxu2 }
 0x299   : > { %7818 = vmatmul.msk.bf16.gmra.mxu3 %vm1086_vm3, %v9881_v26 }
 0x2a0   : > { %7850 = vmatmul.msk.bf16.gmra.mxu1 %vm1086_vm3, %v9290_v56  ;;  %v10014_v31 = vpop.f32.mrf.mxu2 }
 0x2a1   : > { %7822 = vmatmul.msk.bf16.gmra.mxu0 %vm1086_vm3, %v9881_v26 }
 0x2a5   : > { %7893 = vmatmul.msk.bf16.gmra.mxu2 %vm1086_vm3, %v9293_v1 }
 0x2a9   : > { %7819 = vmatmul.msk.bf16.gmra.mxu3 %vm1086_vm3, %v9900_v36 }
 0x2b0   : > { %7851 = vmatmul.msk.bf16.gmra.mxu1 %vm1086_vm3, %v9291_v62 }
 0x2b1   : > { %7823 = vmatmul.msk.bf16.gmra.mxu0 %vm1086_vm3, %v9900_v36 }
 0x2b5   : > { %7894 = vmatmul.msk.bf16.gmra.mxu2 %vm1086_vm3, %v9294_v4 }
 0x2b9   : > { %7856 = vmatmul.msk.bf16.vlgmr.msra.gmra.mxu3 %vm1086_vm3, %v9288_v48 }
 0x2bc   : > { %v1108_v5 = vpop.f32.mrf.mxu3 }
 0x2bd   : > { %v1234_v6 = vadd.f32 %v1233_v0, %v1108_v5  ;;  %v1166_v7 = vpop.f32.mrf.mxu1  ;;  %v9298_v0 = vld [vmem:[%s12332_s2 + $0x90] sm:$0xff] }
 0x2be   : > { %v1137_v8 = vpop.f32.mrf.mxu0 }
 0x2c0   : > { %7888 = vmatmul.msk.bf16.vlgmr.msrb.gmra.mxu1 %vm1086_vm3, %v9292_v63 }
 0x2c1   : > { %7884 = vmatmul.msk.bf16.vlgmr.msrb.gmra.mxu0 %vm1086_vm3, %v9292_v63 }
 0x2c4   : > { %v9984_v10 = vpop.f32.mrf.mxu3 }
 0x2c5   : > { %v9986_v11 = vpop.f32.mrf.mxu1  ;;  %7895 = vmatmul.msk.bf16.gmra.mxu2 %vm1086_vm3, %v9295_v13 }
 0x2c6   : > { %v9988_v12 = vpop.f32.mrf.mxu0 }
 0x2c9   : > { %7857 = vmatmul.msk.bf16.gmra.mxu3 %vm1086_vm3, %v9289_v53 }
 0x2cc   : > { %v1113_v15 = vpop.f32.mrf.mxu3 }
 0x2cd   : > { %v1239_v16 = vadd.f32 %v1238_v3, %v1113_v15  ;;  %v1171_v17 = vpop.f32.mrf.mxu1 }
 0x2ce   : > { %v1142_v18 = vpop.f32.mrf.mxu0 }
 0x2d0   : > { %7889 = vmatmul.msk.bf16.gmra.mxu1 %vm1086_vm3, %v9293_v1 }
 0x2d1   : > { %7885 = vmatmul.msk.bf16.gmra.mxu0 %vm1086_vm3, %v9293_v1 }
 0x2d4   : > { %v9997_v19 = vpop.f32.mrf.mxu3 }
 0x2d5   : > { %v10001_v21 = vpop.f32.mrf.mxu1 }
 0x2d6   : > { %v10003_v22 = vpop.f32.mrf.mxu0 }
 0x2d8   : > { %v1413_v36 = vpop.f32.mrf.mxu2 }
 0x2d9   : > { %7858 = vmatmul.msk.bf16.gmra.mxu3 %vm1086_vm3, %v9290_v56 }
 0x2dc   : > { %v1118_v23 = vpop.f32.mrf.mxu3 }
 0x2dd   : > { %v1244_v24 = vadd.f32 %v1243_v14, %v1118_v23  ;;  %v1176_v25 = vpop.f32.mrf.mxu1 }
 0x2de   : > { %v1147_v26 = vpop.f32.mrf.mxu0 }
 0x2e0   : > { %7890 = vmatmul.msk.bf16.gmra.mxu1 %vm1086_vm3, %v9294_v4  ;;  %v10031_v41 = vpop.f32.mrf.mxu2 }
 0x2e1   : > { %7886 = vmatmul.msk.bf16.gmra.mxu0 %vm1086_vm3, %v9294_v4 }
 0x2e4   : > { %v10008_v28 = vpop.f32.mrf.mxu3 }
 0x2e5   : > { %v10010_v29 = vpop.f32.mrf.mxu1 }
 0x2e6   : > { %v10012_v30 = vpop.f32.mrf.mxu0 }
 0x2e8   : > { %v1418_v50 = vpop.f32.mrf.mxu2 }
 0x2e9   : > { %7859 = vmatmul.msk.bf16.gmra.mxu3 %vm1086_vm3, %v9291_v62 }
 0x2ec   : > { %v1123_v32 = vpop.f32.mrf.mxu3 }
 0x2ed   : > { %v1249_v33 = vadd.f32 %v1248_v27, %v1123_v32  ;;  %v10017_v34 = vpop.f32.mrf.mxu1 }
 0x2ee   : > { %v1152_v35 = vpop.f32.mrf.mxu0 }
 0x2f0   : > { %7891 = vmatmul.msk.bf16.gmra.mxu1 %vm1086_vm3, %v9295_v13  ;;  %v10047_v59 = vpop.f32.mrf.mxu2 }
 0x2f1   : > { %7887 = vmatmul.msk.bf16.gmra.mxu0 %vm1086_vm3, %v9295_v13 }
 0x2f4   : > { %v10021_v37 = vpop.f32.mrf.mxu3 }
 0x2f5   : > { %v10023_v38 = vpop.f32.mrf.mxu1 }
 0x2f6   : > { %v10028_v40 = vpop.f32.mrf.mxu0 }
 0x2f8   : > { %v1423_v3 = vpop.f32.mrf.mxu2 }
 0x2f9   : > { %7920 = vmatmul.msk.bf16.vlgmr.msrb.gmra.mxu3 %vm1086_vm3, %v9296_v39 }
 0x2fc   : > { %v1262_v42 = vpop.f32.mrf.mxu3 }
 0x2fd   : > { %v1263_v43 = vadd.f32 %v1262_v42, %v1137_v8  ;;  %v1384_v44 = vpop.f32.mrf.mxu1 }
 0x2fe   : > { %v1462_v45 = vadd.f32 %v1384_v44, %v1234_v6  ;;  %v1291_v46 = vpop.f32.mrf.mxu0 }
 0x2ff   : > { %v1292_v47 = vadd.f32 %v1291_v46, %v1166_v7  ;;  %v1463_v48 = vadd.f32 %v1413_v36, %v1263_v43 }
 0x300   : > { %7928 = vmatmul.msk.bf16.vlgmr.msra.gmra.mxu1 %vm1086_vm3, %v9296_v39  ;;  %v10073_v15 = vpop.f32.mrf.mxu2 }
 0x301   : > { %7924 = vmatmul.msk.bf16.vlgmr.msra.gmra.mxu0 %vm1086_vm3, %v9296_v39 }
 0x304   : > { %v10035_v49 = vpop.f32.mrf.mxu3 }
 0x305   : > { %v10037_v51 = vpop.f32.mrf.mxu1 }
 0x306   : > { %v10042_v53 = vpop.f32.mrf.mxu0 }
 0x309   : > { %7921 = vmatmul.msk.bf16.gmra.mxu3 %vm1086_vm3, %v9297_v52 }
 0x30c   : > { %v1267_v54 = vpop.f32.mrf.mxu3 }
 0x30d   : > { %v1268_v55 = vadd.f32 %v1267_v54, %v1142_v18  ;;  %v1389_v56 = vpop.f32.mrf.mxu1  ;;  %v9299_v18 = vld [vmem:[%s12332_s2 + $0x98] sm:$0xff] }
 0x30e   : > { %v10045_v57 = vadd.f32 %v1389_v56, %v1239_v16  ;;  %v1296_v58 = vpop.f32.mrf.mxu0 }
 0x30f   : > { %v10049_v60 = vadd.f32 %v1296_v58, %v1171_v17  ;;  %v10051_v61 = vadd.f32 %v1418_v50, %v1268_v55 }
 0x310   : > { %7929 = vmatmul.msk.bf16.gmra.mxu1 %vm1086_vm3, %v9297_v52 }
 0x311   : > { %7925 = vmatmul.msk.bf16.gmra.mxu0 %vm1086_vm3, %v9297_v52 }
 0x314   : > { %v10055_v62 = vpop.f32.mrf.mxu3 }
 0x315   : > { %v10057_v63 = vpop.f32.mrf.mxu1 }
 0x316   : > { %v10062_v1 = vpop.f32.mrf.mxu0 }
 0x319   : > { %7922 = vmatmul.msk.bf16.gmra.mxu3 %vm1086_vm3, %v9298_v0 }
 0x31c   : > { %v1272_v4 = vpop.f32.mrf.mxu3 }
 0x31d   : > { %v1273_v5 = vadd.f32 %v1272_v4, %v1147_v26  ;;  %v1394_v6 = vpop.f32.mrf.mxu1  ;;  %v8118_v4 = vld [vmem:[%s12335_s9 + $0x170] sm:$0xf] }
 0x31e   : > { %v10065_v7 = vadd.f32 %v1394_v6, %v1244_v24  ;;  %v1301_v8 = vpop.f32.mrf.mxu0 }
 0x31f   : > { %v10067_v13 = vadd.f32 %v1301_v8, %v1176_v25  ;;  %v10069_v14 = vadd.f32 %v1423_v3, %v1273_v5  ;;  %v1428_v25 = vpop.f32.mrf.mxu2  ;;  %v7992_v3 = vld [vmem:[%s12335_s9 + $0x78] sm:$0xf0]  ;;  %v9347_v5 = vld [vmem:[%s12335_s9 + $0x174] sm:$0x10] }
 0x320   : > { %7930 = vmatmul.msk.bf16.gmra.mxu1 %vm1086_vm3, %v9298_v0  ;;  %v8119_v8 = vor.u32 %v9347_v5, %v8118_v4 }
 0x321   : > { %7926 = vmatmul.msk.bf16.gmra.mxu0 %vm1086_vm3, %v9298_v0  ;;  %v7990_v0 = vld [vmem:[%s12335_s9 + $0x70] sm:$0xf] }
 0x324   : > { %v10075_v16 = vpop.f32.mrf.mxu3 }
 0x325   : > { %v10077_v17 = vpop.f32.mrf.mxu1 }
 0x326   : > { %v10082_v23 = vpop.f32.mrf.mxu0 }
 0x329   : > { %7923 = vmatmul.msk.bf16.gmra.mxu3 %vm1086_vm3, %v9299_v18 }
 0x32c   : > { %v1277_v24 = vpop.f32.mrf.mxu3 }
 0x32d   : > { %v1278_v26 = vadd.f32 %v1277_v24, %v1152_v35  ;;  %v1399_v27 = vpop.f32.mrf.mxu1  ;;  %v9331_v24 = vld [vmem:[%s12335_s9 + $0xf4] sm:$0xf0] }
 0x32e   : > { %v10085_v32 = vadd.f32 %v1399_v27, %v1249_v33  ;;  %v1306_v36 = vpop.f32.mrf.mxu0 }
 0x32f   : > { %v10088_v39 = vadd.f32 %v1306_v36, %v10017_v34  ;;  %v10090_v42 = vadd.f32 %v1428_v25, %v1278_v26  ;;  %v2197_v25 = vsel %vm2195_vm6, %v8119_v8, 0  ;;  %v7982_v36 = vld [vmem:[%s12335_s9 + $0x60] sm:$0xf] }
 0x330   : > { %7931 = vmatmul.msk.bf16.gmra.mxu1 %vm1086_vm3, %v9299_v18  ;;  %2260 = vmatpush.bf16.msrb.mxu0 %v2197_v25  ;;  %v8046_v8 = vld [vmem:[%s12335_s9 + $0xe0] sm:$0xf] }
 0x331   : > { %7927 = vmatmul.msk.bf16.gmra.mxu0 %vm1086_vm3, %v9299_v18  ;;  %v8054_v18 = vld [vmem:[%s12335_s9 + $0xf0] sm:$0xf] }
 0x332   : > { %v8055_v26 = vor.u32 %v9331_v24, %v8054_v18  ;;  %v9329_v18 = vld [vmem:[%s12335_s9 + $0xe4] sm:$0xf0] }
 0x333   : > { %v8047_v25 = vor.u32 %v9329_v18, %v8046_v8  ;;  %v9308_v8 = vld [vmem:[%s12335_s9 + $0x44] sm:$0xf] }
 0x334   : > { %v10094_v43 = vpop.f32.mrf.mxu3  ;;  %2231 = vmatpush.bf16.msra.mxu3 %v8055_v26  ;;  %v9311_v26 = vld [vmem:[%s12335_s9 + $0x54] sm:$0xf0] }
 0x335   : > { %12333 = vst [vmem:[#allocation3_spill] sm:$0xff] %v10094_v43  ;;  %v10096_v44 = vpop.f32.mrf.mxu1 }
 0x336   : > { %12334 = vst [vmem:[#allocation4_spill] sm:$0xff] %v10096_v44  ;;  %v10098_v46 = vpop.f32.mrf.mxu0 }
 0x338   : > { %2232 = vmatpush.bf16.msra.mxu3 %v8047_v25 }
 0x33c   : > { %v1442_v35 = vpop.f32.mrf.mxu3 }
 0x33d   : > { %v10100_v50 = vadd.f32 %v1442_v35, %v1292_v47  ;;  %v1588_v33 = vpop.f32.mrf.mxu1  ;;  %v9315_v47 = vld [vmem:[%s12335_s9 + $0x74] sm:$0xf0]  ;;  %v9313_v35 = vld [vmem:[%s12335_s9 + $0x64] sm:$0xf0] }
 0x33e   : > { %v10102_v52 = vadd.f32 %v1588_v33, %v1463_v48  ;;  %v1559_v34 = vpop.f32.mrf.mxu0  ;;  %v9314_v48 = vld [vmem:[%s12335_s9 + $0x74] sm:$0xf]  ;;  %v9312_v33 = vld [vmem:[%s12335_s9 + $0x64] sm:$0xf] }
 0x33f   : > { %v10104_v54 = vadd.f32 %v1559_v34, %v1462_v45  ;;  %v7991_v45 = vor.u32 %v9315_v47, %v7990_v0  ;;  %v7995_v6 = vor.u32 %v9314_v48, %v7992_v3  ;;  %v7983_v47 = vor.u32 %v9313_v35, %v7982_v36  ;;  %v7984_v48 = vld [vmem:[%s12335_s9 + $0x68] sm:$0xf0]  ;;  %v9345_v3 = vld [vmem:[%s12335_s9 + $0x164] sm:$0xf0]  ;;  %v8102_v35 = vld [vmem:[%s12335_s9 + $0x150] sm:$0xf] }
 0x340   : > { %v7987_v5 = vor.u32 %v9312_v33, %v7984_v48  ;;  %v9343_v33 = vld [vmem:[%s12335_s9 + $0x154] sm:$0xf0]  ;;  %v8038_v48 = vld [vmem:[%s12335_s9 + $0xd0] sm:$0xf] }
 0x341   : > { %2202 = vmatpush.bf16.msra.mxu2 %v7991_v45  ;;  %2289 = vmatpush.bf16.msrb.mxu1 %v7995_v6  ;;  %v8110_v45 = vld [vmem:[%s12335_s9 + $0x160] sm:$0xf] }
 0x342   : > { %v8111_v6 = vor.u32 %v9345_v3, %v8110_v45  ;;  %v9327_v45 = vld [vmem:[%s12335_s9 + $0xd4] sm:$0xf0] }
 0x343   : > { %v8039_v3 = vor.u32 %v9327_v45, %v8038_v48  ;;  %v7958_v48 = vld [vmem:[%s12335_s9 + $0x30] sm:$0xf]  ;;  %v9307_v45 = vld [vmem:[%s12335_s9 + $0x34] sm:$0xf0] }
 0x344   : > { %v10106_v55 = vpop.f32.mrf.mxu3  ;;  %2261 = vmatpush.bf16.msrb.mxu0 %v8111_v6  ;;  %v9309_v6 = vld [vmem:[%s12335_s9 + $0x44] sm:$0xf0] }
 0x345   : > { %v10108_v56 = vpop.f32.mrf.mxu1  ;;  %2203 = vmatpush.bf16.msra.mxu2 %v7983_v47  ;;  %2290 = vmatpush.bf16.msrb.mxu1 %v7987_v5  ;;  %v8103_v47 = vor.u32 %v9343_v33, %v8102_v35  ;;  %v7966_v5 = vld [vmem:[%s12335_s9 + $0x40] sm:$0xf] }
 0x346   : > { %v10110_v58 = vpop.f32.mrf.mxu0  ;;  %2233 = vmatpush.bf16.msra.mxu3 %v8039_v3  ;;  %v7967_v25 = vor.u32 %v9309_v6, %v7966_v5  ;;  %v8030_v33 = vld [vmem:[%s12335_s9 + $0xc0] sm:$0xf]  ;;  %v9306_v3 = vld [vmem:[%s12335_s9 + $0x34] sm:$0xf]  ;;  %v7959_v5 = vor.u32 %v9307_v45, %v7958_v48  ;;  %v7960_v6 = vld [vmem:[%s12335_s9 + $0x38] sm:$0xf0] }
 0x347   : > { %v9304_v48 = vld [vmem:[%s12335_s9 + $0x24] sm:$0xf] }
 0x348   : > { %2262 = vmatpush.bf16.msrb.mxu0 %v8103_v47 }
 0x34c   : > { %v1447_v27 = vpop.f32.mrf.mxu3 }
 0x34d   : > { %v10147_v34 = vadd.f32 %v1447_v27, %v10049_v60  ;;  %v1593_v0 = vpop.f32.mrf.mxu1  ;;  %v9310_v27 = vld [vmem:[%s12335_s9 + $0x54] sm:$0xf] }
 0x34e   : > { %v10159_v4 = vadd.f32 %v1593_v0, %v10051_v61  ;;  %v1564_v60 = vpop.f32.mrf.mxu0  ;;  %v7974_v61 = vld [vmem:[%s12335_s9 + $0x50] sm:$0xf] }
 0x34f   : > { %v10168_v24 = vadd.f32 %v1564_v60, %v10045_v57  ;;  %v7975_v36 = vor.u32 %v9311_v26, %v7974_v61  ;;  %v7976_v57 = vld [vmem:[%s12335_s9 + $0x58] sm:$0xf0]  ;;  %v7968_v61 = vld [vmem:[%s12335_s9 + $0x48] sm:$0xf0]  ;;  %v8094_v26 = vld [vmem:[%s12335_s9 + $0x140] sm:$0xf] }
 0x350   : > { %v7979_v0 = vor.u32 %v9310_v27, %v7976_v57  ;;  %v9341_v27 = vld [vmem:[%s12335_s9 + $0x144] sm:$0xf0]  ;;  %v7971_v57 = vor.u32 %v9308_v8, %v7968_v61  ;;  %v8086_v8 = vld [vmem:[%s12335_s9 + $0x130] sm:$0xf]  ;;  %v7963_v61 = vor.u32 %v9306_v3, %v7960_v6  ;;  %v7952_v6 = vld [vmem:[%s12335_s9 + $0x28] sm:$0xf0] }
 0x351   : > { %2204 = vmatpush.bf16.msra.mxu2 %v7975_v36  ;;  %v8095_v35 = vor.u32 %v9341_v27, %v8094_v26  ;;  %v8022_v27 = vld [vmem:[%s12335_s9 + $0xb0] sm:$0xf] }
 0x352   : > { %2291 = vmatpush.bf16.msrb.mxu1 %v7979_v0  ;;  %v9325_v0 = vld [vmem:[%s12335_s9 + $0xc4] sm:$0xf0] }
 0x353   : > { %v8031_v47 = vor.u32 %v9325_v0, %v8030_v33  ;;  %2263 = vmatpush.bf16.msrb.mxu0 %v8095_v35  ;;  %v7950_v0 = vld [vmem:[%s12335_s9 + $0x20] sm:$0xf] }
 0x354   : > { %v10194_v60 = vpop.f32.mrf.mxu3 }
 0x355   : > { %v10205_v18 = vpop.f32.mrf.mxu1  ;;  %2205 = vmatpush.bf16.msra.mxu2 %v7967_v25  ;;  %v9339_v25 = vld [vmem:[%s12335_s9 + $0x134] sm:$0xf0]  ;;  %2234 = vmatpush.bf16.msra.mxu3 %v8031_v47  ;;  %v9305_v47 = vld [vmem:[%s12335_s9 + $0x24] sm:$0xf0] }
 0x356   : > { %v10216_v36 = vpop.f32.mrf.mxu0  ;;  %2292 = vmatpush.bf16.msrb.mxu1 %v7971_v57  ;;  %v8087_v26 = vor.u32 %v9339_v25, %v8086_v8  ;;  %v9323_v57 = vld [vmem:[%s12335_s9 + $0xb4] sm:$0xf0]  ;;  %v8078_v8 = vld [vmem:[%s12335_s9 + $0x120] sm:$0xf]  ;;  %v9337_v25 = vld [vmem:[%s12335_s9 + $0x124] sm:$0xf0] }
 0x357   : > { %v8023_v35 = vor.u32 %v9323_v57, %v8022_v27  ;;  %v8079_v27 = vor.u32 %v9337_v25, %v8078_v8  ;;  %v8014_v57 = vld [vmem:[%s12335_s9 + $0xa0] sm:$0xf]  ;;  %v10299_v8 = vpop.f32.mrf.mxu2 }
 0x358   : > { %2264 = vmatpush.bf16.msrb.mxu0 %v8087_v26  ;;  %v7955_v26 = vor.u32 %v9304_v48, %v7952_v6  ;;  %v9302_v48 = vld [vmem:[%s12335_s9 + $0x14] sm:$0xf]  ;;  %v9335_v6 = vld [vmem:[%s12335_s9 + $0x114] sm:$0xf0]  ;;  %12336 = vst [vmem:[#allocation5_spill] sm:$0xff] %v10299_v8 }
 0x359   : > { %2206 = vmatpush.bf16.msra.mxu2 %v7959_v5  ;;  %2235 = vmatpush.bf16.msra.mxu3 %v8023_v35  ;;  %v7951_v5 = vor.u32 %v9305_v47, %v7950_v0  ;;  %v9321_v35 = vld [vmem:[%s12335_s9 + $0xa4] sm:$0xf0]  ;;  %v9303_v47 = vld [vmem:[%s12335_s9 + $0x14] sm:$0xf0] }
 0x35a   : > { %2293 = vmatpush.bf16.msrb.mxu1 %v7963_v61  ;;  %v8015_v0 = vor.u32 %v9321_v35, %v8014_v57 }
 0x35c   : > { %v1452_v33 = vpop.f32.mrf.mxu3  ;;  %2265 = vmatpush.bf16.msrb.mxu0 %v8079_v27  ;;  %v9319_v27 = vld [vmem:[%s12335_s9 + $0x94] sm:$0xf0] }
 0x35d   : > { %v10258_v45 = vadd.f32 %v1452_v33, %v10067_v13  ;;  %v1598_v3 = vpop.f32.mrf.mxu1  ;;  %2207 = vmatpush.bf16.msra.mxu2 %v7951_v5  ;;  %v8070_v5 = vld [vmem:[%s12335_s9 + $0x110] sm:$0xf]  ;;  %2236 = vmatpush.bf16.msra.mxu3 %v8015_v0  ;;  %v7934_v0 = vld [vmem:[%s12335_s9] sm:$0xf] }
 0x35e   : > { %v10270_v61 = vadd.f32 %v1598_v3, %v10069_v14  ;;  %v1569_v13 = vpop.f32.mrf.mxu0  ;;  %v7942_v14 = vld [vmem:[%s12335_s9 + $0x10] sm:$0xf]  ;;  %2294 = vmatpush.bf16.msrb.mxu1 %v7955_v26 }
 0x35f   : > { %v10279_v33 = vadd.f32 %v1569_v13, %v10065_v7  ;;  %v7943_v3 = vor.u32 %v9303_v47, %v7942_v14  ;;  %v7944_v7 = vld [vmem:[%s12335_s9 + $0x18] sm:$0xf0]  ;;  %v8071_v13 = vor.u32 %v9335_v6, %v8070_v5  ;;  %v8006_v26 = vld [vmem:[%s12335_s9 + $0x90] sm:$0xf]  ;;  %v9301_v14 = vld [vmem:[%s12335_s9 + $0x4] sm:$0xf0] }
 0x360   : > { %v7947_v25 = vor.u32 %v9302_v48, %v7944_v7  ;;  %v8007_v57 = vor.u32 %v9319_v27, %v8006_v26  ;;  %v9300_v47 = vld [vmem:[%s12335_s9 + $0x4] sm:$0xf]  ;;  %v7936_v7 = vld [vmem:[%s12335_s9 + $0x8] sm:$0xf0]  ;;  %v8062_v5 = vld [vmem:[%s12335_s9 + $0x100] sm:$0xf] }
 0x361   : > { %2208 = vmatpush.bf16.msra.mxu2 %v7943_v3  ;;  %2266 = vmatpush.bf16.msrb.mxu0 %v8071_v13  ;;  %v7935_v3 = vor.u32 %v9301_v14, %v7934_v0  ;;  %v9333_v6 = vld [vmem:[%s12335_s9 + $0x104] sm:$0xf0]  ;;  %v7939_v13 = vor.u32 %v9300_v47, %v7936_v7  ;;  %v7998_v27 = vld [vmem:[%s12335_s9 + $0x80] sm:$0xf]  ;;  %v1617_v14 = vpop.f32.mrf.mxu2 }
 0x362   : > { %2295 = vmatpush.bf16.msrb.mxu1 %v7947_v25  ;;  %2237 = vmatpush.bf16.msra.mxu3 %v8007_v57  ;;  %v8063_v26 = vor.u32 %v9333_v6, %v8062_v5  ;;  %v9317_v57 = vld [vmem:[%s12335_s9 + $0x84] sm:$0xf0] }
 0x363   : > { %v7999_v0 = vor.u32 %v9317_v57, %v7998_v27 }
 0x364   : > { %v10307_v35 = vpop.f32.mrf.mxu3 }
 0x365   : > { %v10318_v48 = vpop.f32.mrf.mxu1  ;;  %2209 = vmatpush.bf16.msra.mxu2 %v7935_v3  ;;  %2267 = vmatpush.bf16.msrb.mxu0 %v8063_v26 }
 0x366   : > { %v10329_v25 = vpop.f32.mrf.mxu0  ;;  %2296 = vmatpush.bf16.msrb.mxu1 %v7939_v13  ;;  %2238 = vmatpush.bf16.msra.mxu3 %v7999_v0 }
 0x369   : > { %v1619_v3 = vpop.f32.mrf.mxu2 }
 0x36c   : > { %v1457_v8 = vpop.f32.mrf.mxu3 }
 0x36d   : > { %v10338_v44 = vadd.f32 %v1457_v8, %v10088_v39  ;;  %v1603_v47 = vpop.f32.mrf.mxu1  ;;  %v1294_v39 = vadd.f32 %v10042_v53, %v9986_v11 }
 0x36e   : > { %v10341_v7 = vadd.f32 %v1603_v47, %v10090_v42  ;;  %v1574_v5 = vpop.f32.mrf.mxu0  ;;  %v1236_v42 = vadd.f32 %v9969_v2, %v9984_v10 }
 0x36f   : > { %12337 = vst [vmem:[#allocation6_spill] sm:$0xff] %v10338_v44  ;;  %v10344_v6 = vadd.f32 %v1574_v5, %v10085_v32  ;;  %v1265_v32 = vadd.f32 %v10035_v49, %v9988_v12  ;;  %v1467_v47 = vadd.f32 %v10106_v55, %v1294_v39 }
 0x370   : > { %12338 = vst [vmem:[#allocation7_spill] sm:$0xff] %v10341_v7  ;;  %v1465_v5 = vadd.f32 %v10037_v51, %v1236_v42  ;;  %v9344_v42 = vld [vmem:[%s12335_s9 + $0x164] sm:$0xf] }
 0x371   : > { %12339 = vst [vmem:[#allocation8_spill] sm:$0xff] %v10344_v6  ;;  %v1622_v0 = vpop.f32.mrf.mxu2  ;;  %v1466_v7 = vadd.f32 %v10031_v41, %v1265_v32  ;;  %v1642_v44 = vadd.f32 %v1619_v3, %v1467_v47  ;;  %v9328_v3 = vld [vmem:[%s12335_s9 + $0xe4] sm:$0xf]  ;;  %v8112_v32 = vld [vmem:[%s12335_s9 + $0x168] sm:$0xf0]  ;;  %v1241_v47 = vadd.f32 %v9981_v9, %v9997_v19 }
 0x372   : > { %v1640_v6 = vadd.f32 %v10110_v58, %v1465_v5  ;;  %v1270_v5 = vadd.f32 %v10055_v62, %v10003_v22  ;;  %v9342_v9 = vld [vmem:[%s12335_s9 + $0x154] sm:$0xf]  ;;  %v8104_v19 = vld [vmem:[%s12335_s9 + $0x158] sm:$0xf0] }
 0x373   : > { %v1641_v53 = vadd.f32 %v10108_v56, %v1466_v7 }
 0x374   : > { %v10346_v43 = vpop.f32.mrf.mxu3  ;;  %v1472_v22 = vadd.f32 %v10047_v59, %v1270_v5 }
 0x375   : > { %12340 = vst [vmem:[#allocation9_spill] sm:$0xff] %v10346_v43  ;;  %v10348_v27 = vpop.f32.mrf.mxu1 }
 0x376   : > { %12341 = vst [vmem:[#allocation10_spill] sm:$0xff] %v10348_v27  ;;  %v10350_v13 = vpop.f32.mrf.mxu0  ;;  %v1639_v27 = vadd.f32 %v1617_v14, %v10100_v50  ;;  %v9330_v50 = vld [vmem:[%s12335_s9 + $0xf4] sm:$0xf]  ;;  %v1647_v59 = vadd.f32 %v10205_v18, %v1472_v22 }
 0x377   : > { %12342 = vst [vmem:[#allocation11_spill] sm:$0xff] %v10350_v13 }
 0x379   : > { %v1624_v56 = vpop.f32.mrf.mxu2 }
 0x37c   : > { %v1734_v26 = vpop.f32.mrf.mxu3 }
 0x37d   : > { %v1792_v57 = vpop.f32.mrf.mxu1  ;;  %v1812_v2 = vadd.f32 %v1734_v26, %v10104_v54  ;;  %v8056_v54 = vld [vmem:[%s12335_s9 + $0xf8] sm:$0xf0] }
 0x37e   : > { %v1763_v8 = vpop.f32.mrf.mxu0  ;;  %v1814_v12 = vadd.f32 %v1792_v57, %v1639_v27  ;;  %v8048_v27 = vld [vmem:[%s12335_s9 + $0xe8] sm:$0xf0]  ;;  %v1299_v57 = vadd.f32 %v10062_v1, %v10001_v21  ;;  %v9326_v21 = vld [vmem:[%s12335_s9 + $0xd4] sm:$0xf]  ;;  %v8040_v1 = vld [vmem:[%s12335_s9 + $0xd8] sm:$0xf0] }
 0x37f   : > { %v1813_v55 = vadd.f32 %v1763_v8, %v10102_v52  ;;  %v8120_v52 = vld [vmem:[%s12335_s9 + $0x178] sm:$0x10]  ;;  %v8051_v26 = vor.u32 %v9328_v3, %v8048_v27  ;;  %v9322_v3 = vld [vmem:[%s12335_s9 + $0xb4] sm:$0xf] }
 0x380   : > { %v8024_v27 = vld [vmem:[%s12335_s9 + $0xb8] sm:$0xf0] }
 0x384   : > { %v1736_v11 = vpop.f32.mrf.mxu3 }
 0x385   : > { %v1815_v10 = vadd.f32 %v1736_v11, %v1640_v6  ;;  %v1794_v13 = vpop.f32.mrf.mxu1  ;;  %v8115_v11 = vor.u32 %v9344_v42, %v8112_v32  ;;  %v9320_v42 = vld [vmem:[%s12335_s9 + $0xa4] sm:$0xf]  ;;  %v8016_v32 = vld [vmem:[%s12335_s9 + $0xa8] sm:$0xf0] }
 0x386   : > { %v1817_v49 = vadd.f32 %v1794_v13, %v1642_v44  ;;  %v1765_v43 = vpop.f32.mrf.mxu0  ;;  %v8059_v44 = vor.u32 %v9330_v50, %v8056_v54 }
 0x387   : > { %v1836_v51 = vpack.c.bf16 %v1815_v10, %v1812_v2  ;;  %v1816_v39 = vadd.f32 %v1765_v43, %v1641_v53  ;;  %v9346_v43 = vld [vmem:[%s12335_s9 + $0x174] sm:$0xf]  ;;  %v1473_v53 = vadd.f32 %v10194_v60, %v1299_v57  ;;  %v8043_v2 = vor.u32 %v9326_v21, %v8040_v1  ;;  %v8088_v57 = vld [vmem:[%s12335_s9 + $0x138] sm:$0xf0]  ;;  %v8080_v21 = vld [vmem:[%s12335_s9 + $0x128] sm:$0xf0] }
 0x388   : > { %v10366_v41 = vpack.c.bf16 %v1817_v49, %v1814_v12  ;;  %v8123_v14 = vor.u32 %v9346_v43, %v8120_v52  ;;  %2318 = vmatpush.bf16.msrb.mxu2 %v8059_v44  ;;  %v1471_v10 = vadd.f32 %v10057_v63, %v1241_v47  ;;  %v10420_v12 = vpop.f32.mrf.mxu2  ;;  %v8107_v60 = vor.u32 %v9342_v9, %v8104_v19  ;;  %v8096_v52 = vld [vmem:[%s12335_s9 + $0x148] sm:$0xf0]  ;;  %v9336_v47 = vld [vmem:[%s12335_s9 + $0x124] sm:$0xf]  ;;  %v9318_v1 = vld [vmem:[%s12335_s9 + $0x94] sm:$0xf] }
 0x389   : > { %v10374_v58 = vpack.c.bf16 %v1816_v39, %v1813_v55  ;;  %2210 = vmatmul.bf16.vlgmr.msra.gmra.mxu2 %v1836_v51  ;;  %2297 = vmatmul.bf16.vlgmr.msrb.gmra.mxu1 %v1836_v51  ;;  %v1645_v49 = vadd.f32 %v1622_v0, %v10147_v34  ;;  %v1648_v63 = vadd.f32 %v1624_v56, %v1473_v53  ;;  %v9324_v51 = vld [vmem:[%s12335_s9 + $0xc4] sm:$0xf]  ;;  %v8032_v39 = vld [vmem:[%s12335_s9 + $0xc8] sm:$0xf0]  ;;  %v8008_v53 = vld [vmem:[%s12335_s9 + $0x98] sm:$0xf0] }
 0x38a   : > { %8124 = vmatmul.msk.bf16.vlgmr.msrb.gmra.mxu0 %vm2182_vm7, %v10366_v41  ;;  %v2200_v6 = vsel %vm2195_vm6, %v8123_v14, 0  ;;  %v1646_v62 = vadd.f32 %v10216_v36, %v1471_v10  ;;  %v8035_v44 = vor.u32 %v9324_v51, %v8032_v39  ;;  %v9340_v56 = vld [vmem:[%s12335_s9 + $0x144] sm:$0xf]  ;;  %v1304_v9 = vadd.f32 %v10082_v23, %v10010_v29 }
 0x38b   : > { %2239 = vmatmul.bf16.vlgmr.msra.gmra.mxu3 %v10374_v58  ;;  %v8083_v22 = vor.u32 %v9336_v47, %v8080_v21  ;;  %v9316_v23 = vld [vmem:[%s12335_s9 + $0x84] sm:$0xf]  ;;  %v12346_v47 = vld [vmem:[#allocation5_spill] sm:$0xff] }
 0x38c   : > { %v1739_v7 = vpop.f32.mrf.mxu3  ;;  %2347 = vmatpush.bf16.msrb.mxu3 %v2200_v6  ;;  %2319 = vmatpush.bf16.msrb.mxu2 %v8051_v26  ;;  %v8027_v26 = vor.u32 %v9322_v3, %v8024_v27  ;;  %v1479_v29 = vadd.f32 %v10307_v35, %v1304_v9  ;;  %v9332_v35 = vld [vmem:[%s12335_s9 + $0x104] sm:$0xf]  ;;  %v12350_v9 = vld [vmem:[#allocation8_spill] sm:$0xff] }
 0x38d   : > { %v1797_v13 = vpop.f32.mrf.mxu1  ;;  %v1818_v36 = vadd.f32 %v1739_v7, %v10168_v24  ;;  %v8099_v24 = vor.u32 %v9340_v56, %v8096_v52  ;;  %v12343_v27 = vld [vmem:[#allocation3_spill] sm:$0xff] }
 0x38e   : > { %v1768_v8 = vpop.f32.mrf.mxu0  ;;  %v1820_v43 = vadd.f32 %v1797_v13, %v1645_v49  ;;  %v8011_v49 = vor.u32 %v9318_v1, %v8008_v53  ;;  %v12348_v1 = vld [vmem:[#allocation6_spill] sm:$0xff] }
 0x38f   : > { %v1819_v14 = vadd.f32 %v1768_v8, %v10159_v4  ;;  %v9338_v4 = vld [vmem:[%s12335_s9 + $0x134] sm:$0xf] }
 0x390   : > { %2348 = vmatpush.bf16.msrb.mxu3 %v8115_v11  ;;  %2320 = vmatpush.bf16.msrb.mxu2 %v8043_v2  ;;  %v8091_v8 = vor.u32 %v9338_v4, %v8088_v57  ;;  %v8019_v11 = vor.u32 %v9320_v42, %v8016_v32  ;;  %v1629_v2 = vpop.f32.mrf.mxu2  ;;  %v12344_v4 = vld [vmem:[#allocation9_spill] sm:$0xff] }
 0x394   : > { %v1741_v55 = vpop.f32.mrf.mxu3  ;;  %2349 = vmatpush.bf16.msrb.mxu3 %v8107_v60  ;;  %2321 = vmatpush.bf16.msrb.mxu2 %v8035_v44  ;;  %v1275_v60 = vadd.f32 %v10075_v16, %v10012_v30 }
 0x395   : > { %v1821_v50 = vadd.f32 %v1741_v55, %v1646_v62  ;;  %v1799_v54 = vpop.f32.mrf.mxu1  ;;  %v1246_v62 = vadd.f32 %v9999_v20, %v10008_v28  ;;  %v8072_v55 = vld [vmem:[%s12335_s9 + $0x118] sm:$0xf0]  ;;  %v8000_v20 = vld [vmem:[%s12335_s9 + $0x88] sm:$0xf0] }
 0x396   : > { %v1823_v34 = vadd.f32 %v1799_v54, %v1648_v63  ;;  %v1770_v0 = vpop.f32.mrf.mxu0  ;;  %v9334_v63 = vld [vmem:[%s12335_s9 + $0x114] sm:$0xf]  ;;  %v1478_v16 = vadd.f32 %v10073_v15, %v1275_v60  ;;  %v8003_v39 = vor.u32 %v9316_v23, %v8000_v20  ;;  %v12351_v60 = vld [vmem:[#allocation7_spill] sm:$0xff]  ;;  %v10531_v20 = vpop.permute.xlu2 %1936 }
 0x397   : > { %v1839_v18 = vpack.c.bf16 %v1821_v50, %v1818_v36  ;;  %v1822_v6 = vadd.f32 %v1770_v0, %v1647_v59  ;;  %v1477_v28 = vadd.f32 %v10077_v17, %v1246_v62  ;;  %v8075_v30 = vor.u32 %v9334_v63, %v8072_v55  ;;  %v8064_v59 = vld [vmem:[%s12335_s9 + $0x108] sm:$0xf0] }
 0x398   : > { %v10438_v7 = vpack.c.bf16 %v1823_v34, %v1820_v43  ;;  %2350 = vmatpush.bf16.msrb.mxu3 %v8099_v24  ;;  %2322 = vmatpush.bf16.msrb.mxu2 %v8027_v26  ;;  %v1651_v36 = vadd.f32 %v10420_v12, %v10258_v45  ;;  %v1654_v17 = vadd.f32 %v1629_v2, %v1479_v29  ;;  %v1632_v52 = vpop.f32.mrf.mxu2 }
 0x399   : > { %v10446_v13 = vpack.c.bf16 %v1822_v6, %v1819_v14  ;;  %2215 = vmatmul.bf16.gmra.mxu2 %v1839_v18  ;;  %2302 = vmatmul.bf16.gmra.mxu1 %v1839_v18  ;;  %v1652_v51 = vadd.f32 %v10329_v25, %v1477_v28  ;;  %v1653_v54 = vadd.f32 %v10318_v48, %v1478_v16 }
 0x39a   : > { %8125 = vmatmul.msk.bf16.gmra.mxu0 %vm2182_vm7, %v10438_v7  ;;  %v8067_v56 = vor.u32 %v9332_v35, %v8064_v59  ;;  %v1309_v24 = vadd.f32 %v10098_v46, %v10023_v38  ;;  %v1280_v26 = vadd.f32 %v12343_v27, %v10028_v40  ;;  %v1657_v53 = vadd.f32 %v1632_v52, %v12348_v1  ;;  %v12349_v46 = vld [vmem:[#allocation10_spill] sm:$0xff]  ;;  %v10536_v35 = vpop.permute.xlu0 %1941 }
 0x39b   : > { %2244 = vmatmul.bf16.gmra.mxu3 %v10446_v13 }
 0x39c   : > { %v1744_v5 = vpop.f32.mrf.mxu3  ;;  %2351 = vmatpush.bf16.msrb.mxu3 %v8091_v8  ;;  %2323 = vmatpush.bf16.msrb.mxu2 %v8019_v11  ;;  %v1485_v57 = vadd.f32 %v12344_v4, %v1309_v24  ;;  %v12345_v8 = vld [vmem:[#allocation4_spill] sm:$0xff]  ;;  %v12347_v11 = vld [vmem:[#allocation11_spill] sm:$0xff] }
 0x39d   : > { %v1802_v10 = vpop.f32.mrf.mxu1  ;;  %v1824_v15 = vadd.f32 %v1744_v5, %v10279_v33  ;;  %v1484_v5 = vadd.f32 %v12346_v47, %v1280_v26 }
 0x39e   : > { %v1773_v19 = vpop.f32.mrf.mxu0  ;;  %v1826_v43 = vadd.f32 %v1802_v10, %v1651_v36  ;;  %v10534_v28 = vpop.permute.xlu2 %1931 }
 0x39f   : > { %v1825_v14 = vadd.f32 %v1773_v19, %v10270_v61  ;;  %v1251_v61 = vadd.f32 %v10014_v31, %v10021_v37  ;;  %v1659_v10 = vadd.f32 %v12349_v46, %v1484_v5 }
 0x3a0   : > { %2352 = vmatpush.bf16.msrb.mxu3 %v8083_v22  ;;  %2324 = vmatpush.bf16.msrb.mxu2 %v8011_v49  ;;  %v1634_v32 = vpop.f32.mrf.mxu2 }
 0x3a1   : > { %v1483_v42 = vadd.f32 %v12345_v8, %v1251_v61  ;;  %v1660_v2 = vadd.f32 %v1634_v32, %v1485_v57 }
 0x3a2   : > { %v1917_v36 = vpop.permute.xlu0 %1916 }
 0x3a3   : > { %v1658_v21 = vadd.f32 %v12347_v11, %v1483_v42 }
 0x3a4   : > { %v1746_v50 = vpop.f32.mrf.mxu3  ;;  %2353 = vmatpush.bf16.msrb.mxu3 %v8075_v30  ;;  %2325 = vmatpush.bf16.msrb.mxu2 %v8003_v39 }
 0x3a5   : > { %v1827_v25 = vadd.f32 %v1746_v50, %v1652_v51  ;;  %v1804_v44 = vpop.f32.mrf.mxu1 }
 0x3a6   : > { %v1829_v34 = vadd.f32 %v1804_v44, %v1654_v17  ;;  %v1775_v0 = vpop.f32.mrf.mxu0  ;;  %v1907_v30 = vpop.permute.xlu2 %1906 }
 0x3a7   : > { %v1842_v18 = vpack.c.bf16 %v1827_v25, %v1824_v15  ;;  %v1828_v6 = vadd.f32 %v1775_v0, %v1653_v54 }
 0x3a8   : > { %v1844_v45 = vpack.c.bf16 %v1829_v34, %v1826_v43  ;;  %2354 = vmatpush.bf16.msrb.mxu3 %v8067_v56  ;;  %v1927_v43 = vpop.permute.xlu1 %1926 }
 0x3a9   : > { %v1843_v12 = vpack.c.bf16 %v1828_v6, %v1825_v14  ;;  %2220 = vmatmul.bf16.gmra.mxu2 %v1842_v18  ;;  %2307 = vmatmul.bf16.gmra.mxu1 %v1842_v18 }
 0x3aa   : > { %8126 = vmatmul.msk.bf16.gmra.mxu0 %vm2182_vm7, %v1844_v45 }
 0x3ab   : > { %2249 = vmatmul.bf16.gmra.mxu3 %v1843_v12 }
 0x3ac   : > { %v1749_v33 = vpop.f32.mrf.mxu3 }
 0x3ad   : > { %v1807_v48 = vpop.f32.mrf.mxu1  ;;  %v1830_v31 = vadd.f32 %v1749_v33, %v12350_v9 }
 0x3ae   : > { %v1778_v3 = vpop.f32.mrf.mxu0  ;;  %v1832_v40 = vadd.f32 %v1807_v48, %v1657_v53 }
 0x3af   : > { %v1831_v49 = vadd.f32 %v1778_v3, %v12351_v60 }
 0x3b4   : > { %v1751_v38 = vpop.f32.mrf.mxu3 }
 0x3b5   : > { %v1833_v37 = vadd.f32 %v1751_v38, %v1658_v21  ;;  %v1809_v19 = vpop.f32.mrf.mxu1 }
 0x3b6   : > { %v1835_v22 = vadd.f32 %v1809_v19, %v1660_v2  ;;  %v1780_v62 = vpop.f32.mrf.mxu0 }
 0x3b7   : > { %v1845_v63 = vpack.c.bf16 %v1833_v37, %v1830_v31  ;;  %v1834_v55 = vadd.f32 %v1780_v62, %v1659_v10 }
 0x3b8   : > { %v1847_v29 = vpack.c.bf16 %v1835_v22, %v1832_v40 }
 0x3b9   : > { %v1846_v23 = vpack.c.bf16 %v1834_v55, %v1831_v49  ;;  %2225 = vmatmul.bf16.gmra.mxu2 %v1845_v63  ;;  %2312 = vmatmul.bf16.gmra.mxu1 %v1845_v63  ;;  %v1922_v55 = vpop.permute.xlu1 %1921 }
 0x3ba   : > { %8127 = vmatmul.msk.bf16.gmra.mxu0 %vm2182_vm7, %v1847_v29 }
 0x3bb   : > { %2254 = vmatmul.bf16.gmra.mxu3 %v1846_v23 }
 0x3c9   : > { %2326 = vmatmul.bf16.vlgmr.msrb.gmra.mxu2 %v10374_v58 }
 0x3cb   : > { %8128 = vmatmul.msk.bf16.vlgmr.msrb.gmra.mxu3 %vm2182_vm7, %v10366_v41 }
 0x3d9   : > { %2331 = vmatmul.bf16.gmra.mxu2 %v10446_v13 }
 0x3db   : > { %8129 = vmatmul.msk.bf16.gmra.mxu3 %vm2182_vm7, %v10438_v7 }
 0x3e9   : > { %2336 = vmatmul.bf16.gmra.mxu2 %v1843_v12 }
 0x3eb   : > { %8130 = vmatmul.msk.bf16.gmra.mxu3 %vm2182_vm7, %v1844_v45 }
 0x3f9   : > { %2341 = vmatmul.bf16.gmra.mxu2 %v1846_v23 }
 0x3fb   : > { %8131 = vmatmul.msk.bf16.gmra.mxu3 %vm2182_vm7, %v1847_v29 }
 0x406   : > { %v2298_v6 = vpop.f32.mrf.mxu1 }
 0x407   : > { %v2269_v39 = vpop.f32.mrf.mxu0  ;;  %v2299_v26 = vadd.f32 %v2298_v6, %v1907_v30 }
 0x40c   : > { %v2211_v58 = vpop.f32.mrf.mxu2 }
 0x40d   : > { %v2212_v16 = vadd.f32 %v2211_v58, %v1907_v30 }
 0x40e   : > { %v2240_v51 = vpop.f32.mrf.mxu3  ;;  %v10547_v24 = vpop.f32.mrf.mxu1 }
 0x40f   : > { %v2241_v41 = vadd.f32 %v2240_v51, %v2212_v16  ;;  %v10551_v61 = vpop.f32.mrf.mxu0 }
 0x411   : > { %v2270_v13 = vadd.f32 %v2269_v39, %v2241_v41 }
 0x413   : > { %v2392_v32 = vmul.f32 0.2, %v2270_v13  ;;  %vm2376_vm8 = vcmp.ge.f32.partialorder %v2270_v13, 0.0 }
 0x414   : > { %v10538_v7 = vpop.f32.mrf.mxu2 }
 0x415   : > { %v2408_v21 = vsel %vm2376_vm8, %v2270_v13, %v2392_v32 }
 0x416   : > { %v10540_v59 = vpop.f32.mrf.mxu3  ;;  %v2303_v8 = vpop.f32.mrf.mxu1 }
 0x417   : > { %v2274_v5 = vpop.f32.mrf.mxu0  ;;  %v2304_v39 = vadd.f32 %v2303_v8, %v1917_v36 }
 0x41c   : > { %v2216_v17 = vpop.f32.mrf.mxu2 }
 0x41d   : > { %v2217_v50 = vadd.f32 %v2216_v17, %v1917_v36 }
 0x41e   : > { %v2245_v54 = vpop.f32.mrf.mxu3  ;;  %v2305_v46 = vpop.f32.mrf.mxu1 }
 0x41f   : > { %v10542_v15 = vadd.f32 %v2245_v54, %v2217_v50  ;;  %v2276_v10 = vpop.f32.mrf.mxu0  ;;  %v2306_v16 = vadd.f32 %v2305_v46, %v1922_v55 }
 0x424   : > { %v2218_v25 = vpop.f32.mrf.mxu2 }
 0x425   : > { %v2219_v23 = vadd.f32 %v2218_v25, %v1922_v55  ;;  %v1912_v55 = vpop.permute.xlu0 %1911 }
 0x426   : > { %v2247_v44 = vpop.f32.mrf.mxu3  ;;  %v2308_v37 = vpop.f32.mrf.mxu1 }
 0x427   : > { %v2279_v19 = vpop.f32.mrf.mxu0  ;;  %v2309_v62 = vadd.f32 %v2308_v37, %v1927_v43  ;;  %v2248_v50 = vadd.f32 %v2247_v44, %v2219_v23  ;;  %v2275_v44 = vadd.f32 %v2274_v5, %v10542_v15 }
 0x429   : > { %v2277_v25 = vadd.f32 %v2276_v10, %v2248_v50  ;;  %v2396_v10 = vmul.f32 0.2, %v2275_v44  ;;  %vm2380_vm4 = vcmp.ge.f32.partialorder %v2275_v44, 0.0 }
 0x42b   : > { %vm2382_vm15 = vcmp.ge.f32.partialorder %v2277_v25, 0.0  ;;  %v2412_v23 = vsel %vm2380_vm4, %v2275_v44, %v2396_v10 }
 0x42c   : > { %v2221_v34 = vpop.f32.mrf.mxu2 }
 0x42d   : > { %v2222_v0 = vadd.f32 %v2221_v34, %v1927_v43 }
 0x42e   : > { %v2250_v56 = vpop.f32.mrf.mxu3  ;;  %v2310_v49 = vpop.f32.mrf.mxu1 }
 0x42f   : > { %v2251_v52 = vadd.f32 %v2250_v56, %v2222_v0  ;;  %v2281_v30 = vpop.f32.mrf.mxu0  ;;  %v2311_v54 = vadd.f32 %v2310_v49, %v10534_v28 }
 0x431   : > { %v2280_v13 = vadd.f32 %v2279_v19, %v2251_v52 }
 0x433   : > { %vm2384_vm11 = vcmp.ge.f32.partialorder %v2280_v13, 0.0 }
 0x434   : > { %v2223_v14 = vpop.f32.mrf.mxu2 }
 0x435   : > { %v2224_v60 = vadd.f32 %v2223_v14, %v10534_v28  ;;  %v2400_v14 = vmul.f32 0.2, %v2280_v13 }
 0x436   : > { %v2252_v18 = vpop.f32.mrf.mxu3 }
 0x437   : > { %v2253_v51 = vadd.f32 %v2252_v18, %v2224_v60  ;;  %v2284_v28 = vpop.f32.mrf.mxu0 }
 0x439   : > { %v2282_v34 = vadd.f32 %v2281_v30, %v2253_v51  ;;  %v2301_v30 = vadd.f32 %v10547_v24, %v1912_v55 }
 0x43b   : > { %v2402_v18 = vmul.f32 0.2, %v2282_v34  ;;  %vm2386_vm12 = vcmp.ge.f32.partialorder %v2282_v34, 0.0 }
 0x43c   : > { %v2226_v45 = vpop.f32.mrf.mxu2 }
 0x43d   : > { %v2227_v12 = vadd.f32 %v2226_v45, %v10531_v20 }
 0x43e   : > { %v2255_v33 = vpop.f32.mrf.mxu3 }
 0x43f   : > { %v10545_v48 = vadd.f32 %v2255_v33, %v2227_v12  ;;  %v2313_v12 = vpop.f32.mrf.mxu1 }
 0x440   : > { %v2314_v32 = vadd.f32 %v2313_v12, %v10531_v20 }
 0x444   : > { %v10549_v3 = vpop.f32.mrf.mxu2 }
 0x446   : > { %v10553_v27 = vpop.f32.mrf.mxu3 }
 0x447   : > { %v2315_v60 = vpop.f32.mrf.mxu1 }
 0x448   : > { %v2316_v51 = vadd.f32 %v2315_v60, %v10536_v35  ;;  %v3148_v60 = vld [vmem:[%s12354_s28 + $0x58] sm:$0xff] }
 0x44c   : > { %v2327_v4 = vpop.f32.mrf.mxu2 }
 0x44d   : > { %v2328_v57 = vadd.f32 %v2327_v4, %v2299_v26 }
 0x44e   : > { %v2356_v42 = vpop.f32.mrf.mxu3 }
 0x44f   : > { %v2357_v47 = vadd.f32 %v2356_v42, %v2328_v57  ;;  %v2416_v57 = vsel %vm2384_vm11, %v2280_v13, %v2400_v14  ;;  %v2398_v42 = vmul.f32 0.2, %v2277_v25 }
 0x451   : > { %vm2377_vm9 = vcmp.ge.f32.partialorder %v2357_v47, 0.0  ;;  %v2393_v11 = vmul.f32 0.2, %v2357_v47 }
 0x453   : > { %v2409_v1 = vsel %vm2377_vm9, %v2357_v47, %v2393_v11  ;;  %v2229_v11 = vadd.f32 %v10549_v3, %v10536_v35 }
 0x454   : > { %v10555_v53 = vpack.c.bf16 %v2409_v1, %v2408_v21  ;;  %v10557_v2 = vpop.f32.mrf.mxu2  ;;  %v2418_v1 = vsel %vm2386_vm12, %v2282_v34, %v2402_v18  ;;  %vm2565_vm12 = vcmask 523264  }
 0x456   : > { %v10559_v38 = vpop.f32.mrf.mxu3  ;;  %v2513_v10 = vunpack.c.l.b16 %v10555_v53 }
 0x45c   : > { %v2332_v9 = vpop.f32.mrf.mxu2 }
 0x45d   : > { %v2333_v43 = vadd.f32 %v2332_v9, %v2304_v39 }
 0x45e   : > { %v2361_v31 = vpop.f32.mrf.mxu3 }
 0x45f   : > { %v2362_v26 = vadd.f32 %v2361_v31, %v2333_v43 }
 0x461   : > { %v2397_v21 = vmul.f32 0.2, %v2362_v26  ;;  %vm2381_vm3 = vcmp.ge.f32.partialorder %v2362_v26, 0.0 }
 0x463   : > { %v2413_v3 = vsel %vm2381_vm3, %v2362_v26, %v2397_v21 }
 0x464   : > { %v2334_v40 = vpop.f32.mrf.mxu2 }
 0x465   : > { %v2335_v17 = vadd.f32 %v2334_v40, %v2306_v16  ;;  %v2258_v40 = vadd.f32 %v10553_v27, %v2229_v11  ;;  %v2426_v16 = vpack.c.bf16 %v2413_v3, %v2412_v23  ;;  %v2214_v27 = vadd.f32 %v10538_v7, %v1912_v55  ;;  %v3149_v3 = vld [vmem:[%s12354_s28 + $0x60] sm:$0xff]  ;;  %v3143_v55 = vld [vmem:[%s12354_s28 + $0x30] sm:$0xff]  ;;  %v3142_v23 = vld [vmem:[%s12354_s28 + $0x28] sm:$0xff] }
 0x466   : > { %v2363_v22 = vpop.f32.mrf.mxu3 }
 0x467   : > { %v2364_v6 = vadd.f32 %v2363_v22, %v2335_v17  ;;  %v2414_v22 = vsel %vm2382_vm15, %v2277_v25, %v2398_v42  ;;  %v2518_v34 = vunpack.c.h.b16 %v2426_v16  ;;  %v2243_v43 = vadd.f32 %v10540_v59, %v2214_v27  ;;  %v9348_v27 = vld [vmem:[%s12355_s24] sm:$0xff] }
 0x469   : > { %v2399_v4 = vmul.f32 0.2, %v2364_v6  ;;  %vm2383_vm14 = vcmp.ge.f32.partialorder %v2364_v6, 0.0 }
 0x46b   : > { %v2415_v9 = vsel %vm2383_vm14, %v2364_v6, %v2399_v4 }
 0x46c   : > { %v2337_v63 = vpop.f32.mrf.mxu2  ;;  %v10574_v49 = vpack.c.bf16 %v2415_v9, %v2414_v22  ;;  %v3141_v22 = vld [vmem:[%s12354_s28 + $0x20] sm:$0xff] }
 0x46d   : > { %v2338_v29 = vadd.f32 %v2337_v63, %v2309_v62 }
 0x46e   : > { %v2366_v58 = vpop.f32.mrf.mxu3  ;;  %v2520_v17 = vunpack.c.h.b16 %v10574_v49  ;;  %v2519_v21 = vunpack.c.l.b16 %v10574_v49  ;;  %v3140_v49 = vld [vmem:[%s12354_s28 + $0x18] sm:$0xff] }
 0x46f   : > { %v2367_v41 = vadd.f32 %v2366_v58, %v2338_v29  ;;  %v2285_v29 = vadd.f32 %v2284_v28, %v10545_v48  ;;  %v2286_v58 = vpop.f32.mrf.mxu0  ;;  %v2330_v48 = vadd.f32 %v10557_v2, %v2301_v30  ;;  %v2272_v2 = vadd.f32 %v10551_v61, %v2243_v43  ;;  %v3138_v30 = vld [vmem:[%s12354_s28 + $0x8] sm:$0xff] }
 0x470   : > { %v2532_v35 = vpack.c.b16 %v2520_v17, %v2518_v34 }
 0x471   : > { %v2401_v0 = vmul.f32 0.2, %v2367_v41  ;;  %vm2385_vm10 = vcmp.ge.f32.partialorder %v2367_v41, 0.0  ;;  %v2404_v50 = vmul.f32 0.2, %v2285_v29  ;;  %vm2388_vm7 = vcmp.ge.f32.partialorder %v2285_v29, 0.0 }
 0x472   : > { %v2359_v14 = vadd.f32 %v10559_v38, %v2330_v48  ;;  %v2394_v28 = vmul.f32 0.2, %v2272_v2  ;;  %vm2378_vm11 = vcmp.ge.f32.partialorder %v2272_v2, 0.0 }
 0x473   : > { %v2417_v36 = vsel %vm2385_vm10, %v2367_v41, %v2401_v0  ;;  %v2287_v41 = vadd.f32 %v2286_v58, %v2258_v40  ;;  %v2420_v6 = vsel %vm2388_vm7, %v2285_v29, %v2404_v50  ;;  %v3150_v40 = vld [vmem:[%s12354_s28 + $0x68] sm:$0xff]  ;;  %v3139_v29 = vld [vmem:[%s12354_s28 + $0x10] sm:$0xff]  ;;  %v3137_v58 = vld [vmem:[%s12354_s28] sm:$0xff] }
 0x474   : > { %v2339_v56 = vpop.f32.mrf.mxu2  ;;  %v10565_v47 = vpack.c.bf16 %v2417_v36, %v2416_v57  ;;  %vm2379_vm10 = vcmp.ge.f32.partialorder %v2359_v14, 0.0  ;;  %v2395_v59 = vmul.f32 0.2, %v2359_v14  ;;  %v2410_v42 = vsel %vm2378_vm11, %v2272_v2, %v2394_v28  ;;  %v9351_v2 = vld [vmem:[%s12355_s24 + $0x18] sm:$0xff]  ;;  %v9352_v28 = vld [vmem:[%s12355_s24 + $0x20] sm:$0xff] }
 0x475   : > { %v2340_v45 = vadd.f32 %v2339_v56, %v2311_v54  ;;  %v2406_v0 = vmul.f32 0.2, %v2287_v41  ;;  %vm2390_vm8 = vcmp.ge.f32.partialorder %v2287_v41, 0.0 }
 0x476   : > { %v2368_v33 = vpop.f32.mrf.mxu3  ;;  %v2521_v20 = vunpack.c.l.b16 %v10565_v47  ;;  %v2522_v61 = vunpack.c.h.b16 %v10565_v47  ;;  %v2514_v47 = vunpack.c.h.b16 %v10555_v53  ;;  %v3147_v53 = vld [vmem:[%s12354_s28 + $0x50] sm:$0xff] }
 0x477   : > { %v2369_v52 = vadd.f32 %v2368_v33, %v2340_v45  ;;  %v2422_v12 = vsel %vm2390_vm8, %v2287_v41, %v2406_v0  ;;  %v9349_v41 = vld [vmem:[%s12355_s24 + $0x8] sm:$0xff] }
 0x479   : > { %vm2387_vm13 = vcmp.ge.f32.partialorder %v2369_v52, 0.0  ;;  %v2403_v8 = vmul.f32 0.2, %v2369_v52 }
 0x47b   : > { %v2419_v46 = vsel %vm2387_vm13, %v2369_v52, %v2403_v8  ;;  %v2411_v8 = vsel %vm2379_vm10, %v2359_v14, %v2395_v59  ;;  %v9357_v59 = vld [vmem:[%s12355_s24 + $0x48] sm:$0xff] }
 0x47c   : > { %v10569_v15 = vpack.c.bf16 %v2419_v46, %v2418_v1  ;;  %v2342_v5 = vpop.f32.mrf.mxu2  ;;  %v2517_v1 = vunpack.c.l.b16 %v2426_v16 }
 0x47d   : > { %v2343_v31 = vadd.f32 %v2342_v5, %v2314_v32  ;;  %v2425_v32 = vpack.c.bf16 %v2411_v8, %v2410_v42  ;;  %v9354_v8 = vld [vmem:[%s12355_s24 + $0x30] sm:$0xff]  ;;  %v9355_v42 = vld [vmem:[%s12355_s24 + $0x38] sm:$0xff] }
 0x47e   : > { %v2371_v37 = vpop.f32.mrf.mxu3  ;;  %v2523_v19 = vunpack.c.l.b16 %v10569_v15  ;;  %v2524_v57 = vunpack.c.h.b16 %v10569_v15  ;;  %v2531_v46 = vpack.c.b16 %v2519_v21, %v2517_v1  ;;  %v9363_v21 = vld [vmem:[%s12355_s24 + $0x78] sm:$0xff]  ;;  %v9364_v1 = vld [vmem:[%s12355_s24 + $0x80] sm:$0xff] }
 0x47f   : > { %v2372_v62 = vadd.f32 %v2371_v37, %v2343_v31  ;;  %v2516_v15 = vunpack.c.h.b16 %v2425_v32  ;;  %v2515_v5 = vunpack.c.l.b16 %v2425_v32  ;;  %v3152_v37 = vld [vmem:[%s12354_s28 + $0x78] sm:$0xff]  ;;  %v9361_v32 = vld [vmem:[%s12355_s24 + $0x68] sm:$0xff] }
 0x480   : > { %v10576_v63 = vpack.c.b16 %v2523_v19, %v2521_v20  ;;  %v2534_v11 = vpack.c.b16 %v2524_v57, %v2522_v61  ;;  %v3151_v20 = vld [vmem:[%s12354_s28 + $0x70] sm:$0xff]  ;;  %v3146_v19 = vld [vmem:[%s12354_s28 + $0x48] sm:$0xff]  ;;  %v9359_v57 = vld [vmem:[%s12355_s24 + $0x58] sm:$0xff] }
 0x481   : > { %v2405_v39 = vmul.f32 0.2, %v2372_v62  ;;  %vm2389_vm5 = vcmp.ge.f32.partialorder %v2372_v62, 0.0  ;;  %v2530_v9 = vpack.c.b16 %v2516_v15, %v2514_v47  ;;  %v2529_v31 = vpack.c.b16 %v2515_v5, %v2513_v10  ;;  %v9360_v61 = vld [vmem:[%s12355_s24 + $0x60] sm:$0xff]  ;;  %v9365_v10 = vld [vmem:[%s12355_s24 + $0x88] sm:$0xff] }
 0x482   : > { %2545 = vrot.lane.b32.xlu0 %v10576_v63, %s12352_s1 }
 0x483   : > { %v2421_v56 = vsel %vm2389_vm5, %v2372_v62, %v2405_v39  ;;  %v3145_v62 = vld [vmem:[%s12354_s28 + $0x40] sm:$0xff] }
 0x484   : > { %v2344_v13 = vpop.f32.mrf.mxu2  ;;  %v2430_v25 = vpack.c.bf16 %v2421_v56, %v2420_v6 }
 0x485   : > { %v2345_v54 = vadd.f32 %v2344_v13, %v2316_v51 }
 0x486   : > { %v2373_v24 = vpop.f32.mrf.mxu3  ;;  %v2526_v26 = vunpack.c.h.b16 %v2430_v25  ;;  %v2525_v52 = vunpack.c.l.b16 %v2430_v25 }
 0x487   : > { %v2374_v7 = vadd.f32 %v2373_v24, %v2345_v54  ;;  %v9350_v24 = vld [vmem:[%s12355_s24 + $0x10] sm:$0xff] }
 0x489   : > { %vm2391_vm9 = vcmp.ge.f32.partialorder %v2374_v7, 0.0  ;;  %v2407_v45 = vmul.f32 0.2, %v2374_v7 }
 0x48a   : > { %2543 = vrot.lane.b32.xlu0 %v2532_v35, %s12352_s1 }
 0x48b   : > { %v2423_v33 = vsel %vm2391_vm9, %v2374_v7, %v2407_v45  ;;  %v9356_v7 = vld [vmem:[%s12355_s24 + $0x40] sm:$0xff] }
 0x48c   : > { %v2431_v18 = vpack.c.bf16 %v2423_v33, %v2422_v12 }
 0x48e   : > { %v2528_v36 = vunpack.c.h.b16 %v2431_v18  ;;  %v2527_v44 = vunpack.c.l.b16 %v2431_v18 }
 0x490   : > { %v2536_v38 = vpack.c.b16 %v2528_v36, %v2526_v26  ;;  %v2535_v4 = vpack.c.b16 %v2527_v44, %v2525_v52 }
 0x492   : > { %2551 = vrot.lane.b32.xlu2 %v2536_v38, %s12352_s1  ;;  %2813 = vmatpush.bf16.msra.mxu3 %v2536_v38 }
 0x493   : > { %2549 = vrot.lane.b32.xlu1 %v2535_v4, %s12352_s1  ;;  %2764 = vmatpush.bf16.msra.mxu2 %v2535_v4 }
 0x494   : > { %2927 = vrot.lane.b32.xlu0 %v2535_v4, %s12353_s7  ;;  %v9353_v4 = vld [vmem:[%s12355_s24 + $0x28] sm:$0xff] }
 0x496   : > { %2814 = vmatpush.bf16.msra.mxu3 %v2534_v11 }
 0x497   : > { %2765 = vmatpush.bf16.msra.mxu2 %v10576_v63 }
 0x49a   : > { %2815 = vmatpush.bf16.msra.mxu3 %v2532_v35  ;;  %2541 = vrot.lane.b32.xlu2 %v2531_v46, %s12352_s1 }
 0x49b   : > { %2547 = vrot.lane.b32.xlu1 %v2534_v11, %s12352_s1  ;;  %2766 = vmatpush.bf16.msra.mxu2 %v2531_v46 }
 0x49c   : > { %2925 = vrot.lane.b32.xlu0 %v2534_v11, %s12353_s7  ;;  %v9362_v11 = vld [vmem:[%s12355_s24 + $0x70] sm:$0xff] }
 0x49e   : > { %2816 = vmatpush.bf16.msra.mxu3 %v2530_v9 }
 0x49f   : > { %2767 = vmatpush.bf16.msra.mxu2 %v2529_v31 }
 0x4a1   : > { %8236 = vmatmul.msk.bf16.vlgmr.msra.gmra.mxu3 %vm2565_vm12, %v9348_v27 }
 0x4a2   : > { %2539 = vrot.lane.b32.xlu2 %v2530_v9, %s12352_s1  ;;  %8228 = vmatmul.msk.bf16.vlgmr.msra.gmra.mxu2 %vm2565_vm12, %v9348_v27  ;;  %v9379_v27 = vld [vmem:[%s12356_s10 + $0x38] sm:$0xff] }
 0x4a3   : > { %2537 = vrot.lane.b32.xlu1 %v2529_v31, %s12352_s1  ;;  %3335 = vmatpush.bf16.msrb.mxu2 %v9379_v27 }
 0x4a4   : > { %2915 = vrot.lane.b32.xlu0 %v2529_v31, %s12353_s7 }
 0x4aa   : > { %2923 = vrot.lane.b32.xlu2 %v10576_v63, %s12353_s7  ;;  %v3144_v63 = vld [vmem:[%s12354_s28 + $0x38] sm:$0xff] }
 0x4ab   : > { %2929 = vrot.lane.b32.xlu1 %v2536_v38, %s12353_s7  ;;  %v9358_v38 = vld [vmem:[%s12355_s24 + $0x50] sm:$0xff] }
 0x4ac   : > { %3230 = vperm.xlu0 %9569, %v3152_v37  }
 0x4b1   : > { %8237 = vmatmul.msk.bf16.gmra.mxu3 %vm2565_vm12, %v9349_v41 }
 0x4b2   : > { %2921 = vrot.lane.b32.xlu2 %v2532_v35, %s12353_s7  ;;  %8229 = vmatmul.msk.bf16.gmra.mxu2 %vm2565_vm12, %v9349_v41  ;;  %v9585_v41 = vmov 65535  }
 0x4b3   : > { %2919 = vrot.lane.b32.xlu1 %v2531_v46, %s12353_s7 }
 0x4b4   : > { %3205 = vperm.xlu0 %9569, %v3147_v53  }
 0x4ba   : > { %3225 = vperm.xlu2 %9571, %v3151_v20   ;;  %v9366_v20 = vld [vmem:[%s12355_s24 + $0x90] sm:$0xff] }
 0x4bb   : > { %2917 = vrot.lane.b32.xlu1 %v2530_v9, %s12353_s7 }
 0x4bc   : > { %3200 = vperm.xlu0 %9569, %v3146_v19  }
 0x4c1   : > { %8238 = vmatmul.msk.bf16.gmra.mxu3 %vm2565_vm12, %v9350_v24 }
 0x4c2   : > { %3220 = vperm.xlu2 %9571, %v3150_v40   ;;  %8230 = vmatmul.msk.bf16.gmra.mxu2 %vm2565_vm12, %v9350_v24 }
 0x4c3   : > { %3215 = vperm.xlu1 %9570, %v3149_v3  }
 0x4c4   : > { %3175 = vperm.xlu0 %9569, %v3141_v22  }
 0x4ca   : > { %3195 = vperm.xlu2 %9571, %v3145_v62   ;;  %v9367_v62 = vld [vmem:[%s12355_s24 + $0x98] sm:$0xff] }
 0x4cb   : > { %3210 = vperm.xlu1 %9570, %v3148_v60  }
 0x4cc   : > { %3170 = vperm.xlu0 %9569, %v3140_v49  }
 0x4d1   : > { %8239 = vmatmul.msk.bf16.gmra.mxu3 %vm2565_vm12, %v9351_v2 }
 0x4d2   : > { %3190 = vperm.xlu2 %9571, %v3144_v63   ;;  %8231 = vmatmul.msk.bf16.gmra.mxu2 %vm2565_vm12, %v9351_v2 }
 0x4d3   : > { %3185 = vperm.xlu1 %9570, %v3143_v55  }
 0x4da   : > { %3165 = vperm.xlu2 %9571, %v3139_v29   ;;  %v9368_v29 = vld [vmem:[%s12355_s24 + $0xa0] sm:$0xff] }
 0x4db   : > { %3180 = vperm.xlu1 %9570, %v3142_v23  }
 0x4e1   : > { %8240 = vmatmul.msk.bf16.gmra.mxu3 %vm2565_vm12, %v9352_v28 }
 0x4e2   : > { %3160 = vperm.xlu2 %9571, %v3138_v30   ;;  %8232 = vmatmul.msk.bf16.gmra.mxu2 %vm2565_vm12, %v9352_v28 }
 0x4e3   : > { %3155 = vperm.xlu1 %9570, %v3137_v58  }
 0x4ec   : > { %v2552_v16 = vpop.permute.xlu2 %2551 }
 0x4ed   : > { %2643 = vmatpush.bf16.msra.mxu1 %v2552_v16 }
 0x4f1   : > { %8241 = vmatmul.msk.bf16.gmra.mxu3 %vm2565_vm12, %v9353_v4 }
 0x4f2   : > { %8233 = vmatmul.msk.bf16.gmra.mxu2 %vm2565_vm12, %v9353_v4  ;;  %v9372_v4 = vld [vmem:[%s12356_s10] sm:$0xff] }
 0x4f4   : > { %v2546_v51 = vpop.permute.xlu0 %2545  ;;  %v2542_v17 = vpop.permute.xlu2 %2541 }
 0x4fc   : > { %v2544_v50 = vpop.permute.xlu0 %2543  ;;  %v2540_v34 = vpop.permute.xlu2 %2539 }
 0x4fd   : > { %v2554_v43 = vsel %vm795_vm0, %v2542_v17, %v2544_v50 }
 0x501   : > { %8242 = vmatmul.msk.bf16.gmra.mxu3 %vm2565_vm12, %v9354_v8 }
 0x502   : > { %8234 = vmatmul.msk.bf16.gmra.mxu2 %vm2565_vm12, %v9354_v8 }
 0x504   : > { %v2924_v14 = vpop.permute.xlu2 %2923 }
 0x505   : > { %v2550_v39 = vpop.permute.xlu1 %2549 }
 0x506   : > { %v2556_v13 = vsel %vm795_vm0, %v2550_v39, %v2552_v16  ;;  %v2928_v0 = vpop.permute.xlu0 %2927  ;;  %v3330_v39 = vsel %vm2195_vm6, 4294967295, %v9585_v41 }
 0x507   : > { %2594 = vmatpush.bf16.msra.mxu0 %v2556_v13 }
 0x50c   : > { %v2922_v33 = vpop.permute.xlu2 %2921 }
 0x50d   : > { %v2548_v48 = vpop.permute.xlu1 %2547 }
 0x50e   : > { %2644 = vmatpush.bf16.msra.mxu1 %v2548_v48  ;;  %v2555_v54 = vsel %vm795_vm0, %v2546_v51, %v2548_v48  ;;  %v2926_v25 = vpop.permute.xlu0 %2925  ;;  %v9369_v51 = vld [vmem:[%s12355_s24 + $0xa8] sm:$0xff]  ;;  %v9383_v48 = vld [vmem:[%s12356_s10 + $0x58] sm:$0x30] }
 0x50f   : > { %2595 = vmatpush.bf16.msra.mxu0 %v2555_v54  ;;  %v2933_v12 = vsel %vm823_vm1, %v2924_v14, %v2926_v25  ;;  %v9375_v14 = vld [vmem:[%s12356_s10 + $0x18] sm:$0xff] }
 0x511   : > { %8243 = vmatmul.msk.bf16.gmra.mxu3 %vm2565_vm12, %v9355_v42 }
 0x512   : > { %2645 = vmatpush.bf16.msra.mxu1 %v2544_v50  ;;  %8235 = vmatmul.msk.bf16.gmra.mxu2 %vm2565_vm12, %v9355_v42  ;;  %v8354_v50 = vld [vmem:[%s12356_s10 + $0x58] sm:$0xf] }
 0x513   : > { %2596 = vmatpush.bf16.msra.mxu0 %v2554_v43  ;;  %v8355_v54 = vor.u32 %v9383_v48, %v8354_v50 }
 0x515   : > { %v2538_v56 = vpop.permute.xlu1 %2537 }
 0x516   : > { %2646 = vmatpush.bf16.msra.mxu1 %v2540_v34  ;;  %v2553_v35 = vsel %vm795_vm0, %v2538_v56, %v2540_v34  ;;  %v2916_v36 = vpop.permute.xlu0 %2915  ;;  %vm3329_vm0 = vcmask 1045504   ;;  %v9378_v34 = vld [vmem:[%s12356_s10 + $0x30] sm:$0xff] }
 0x517   : > { %2597 = vmatpush.bf16.msra.mxu0 %v2553_v35  ;;  %v10832_v24 = vsel %vm3329_vm0, %v3330_v39, 0  ;;  %3336 = vmatpush.bf16.msrb.mxu2 %v9378_v34  ;;  %v9376_v35 = vld [vmem:[%s12356_s10 + $0x20] sm:$0xff] }
 0x518   : > { %v3333_v43 = vand.u32 %v8355_v54, %v10832_v24 }
 0x519   : > { %8188 = vmatmul.msk.bf16.vlgmr.msra.gmra.mxu1 %vm2565_vm12, %v9356_v7 }
 0x51a   : > { %8180 = vmatmul.msk.bf16.vlgmr.msra.gmra.mxu0 %vm2565_vm12, %v9356_v7  ;;  %3388 = vmatpush.bf16.msrb.mxu3 %v3333_v43 }
 0x51d   : > { %v2930_v6 = vpop.permute.xlu1 %2929 }
 0x51e   : > { %3020 = vmatpush.bf16.msrb.mxu1 %v2930_v6  ;;  %v2934_v45 = vsel %vm823_vm1, %v2928_v0, %v2930_v6  ;;  %v9377_v0 = vld [vmem:[%s12356_s10 + $0x28] sm:$0xff] }
 0x51f   : > { %2971 = vmatpush.bf16.msrb.mxu0 %v2934_v45  ;;  %3337 = vmatpush.bf16.msrb.mxu2 %v9377_v0 }
 0x522   : > { %3021 = vmatpush.bf16.msrb.mxu1 %v2926_v25  ;;  %v9370_v25 = vld [vmem:[%s12355_s24 + $0xb0] sm:$0xff] }
 0x523   : > { %2972 = vmatpush.bf16.msrb.mxu0 %v2933_v12  ;;  %3338 = vmatpush.bf16.msrb.mxu2 %v9376_v35 }
 0x524   : > { %v2818_v6 = vpop.f32.mrf.mxu3 }
 0x525   : > { %v2920_v18 = vpop.permute.xlu1 %2919  ;;  %v2769_v45 = vpop.f32.mrf.mxu2 }
 0x526   : > { %3022 = vmatpush.bf16.msrb.mxu1 %v2922_v33  ;;  %v2932_v26 = vsel %vm823_vm1, %v2920_v18, %v2922_v33  ;;  %v9382_v33 = vld [vmem:[%s12356_s10 + $0x50] sm:$0xff] }
 0x527   : > { %2973 = vmatpush.bf16.msrb.mxu0 %v2932_v26  ;;  %3339 = vmatpush.bf16.msrb.mxu2 %v9375_v14  ;;  %v9374_v18 = vld [vmem:[%s12356_s10 + $0x10] sm:$0xff]  ;;  %v9373_v26 = vld [vmem:[%s12356_s10 + $0x8] sm:$0xff] }
 0x528   : > { %3389 = vmatpush.bf16.msrb.mxu3 %v9382_v33 }
 0x529   : > { %8189 = vmatmul.msk.bf16.gmra.mxu1 %vm2565_vm12, %v9357_v59 }
 0x52a   : > { %8181 = vmatmul.msk.bf16.gmra.mxu0 %vm2565_vm12, %v9357_v59  ;;  %v9381_v59 = vld [vmem:[%s12356_s10 + $0x48] sm:$0xff] }
 0x52b   : > { %3340 = vmatpush.bf16.msrb.mxu2 %v9374_v18 }
 0x52c   : > { %3390 = vmatpush.bf16.msrb.mxu3 %v9381_v59 }
 0x52d   : > { %v2918_v52 = vpop.permute.xlu1 %2917 }
 0x52e   : > { %3023 = vmatpush.bf16.msrb.mxu1 %v2918_v52  ;;  %v2931_v44 = vsel %vm823_vm1, %v2916_v36, %v2918_v52  ;;  %v2820_v36 = vpop.f32.mrf.mxu3  ;;  %vm3304_vm1 = vcmask 482304  }
 0x52f   : > { %2974 = vmatpush.bf16.msrb.mxu0 %v2931_v44  ;;  %v2771_v44 = vpop.f32.mrf.mxu2  ;;  %3341 = vmatpush.bf16.msrb.mxu2 %v9373_v26 }
 0x533   : > { %3342 = vmatpush.bf16.msrb.mxu2 %v9372_v4 }
 0x536   : > { %v2823_v42 = vpop.f32.mrf.mxu3 }
 0x539   : > { %8190 = vmatmul.msk.bf16.gmra.mxu1 %vm2565_vm12, %v9358_v38 }
 0x53a   : > { %8182 = vmatmul.msk.bf16.gmra.mxu0 %vm2565_vm12, %v9358_v38  ;;  %v9380_v38 = vld [vmem:[%s12356_s10 + $0x40] sm:$0xff]  ;;  %s762_s10 = scalar_lea.vmem %s12294_s25, %s12359_s30 }
 0x53b   : > { %3391 = vmatpush.bf16.msrb.mxu3 %v9380_v38 }
 0x549   : > { %8191 = vmatmul.msk.bf16.gmra.mxu1 %vm2565_vm12, %v9359_v57 }
 0x54a   : > { %8183 = vmatmul.msk.bf16.gmra.mxu0 %vm2565_vm12, %v9359_v57  ;;  %v9371_v57 = vld [vmem:[%s12355_s24 + $0xb8] sm:$0xff] }
 0x559   : > { %8192 = vmatmul.msk.bf16.gmra.mxu1 %vm2565_vm12, %v9360_v61 }
 0x55a   : > { %8184 = vmatmul.msk.bf16.gmra.mxu0 %vm2565_vm12, %v9360_v61 }
 0x569   : > { %8193 = vmatmul.msk.bf16.gmra.mxu1 %vm2565_vm12, %v9361_v32 }
 0x56a   : > { %8185 = vmatmul.msk.bf16.gmra.mxu0 %vm2565_vm12, %v9361_v32  ;;  %v2774_v32 = vpop.f32.mrf.mxu2 }
 0x579   : > { %8194 = vmatmul.msk.bf16.gmra.mxu1 %vm2565_vm12, %v9362_v11 }
 0x57a   : > { %8186 = vmatmul.msk.bf16.gmra.mxu0 %vm2565_vm12, %v9362_v11 }
 0x589   : > { %8195 = vmatmul.msk.bf16.gmra.mxu1 %vm2565_vm12, %v9363_v21 }
 0x58a   : > { %8187 = vmatmul.msk.bf16.gmra.mxu0 %vm2565_vm12, %v9363_v21 }
 0x596   : > { %v10750_v46 = vpop.f32.mrf.mxu1 }
 0x597   : > { %v10752_v15 = vpop.f32.mrf.mxu0  ;;  %v2819_v27 = vadd.f32 %v2818_v6, %v10750_v46 }
 0x598   : > { %v2770_v50 = vadd.f32 %v2769_v45, %v10752_v15 }
 0x599   : > { %8300 = vmatmul.msk.bf16.vlgmr.msrb.gmra.mxu1 %vm2565_vm12, %v9364_v1 }
 0x59a   : > { %8292 = vmatmul.msk.bf16.vlgmr.msrb.gmra.mxu0 %vm2565_vm12, %v9364_v1  ;;  %v2825_v1 = vpop.f32.mrf.mxu3 }
 0x59e   : > { %v10756_v5 = vpop.f32.mrf.mxu1 }
 0x59f   : > { %v10758_v47 = vpop.f32.mrf.mxu0 }
 0x5a0   : > { %v2772_v48 = vadd.f32 %v2771_v44, %v10758_v47 }
 0x5a6   : > { %v10763_v9 = vpop.f32.mrf.mxu1 }
 0x5a7   : > { %v10765_v31 = vpop.f32.mrf.mxu0  ;;  %v2824_v15 = vadd.f32 %v2823_v42, %v10763_v9 }
 0x5a8   : > { %v2775_v45 = vadd.f32 %v2774_v32, %v10765_v31 }
 0x5a9   : > { %8301 = vmatmul.msk.bf16.gmra.mxu1 %vm2565_vm12, %v9365_v10 }
 0x5aa   : > { %8293 = vmatmul.msk.bf16.gmra.mxu0 %vm2565_vm12, %v9365_v10  ;;  %v2776_v10 = vpop.f32.mrf.mxu2 }
 0x5ae   : > { %v10769_v37 = vpop.f32.mrf.mxu1 }
 0x5af   : > { %v10771_v53 = vpop.f32.mrf.mxu0  ;;  %v2826_v47 = vadd.f32 %v2825_v1, %v10769_v37 }
 0x5b0   : > { %v2777_v59 = vadd.f32 %v2776_v10, %v10771_v53 }
 0x5b2   : > { %v2779_v39 = vpop.f32.mrf.mxu2 }
 0x5b6   : > { %v10776_v19 = vpop.f32.mrf.mxu1 }
 0x5b7   : > { %v10778_v40 = vpop.f32.mrf.mxu0 }
 0x5b8   : > { %v2780_v32 = vadd.f32 %v2779_v39, %v10778_v40 }
 0x5b9   : > { %8302 = vmatmul.msk.bf16.gmra.mxu1 %vm2565_vm12, %v9366_v20 }
 0x5ba   : > { %8294 = vmatmul.msk.bf16.gmra.mxu0 %vm2565_vm12, %v9366_v20 }
 0x5be   : > { %v10782_v3 = vpop.f32.mrf.mxu1 }
 0x5bf   : > { %v10784_v22 = vpop.f32.mrf.mxu0 }
 0x5c6   : > { %v10789_v60 = vpop.f32.mrf.mxu1 }
 0x5c7   : > { %v10791_v49 = vpop.f32.mrf.mxu0 }
 0x5c9   : > { %8303 = vmatmul.msk.bf16.gmra.mxu1 %vm2565_vm12, %v9367_v62 }
 0x5ca   : > { %8295 = vmatmul.msk.bf16.gmra.mxu0 %vm2565_vm12, %v9367_v62 }
 0x5ce   : > { %v10795_v63 = vpop.f32.mrf.mxu1 }
 0x5cf   : > { %v10797_v55 = vpop.f32.mrf.mxu0 }
 0x5d6   : > { %v10802_v23 = vpop.f32.mrf.mxu1 }
 0x5d7   : > { %v10804_v30 = vpop.f32.mrf.mxu0 }
 0x5d9   : > { %8304 = vmatmul.msk.bf16.gmra.mxu1 %vm2565_vm12, %v9368_v29 }
 0x5da   : > { %8296 = vmatmul.msk.bf16.gmra.mxu0 %vm2565_vm12, %v9368_v29  ;;  %v2828_v29 = vpop.f32.mrf.mxu3 }
 0x5db   : > { %v2829_v31 = vadd.f32 %v2828_v29, %v10776_v19 }
 0x5de   : > { %v10808_v58 = vpop.f32.mrf.mxu1 }
 0x5df   : > { %v10810_v16 = vpop.f32.mrf.mxu0 }
 0x5e2   : > { %v2830_v46 = vpop.f32.mrf.mxu3 }
 0x5e3   : > { %v2831_v53 = vadd.f32 %v2830_v46, %v10782_v3 }
 0x5e6   : > { %v10820_v13 = vpop.f32.mrf.mxu1 }
 0x5e7   : > { %v10822_v17 = vpop.f32.mrf.mxu0 }
 0x5e9   : > { %8305 = vmatmul.msk.bf16.gmra.mxu1 %vm2565_vm12, %v9369_v51 }
 0x5ea   : > { %8297 = vmatmul.msk.bf16.gmra.mxu0 %vm2565_vm12, %v9369_v51  ;;  %v2821_v51 = vadd.f32 %v2820_v36, %v10756_v5  ;;  %v2781_v5 = vpop.f32.mrf.mxu2  ;;  %v2833_v4 = vpop.f32.mrf.mxu3 }
 0x5eb   : > { %v2782_v10 = vadd.f32 %v2781_v5, %v10784_v22  ;;  %v2834_v3 = vadd.f32 %v2833_v4, %v10789_v60 }
 0x5ee   : > { %v10842_v56 = vpop.f32.mrf.mxu1 }
 0x5ef   : > { %v10844_v7 = vpop.f32.mrf.mxu0 }
 0x5f2   : > { %v2835_v37 = vpop.f32.mrf.mxu3 }
 0x5f3   : > { %v2836_v40 = vadd.f32 %v2835_v37, %v10795_v63 }
 0x5f6   : > { %v10855_v2 = vpop.f32.mrf.mxu1 }
 0x5f7   : > { %v10857_v12 = vpop.f32.mrf.mxu0 }
 0x5f9   : > { %8306 = vmatmul.msk.bf16.gmra.mxu1 %vm2565_vm12, %v9370_v25 }
 0x5fa   : > { %8298 = vmatmul.msk.bf16.gmra.mxu0 %vm2565_vm12, %v9370_v25 }
 0x5fe   : > { %v10873_v52 = vpop.f32.mrf.mxu1 }
 0x5ff   : > { %v10875_v28 = vpop.f32.mrf.mxu0 }
 0x606   : > { %v10886_v8 = vpop.f32.mrf.mxu1 }
 0x607   : > { %v10888_v61 = vpop.f32.mrf.mxu0 }
 0x609   : > { %8307 = vmatmul.msk.bf16.gmra.mxu1 %vm2565_vm12, %v9371_v57 }
 0x60a   : > { %8299 = vmatmul.msk.bf16.gmra.mxu0 %vm2565_vm12, %v9371_v57 }
 0x60e   : > { %v10892_v11 = vpop.f32.mrf.mxu1 }
 0x60f   : > { %v10894_v21 = vpop.f32.mrf.mxu0 }
 0x616   : > { %v3025_v20 = vpop.f32.mrf.mxu1 }
 0x617   : > { %v2976_v62 = vpop.f32.mrf.mxu0  ;;  %v3066_v34 = vadd.f32 %v3025_v20, %v2819_v27 }
 0x618   : > { %v3065_v35 = vadd.f32 %v2976_v62, %v2770_v50  ;;  %v2784_v62 = vpop.f32.mrf.mxu2 }
 0x619   : > { %v2785_v22 = vadd.f32 %v2784_v62, %v10791_v49 }
 0x61e   : > { %v3027_v54 = vpop.f32.mrf.mxu1 }
 0x61f   : > { %v3068_v43 = vadd.f32 %v3027_v54, %v2821_v51  ;;  %v2978_v0 = vpop.f32.mrf.mxu0 }
 0x620   : > { %v3067_v14 = vadd.f32 %v2978_v0, %v2772_v48  ;;  %v2786_v1 = vpop.f32.mrf.mxu2 }
 0x621   : > { %v3098_v25 = vpack.c.bf16 %v3068_v43, %v3066_v34  ;;  %v2787_v39 = vadd.f32 %v2786_v1, %v10797_v55 }
 0x622   : > { %v3097_v33 = vpack.c.bf16 %v3067_v14, %v3065_v35 }
 0x623   : > { %8356 = vmatmul.msk.bf16.vlgmr.msrb.gmra.mxu3 %vm3304_vm1, %v3098_v25  ;;  %v2838_v25 = vpop.f32.mrf.mxu3 }
 0x624   : > { %3343 = vmatmul.bf16.vlgmr.msrb.gmra.mxu2 %v3097_v33  ;;  %v2839_v49 = vadd.f32 %v2838_v25, %v10802_v23 }
 0x626   : > { %v3030_v6 = vpop.f32.mrf.mxu1 }
 0x627   : > { %v2981_v18 = vpop.f32.mrf.mxu0  ;;  %v3070_v36 = vadd.f32 %v3030_v6, %v2824_v15 }
 0x628   : > { %v3069_v57 = vadd.f32 %v2981_v18, %v2775_v45  ;;  %v2789_v33 = vpop.f32.mrf.mxu2 }
 0x629   : > { %v2790_v4 = vadd.f32 %v2789_v33, %v10804_v30 }
 0x62b   : > { %v2840_v46 = vpop.f32.mrf.mxu3 }
 0x62c   : > { %v2841_v55 = vadd.f32 %v2840_v46, %v10808_v58 }
 0x62e   : > { %v3032_v26 = vpop.f32.mrf.mxu1 }
 0x62f   : > { %v3072_v44 = vadd.f32 %v3032_v26, %v2826_v47  ;;  %v2983_v38 = vpop.f32.mrf.mxu0 }
 0x630   : > { %v3071_v20 = vadd.f32 %v2983_v38, %v2777_v59  ;;  %v2791_v5 = vpop.f32.mrf.mxu2 }
 0x631   : > { %v3100_v27 = vpack.c.bf16 %v3072_v44, %v3070_v36 }
 0x632   : > { %v3099_v51 = vpack.c.bf16 %v3071_v20, %v3069_v57  ;;  %v2792_v57 = vadd.f32 %v2791_v5, %v10810_v16 }
 0x633   : > { %8357 = vmatmul.msk.bf16.gmra.mxu3 %vm3304_vm1, %v3100_v27  ;;  %v2843_v63 = vpop.f32.mrf.mxu3 }
 0x634   : > { %3348 = vmatmul.bf16.gmra.mxu2 %v3099_v51  ;;  %v2844_v30 = vadd.f32 %v2843_v63, %v10820_v13 }
 0x636   : > { %v3035_v9 = vpop.f32.mrf.mxu1 }
 0x637   : > { %v2986_v42 = vpop.f32.mrf.mxu0  ;;  %v3074_v48 = vadd.f32 %v3035_v9, %v2829_v31 }
 0x638   : > { %v3073_v43 = vadd.f32 %v2986_v42, %v2780_v32  ;;  %v2794_v38 = vpop.f32.mrf.mxu2 }
 0x63b   : > { %v2845_v1 = vpop.f32.mrf.mxu3 }
 0x63c   : > { %v2846_v16 = vadd.f32 %v2845_v1, %v10842_v56 }
 0x63e   : > { %v3037_v50 = vpop.f32.mrf.mxu1 }
 0x63f   : > { %v3076_v54 = vadd.f32 %v3037_v50, %v2831_v53  ;;  %v2988_v34 = vpop.f32.mrf.mxu0  ;;  %v2795_v50 = vadd.f32 %v2794_v38, %v10822_v17 }
 0x640   : > { %v3075_v0 = vadd.f32 %v2988_v34, %v2782_v10  ;;  %v2796_v53 = vpop.f32.mrf.mxu2 }
 0x641   : > { %v3102_v35 = vpack.c.bf16 %v3076_v54, %v3074_v48  ;;  %v2797_v48 = vadd.f32 %v2796_v53, %v10844_v7  ;;  %v10946_v53 = vpop.permute.xlu0 %3230 }
 0x642   : > { %v3101_v14 = vpack.c.bf16 %v3075_v0, %v3073_v43 }
 0x643   : > { %8358 = vmatmul.msk.bf16.gmra.mxu3 %vm3304_vm1, %v3102_v35  ;;  %v2848_v58 = vpop.f32.mrf.mxu3 }
 0x644   : > { %3353 = vmatmul.bf16.gmra.mxu2 %v3101_v14 }
 0x646   : > { %v3040_v19 = vpop.f32.mrf.mxu1 }
 0x647   : > { %v2991_v29 = vpop.f32.mrf.mxu0  ;;  %v3078_v18 = vadd.f32 %v3040_v19, %v2834_v3  ;;  %v2849_v3 = vadd.f32 %v2848_v58, %v10855_v2 }
 0x648   : > { %v3077_v45 = vadd.f32 %v2991_v29, %v2785_v22  ;;  %v2799_v10 = vpop.f32.mrf.mxu2 }
 0x649   : > { %v2800_v7 = vadd.f32 %v2799_v10, %v10857_v12 }
 0x64b   : > { %v2850_v19 = vpop.f32.mrf.mxu3 }
 0x64c   : > { %v2851_v17 = vadd.f32 %v2850_v19, %v10873_v52 }
 0x64e   : > { %v3042_v6 = vpop.f32.mrf.mxu1 }
 0x64f   : > { %v3080_v15 = vadd.f32 %v3042_v6, %v2836_v40  ;;  %v2993_v47 = vpop.f32.mrf.mxu0 }
 0x650   : > { %v3079_v59 = vadd.f32 %v2993_v47, %v2787_v39  ;;  %v2801_v29 = vpop.f32.mrf.mxu2  ;;  %v10930_v39 = vpop.permute.xlu1 %3215 }
 0x651   : > { %v3104_v26 = vpack.c.bf16 %v3080_v15, %v3078_v18  ;;  %v2802_v40 = vadd.f32 %v2801_v29, %v10875_v28 }
 0x652   : > { %v3103_v36 = vpack.c.bf16 %v3079_v59, %v3077_v45 }
 0x653   : > { %8359 = vmatmul.msk.bf16.gmra.mxu3 %vm3304_vm1, %v3104_v26  ;;  %v2853_v18 = vpop.f32.mrf.mxu3 }
 0x654   : > { %3358 = vmatmul.bf16.gmra.mxu2 %v3103_v36 }
 0x656   : > { %v3045_v60 = vpop.f32.mrf.mxu1 }
 0x657   : > { %v2996_v44 = vpop.f32.mrf.mxu0  ;;  %v3082_v62 = vadd.f32 %v3045_v60, %v2839_v49  ;;  %v2854_v60 = vadd.f32 %v2853_v18, %v10886_v8 }
 0x658   : > { %v3081_v9 = vadd.f32 %v2996_v44, %v2790_v4  ;;  %v2804_v45 = vpop.f32.mrf.mxu2  ;;  %v10933_v12 = vpop.permute.xlu1 %3210 }
 0x659   : > { %v2805_v63 = vadd.f32 %v2804_v45, %v10888_v61 }
 0x65b   : > { %v2855_v28 = vpop.f32.mrf.mxu3 }
 0x65c   : > { %v2856_v44 = vadd.f32 %v2855_v28, %v10892_v11 }
 0x65e   : > { %v3047_v20 = vpop.f32.mrf.mxu1 }
 0x65f   : > { %v3084_v27 = vadd.f32 %v3047_v20, %v2841_v55  ;;  %v2998_v51 = vpop.f32.mrf.mxu0  ;;  %v10939_v55 = vpop.permute.xlu2 %3225 }
 0x660   : > { %v3083_v42 = vadd.f32 %v2998_v51, %v2792_v57  ;;  %v2806_v36 = vpop.f32.mrf.mxu2 }
 0x661   : > { %v3106_v37 = vpack.c.bf16 %v3084_v27, %v3082_v62  ;;  %v2807_v38 = vadd.f32 %v2806_v36, %v10894_v21 }
 0x662   : > { %v3105_v31 = vpack.c.bf16 %v3083_v42, %v3081_v9  ;;  %v3186_v42 = vpop.permute.xlu1 %3185 }
 0x663   : > { %8360 = vmatmul.msk.bf16.gmra.mxu3 %vm3304_vm1, %v3106_v37 }
 0x664   : > { %3363 = vmatmul.bf16.gmra.mxu2 %v3105_v31 }
 0x666   : > { %v3050_v23 = vpop.f32.mrf.mxu1 }
 0x667   : > { %v3001_v32 = vpop.f32.mrf.mxu0  ;;  %v3086_v34 = vadd.f32 %v3050_v23, %v2844_v30  ;;  %v10942_v8 = vpop.permute.xlu2 %3220 }
 0x668   : > { %v3085_v35 = vadd.f32 %v3001_v32, %v2795_v50 }
 0x66a   : > { %v10944_v11 = vpop.permute.xlu1 %3180 }
 0x66e   : > { %v3052_v54 = vpop.f32.mrf.mxu1 }
 0x66f   : > { %v3088_v43 = vadd.f32 %v3052_v54, %v2846_v16  ;;  %v3003_v0 = vpop.f32.mrf.mxu0  ;;  %v3196_v61 = vpop.permute.xlu2 %3195 }
 0x670   : > { %v3087_v14 = vadd.f32 %v3003_v0, %v2797_v48  ;;  %v3206_v16 = vpop.permute.xlu0 %3205 }
 0x671   : > { %v3108_v25 = vpack.c.bf16 %v3088_v43, %v3086_v34 }
 0x672   : > { %v3107_v33 = vpack.c.bf16 %v3087_v14, %v3085_v35  ;;  %v3156_v37 = vpop.permute.xlu1 %3155 }
 0x673   : > { %8361 = vmatmul.msk.bf16.gmra.mxu3 %vm3304_vm1, %v3108_v25 }
 0x674   : > { %3368 = vmatmul.bf16.gmra.mxu2 %v3107_v33 }
 0x676   : > { %v3055_v13 = vpop.f32.mrf.mxu1 }
 0x677   : > { %v3006_v56 = vpop.f32.mrf.mxu0  ;;  %v3090_v46 = vadd.f32 %v3055_v13, %v2849_v3  ;;  %v10950_v32 = vpop.permute.xlu2 %3190 }
 0x678   : > { %v3089_v15 = vadd.f32 %v3006_v56, %v2800_v7  ;;  %v3201_v43 = vpop.permute.xlu0 %3200 }
 0x67e   : > { %v3057_v22 = vpop.f32.mrf.mxu1 }
 0x67f   : > { %v3092_v6 = vadd.f32 %v3057_v22, %v2851_v17  ;;  %v3008_v5 = vpop.f32.mrf.mxu0  ;;  %v3166_v50 = vpop.permute.xlu2 %3165 }
 0x680   : > { %v3091_v47 = vadd.f32 %v3008_v5, %v2802_v40  ;;  %v3176_v25 = vpop.permute.xlu0 %3175 }
 0x681   : > { %v3110_v59 = vpack.c.bf16 %v3092_v6, %v3090_v46 }
 0x682   : > { %v3109_v26 = vpack.c.bf16 %v3091_v47, %v3089_v15 }
 0x683   : > { %8362 = vmatmul.msk.bf16.gmra.mxu3 %vm3304_vm1, %v3110_v59 }
 0x684   : > { %3373 = vmatmul.bf16.gmra.mxu2 %v3109_v26 }
 0x686   : > { %v3060_v2 = vpop.f32.mrf.mxu1 }
 0x687   : > { %v3011_v52 = vpop.f32.mrf.mxu0  ;;  %v3094_v4 = vadd.f32 %v3060_v2, %v2854_v60 }
 0x688   : > { %v3093_v62 = vadd.f32 %v3011_v52, %v2805_v63 }
 0x68e   : > { %v3062_v49 = vpop.f32.mrf.mxu1 }
 0x68f   : > { %v3096_v57 = vadd.f32 %v3062_v49, %v2856_v44  ;;  %v3013_v20 = vpop.f32.mrf.mxu0 }
 0x690   : > { %v3095_v27 = vadd.f32 %v3013_v20, %v2807_v38 }
 0x691   : > { %v3112_v51 = vpack.c.bf16 %v3096_v57, %v3094_v4 }
 0x692   : > { %v3111_v9 = vpack.c.bf16 %v3095_v27, %v3093_v62 }
 0x693   : > { %8363 = vmatmul.msk.bf16.gmra.mxu3 %vm3304_vm1, %v3112_v51 }
 0x694   : > { %3378 = vmatmul.bf16.gmra.mxu2 %v3111_v9 }
 0x6a6   : > { %v3393_v21 = vpop.f32.mrf.mxu3 }
 0x6a7   : > { %v3344_v1 = vpop.f32.mrf.mxu2 }
 0x6a8   : > { %v3345_v31 = vadd.f32 %v3344_v1, %v3156_v37 }
 0x6aa   : > { %v10948_v23 = vadd.f32 %v3393_v21, %v3345_v31 }
 0x6ae   : > { %v10952_v58 = vpop.f32.mrf.mxu3 }
 0x6af   : > { %v10954_v30 = vpop.f32.mrf.mxu2 }
 0x6b6   : > { %v3398_v10 = vpop.f32.mrf.mxu3 }
 0x6b7   : > { %v3349_v48 = vpop.f32.mrf.mxu2 }
 0x6b8   : > { %v3350_v54 = vadd.f32 %v3349_v48, %v3166_v50 }
 0x6ba   : > { %v10956_v34 = vadd.f32 %v3398_v10, %v3350_v54 }
 0x6bc   : > { %vm3435_vm1 = vcmp.ge.f32.partialorder %v10956_v34, 0.0 }
 0x6be   : > { %v10958_v0 = vpop.f32.mrf.mxu3 }
 0x6bf   : > { %v10960_v35 = vpop.f32.mrf.mxu2 }
 0x6c6   : > { %v3403_v14 = vpop.f32.mrf.mxu3 }
 0x6c7   : > { %v3354_v33 = vpop.f32.mrf.mxu2 }
 0x6c8   : > { %v3355_v19 = vadd.f32 %v3354_v33, %v3176_v25 }
 0x6ca   : > { %v10962_v13 = vadd.f32 %v3403_v14, %v3355_v19 }
 0x6cc   : > { %vm3437_vm11 = vcmp.ge.f32.partialorder %v10962_v13, 0.0 }
 0x6ce   : > { %v10964_v29 = vpop.f32.mrf.mxu3 }
 0x6cf   : > { %v10966_v56 = vpop.f32.mrf.mxu2 }
 0x6d6   : > { %v3408_v3 = vpop.f32.mrf.mxu3 }
 0x6d7   : > { %v3359_v17 = vpop.f32.mrf.mxu2 }
 0x6d8   : > { %v3360_v7 = vadd.f32 %v3359_v17, %v3186_v42 }
 0x6da   : > { %v10968_v40 = vadd.f32 %v3408_v3, %v3360_v7 }
 0x6dc   : > { %vm3439_vm9 = vcmp.ge.f32.partialorder %v10968_v40, 0.0 }
 0x6de   : > { %v10970_v22 = vpop.f32.mrf.mxu3 }
 0x6df   : > { %v10972_v46 = vpop.f32.mrf.mxu2 }
 0x6e6   : > { %v3413_v6 = vpop.f32.mrf.mxu3 }
 0x6e7   : > { %v3364_v5 = vpop.f32.mrf.mxu2 }
 0x6e8   : > { %v3365_v18 = vadd.f32 %v3364_v5, %v3196_v61 }
 0x6ea   : > { %v3414_v15 = vadd.f32 %v3413_v6, %v3365_v18 }
 0x6ec   : > { %v3457_v47 = vmul.f32 0.2, %v3414_v15  ;;  %vm3441_vm6 = vcmp.ge.f32.partialorder %v3414_v15, 0.0 }
 0x6ee   : > { %v3415_v45 = vpop.f32.mrf.mxu3  ;;  %v3473_v2 = vsel %vm3441_vm6, %v3414_v15, %v3457_v47 }
 0x6ef   : > { %v3366_v59 = vpop.f32.mrf.mxu2  ;;  %v3489_v36 = vpack.c.bf16 %v3473_v2, %v3473_v2 }
 0x6f0   : > { %v3367_v26 = vadd.f32 %v3366_v59, %v3201_v43 }
 0x6f1   : > { %v3602_v4 = vunpack.c.l.b16 %v3489_v36 }
 0x6f2   : > { %v3416_v52 = vadd.f32 %v3415_v45, %v3367_v26 }
 0x6f4   : > { %vm3442_vm13 = vcmp.ge.f32.partialorder %v3416_v52, 0.0  ;;  %v3458_v28 = vmul.f32 0.2, %v3416_v52 }
 0x6f6   : > { %v3474_v60 = vsel %vm3442_vm13, %v3416_v52, %v3458_v28  ;;  %v3418_v44 = vpop.f32.mrf.mxu3  ;;  %v3362_v28 = vadd.f32 %v10972_v46, %v10950_v32  ;;  %vm3433_vm13 = vcmp.ge.f32.partialorder %v10948_v23, 0.0 }
 0x6f7   : > { %v3490_v63 = vpack.c.bf16 %v3474_v60, %v3474_v60  ;;  %v3369_v38 = vpop.f32.mrf.mxu2 }
 0x6f8   : > { %v3370_v49 = vadd.f32 %v3369_v38, %v3206_v16  ;;  %v3411_v60 = vadd.f32 %v10970_v22, %v3362_v28  ;;  %v4135_v28 = vld [vmem:[%s12281_s12 + $0x58] sm:$0xff] }
 0x6f9   : > { %v3603_v57 = vunpack.c.l.b16 %v3490_v63 }
 0x6fa   : > { %v3419_v20 = vadd.f32 %v3418_v44, %v3370_v49  ;;  %v3357_v49 = vadd.f32 %v10966_v56, %v10944_v11  ;;  %v3456_v32 = vmul.f32 0.2, %v3411_v60  ;;  %vm3440_vm8 = vcmp.ge.f32.partialorder %v3411_v60, 0.0 }
 0x6fb   : > { %v10974_v62 = vpack.c.b16 %v3603_v57, %v3602_v4  ;;  %v3455_v57 = vmul.f32 0.2, %v10968_v40 }
 0x6fc   : > { %v3459_v27 = vmul.f32 0.2, %v3419_v20  ;;  %vm3443_vm14 = vcmp.ge.f32.partialorder %v3419_v20, 0.0  ;;  %v3406_v22 = vadd.f32 %v10964_v29, %v3357_v49  ;;  %v3161_v29 = vpop.permute.xlu2 %3160  ;;  %v4131_v49 = vld [vmem:[%s12281_s12 + $0x38] sm:$0xff] }
 0x6fd   : > { %3626 = vrot.lane.b32.xlu2 %v10974_v62, %s12352_s1  ;;  %4023 = vrot.lane.b32.xlu1 %v10974_v62, %s12357_s8 }
 0x6fe   : > { %3869 = vrot.lane.b32.xlu0 %v10974_v62, %s12353_s7  ;;  %v3420_v51 = vpop.f32.mrf.mxu3  ;;  %v3475_v61 = vsel %vm3443_vm14, %v3419_v20, %v3459_v27  ;;  %vm3438_vm10 = vcmp.ge.f32.partialorder %v3406_v22, 0.0  ;;  %vm4255_vm14 = vcmask 744448  }
 0x6ff   : > { %v3371_v9 = vpop.f32.mrf.mxu2  ;;  %v3491_v1 = vpack.c.bf16 %v3475_v61, %v3475_v61  ;;  %v3171_v61 = vpop.permute.xlu0 %3170 }
 0x700   : > { %v3372_v42 = vadd.f32 %v3371_v9, %v10933_v12 }
 0x701   : > { %v3604_v54 = vunpack.c.l.b16 %v3491_v1 }
 0x702   : > { %v3421_v21 = vadd.f32 %v3420_v51, %v3372_v42  ;;  %v3471_v42 = vsel %vm3439_vm9, %v10968_v40, %v3455_v57  ;;  %v4126_v57 = vld [vmem:[%s12281_s12 + $0x10] sm:$0xff] }
 0x703   : > { %v3487_v1 = vpack.c.bf16 %v3471_v42, %v3471_v42 }
 0x704   : > { %vm3444_vm15 = vcmp.ge.f32.partialorder %v3421_v21, 0.0  ;;  %v3460_v37 = vmul.f32 0.2, %v3421_v21 }
 0x706   : > { %v3476_v31 = vsel %vm3444_vm15, %v3421_v21, %v3460_v37  ;;  %v3423_v16 = vpop.f32.mrf.mxu3  ;;  %v3352_v21 = vadd.f32 %v10960_v35, %v3171_v61  ;;  %v3454_v37 = vmul.f32 0.2, %v3406_v22 }
 0x707   : > { %v3492_v10 = vpack.c.bf16 %v3476_v31, %v3476_v31  ;;  %v3374_v50 = vpop.f32.mrf.mxu2  ;;  %v3453_v31 = vmul.f32 0.2, %v10962_v13 }
 0x708   : > { %v3375_v48 = vadd.f32 %v3374_v50, %v10930_v39  ;;  %v3401_v35 = vadd.f32 %v10958_v0, %v3352_v21  ;;  %v3600_v50 = vunpack.c.l.b16 %v3487_v1  ;;  %v9384_v1 = vld [vmem:[%s12280_s11] sm:$0xff] }
 0x709   : > { %v3605_v43 = vunpack.c.l.b16 %v3492_v10  ;;  %v3470_v10 = vsel %vm3438_vm10, %v3406_v22, %v3454_v37 }
 0x70a   : > { %v3424_v14 = vadd.f32 %v3423_v16, %v3375_v48  ;;  %v3347_v16 = vadd.f32 %v10954_v30, %v3161_v29  ;;  %v3469_v48 = vsel %vm3437_vm11, %v10962_v13, %v3453_v31  ;;  %vm3436_vm12 = vcmp.ge.f32.partialorder %v3401_v35, 0.0 }
 0x70b   : > { %v10984_v25 = vpack.c.b16 %v3605_v43, %v3604_v54  ;;  %v3486_v54 = vpack.c.bf16 %v3470_v10, %v3470_v10  ;;  %v3451_v30 = vmul.f32 0.2, %v10956_v34 }
 0x70c   : > { %v3461_v12 = vmul.f32 0.2, %v3424_v14  ;;  %vm3445_vm3 = vcmp.ge.f32.partialorder %v3424_v14, 0.0 }
 0x70d   : > { %3628 = vrot.lane.b32.xlu2 %v10984_v25, %s12352_s1  ;;  %4025 = vrot.lane.b32.xlu1 %v10984_v25, %s12357_s8  ;;  %v3599_v0 = vunpack.c.l.b16 %v3486_v54 }
 0x70e   : > { %3871 = vrot.lane.b32.xlu0 %v10984_v25, %s12353_s7  ;;  %v3425_v33 = vpop.f32.mrf.mxu3  ;;  %v3477_v3 = vsel %vm3445_vm3, %v3424_v14, %v3461_v12  ;;  %v3396_v14 = vadd.f32 %v10952_v58, %v3347_v16  ;;  %v3452_v12 = vmul.f32 0.2, %v3401_v35 }
 0x70f   : > { %v3376_v19 = vpop.f32.mrf.mxu2  ;;  %v3493_v6 = vpack.c.bf16 %v3477_v3, %v3477_v3 }
 0x710   : > { %v3377_v39 = vadd.f32 %v3376_v19, %v10942_v8  ;;  %v3450_v13 = vmul.f32 0.2, %v3396_v14  ;;  %v3468_v19 = vsel %vm3436_vm12, %v3401_v35, %v3452_v12  ;;  %vm3434_vm6 = vcmp.ge.f32.partialorder %v3396_v14, 0.0  ;;  %v9392_v35 = vld [vmem:[%s12280_s11 + $0x40] sm:$0xff] }
 0x711   : > { %v3606_v59 = vunpack.c.l.b16 %v3493_v6  ;;  %v3484_v3 = vpack.c.bf16 %v3468_v19, %v3468_v19  ;;  %v9400_v19 = vld [vmem:[%s12280_s11 + $0x80] sm:$0xff] }
 0x712   : > { %v3426_v17 = vadd.f32 %v3425_v33, %v3377_v39  ;;  %v3485_v33 = vpack.c.bf16 %v3469_v48, %v3469_v48  ;;  %v3449_v39 = vmul.f32 0.2, %v10948_v23  ;;  %v9385_v48 = vld [vmem:[%s12280_s11 + $0x8] sm:$0xff] }
 0x714   : > { %vm3446_vm4 = vcmp.ge.f32.partialorder %v3426_v17, 0.0  ;;  %v3462_v7 = vmul.f32 0.2, %v3426_v17  ;;  %v3598_v58 = vunpack.c.l.b16 %v3485_v33 }
 0x716   : > { %v3478_v5 = vsel %vm3446_vm4, %v3426_v17, %v3462_v7  ;;  %v3428_v15 = vpop.f32.mrf.mxu3  ;;  %v3612_v17 = vpack.c.b16 %v3599_v0, %v3598_v58  ;;  %v3466_v7 = vsel %vm3434_vm6, %v3396_v14, %v3450_v13  ;;  %v9393_v14 = vld [vmem:[%s12280_s11 + $0x48] sm:$0xff]  ;;  %v9408_v58 = vld [vmem:[%s12280_s11 + $0xc0] sm:$0xff] }
 0x717   : > { %v3494_v18 = vpack.c.bf16 %v3478_v5, %v3478_v5  ;;  %v3379_v47 = vpop.f32.mrf.mxu2  ;;  %v3465_v5 = vsel %vm3433_vm13, %v10948_v23, %v3449_v39  ;;  %v9394_v39 = vld [vmem:[%s12280_s11 + $0x50] sm:$0xff] }
 0x718   : > { %v3380_v45 = vadd.f32 %v3379_v47, %v10939_v55 }
 0x719   : > { %v3607_v26 = vunpack.c.l.b16 %v3494_v18  ;;  %v3597_v18 = vunpack.c.l.b16 %v3484_v3  ;;  %v9401_v3 = vld [vmem:[%s12280_s11 + $0x88] sm:$0xff] }
 0x71a   : > { %v3429_v2 = vadd.f32 %v3428_v15, %v3380_v45  ;;  %v3481_v15 = vpack.c.bf16 %v3465_v5, %v3465_v5  ;;  %v9402_v5 = vld [vmem:[%s12280_s11 + $0x90] sm:$0xff] }
 0x71b   : > { %v3616_v52 = vpack.c.b16 %v3607_v26, %v3606_v59  ;;  %v4136_v26 = vld [vmem:[%s12281_s12 + $0x60] sm:$0xff] }
 0x71c   : > { %v3463_v8 = vmul.f32 0.2, %v3429_v2  ;;  %vm3447_vm5 = vcmp.ge.f32.partialorder %v3429_v2, 0.0  ;;  %v3594_v59 = vunpack.c.l.b16 %v3481_v15  ;;  %v9389_v15 = vld [vmem:[%s12280_s11 + $0x28] sm:$0xff] }
 0x71d   : > { %3630 = vrot.lane.b32.xlu2 %v3616_v52, %s12352_s1  ;;  %4027 = vrot.lane.b32.xlu1 %v3616_v52, %s12357_s8 }
 0x71e   : > { %3873 = vrot.lane.b32.xlu0 %v3616_v52, %s12353_s7  ;;  %v3430_v44 = vpop.f32.mrf.mxu3  ;;  %v3479_v63 = vsel %vm3447_vm5, %v3429_v2, %v3463_v8  ;;  %v4139_v2 = vld [vmem:[%s12281_s12 + $0x78] sm:$0xff]  ;;  %v4134_v8 = vld [vmem:[%s12281_s12 + $0x50] sm:$0xff] }
 0x71f   : > { %v3381_v36 = vpop.f32.mrf.mxu2  ;;  %v3495_v4 = vpack.c.bf16 %v3479_v63, %v3479_v63  ;;  %v4129_v63 = vld [vmem:[%s12281_s12 + $0x28] sm:$0xff] }
 0x720   : > { %v3382_v55 = vadd.f32 %v3381_v36, %v10946_v53  ;;  %v3472_v53 = vsel %vm3440_vm8, %v3411_v60, %v3456_v32  ;;  %v4137_v36 = vld [vmem:[%s12281_s12 + $0x68] sm:$0xff]  ;;  %v4130_v60 = vld [vmem:[%s12281_s12 + $0x30] sm:$0xff] }
 0x721   : > { %v3608_v51 = vunpack.c.l.b16 %v3495_v4  ;;  %v3488_v11 = vpack.c.bf16 %v3472_v53, %v3472_v53  ;;  %v4127_v4 = vld [vmem:[%s12281_s12 + $0x18] sm:$0xff] }
 0x722   : > { %v3431_v38 = vadd.f32 %v3430_v44, %v3382_v55  ;;  %v4133_v55 = vld [vmem:[%s12281_s12 + $0x48] sm:$0xff]  ;;  %v4132_v44 = vld [vmem:[%s12281_s12 + $0x40] sm:$0xff] }
 0x723   : > { %v3601_v40 = vunpack.c.l.b16 %v3488_v11 }
 0x724   : > { %vm3448_vm7 = vcmp.ge.f32.partialorder %v3431_v38, 0.0  ;;  %v3464_v46 = vmul.f32 0.2, %v3431_v38 }
 0x725   : > { %v3613_v43 = vpack.c.b16 %v3601_v40, %v3600_v50 }
 0x726   : > { %v3480_v20 = vsel %vm3448_vm7, %v3431_v38, %v3464_v46  ;;  %v4128_v38 = vld [vmem:[%s12281_s12 + $0x20] sm:$0xff] }
 0x727   : > { %v3496_v27 = vpack.c.bf16 %v3480_v20, %v3480_v20  ;;  %v4124_v46 = vld [vmem:[%s12281_s12] sm:$0xff] }
 0x729   : > { %v3609_v9 = vunpack.c.l.b16 %v3496_v27  ;;  %v4125_v27 = vld [vmem:[%s12281_s12 + $0x8] sm:$0xff] }
 0x72b   : > { %v3617_v56 = vpack.c.b16 %v3609_v9, %v3608_v51 }
 0x72d   : > { %3747 = vmatpush.bf16.msra.mxu1 %v3617_v56  ;;  %3632 = vrot.lane.b32.xlu2 %v3617_v56, %s12352_s1 }
 0x72e   : > { %4029 = vrot.lane.b32.xlu1 %v3617_v56, %s12357_s8  ;;  %3875 = vrot.lane.b32.xlu0 %v3617_v56, %s12353_s7 }
 0x731   : > { %3748 = vmatpush.bf16.msra.mxu1 %v3616_v52  ;;  %v4138_v52 = vld [vmem:[%s12281_s12 + $0x70] sm:$0xff] }
 0x735   : > { %3749 = vmatpush.bf16.msra.mxu1 %v10984_v25  ;;  %3624 = vrot.lane.b32.xlu2 %v3613_v43, %s12352_s1  ;;  %v3467_v25 = vsel %vm3435_vm1, %v10956_v34, %v3451_v30  ;;  %v9386_v30 = vld [vmem:[%s12280_s11 + $0x10] sm:$0xff] }
 0x736   : > { %4021 = vrot.lane.b32.xlu1 %v3613_v43, %s12357_s8  ;;  %3867 = vrot.lane.b32.xlu0 %v3613_v43, %s12353_s7  ;;  %v3483_v6 = vpack.c.bf16 %v3467_v25, %v3467_v25  ;;  %v9387_v25 = vld [vmem:[%s12280_s11 + $0x18] sm:$0xff] }
 0x738   : > { %v3596_v47 = vunpack.c.l.b16 %v3483_v6  ;;  %v9388_v6 = vld [vmem:[%s12280_s11 + $0x20] sm:$0xff] }
 0x739   : > { %3750 = vmatpush.bf16.msra.mxu1 %v10974_v62  ;;  %v3482_v62 = vpack.c.bf16 %v3466_v7, %v3466_v7  ;;  %v9395_v7 = vld [vmem:[%s12280_s11 + $0x58] sm:$0xff] }
 0x73a   : > { %v3611_v45 = vpack.c.b16 %v3597_v18, %v3596_v47  ;;  %v9396_v18 = vld [vmem:[%s12280_s11 + $0x60] sm:$0xff]  ;;  %v9403_v47 = vld [vmem:[%s12280_s11 + $0x98] sm:$0xff] }
 0x73b   : > { %v3595_v34 = vunpack.c.l.b16 %v3482_v62  ;;  %v9410_v62 = vld [vmem:[%s12280_s11 + $0xd0] sm:$0xff] }
 0x73d   : > { %3751 = vmatpush.bf16.msra.mxu1 %v3613_v43  ;;  %3622 = vrot.lane.b32.xlu2 %v3612_v17, %s12352_s1  ;;  %v3610_v23 = vpack.c.b16 %v3595_v34, %v3594_v59  ;;  %v9411_v34 = vld [vmem:[%s12280_s11 + $0xd8] sm:$0xff]  ;;  %v9390_v59 = vld [vmem:[%s12280_s11 + $0x30] sm:$0xff] }
 0x73e   : > { %4019 = vrot.lane.b32.xlu1 %v3612_v17, %s12357_s8  ;;  %3865 = vrot.lane.b32.xlu0 %v3612_v17, %s12353_s7 }
 0x741   : > { %3752 = vmatpush.bf16.msra.mxu1 %v3612_v17  ;;  %v9409_v17 = vld [vmem:[%s12280_s11 + $0xc8] sm:$0xff] }
 0x745   : > { %3620 = vrot.lane.b32.xlu2 %v3611_v45, %s12352_s1  ;;  %3753 = vmatpush.bf16.msra.mxu1 %v3611_v45 }
 0x746   : > { %4017 = vrot.lane.b32.xlu1 %v3611_v45, %s12357_s8  ;;  %3863 = vrot.lane.b32.xlu0 %v3611_v45, %s12353_s7  ;;  %v9397_v45 = vld [vmem:[%s12280_s11 + $0x68] sm:$0xff] }
 0x749   : > { %3754 = vmatpush.bf16.msra.mxu1 %v3610_v23 }
 0x74c   : > { %3755 = vmatmul.bf16.vlgmr.msra.gmra.mxu1 %v9384_v1 }
 0x74d   : > { %3618 = vrot.lane.b32.xlu2 %v3610_v23, %s12352_s1 }
 0x74e   : > { %4015 = vrot.lane.b32.xlu1 %v3610_v23, %s12357_s8  ;;  %3861 = vrot.lane.b32.xlu0 %v3610_v23, %s12353_s7  ;;  %v9404_v23 = vld [vmem:[%s12280_s11 + $0xa0] sm:$0xff] }
 0x755   : > { %4202 = vperm.xlu2 %9571, %v4136_v26   ;;  %v9412_v26 = vld [vmem:[%s12280_s11 + $0xe0] sm:$0xff] }
 0x756   : > { %4217 = vperm.xlu1 %9570, %v4139_v2   ;;  %4212 = vperm.xlu0 %9569, %v4138_v52   ;;  %v9398_v2 = vld [vmem:[%s12280_s11 + $0x70] sm:$0xff]  ;;  %v9391_v52 = vld [vmem:[%s12280_s11 + $0x38] sm:$0xff] }
 0x757   : > { %v3627_v32 = vpop.permute.xlu2 %3626 }
 0x75c   : > { %3760 = vmatmul.bf16.gmra.mxu1 %v9385_v48 }
 0x75d   : > { %4197 = vperm.xlu2 %9571, %v4135_v28   ;;  %v9405_v28 = vld [vmem:[%s12280_s11 + $0xa8] sm:$0xff] }
 0x75e   : > { %4192 = vperm.xlu1 %9570, %v4134_v8   ;;  %4207 = vperm.xlu0 %9569, %v4137_v36   ;;  %v9413_v8 = vld [vmem:[%s12280_s11 + $0xe8] sm:$0xff] }
 0x75f   : > { %v8562_v36 = vld [vmem:[%s12282_s13 + $0x28] sm:$0xf] }
 0x765   : > { %4172 = vperm.xlu2 %9571, %v4130_v60   ;;  %v9421_v60 = vld [vmem:[%s12282_s13 + $0x28] sm:$0x30] }
 0x766   : > { %4187 = vperm.xlu1 %9570, %v4133_v55   ;;  %4182 = vperm.xlu0 %9569, %v4132_v44   ;;  %v8563_v55 = vor.u32 %v9421_v60, %v8562_v36  ;;  %v9399_v44 = vld [vmem:[%s12280_s11 + $0x78] sm:$0xff] }
 0x767   : > { %v3629_v20 = vpop.permute.xlu2 %3628 }
 0x76c   : > { %3765 = vmatmul.bf16.gmra.mxu1 %v9386_v30 }
 0x76d   : > { %4167 = vperm.xlu2 %9571, %v4129_v63   ;;  %v4281_v63 = vand.u32 %v8563_v55, %v10832_v24  ;;  %v9419_v24 = vld [vmem:[%s12282_s13 + $0x18] sm:$0xff] }
 0x76e   : > { %4162 = vperm.xlu1 %9570, %v4128_v38   ;;  %4177 = vperm.xlu0 %9569, %v4131_v49   ;;  %v9420_v38 = vld [vmem:[%s12282_s13 + $0x20] sm:$0xff]  ;;  %v9406_v49 = vld [vmem:[%s12280_s11 + $0xb0] sm:$0xff] }
 0x76f   : > { %v4024_v51 = vpop.permute.xlu1 %4023 }
 0x770   : > { %v3870_v9 = vpop.permute.xlu0 %3869 }
 0x775   : > { %4142 = vperm.xlu2 %9571, %v4124_v46  }
 0x776   : > { %4157 = vperm.xlu1 %9570, %v4127_v4   ;;  %4152 = vperm.xlu0 %9569, %v4126_v57   ;;  %v9418_v57 = vld [vmem:[%s12282_s13 + $0x10] sm:$0xff] }
 0x777   : > { %v3631_v22 = vpop.permute.xlu2 %3630 }
 0x77c   : > { %3770 = vmatmul.bf16.gmra.mxu1 %v9387_v25 }
 0x77e   : > { %4147 = vperm.xlu0 %9569, %v4125_v27  }
 0x77f   : > { %v4026_v61 = vpop.permute.xlu1 %4025 }
 0x780   : > { %v3872_v11 = vpop.permute.xlu0 %3871 }
 0x787   : > { %v3633_v53 = vpop.permute.xlu2 %3632 }
 0x788   : > { %3642 = vmatpush.bf16.msra.mxu0 %v3633_v53  ;;  %v9415_v53 = vld [vmem:[%s12280_s11 + $0xf8] sm:$0xff] }
 0x78c   : > { %3643 = vmatpush.bf16.msra.mxu0 %v3631_v22  ;;  %3775 = vmatmul.bf16.gmra.mxu1 %v9388_v6  ;;  %v9407_v22 = vld [vmem:[%s12280_s11 + $0xb8] sm:$0xff] }
 0x78f   : > { %v3625_v42 = vpop.permute.xlu2 %3624  ;;  %v4028_v21 = vpop.permute.xlu1 %4027 }
 0x790   : > { %3644 = vmatpush.bf16.msra.mxu0 %v3629_v20  ;;  %v3874_v37 = vpop.permute.xlu0 %3873  ;;  %v9417_v20 = vld [vmem:[%s12282_s13 + $0x8] sm:$0xff] }
 0x794   : > { %3645 = vmatpush.bf16.msra.mxu0 %v3627_v32  ;;  %v9414_v32 = vld [vmem:[%s12280_s11 + $0xf0] sm:$0xff] }
 0x797   : > { %v3623_v56 = vpop.permute.xlu2 %3622 }
 0x798   : > { %3646 = vmatpush.bf16.msra.mxu0 %v3625_v42 }
 0x79c   : > { %3647 = vmatpush.bf16.msra.mxu0 %v3623_v56  ;;  %3780 = vmatmul.bf16.gmra.mxu1 %v9389_v15 }
 0x79f   : > { %v3621_v31 = vpop.permute.xlu2 %3620 }
 0x7a0   : > { %v4030_v29 = vpop.permute.xlu1 %4029  ;;  %v3876_v40 = vpop.permute.xlu0 %3875  ;;  %3648 = vmatpush.bf16.msra.mxu0 %v3621_v31 }
 0x7a1   : > { %3885 = vmatpush.bf16.msra.mxu2 %v3876_v40  ;;  %4039 = vmatpush.bf16.msra.mxu3 %v4030_v29 }
 0x7a5   : > { %3886 = vmatpush.bf16.msra.mxu2 %v3874_v37  ;;  %4040 = vmatpush.bf16.msra.mxu3 %v4028_v21 }
 0x7a7   : > { %v3619_v16 = vpop.permute.xlu2 %3618 }
 0x7a8   : > { %v4022_v10 = vpop.permute.xlu1 %4021  ;;  %v3868_v50 = vpop.permute.xlu0 %3867  ;;  %3649 = vmatpush.bf16.msra.mxu0 %v3619_v16 }
 0x7a9   : > { %3887 = vmatpush.bf16.msra.mxu2 %v3872_v11  ;;  %4041 = vmatpush.bf16.msra.mxu3 %v4026_v61 }
 0x7ab   : > { %3650 = vmatmul.bf16.vlgmr.msra.gmra.mxu0 %v9392_v35 }
 0x7ac   : > { %3785 = vmatmul.bf16.gmra.mxu1 %v9390_v59  ;;  %4285 = vmatpush.bf16.msrb.mxu0 %v4281_v63 }
 0x7ad   : > { %3888 = vmatpush.bf16.msra.mxu2 %v3870_v9  ;;  %4042 = vmatpush.bf16.msra.mxu3 %v4024_v51  ;;  %v9416_v9 = vld [vmem:[%s12282_s13] sm:$0xff] }
 0x7b0   : > { %v4020_v54 = vpop.permute.xlu1 %4019  ;;  %v3866_v43 = vpop.permute.xlu0 %3865  ;;  %4286 = vmatpush.bf16.msrb.mxu0 %v9420_v38 }
 0x7b1   : > { %3889 = vmatpush.bf16.msra.mxu2 %v3868_v50  ;;  %4043 = vmatpush.bf16.msra.mxu3 %v4022_v10 }
 0x7b4   : > { %4287 = vmatpush.bf16.msrb.mxu0 %v9419_v24 }
 0x7b5   : > { %3890 = vmatpush.bf16.msra.mxu2 %v3866_v43  ;;  %4044 = vmatpush.bf16.msra.mxu3 %v4020_v54 }
 0x7b8   : > { %v4018_v12 = vpop.permute.xlu1 %4017  ;;  %v3864_v33 = vpop.permute.xlu0 %3863  ;;  %4288 = vmatpush.bf16.msrb.mxu0 %v9418_v57 }
 0x7b9   : > { %3891 = vmatpush.bf16.msra.mxu2 %v3864_v33  ;;  %4045 = vmatpush.bf16.msra.mxu3 %v4018_v12 }
 0x7bb   : > { %3655 = vmatmul.bf16.gmra.mxu0 %v9393_v14 }
 0x7bc   : > { %3790 = vmatmul.bf16.gmra.mxu1 %v9391_v52  ;;  %4289 = vmatpush.bf16.msrb.mxu0 %v9417_v20 }
 0x7c0   : > { %v4016_v0 = vpop.permute.xlu1 %4015  ;;  %v3862_v13 = vpop.permute.xlu0 %3861  ;;  %4290 = vmatpush.bf16.msrb.mxu0 %v9416_v9 }
 0x7c1   : > { %3892 = vmatpush.bf16.msra.mxu2 %v3862_v13  ;;  %4046 = vmatpush.bf16.msra.mxu3 %v4016_v0 }
 0x7c4   : > { %3893 = vmatmul.bf16.vlgmr.msra.gmra.mxu2 %v9400_v19  ;;  %4047 = vmatmul.bf16.vlgmr.msra.gmra.mxu3 %v9408_v58 }
 0x7c9   : > { %v3756_v46 = vpop.f32.mrf.mxu1 }
 0x7cb   : > { %3660 = vmatmul.bf16.gmra.mxu0 %v9394_v39 }
 0x7d1   : > { %v3758_v27 = vpop.f32.mrf.mxu1 }
 0x7d4   : > { %3898 = vmatmul.bf16.gmra.mxu2 %v9401_v3  ;;  %4052 = vmatmul.bf16.gmra.mxu3 %v9409_v17 }
 0x7d9   : > { %v3761_v61 = vpop.f32.mrf.mxu1 }
 0x7db   : > { %3665 = vmatmul.bf16.gmra.mxu0 %v9395_v7 }
 0x7e1   : > { %v3763_v56 = vpop.f32.mrf.mxu1 }
 0x7e4   : > { %3903 = vmatmul.bf16.gmra.mxu2 %v9402_v5  ;;  %4057 = vmatmul.bf16.gmra.mxu3 %v9410_v62 }
 0x7e9   : > { %v3766_v29 = vpop.f32.mrf.mxu1 }
 0x7eb   : > { %3670 = vmatmul.bf16.gmra.mxu0 %v9396_v18 }
 0x7f1   : > { %v3768_v12 = vpop.f32.mrf.mxu1 }
 0x7f4   : > { %3908 = vmatmul.bf16.gmra.mxu2 %v9403_v47  ;;  %4062 = vmatmul.bf16.gmra.mxu3 %v9411_v34 }
 0x7f9   : > { %v3771_v17 = vpop.f32.mrf.mxu1 }
 0x7fb   : > { %3675 = vmatmul.bf16.gmra.mxu0 %v9397_v45 }
 0x801   : > { %v3773_v34 = vpop.f32.mrf.mxu1 }
 0x804   : > { %3913 = vmatmul.bf16.gmra.mxu2 %v9404_v23  ;;  %4067 = vmatmul.bf16.gmra.mxu3 %v9412_v26 }
 0x809   : > { %v3776_v60 = vpop.f32.mrf.mxu1 }
 0x80b   : > { %3680 = vmatmul.bf16.gmra.mxu0 %v9398_v2 }
 0x814   : > { %3918 = vmatmul.bf16.gmra.mxu2 %v9405_v28  ;;  %4072 = vmatmul.bf16.gmra.mxu3 %v9413_v8 }
 0x81b   : > { %3685 = vmatmul.bf16.gmra.mxu0 %v9399_v44 }
 0x824   : > { %3923 = vmatmul.bf16.gmra.mxu2 %v9406_v49  ;;  %4077 = vmatmul.bf16.gmra.mxu3 %v9414_v32 }
 0x828   : > { %v3651_v4 = vpop.f32.mrf.mxu0 }
 0x829   : > { %v3757_v1 = vadd.f32 %v3756_v46, %v3651_v4  ;;  %v3778_v46 = vpop.f32.mrf.mxu1 }
 0x830   : > { %v3653_v51 = vpop.f32.mrf.mxu0 }
 0x831   : > { %v3759_v40 = vadd.f32 %v3758_v27, %v3653_v51 }
 0x834   : > { %3928 = vmatmul.bf16.gmra.mxu2 %v9407_v22  ;;  %4082 = vmatmul.bf16.gmra.mxu3 %v9415_v53 }
 0x838   : > { %v3656_v42 = vpop.f32.mrf.mxu0 }
 0x839   : > { %v3762_v0 = vadd.f32 %v3761_v61, %v3656_v42  ;;  %v3781_v42 = vpop.f32.mrf.mxu1 }
 0x840   : > { %v3658_v11 = vpop.f32.mrf.mxu0 }
 0x841   : > { %v3764_v13 = vadd.f32 %v3763_v56, %v3658_v11 }
 0x847   : > { %v3894_v21 = vpop.f32.mrf.mxu2  ;;  %v4048_v37 = vpop.f32.mrf.mxu3 }
 0x848   : > { %v3661_v31 = vpop.f32.mrf.mxu0  ;;  %v3934_v16 = vadd.f32 %v3894_v21, %v3757_v1 }
 0x849   : > { %v3767_v15 = vadd.f32 %v3766_v29, %v3661_v31 }
 0x84a   : > { %v4088_v48 = vadd.f32 %v4048_v37, %v3934_v16  ;;  %v3783_v16 = vpop.f32.mrf.mxu1 }
 0x84f   : > { %v3896_v35 = vpop.f32.mrf.mxu2  ;;  %v4050_v10 = vpop.f32.mrf.mxu3 }
 0x850   : > { %v3935_v50 = vadd.f32 %v3896_v35, %v3759_v40  ;;  %v3663_v14 = vpop.f32.mrf.mxu0 }
 0x851   : > { %v3769_v45 = vadd.f32 %v3768_v12, %v3663_v14 }
 0x852   : > { %v4089_v54 = vadd.f32 %v4050_v10, %v3935_v50 }
 0x854   : > { %v4104_v43 = vpack.c.bf16 %v4089_v54, %v4088_v48 }
 0x856   : > { %8564 = vmatmul.msk.bf16.vlgmr.msrb.gmra.mxu0 %vm4255_vm14, %v4104_v43  ;;  %v3786_v43 = vpop.f32.mrf.mxu1 }
 0x857   : > { %v3899_v33 = vpop.f32.mrf.mxu2  ;;  %v4053_v30 = vpop.f32.mrf.mxu3 }
 0x858   : > { %v3936_v19 = vadd.f32 %v3899_v33, %v3762_v0  ;;  %v3666_v3 = vpop.f32.mrf.mxu0 }
 0x859   : > { %v3772_v63 = vadd.f32 %v3771_v17, %v3666_v3 }
 0x85a   : > { %v4090_v7 = vadd.f32 %v4053_v30, %v3936_v19 }
 0x85f   : > { %v3901_v58 = vpop.f32.mrf.mxu2  ;;  %v4055_v39 = vpop.f32.mrf.mxu3 }
 0x860   : > { %v3937_v25 = vadd.f32 %v3901_v58, %v3764_v13  ;;  %v3668_v47 = vpop.f32.mrf.mxu0 }
 0x861   : > { %v3774_v38 = vadd.f32 %v3773_v34, %v3668_v47 }
 0x862   : > { %v4091_v6 = vadd.f32 %v4055_v39, %v3937_v25  ;;  %v3788_v25 = vpop.f32.mrf.mxu1 }
 0x864   : > { %v4105_v5 = vpack.c.bf16 %v4091_v6, %v4090_v7 }
 0x866   : > { %8565 = vmatmul.msk.bf16.gmra.mxu0 %vm4255_vm14, %v4105_v5 }
 0x867   : > { %v3904_v62 = vpop.f32.mrf.mxu2  ;;  %v4058_v18 = vpop.f32.mrf.mxu3 }
 0x868   : > { %v3938_v59 = vadd.f32 %v3904_v62, %v3767_v15  ;;  %v3671_v36 = vpop.f32.mrf.mxu0 }
 0x869   : > { %v3777_v61 = vadd.f32 %v3776_v60, %v3671_v36 }
 0x86a   : > { %v4092_v52 = vadd.f32 %v4058_v18, %v3938_v59  ;;  %v3791_v34 = vpop.f32.mrf.mxu1 }
 0x86f   : > { %v3906_v23 = vpop.f32.mrf.mxu2  ;;  %v4060_v26 = vpop.f32.mrf.mxu3 }
 0x870   : > { %v3939_v2 = vadd.f32 %v3906_v23, %v3769_v45  ;;  %v3673_v32 = vpop.f32.mrf.mxu0 }
 0x871   : > { %v3779_v11 = vadd.f32 %v3778_v46, %v3673_v32 }
 0x872   : > { %v4093_v28 = vadd.f32 %v4060_v26, %v3939_v2 }
 0x874   : > { %v4106_v8 = vpack.c.bf16 %v4093_v28, %v4092_v52 }
 0x876   : > { %8566 = vmatmul.msk.bf16.gmra.mxu0 %vm4255_vm14, %v4106_v8  ;;  %v3793_v8 = vpop.f32.mrf.mxu1 }
 0x877   : > { %v3909_v55 = vpop.f32.mrf.mxu2  ;;  %v4063_v44 = vpop.f32.mrf.mxu3 }
 0x878   : > { %v3940_v49 = vadd.f32 %v3909_v55, %v3772_v63  ;;  %v3676_v9 = vpop.f32.mrf.mxu0 }
 0x879   : > { %v3782_v48 = vadd.f32 %v3781_v42, %v3676_v9  ;;  %v4213_v9 = vpop.permute.xlu0 %4212  ;;  %v11221_v42 = vpop.permute.xlu1 %4217 }
 0x87a   : > { %v4094_v20 = vadd.f32 %v4063_v44, %v3940_v49 }
 0x87f   : > { %v3911_v24 = vpop.f32.mrf.mxu2  ;;  %v4065_v4 = vpop.f32.mrf.mxu3 }
 0x880   : > { %v3941_v57 = vadd.f32 %v3911_v24, %v3774_v38  ;;  %v3678_v40 = vpop.f32.mrf.mxu0 }
 0x881   : > { %v3784_v14 = vadd.f32 %v3783_v16, %v3678_v40 }
 0x882   : > { %v4095_v27 = vadd.f32 %v4065_v4, %v3941_v57 }
 0x884   : > { %v4107_v22 = vpack.c.bf16 %v4095_v27, %v4094_v20 }
 0x886   : > { %8567 = vmatmul.msk.bf16.gmra.mxu0 %vm4255_vm14, %v4107_v22 }
 0x887   : > { %v3914_v53 = vpop.f32.mrf.mxu2  ;;  %v4068_v51 = vpop.f32.mrf.mxu3 }
 0x888   : > { %v3942_v56 = vadd.f32 %v3914_v53, %v3777_v61  ;;  %v3681_v54 = vpop.f32.mrf.mxu0 }
 0x889   : > { %v3787_v7 = vadd.f32 %v3786_v43, %v3681_v54 }
 0x88a   : > { %v4096_v31 = vadd.f32 %v4068_v51, %v3942_v56  ;;  %v4208_v56 = vpop.permute.xlu0 %4207 }
 0x88f   : > { %v3916_v21 = vpop.f32.mrf.mxu2  ;;  %v4070_v37 = vpop.f32.mrf.mxu3 }
 0x890   : > { %v3943_v1 = vadd.f32 %v3916_v21, %v3779_v11  ;;  %v3683_v39 = vpop.f32.mrf.mxu0  ;;  %v4203_v11 = vpop.permute.xlu2 %4202 }
 0x891   : > { %v3789_v6 = vadd.f32 %v3788_v25, %v3683_v39  ;;  %v4193_v21 = vpop.permute.xlu1 %4192 }
 0x892   : > { %v4097_v29 = vadd.f32 %v4070_v37, %v3943_v1  ;;  %v11225_v16 = vpop.permute.xlu0 %4182 }
 0x894   : > { %v4108_v35 = vpack.c.bf16 %v4097_v29, %v4096_v31 }
 0x896   : > { %8568 = vmatmul.msk.bf16.gmra.mxu0 %vm4255_vm14, %v4108_v35 }
 0x897   : > { %v3919_v10 = vpop.f32.mrf.mxu2  ;;  %v4073_v50 = vpop.f32.mrf.mxu3 }
 0x898   : > { %v3944_v12 = vadd.f32 %v3919_v10, %v3782_v48  ;;  %v3686_v47 = vpop.f32.mrf.mxu0  ;;  %v4198_v29 = vpop.permute.xlu2 %4197 }
 0x899   : > { %v3792_v52 = vadd.f32 %v3791_v34, %v3686_v47  ;;  %v4188_v39 = vpop.permute.xlu1 %4187 }
 0x89a   : > { %v4098_v13 = vadd.f32 %v4073_v50, %v3944_v12 }
 0x89f   : > { %v3921_v33 = vpop.f32.mrf.mxu2  ;;  %v4075_v30 = vpop.f32.mrf.mxu3 }
 0x8a0   : > { %v3945_v0 = vadd.f32 %v3921_v33, %v3784_v14  ;;  %v3688_v28 = vpop.f32.mrf.mxu0 }
 0x8a1   : > { %v3794_v36 = vadd.f32 %v3793_v8, %v3688_v28  ;;  %v4163_v8 = vpop.permute.xlu1 %4162 }
 0x8a2   : > { %v4099_v19 = vadd.f32 %v4075_v30, %v3945_v0 }
 0x8a4   : > { %v4109_v58 = vpack.c.bf16 %v4099_v19, %v4098_v13  ;;  %v4178_v13 = vpop.permute.xlu0 %4177  ;;  %v4173_v19 = vpop.permute.xlu2 %4172 }
 0x8a6   : > { %8569 = vmatmul.msk.bf16.gmra.mxu0 %vm4255_vm14, %v4109_v58 }
 0x8a7   : > { %v3924_v3 = vpop.f32.mrf.mxu2  ;;  %v4078_v17 = vpop.f32.mrf.mxu3 }
 0x8a8   : > { %v3946_v5 = vadd.f32 %v3924_v3, %v3787_v7 }
 0x8aa   : > { %v4100_v45 = vadd.f32 %v4078_v17, %v3946_v5 }
 0x8af   : > { %v3926_v62 = vpop.f32.mrf.mxu2  ;;  %v4080_v18 = vpop.f32.mrf.mxu3 }
 0x8b0   : > { %v3947_v15 = vadd.f32 %v3926_v62, %v3789_v6 }
 0x8b2   : > { %v4101_v59 = vadd.f32 %v4080_v18, %v3947_v15  ;;  %v11233_v15 = vpop.permute.xlu0 %4152 }
 0x8b4   : > { %v4110_v23 = vpack.c.bf16 %v4101_v59, %v4100_v45  ;;  %v4168_v59 = vpop.permute.xlu2 %4167 }
 0x8b6   : > { %8570 = vmatmul.msk.bf16.gmra.mxu0 %vm4255_vm14, %v4110_v23 }
 0x8b7   : > { %v3929_v26 = vpop.f32.mrf.mxu2  ;;  %v4083_v2 = vpop.f32.mrf.mxu3 }
 0x8b8   : > { %v3948_v60 = vadd.f32 %v3929_v26, %v3792_v52 }
 0x8ba   : > { %v4102_v38 = vadd.f32 %v4083_v2, %v3948_v60 }
 0x8bf   : > { %v3931_v55 = vpop.f32.mrf.mxu2  ;;  %v4085_v63 = vpop.f32.mrf.mxu3 }
 0x8c0   : > { %v3949_v44 = vadd.f32 %v3931_v55, %v3794_v36 }
 0x8c2   : > { %v4103_v49 = vadd.f32 %v4085_v63, %v3949_v44 }
 0x8c4   : > { %v4111_v32 = vpack.c.bf16 %v4103_v49, %v4102_v38 }
 0x8c6   : > { %8571 = vmatmul.msk.bf16.gmra.mxu0 %vm4255_vm14, %v4111_v32 }
 0x8d3   : > { %v11211_v46 = vpop.f32.mrf.mxu0 }
 0x8db   : > { %v11213_v24 = vpop.f32.mrf.mxu0 }
 0x8e3   : > { %v11215_v4 = vpop.f32.mrf.mxu0 }
 0x8eb   : > { %v11217_v57 = vpop.f32.mrf.mxu0 }
 0x8f3   : > { %v4302_v20 = vpop.f32.mrf.mxu0 }
 0x8f4   : > { %v4303_v55 = vadd.f32 %v4302_v20, %v4163_v8 }
 0x8f6   : > { %vm4336_vm11 = vcmp.ge.f32.partialorder %v4303_v55, 0.0 }
 0x8fb   : > { %v4304_v27 = vpop.f32.mrf.mxu0 }
 0x8fc   : > { %v4305_v26 = vadd.f32 %v4304_v27, %v4168_v59  ;;  %v4352_v27 = vmul.f32 0.2, %v4303_v55 }
 0x8fe   : > { %v4353_v38 = vmul.f32 0.2, %v4305_v26  ;;  %vm4337_vm9 = vcmp.ge.f32.partialorder %v4305_v26, 0.0 }
 0x903   : > { %v4307_v22 = vpop.f32.mrf.mxu0 }
 0x904   : > { %v4308_v17 = vadd.f32 %v4307_v22, %v4173_v19 }
 0x906   : > { %v4354_v47 = vmul.f32 0.2, %v4308_v17  ;;  %vm4338_vm8 = vcmp.ge.f32.partialorder %v4308_v17, 0.0 }
 0x908   : > { %v4370_v36 = vsel %vm4338_vm8, %v4308_v17, %v4354_v47 }
 0x909   : > { %v4386_v49 = vpack.c.bf16 %v4370_v36, %v4370_v36 }
 0x90b   : > { %v4309_v53 = vpop.f32.mrf.mxu0 }
 0x90c   : > { %v4310_v25 = vadd.f32 %v4309_v53, %v4178_v13  ;;  %v4148_v53 = vpop.permute.xlu0 %4147 }
 0x90e   : > { %v4355_v5 = vmul.f32 0.2, %v4310_v25  ;;  %vm4339_vm7 = vcmp.ge.f32.partialorder %v4310_v25, 0.0 }
 0x910   : > { %v4371_v23 = vsel %vm4339_vm7, %v4310_v25, %v4355_v5 }
 0x911   : > { %v4387_v63 = vpack.c.bf16 %v4371_v23, %v4371_v23  ;;  %v4298_v23 = vadd.f32 %v11215_v4, %v11233_v15  ;;  %v4878_v4 = vld [vmem:[%s12284_s15 + $0x78] sm:$0xff] }
 0x913   : > { %v11219_v51 = vpop.f32.mrf.mxu0  ;;  %v4500_v22 = vunpack.c.l.b16 %v4387_v63  ;;  %v4877_v63 = vld [vmem:[%s12284_s15 + $0x70] sm:$0xff] }
 0x91b   : > { %v11223_v61 = vpop.f32.mrf.mxu0 }
 0x91c   : > { %v4315_v20 = vadd.f32 %v11223_v61, %v4188_v39 }
 0x91e   : > { %vm4341_vm1 = vcmp.ge.f32.partialorder %v4315_v20, 0.0 }
 0x923   : > { %v4317_v37 = vpop.f32.mrf.mxu0 }
 0x924   : > { %v4318_v1 = vadd.f32 %v4317_v37, %v4193_v21  ;;  %v4143_v37 = vpop.permute.xlu2 %4142 }
 0x926   : > { %v4358_v31 = vmul.f32 0.2, %v4318_v1  ;;  %vm4342_vm15 = vcmp.ge.f32.partialorder %v4318_v1, 0.0 }
 0x928   : > { %v4374_v35 = vsel %vm4342_vm15, %v4318_v1, %v4358_v31  ;;  %v4313_v1 = vadd.f32 %v11219_v51, %v11225_v16 }
 0x929   : > { %v4390_v48 = vpack.c.bf16 %v4374_v35, %v4374_v35  ;;  %v4368_v35 = vsel %vm4336_vm11, %v4303_v55, %v4352_v27  ;;  %v4867_v27 = vld [vmem:[%s12284_s15 + $0x20] sm:$0xff] }
 0x92a   : > { %vm4340_vm13 = vcmp.ge.f32.partialorder %v4313_v1, 0.0 }
 0x92b   : > { %v4319_v40 = vpop.f32.mrf.mxu0  ;;  %v4503_v14 = vunpack.c.l.b16 %v4390_v48 }
 0x92c   : > { %v4320_v10 = vadd.f32 %v4319_v40, %v4198_v29  ;;  %v4293_v40 = vadd.f32 %v11211_v46, %v4143_v37  ;;  %v4863_v37 = vld [vmem:[%s12284_s15] sm:$0xff] }
 0x92e   : > { %vm4343_vm3 = vcmp.ge.f32.partialorder %v4320_v10, 0.0  ;;  %v4359_v50 = vmul.f32 0.2, %v4320_v10  ;;  %v4348_v16 = vmul.f32 0.2, %v4293_v40  ;;  %vm4332_vm14 = vcmp.ge.f32.partialorder %v4293_v40, 0.0 }
 0x930   : > { %v4375_v54 = vsel %vm4343_vm3, %v4320_v10, %v4359_v50  ;;  %v4357_v50 = vmul.f32 0.2, %v4315_v20  ;;  %v4364_v39 = vsel %vm4332_vm14, %v4293_v40, %v4348_v16  ;;  %vm4334_vm3 = vcmp.ge.f32.partialorder %v4298_v23, 0.0 }
 0x931   : > { %v4391_v43 = vpack.c.bf16 %v4375_v54, %v4375_v54  ;;  %v4380_v5 = vpack.c.bf16 %v4364_v39, %v4364_v39  ;;  %v9439_v39 = vld [vmem:[%s12283_s14 + $0x88] sm:$0xff] }
 0x932   : > { %v4373_v46 = vsel %vm4341_vm1, %v4315_v20, %v4357_v50  ;;  %v4866_v20 = vld [vmem:[%s12284_s15 + $0x18] sm:$0xff] }
 0x933   : > { %v4322_v12 = vpop.f32.mrf.mxu0  ;;  %v4504_v33 = vunpack.c.l.b16 %v4391_v43  ;;  %v4384_v43 = vpack.c.bf16 %v4368_v35, %v4368_v35  ;;  %v4493_v59 = vunpack.c.l.b16 %v4380_v5  ;;  %v9441_v5 = vld [vmem:[%s12283_s14 + $0x98] sm:$0xff] }
 0x934   : > { %v4323_v30 = vadd.f32 %v4322_v12, %v4203_v11  ;;  %v4369_v11 = vsel %vm4337_vm9, %v4305_v26, %v4353_v38  ;;  %v4872_v38 = vld [vmem:[%s12284_s15 + $0x48] sm:$0xff] }
 0x935   : > { %v11227_v0 = vpack.c.b16 %v4504_v33, %v4503_v14  ;;  %v4385_v61 = vpack.c.bf16 %v4369_v11, %v4369_v11  ;;  %v4356_v14 = vmul.f32 0.2, %v4313_v1  ;;  %v4497_v19 = vunpack.c.l.b16 %v4384_v43  ;;  %v4870_v11 = vld [vmem:[%s12284_s15 + $0x38] sm:$0xff] }
 0x936   : > { %v4360_v58 = vmul.f32 0.2, %v4323_v30  ;;  %vm4344_vm4 = vcmp.ge.f32.partialorder %v4323_v30, 0.0 }
 0x937   : > { %4527 = vrot.lane.b32.xlu0 %v11227_v0, %s12352_s1  ;;  %4770 = vrot.lane.b32.xlu2 %v11227_v0, %s12353_s7  ;;  %v4498_v12 = vunpack.c.l.b16 %v4385_v61 }
 0x938   : > { %v4376_v7 = vsel %vm4344_vm4, %v4323_v30, %v4360_v58  ;;  %v4372_v58 = vsel %vm4340_vm13, %v4313_v1, %v4356_v14  ;;  %v4864_v1 = vld [vmem:[%s12284_s15 + $0x8] sm:$0xff] }
 0x939   : > { %v4392_v18 = vpack.c.bf16 %v4376_v7, %v4376_v7  ;;  %v4511_v17 = vpack.c.b16 %v4498_v12, %v4497_v19  ;;  %v9430_v19 = vld [vmem:[%s12283_s14 + $0x40] sm:$0xff] }
 0x93b   : > { %v4324_v3 = vpop.f32.mrf.mxu0  ;;  %v4505_v2 = vunpack.c.l.b16 %v4392_v18 }
 0x93c   : > { %v4325_v6 = vadd.f32 %v4324_v3, %v4208_v56  ;;  %v4499_v56 = vunpack.c.l.b16 %v4386_v49  ;;  %v4389_v3 = vpack.c.bf16 %v4373_v46, %v4373_v46  ;;  %v4875_v49 = vld [vmem:[%s12284_s15 + $0x60] sm:$0xff] }
 0x93e   : > { %vm4345_vm5 = vcmp.ge.f32.partialorder %v4325_v6, 0.0  ;;  %v4361_v62 = vmul.f32 0.2, %v4325_v6  ;;  %v4512_v10 = vpack.c.b16 %v4500_v22, %v4499_v56  ;;  %v4502_v18 = vunpack.c.l.b16 %v4389_v3  ;;  %v4874_v22 = vld [vmem:[%s12284_s15 + $0x58] sm:$0xff]  ;;  %v4868_v56 = vld [vmem:[%s12284_s15 + $0x28] sm:$0xff]  ;;  %v9426_v3 = vld [vmem:[%s12283_s14 + $0x20] sm:$0xff] }
 0x940   : > { %v4377_v34 = vsel %vm4345_vm5, %v4325_v6, %v4361_v62  ;;  %v4388_v6 = vpack.c.bf16 %v4372_v58, %v4372_v58  ;;  %v4158_v62 = vpop.permute.xlu1 %4157  ;;  %v9425_v58 = vld [vmem:[%s12283_s14 + $0x18] sm:$0xff] }
 0x941   : > { %v4393_v45 = vpack.c.bf16 %v4377_v34, %v4377_v34  ;;  %v4300_v47 = vadd.f32 %v11217_v57, %v4158_v62  ;;  %v9433_v62 = vld [vmem:[%s12283_s14 + $0x58] sm:$0xff] }
 0x943   : > { %v4327_v52 = vpop.f32.mrf.mxu0  ;;  %v4506_v28 = vunpack.c.l.b16 %v4393_v45  ;;  %v4501_v45 = vunpack.c.l.b16 %v4388_v6  ;;  %vm4335_vm15 = vcmp.ge.f32.partialorder %v4300_v47, 0.0  ;;  %v9427_v6 = vld [vmem:[%s12283_s14 + $0x28] sm:$0xff] }
 0x944   : > { %v4328_v60 = vadd.f32 %v4327_v52, %v4213_v9  ;;  %v4295_v9 = vadd.f32 %v11213_v24, %v4148_v53  ;;  %v4871_v53 = vld [vmem:[%s12284_s15 + $0x40] sm:$0xff] }
 0x945   : > { %v11235_v44 = vpack.c.b16 %v4506_v28, %v4505_v2  ;;  %v4513_v26 = vpack.c.b16 %v4502_v18, %v4501_v45  ;;  %v4351_v2 = vmul.f32 0.2, %v4300_v47  ;;  %v4350_v28 = vmul.f32 0.2, %v4298_v23  ;;  %v9428_v18 = vld [vmem:[%s12283_s14 + $0x30] sm:$0xff]  ;;  %v9429_v45 = vld [vmem:[%s12283_s14 + $0x38] sm:$0xff] }
 0x946   : > { %v4362_v32 = vmul.f32 0.2, %v4328_v60  ;;  %vm4346_vm10 = vcmp.ge.f32.partialorder %v4328_v60, 0.0  ;;  %v4349_v54 = vmul.f32 0.2, %v4295_v9  ;;  %vm4333_vm6 = vcmp.ge.f32.partialorder %v4295_v9, 0.0 }
 0x947   : > { %4529 = vrot.lane.b32.xlu1 %v11235_v44, %s12352_s1  ;;  %4772 = vrot.lane.b32.xlu0 %v11235_v44, %s12353_s7  ;;  %v4367_v57 = vsel %vm4335_vm15, %v4300_v47, %v4351_v2  ;;  %v4366_v8 = vsel %vm4334_vm3, %v4298_v23, %v4350_v28  ;;  %v9442_v47 = vld [vmem:[%s12283_s14 + $0xa0] sm:$0xff]  ;;  %v9435_v23 = vld [vmem:[%s12283_s14 + $0x68] sm:$0xff] }
 0x948   : > { %v4378_v31 = vsel %vm4346_vm10, %v4328_v60, %v4362_v32  ;;  %v4365_v33 = vsel %vm4333_vm6, %v4295_v9, %v4349_v54  ;;  %v4383_v15 = vpack.c.bf16 %v4367_v57, %v4367_v57  ;;  %v4382_v36 = vpack.c.bf16 %v4366_v8, %v4366_v8  ;;  %v4876_v32 = vld [vmem:[%s12284_s15 + $0x68] sm:$0xff]  ;;  %v4869_v9 = vld [vmem:[%s12284_s15 + $0x30] sm:$0xff] }
 0x949   : > { %v4394_v24 = vpack.c.bf16 %v4378_v31, %v4378_v31  ;;  %v4381_v7 = vpack.c.bf16 %v4365_v33, %v4365_v33  ;;  %v9423_v54 = vld [vmem:[%s12283_s14 + $0x8] sm:$0xff]  ;;  %v9448_v2 = vld [vmem:[%s12285_s16 + $0x10] sm:$0x30] }
 0x94a   : > { %v4495_v60 = vunpack.c.l.b16 %v4382_v36  ;;  %v9444_v57 = vld [vmem:[%s12283_s14 + $0xb0] sm:$0xff]  ;;  %v9445_v36 = vld [vmem:[%s12283_s14 + $0xb8] sm:$0xff] }
 0x94b   : > { %v4329_v21 = vpop.f32.mrf.mxu0  ;;  %v4507_v30 = vunpack.c.l.b16 %v4394_v24  ;;  %v4494_v34 = vunpack.c.l.b16 %v4381_v7  ;;  %v9432_v7 = vld [vmem:[%s12283_s14 + $0x50] sm:$0xff] }
 0x94c   : > { %v4330_v29 = vadd.f32 %v4329_v21, %v11221_v42  ;;  %v4865_v21 = vld [vmem:[%s12284_s15 + $0x10] sm:$0xff] }
 0x94d   : > { %v4509_v52 = vpack.c.b16 %v4494_v34, %v4493_v59  ;;  %v9434_v34 = vld [vmem:[%s12283_s14 + $0x60] sm:$0xff]  ;;  %v9443_v59 = vld [vmem:[%s12283_s14 + $0xa8] sm:$0xff]  ;;  %v9436_v8 = vld [vmem:[%s12283_s14 + $0x70] sm:$0xff] }
 0x94e   : > { %vm4347_vm12 = vcmp.ge.f32.partialorder %v4330_v29, 0.0  ;;  %v4363_v48 = vmul.f32 0.2, %v4330_v29 }
 0x94f   : > { %4766 = vrot.lane.b32.xlu0 %v4512_v10, %s12353_s7 }
 0x950   : > { %v4379_v51 = vsel %vm4347_vm12, %v4330_v29, %v4363_v48 }
 0x951   : > { %v4395_v42 = vpack.c.bf16 %v4379_v51, %v4379_v51 }
 0x953   : > { %v4508_v13 = vunpack.c.l.b16 %v4395_v42  ;;  %v9424_v42 = vld [vmem:[%s12283_s14 + $0x10] sm:$0xff] }
 0x955   : > { %v4516_v25 = vpack.c.b16 %v4508_v13, %v4507_v30  ;;  %v9438_v30 = vld [vmem:[%s12283_s14 + $0x80] sm:$0xff] }
 0x957   : > { %4646 = vmatpush.bf16.msrb.mxu2 %v4516_v25  ;;  %4774 = vrot.lane.b32.xlu1 %v4516_v25, %s12353_s7 }
 0x958   : > { %4531 = vrot.lane.b32.xlu2 %v4516_v25, %s12352_s1  ;;  %4521 = vrot.lane.b32.xlu0 %v4511_v17, %s12352_s1  ;;  %v9431_v25 = vld [vmem:[%s12283_s14 + $0x48] sm:$0xff] }
 0x95b   : > { %4647 = vmatpush.bf16.msrb.mxu2 %v11235_v44  ;;  %v4873_v44 = vld [vmem:[%s12284_s15 + $0x50] sm:$0xff] }
 0x95f   : > { %4648 = vmatpush.bf16.msrb.mxu2 %v11227_v0  ;;  %4768 = vrot.lane.b32.xlu1 %v4513_v26, %s12353_s7  ;;  %v4496_v0 = vunpack.c.l.b16 %v4383_v15  ;;  %v9447_v15 = vld [vmem:[%s12285_s16 + $0x8] sm:$0xff] }
 0x960   : > { %4525 = vrot.lane.b32.xlu2 %v4513_v26, %s12352_s1  ;;  %4760 = vrot.lane.b32.xlu0 %v4509_v52, %s12353_s7 }
 0x961   : > { %v4510_v55 = vpack.c.b16 %v4496_v0, %v4495_v60  ;;  %v9446_v0 = vld [vmem:[%s12285_s16] sm:$0xff] }
 0x963   : > { %4649 = vmatpush.bf16.msrb.mxu2 %v4513_v26  ;;  %v8710_v26 = vld [vmem:[%s12285_s16 + $0x10] sm:$0xf] }
 0x967   : > { %4523 = vrot.lane.b32.xlu1 %v4512_v10, %s12352_s1  ;;  %4650 = vmatpush.bf16.msrb.mxu2 %v4512_v10  ;;  %v9422_v10 = vld [vmem:[%s12283_s14] sm:$0xff] }
 0x968   : > { %4764 = vrot.lane.b32.xlu2 %v4511_v17, %s12353_s7  ;;  %4956 = vperm.xlu0 %9569, %v4878_v4  }
 0x96b   : > { %4651 = vmatpush.bf16.msrb.mxu2 %v4511_v17  ;;  %v9440_v17 = vld [vmem:[%s12283_s14 + $0x90] sm:$0xff] }
 0x96f   : > { %4762 = vrot.lane.b32.xlu1 %v4510_v55, %s12353_s7  ;;  %4652 = vmatpush.bf16.msrb.mxu2 %v4510_v55 }
 0x970   : > { %4519 = vrot.lane.b32.xlu2 %v4510_v55, %s12352_s1  ;;  %4931 = vperm.xlu0 %9569, %v4873_v44   ;;  %v9437_v55 = vld [vmem:[%s12283_s14 + $0x78] sm:$0xff] }
 0x973   : > { %4653 = vmatpush.bf16.msrb.mxu2 %v4509_v52 }
 0x976   : > { %4654 = vmatmul.bf16.vlgmr.msrb.gmra.mxu2 %v9422_v10 }
 0x977   : > { %4517 = vrot.lane.b32.xlu1 %v4509_v52, %s12352_s1  ;;  %v8711_v52 = vor.u32 %v9448_v2, %v8710_v26 }
 0x978   : > { %4951 = vperm.xlu2 %9571, %v4877_v63   ;;  %4926 = vperm.xlu0 %9569, %v4872_v38  }
 0x979   : > { %v5002_v28 = vsel %vm3329_vm0, %v8711_v52, 0  ;;  %vm4976_vm0 = vcmask 359424  }
 0x97a   : > { %5009 = vmatpush.bf16.msra.mxu0 %v5002_v28 }
 0x97e   : > { %5010 = vmatpush.bf16.msra.mxu0 %v9447_v15 }
 0x97f   : > { %4941 = vperm.xlu1 %9570, %v4875_v49  }
 0x980   : > { %4946 = vperm.xlu2 %9571, %v4876_v32   ;;  %4901 = vperm.xlu0 %9569, %v4867_v27  }
 0x982   : > { %5011 = vmatpush.bf16.msra.mxu0 %v9446_v0 }
 0x986   : > { %4659 = vmatmul.bf16.gmra.mxu2 %v9423_v54 }
 0x987   : > { %4936 = vperm.xlu1 %9570, %v4874_v22  }
 0x988   : > { %4921 = vperm.xlu2 %9571, %v4871_v53   ;;  %4896 = vperm.xlu0 %9569, %v4866_v20  }
 0x98f   : > { %4911 = vperm.xlu1 %9570, %v4869_v9  }
 0x990   : > { %4916 = vperm.xlu2 %9571, %v4870_v11  }
 0x991   : > { %v4771_v31 = vpop.permute.xlu2 %4770 }
 0x996   : > { %4664 = vmatmul.bf16.gmra.mxu2 %v9424_v42 }
 0x997   : > { %4906 = vperm.xlu1 %9570, %v4868_v56  }
 0x998   : > { %4891 = vperm.xlu2 %9571, %v4865_v21  }
 0x99f   : > { %4881 = vperm.xlu1 %9570, %v4863_v37  }
 0x9a0   : > { %4886 = vperm.xlu2 %9571, %v4864_v1  }
 0x9a6   : > { %4669 = vmatmul.bf16.gmra.mxu2 %v9425_v58 }
 0x9a9   : > { %v4528_v35 = vpop.permute.xlu0 %4527 }
 0x9b2   : > { %v4532_v29 = vpop.permute.xlu2 %4531 }
 0x9b3   : > { %4541 = vmatpush.bf16.msrb.mxu1 %v4532_v29 }
 0x9b6   : > { %4674 = vmatmul.bf16.gmra.mxu2 %v9426_v3 }
 0x9b9   : > { %v4530_v40 = vpop.permute.xlu1 %4529  ;;  %v4773_v48 = vpop.permute.xlu0 %4772 }
 0x9ba   : > { %4542 = vmatpush.bf16.msrb.mxu1 %v4530_v40  ;;  %v4526_v50 = vpop.permute.xlu2 %4525 }
 0x9be   : > { %4543 = vmatpush.bf16.msrb.mxu1 %v4528_v35 }
 0x9c1   : > { %v4767_v24 = vpop.permute.xlu0 %4766 }
 0x9c2   : > { %4544 = vmatpush.bf16.msrb.mxu1 %v4526_v50  ;;  %v4765_v14 = vpop.permute.xlu2 %4764 }
 0x9c6   : > { %4679 = vmatmul.bf16.gmra.mxu2 %v9427_v6 }
 0x9c9   : > { %v4775_v61 = vpop.permute.xlu1 %4774 }
 0x9ca   : > { %4784 = vmatpush.bf16.msrb.mxu3 %v4775_v61  ;;  %v4522_v16 = vpop.permute.xlu0 %4521  ;;  %v4520_v46 = vpop.permute.xlu2 %4519 }
 0x9ce   : > { %4785 = vmatpush.bf16.msrb.mxu3 %v4773_v48 }
 0x9d1   : > { %v4769_v43 = vpop.permute.xlu1 %4768 }
 0x9d2   : > { %4786 = vmatpush.bf16.msrb.mxu3 %v4771_v31  ;;  %v4761_v33 = vpop.permute.xlu0 %4760 }
 0x9d6   : > { %4787 = vmatpush.bf16.msrb.mxu3 %v4769_v43  ;;  %4684 = vmatmul.bf16.gmra.mxu2 %v9428_v18 }
 0x9d9   : > { %v4524_v51 = vpop.permute.xlu1 %4523 }
 0x9da   : > { %4545 = vmatpush.bf16.msrb.mxu1 %v4524_v51  ;;  %4788 = vmatpush.bf16.msrb.mxu3 %v4767_v24 }
 0x9de   : > { %4546 = vmatpush.bf16.msrb.mxu1 %v4522_v16  ;;  %4789 = vmatpush.bf16.msrb.mxu3 %v4765_v14 }
 0x9e1   : > { %v4763_v12 = vpop.permute.xlu1 %4762 }
 0x9e2   : > { %4547 = vmatpush.bf16.msrb.mxu1 %v4520_v46  ;;  %4790 = vmatpush.bf16.msrb.mxu3 %v4763_v12 }
 0x9e6   : > { %4791 = vmatpush.bf16.msrb.mxu3 %v4761_v33  ;;  %4689 = vmatmul.bf16.gmra.mxu2 %v9429_v45 }
 0x9e9   : > { %v4518_v13 = vpop.permute.xlu1 %4517  ;;  %4792 = vmatmul.bf16.vlgmr.msrb.gmra.mxu3 %v9438_v30 }
 0x9ea   : > { %4548 = vmatpush.bf16.msrb.mxu1 %v4518_v13 }
 0x9ed   : > { %4549 = vmatmul.bf16.vlgmr.msrb.gmra.mxu1 %v9430_v19 }
 0x9f9   : > { %4797 = vmatmul.bf16.gmra.mxu3 %v9439_v39  ;;  %v4655_v4 = vpop.f32.mrf.mxu2 }
 0x9fd   : > { %4554 = vmatmul.bf16.gmra.mxu1 %v9431_v25 }
 0xa01   : > { %v4657_v60 = vpop.f32.mrf.mxu2 }
 0xa09   : > { %4802 = vmatmul.bf16.gmra.mxu3 %v9440_v17  ;;  %v4660_v44 = vpop.f32.mrf.mxu2 }
 0xa0d   : > { %4559 = vmatmul.bf16.gmra.mxu1 %v9432_v7 }
 0xa11   : > { %v4662_v38 = vpop.f32.mrf.mxu2 }
 0xa19   : > { %4807 = vmatmul.bf16.gmra.mxu3 %v9441_v5  ;;  %v4665_v20 = vpop.f32.mrf.mxu2 }
 0xa1d   : > { %4564 = vmatmul.bf16.gmra.mxu1 %v9433_v62 }
 0xa21   : > { %v4667_v1 = vpop.f32.mrf.mxu2 }
 0xa29   : > { %4812 = vmatmul.bf16.gmra.mxu3 %v9442_v47  ;;  %v4670_v61 = vpop.f32.mrf.mxu2 }
 0xa2d   : > { %4569 = vmatmul.bf16.gmra.mxu1 %v9434_v34 }
 0xa31   : > { %v4672_v51 = vpop.f32.mrf.mxu2 }
 0xa39   : > { %4817 = vmatmul.bf16.gmra.mxu3 %v9443_v59  ;;  %v4675_v19 = vpop.f32.mrf.mxu2 }
 0xa3d   : > { %4574 = vmatmul.bf16.gmra.mxu1 %v9435_v23 }
 0xa41   : > { %v4677_v6 = vpop.f32.mrf.mxu2 }
 0xa49   : > { %4822 = vmatmul.bf16.gmra.mxu3 %v9444_v57  ;;  %v4680_v47 = vpop.f32.mrf.mxu2 }
 0xa4d   : > { %4579 = vmatmul.bf16.gmra.mxu1 %v9436_v8 }
 0xa51   : > { %v4682_v57 = vpop.f32.mrf.mxu2 }
 0xa59   : > { %4827 = vmatmul.bf16.gmra.mxu3 %v9445_v36  ;;  %v4685_v0 = vpop.f32.mrf.mxu2 }
 0xa5d   : > { %4584 = vmatmul.bf16.gmra.mxu1 %v9437_v55 }
 0xa6a   : > { %v4550_v63 = vpop.f32.mrf.mxu1 }
 0xa6b   : > { %v4656_v32 = vadd.f32 %v4655_v4, %v4550_v63 }
 0xa6c   : > { %v4793_v49 = vpop.f32.mrf.mxu3 }
 0xa6d   : > { %v4833_v9 = vadd.f32 %v4793_v49, %v4656_v32  ;;  %v4687_v32 = vpop.f32.mrf.mxu2 }
 0xa72   : > { %v4552_v27 = vpop.f32.mrf.mxu1 }
 0xa73   : > { %v4658_v22 = vadd.f32 %v4657_v60, %v4552_v27 }
 0xa74   : > { %v4795_v53 = vpop.f32.mrf.mxu3 }
 0xa75   : > { %v4834_v11 = vadd.f32 %v4795_v53, %v4658_v22 }
 0xa77   : > { %v4849_v56 = vpack.c.bf16 %v4834_v11, %v4833_v9 }
 0xa79   : > { %8712 = vmatmul.msk.bf16.vlgmr.msra.gmra.mxu0 %vm4976_vm0, %v4849_v56 }
 0xa7a   : > { %v4555_v21 = vpop.f32.mrf.mxu1 }
 0xa7b   : > { %v4661_v31 = vadd.f32 %v4660_v44, %v4555_v21  ;;  %v4690_v21 = vpop.f32.mrf.mxu2 }
 0xa7c   : > { %v4798_v37 = vpop.f32.mrf.mxu3 }
 0xa7d   : > { %v4835_v10 = vadd.f32 %v4798_v37, %v4661_v31 }
 0xa82   : > { %v4557_v29 = vpop.f32.mrf.mxu1 }
 0xa83   : > { %v4663_v40 = vadd.f32 %v4662_v38, %v4557_v29  ;;  %v4692_v29 = vpop.f32.mrf.mxu2 }
 0xa84   : > { %v4800_v35 = vpop.f32.mrf.mxu3 }
 0xa85   : > { %v4836_v50 = vadd.f32 %v4800_v35, %v4663_v40 }
 0xa87   : > { %v4850_v48 = vpack.c.bf16 %v4836_v50, %v4835_v10 }
 0xa89   : > { %8713 = vmatmul.msk.bf16.gmra.mxu0 %vm4976_vm0, %v4850_v48 }
 0xa8a   : > { %v4560_v54 = vpop.f32.mrf.mxu1 }
 0xa8b   : > { %v4666_v43 = vadd.f32 %v4665_v20, %v4560_v54 }
 0xa8c   : > { %v4803_v24 = vpop.f32.mrf.mxu3 }
 0xa8d   : > { %v4837_v46 = vadd.f32 %v4803_v24, %v4666_v43 }
 0xa92   : > { %v4562_v14 = vpop.f32.mrf.mxu1 }
 0xa93   : > { %v4668_v16 = vadd.f32 %v4667_v1, %v4562_v14 }
 0xa94   : > { %v4805_v42 = vpop.f32.mrf.mxu3 }
 0xa95   : > { %v4838_v12 = vadd.f32 %v4805_v42, %v4668_v16  ;;  %v4942_v16 = vpop.permute.xlu1 %4941 }
 0xa97   : > { %v4851_v33 = vpack.c.bf16 %v4838_v12, %v4837_v46 }
 0xa99   : > { %8714 = vmatmul.msk.bf16.gmra.mxu0 %vm4976_vm0, %v4851_v33 }
 0xa9a   : > { %v4565_v30 = vpop.f32.mrf.mxu1 }
 0xa9b   : > { %v4671_v58 = vadd.f32 %v4670_v61, %v4565_v30 }
 0xa9c   : > { %v4808_v13 = vpop.f32.mrf.mxu3 }
 0xa9d   : > { %v4839_v17 = vadd.f32 %v4808_v13, %v4671_v58  ;;  %v4937_v12 = vpop.permute.xlu1 %4936 }
 0xaa2   : > { %v4567_v39 = vpop.f32.mrf.mxu1 }
 0xaa3   : > { %v4673_v25 = vadd.f32 %v4672_v51, %v4567_v39  ;;  %v11413_v51 = vpop.permute.xlu2 %4951  ;;  %v11421_v39 = vpop.permute.xlu0 %4956 }
 0xaa4   : > { %v4810_v3 = vpop.f32.mrf.mxu3 }
 0xaa5   : > { %v4840_v7 = vadd.f32 %v4810_v3, %v4673_v25  ;;  %v4912_v13 = vpop.permute.xlu1 %4911 }
 0xaa7   : > { %v4852_v5 = vpack.c.bf16 %v4840_v7, %v4839_v17 }
 0xaa9   : > { %8715 = vmatmul.msk.bf16.gmra.mxu0 %vm4976_vm0, %v4852_v5 }
 0xaaa   : > { %v4570_v62 = vpop.f32.mrf.mxu1 }
 0xaab   : > { %v4676_v34 = vadd.f32 %v4675_v19, %v4570_v62  ;;  %v11417_v46 = vpop.permute.xlu2 %4946 }
 0xaac   : > { %v4813_v18 = vpop.f32.mrf.mxu3 }
 0xaad   : > { %v4841_v26 = vadd.f32 %v4813_v18, %v4676_v34 }
 0xab2   : > { %v4572_v45 = vpop.f32.mrf.mxu1 }
 0xab3   : > { %v4678_v59 = vadd.f32 %v4677_v6, %v4572_v45  ;;  %v4922_v30 = vpop.permute.xlu2 %4921 }
 0xab4   : > { %v4815_v23 = vpop.f32.mrf.mxu3 }
 0xab5   : > { %v4842_v2 = vadd.f32 %v4815_v23, %v4678_v59 }
 0xab7   : > { %v4853_v52 = vpack.c.bf16 %v4842_v2, %v4841_v26 }
 0xab9   : > { %8716 = vmatmul.msk.bf16.gmra.mxu0 %vm4976_vm0, %v4853_v52 }
 0xaba   : > { %v4575_v28 = vpop.f32.mrf.mxu1 }
 0xabb   : > { %v4681_v4 = vadd.f32 %v4680_v47, %v4575_v28  ;;  %v4917_v3 = vpop.permute.xlu2 %4916  ;;  %v4932_v47 = vpop.permute.xlu0 %4931 }
 0xabc   : > { %v4818_v8 = vpop.f32.mrf.mxu3 }
 0xabd   : > { %v4843_v55 = vadd.f32 %v4818_v8, %v4681_v4 }
 0xac2   : > { %v4577_v15 = vpop.f32.mrf.mxu1 }
 0xac3   : > { %v4683_v36 = vadd.f32 %v4682_v57, %v4577_v15  ;;  %v4927_v28 = vpop.permute.xlu0 %4926 }
 0xac4   : > { %v4820_v60 = vpop.f32.mrf.mxu3 }
 0xac5   : > { %v4844_v44 = vadd.f32 %v4820_v60, %v4683_v36 }
 0xac7   : > { %v4854_v63 = vpack.c.bf16 %v4844_v44, %v4843_v55 }
 0xac9   : > { %8717 = vmatmul.msk.bf16.gmra.mxu0 %vm4976_vm0, %v4854_v63 }
 0xaca   : > { %v4580_v38 = vpop.f32.mrf.mxu1 }
 0xacb   : > { %v4686_v27 = vadd.f32 %v4685_v0, %v4580_v38 }
 0xacc   : > { %v4823_v49 = vpop.f32.mrf.mxu3 }
 0xacd   : > { %v4845_v9 = vadd.f32 %v4823_v49, %v4686_v27 }
 0xad2   : > { %v4582_v22 = vpop.f32.mrf.mxu1 }
 0xad3   : > { %v4688_v53 = vadd.f32 %v4687_v32, %v4582_v22 }
 0xad4   : > { %v4825_v20 = vpop.f32.mrf.mxu3 }
 0xad5   : > { %v4846_v11 = vadd.f32 %v4825_v20, %v4688_v53 }
 0xad7   : > { %v4855_v56 = vpack.c.bf16 %v4846_v11, %v4845_v9 }
 0xad9   : > { %8718 = vmatmul.msk.bf16.gmra.mxu0 %vm4976_vm0, %v4855_v56 }
 0xada   : > { %v4585_v37 = vpop.f32.mrf.mxu1 }
 0xadb   : > { %v4691_v31 = vadd.f32 %v4690_v21, %v4585_v37 }
 0xadc   : > { %v4828_v1 = vpop.f32.mrf.mxu3 }
 0xadd   : > { %v4847_v50 = vadd.f32 %v4828_v1, %v4691_v31 }
 0xae2   : > { %v4587_v40 = vpop.f32.mrf.mxu1 }
 0xae3   : > { %v4693_v35 = vadd.f32 %v4692_v29, %v4587_v40 }
 0xae4   : > { %v4830_v10 = vpop.f32.mrf.mxu3 }
 0xae5   : > { %v4848_v48 = vadd.f32 %v4830_v10, %v4693_v35 }
 0xae7   : > { %v4856_v61 = vpack.c.bf16 %v4848_v48, %v4847_v50 }
 0xae9   : > { %8719 = vmatmul.msk.bf16.gmra.mxu0 %vm4976_vm0, %v4856_v61 }
 0xaf6   : > { %v11405_v54 = vpop.f32.mrf.mxu0 }
 0xafe   : > { %v11407_v24 = vpop.f32.mrf.mxu0 }
 0xb06   : > { %v11409_v43 = vpop.f32.mrf.mxu0 }
 0xb0e   : > { %v11411_v14 = vpop.f32.mrf.mxu0 }
 0xb16   : > { %v11415_v42 = vpop.f32.mrf.mxu0 }
 0xb1e   : > { %v11419_v33 = vpop.f32.mrf.mxu0 }
 0xb26   : > { %v5028_v19 = vpop.f32.mrf.mxu0 }
 0xb27   : > { %v5029_v58 = vadd.f32 %v5028_v19, %v4912_v13 }
 0xb29   : > { %v5075_v25 = vmul.f32 0.2, %v5029_v58  ;;  %vm5059_vm4 = vcmp.ge.f32.partialorder %v5029_v58, 0.0 }
 0xb2b   : > { %v5091_v7 = vsel %vm5059_vm4, %v5029_v58, %v5075_v25 }
 0xb2c   : > { %v5107_v62 = vpack.c.bf16 %v5091_v7, %v5091_v7  ;;  %v4907_v7 = vpop.permute.xlu1 %4906 }
 0xb2e   : > { %v5030_v17 = vpop.f32.mrf.mxu0  ;;  %v5220_v45 = vunpack.c.l.b16 %v5107_v62 }
 0xb2f   : > { %v5031_v6 = vadd.f32 %v5030_v17, %v4917_v3  ;;  %v4902_v3 = vpop.permute.xlu0 %4901 }
 0xb31   : > { %vm5060_vm5 = vcmp.ge.f32.partialorder %v5031_v6, 0.0  ;;  %v5076_v5 = vmul.f32 0.2, %v5031_v6 }
 0xb33   : > { %v5092_v18 = vsel %vm5060_vm5, %v5031_v6, %v5076_v5  ;;  %vm5865_vm5 = vcmask 1040384  }
 0xb34   : > { %v5108_v34 = vpack.c.bf16 %v5092_v18, %v5092_v18  ;;  %v5024_v18 = vadd.f32 %v11415_v42, %v4902_v3  ;;  %v5735_v3 = vld [vmem:[%s12287_s18] sm:$0xff] }
 0xb36   : > { %v5221_v59 = vunpack.c.l.b16 %v5108_v34  ;;  %v5033_v23 = vpop.f32.mrf.mxu0  ;;  %vm5057_vm14 = vcmp.ge.f32.partialorder %v5024_v18, 0.0 }
 0xb37   : > { %v5034_v26 = vadd.f32 %v5033_v23, %v4922_v30  ;;  %v5073_v23 = vmul.f32 0.2, %v5024_v18 }
 0xb38   : > { %v11423_v2 = vpack.c.b16 %v5221_v59, %v5220_v45  ;;  %v4892_v45 = vpop.permute.xlu2 %4891 }
 0xb39   : > { %v5077_v52 = vmul.f32 0.2, %v5034_v26  ;;  %vm5061_vm7 = vcmp.ge.f32.partialorder %v5034_v26, 0.0  ;;  %v5019_v42 = vadd.f32 %v11409_v43, %v4892_v45 }
 0xb3a   : > { %5487 = vrot.lane.b32.xlu1 %v11423_v2, %s12353_s7 }
 0xb3b   : > { %v5093_v8 = vsel %vm5061_vm7, %v5034_v26, %v5077_v52  ;;  %v4897_v52 = vpop.permute.xlu0 %4896  ;;  %vm5055_vm3 = vcmp.ge.f32.partialorder %v5019_v42, 0.0  ;;  %vm5866_vm7 = vcmask 1041408  }
 0xb3c   : > { %v5109_v36 = vpack.c.bf16 %v5093_v8, %v5093_v8  ;;  %v5089_v8 = vsel %vm5057_vm14, %v5024_v18, %v5073_v23 }
 0xb3e   : > { %v5035_v57 = vpop.f32.mrf.mxu0  ;;  %v5222_v55 = vunpack.c.l.b16 %v5109_v36 }
 0xb3f   : > { %v5036_v4 = vadd.f32 %v5035_v57, %v4927_v28 }
 0xb41   : > { %vm5062_vm8 = vcmp.ge.f32.partialorder %v5036_v4, 0.0  ;;  %v5078_v15 = vmul.f32 0.2, %v5036_v4 }
 0xb43   : > { %v5094_v0 = vsel %vm5062_vm8, %v5036_v4, %v5078_v15  ;;  %vm5840_vm8 = vcmask 154624  }
 0xb44   : > { %v5110_v60 = vpack.c.bf16 %v5094_v0, %v5094_v0  ;;  %v5105_v0 = vpack.c.bf16 %v5089_v8, %v5089_v8 }
 0xb46   : > { %v5223_v44 = vunpack.c.l.b16 %v5110_v60  ;;  %v5038_v63 = vpop.f32.mrf.mxu0  ;;  %v5071_v60 = vmul.f32 0.2, %v5019_v42 }
 0xb47   : > { %v5039_v38 = vadd.f32 %v5038_v63, %v4932_v47  ;;  %v4882_v63 = vpop.permute.xlu1 %4881 }
 0xb48   : > { %v11427_v49 = vpack.c.b16 %v5223_v44, %v5222_v55 }
 0xb49   : > { %v5079_v32 = vmul.f32 0.2, %v5039_v38  ;;  %vm5063_vm9 = vcmp.ge.f32.partialorder %v5039_v38, 0.0 }
 0xb4a   : > { %5246 = vrot.lane.b32.xlu0 %v11427_v49, %s12352_s1  ;;  %5489 = vrot.lane.b32.xlu1 %v11427_v49, %s12353_s7 }
 0xb4b   : > { %v5095_v22 = vsel %vm5063_vm9, %v5039_v38, %v5079_v32  ;;  %v5218_v38 = vunpack.c.l.b16 %v5105_v0  ;;  %v5014_v32 = vadd.f32 %v11405_v54, %v4882_v63 }
 0xb4c   : > { %v5111_v9 = vpack.c.bf16 %v5095_v22, %v5095_v22 }
 0xb4d   : > { %vm5053_vm4 = vcmp.ge.f32.partialorder %v5014_v32, 0.0 }
 0xb4e   : > { %v5040_v27 = vpop.f32.mrf.mxu0  ;;  %v5224_v21 = vunpack.c.l.b16 %v5111_v9 }
 0xb4f   : > { %v5041_v53 = vadd.f32 %v5040_v27, %v4937_v12  ;;  %v5087_v27 = vsel %vm5055_vm3, %v5019_v42, %v5071_v60 }
 0xb50   : > { %v5103_v9 = vpack.c.bf16 %v5087_v27, %v5087_v27  ;;  %v9466_v27 = vld [vmem:[%s12286_s17 + $0x88] sm:$0xff] }
 0xb51   : > { %vm5064_vm10 = vcmp.ge.f32.partialorder %v5041_v53, 0.0  ;;  %v5080_v20 = vmul.f32 0.2, %v5041_v53 }
 0xb53   : > { %v5096_v11 = vsel %vm5064_vm10, %v5041_v53, %v5080_v20 }
 0xb54   : > { %v5112_v56 = vpack.c.bf16 %v5096_v11, %v5096_v11 }
 0xb56   : > { %v5225_v37 = vunpack.c.l.b16 %v5112_v56  ;;  %v5043_v1 = vpop.f32.mrf.mxu0  ;;  %v5216_v56 = vunpack.c.l.b16 %v5103_v9  ;;  %v9467_v9 = vld [vmem:[%s12286_s17 + $0x90] sm:$0xff] }
 0xb57   : > { %v5044_v31 = vadd.f32 %v5043_v1, %v4942_v16 }
 0xb58   : > { %v11433_v29 = vpack.c.b16 %v5225_v37, %v5224_v21 }
 0xb59   : > { %v5081_v40 = vmul.f32 0.2, %v5044_v31  ;;  %vm5065_vm11 = vcmp.ge.f32.partialorder %v5044_v31, 0.0 }
 0xb5a   : > { %5645 = vrot.lane.b32.xlu2 %v11433_v29, %s12357_s8  ;;  %5248 = vrot.lane.b32.xlu0 %v11433_v29, %s12352_s1 }
 0xb5b   : > { %5491 = vrot.lane.b32.xlu1 %v11433_v29, %s12353_s7  ;;  %v5097_v10 = vsel %vm5065_vm11, %v5044_v31, %v5081_v40 }
 0xb5c   : > { %v5113_v61 = vpack.c.bf16 %v5097_v10, %v5097_v10  ;;  %v5750_v10 = vld [vmem:[%s12287_s18 + $0x78] sm:$0xff] }
 0xb5e   : > { %v5045_v35 = vpop.f32.mrf.mxu0  ;;  %v5226_v30 = vunpack.c.l.b16 %v5113_v61  ;;  %v5745_v61 = vld [vmem:[%s12287_s18 + $0x50] sm:$0xff] }
 0xb5f   : > { %v5046_v50 = vadd.f32 %v5045_v35, %v11417_v46  ;;  %v5026_v46 = vadd.f32 %v11419_v33, %v4907_v7  ;;  %v5021_v33 = vadd.f32 %v11411_v14, %v4897_v52  ;;  %v4887_v14 = vpop.permute.xlu2 %4886  ;;  %v5738_v7 = vld [vmem:[%s12287_s18 + $0x18] sm:$0xff] }
 0xb60   : > { %v5016_v44 = vadd.f32 %v11407_v24, %v4887_v14  ;;  %v5069_v24 = vmul.f32 0.2, %v5014_v32  ;;  %v9465_v14 = vld [vmem:[%s12286_s17 + $0x80] sm:$0xff] }
 0xb61   : > { %vm5066_vm12 = vcmp.ge.f32.partialorder %v5046_v50, 0.0  ;;  %v5082_v48 = vmul.f32 0.2, %v5046_v50  ;;  %vm5058_vm13 = vcmp.ge.f32.partialorder %v5026_v46, 0.0  ;;  %v5072_v36 = vmul.f32 0.2, %v5021_v33 }
 0xb62   : > { %vm5056_vm15 = vcmp.ge.f32.partialorder %v5021_v33, 0.0  ;;  %v5070_v20 = vmul.f32 0.2, %v5016_v44  ;;  %vm5054_vm0 = vcmp.ge.f32.partialorder %v5016_v44, 0.0  ;;  %v5085_v21 = vsel %vm5053_vm4, %v5014_v32, %v5069_v24  ;;  %v9452_v32 = vld [vmem:[%s12286_s17 + $0x18] sm:$0xff]  ;;  %v9459_v24 = vld [vmem:[%s12286_s17 + $0x50] sm:$0xff] }
 0xb63   : > { %v5098_v16 = vsel %vm5066_vm12, %v5046_v50, %v5082_v48  ;;  %v5088_v43 = vsel %vm5056_vm15, %v5021_v33, %v5072_v36  ;;  %v5101_v31 = vpack.c.bf16 %v5085_v21, %v5085_v21  ;;  %v5746_v50 = vld [vmem:[%s12287_s18 + $0x58] sm:$0xff]  ;;  %v5748_v48 = vld [vmem:[%s12287_s18 + $0x68] sm:$0xff]  ;;  %v9451_v36 = vld [vmem:[%s12286_s17 + $0x10] sm:$0xff] }
 0xb64   : > { %v5114_v12 = vpack.c.bf16 %v5098_v16, %v5098_v16  ;;  %v5104_v22 = vpack.c.bf16 %v5088_v43, %v5088_v43  ;;  %v5086_v54 = vsel %vm5054_vm0, %v5016_v44, %v5070_v20  ;;  %v5741_v16 = vld [vmem:[%s12287_s18 + $0x30] sm:$0xff]  ;;  %v9457_v43 = vld [vmem:[%s12286_s17 + $0x40] sm:$0xff]  ;;  %v9460_v21 = vld [vmem:[%s12286_s17 + $0x58] sm:$0xff] }
 0xb65   : > { %v5102_v37 = vpack.c.bf16 %v5086_v54, %v5086_v54  ;;  %v5214_v40 = vunpack.c.l.b16 %v5101_v31  ;;  %v9453_v20 = vld [vmem:[%s12286_s17 + $0x20] sm:$0xff]  ;;  %v9454_v54 = vld [vmem:[%s12286_s17 + $0x28] sm:$0xff] }
 0xb66   : > { %v5227_v13 = vunpack.c.l.b16 %v5114_v12  ;;  %v5048_v19 = vpop.f32.mrf.mxu0  ;;  %v5217_v11 = vunpack.c.l.b16 %v5104_v22  ;;  %v5743_v12 = vld [vmem:[%s12287_s18 + $0x40] sm:$0xff]  ;;  %v9458_v22 = vld [vmem:[%s12286_s17 + $0x48] sm:$0xff] }
 0xb67   : > { %v5049_v58 = vadd.f32 %v5048_v19, %v11413_v51  ;;  %v5074_v51 = vmul.f32 0.2, %v5026_v46  ;;  %v5742_v19 = vld [vmem:[%s12287_s18 + $0x38] sm:$0xff]  ;;  %v9469_v31 = vld [vmem:[%s12286_s17 + $0xa0] sm:$0xff] }
 0xb68   : > { %v5236_v25 = vpack.c.b16 %v5227_v13, %v5226_v30  ;;  %v5231_v1 = vpack.c.b16 %v5217_v11, %v5216_v56  ;;  %v5744_v30 = vld [vmem:[%s12287_s18 + $0x48] sm:$0xff]  ;;  %v9475_v11 = vld [vmem:[%s12286_s17 + $0xd0] sm:$0xff]  ;;  %v9468_v56 = vld [vmem:[%s12286_s17 + $0x98] sm:$0xff] }
 0xb69   : > { %v5083_v17 = vmul.f32 0.2, %v5049_v58  ;;  %vm5067_vm1 = vcmp.ge.f32.partialorder %v5049_v58, 0.0  ;;  %v5090_v28 = vsel %vm5058_vm13, %v5026_v46, %v5074_v51  ;;  %v5740_v13 = vld [vmem:[%s12287_s18 + $0x28] sm:$0xff] }
 0xb6a   : > { %5493 = vrot.lane.b32.xlu2 %v5236_v25, %s12353_s7  ;;  %5250 = vrot.lane.b32.xlu0 %v5236_v25, %s12352_s1  ;;  %v5106_v15 = vpack.c.bf16 %v5090_v28, %v5090_v28 }
 0xb6b   : > { %v5099_v5 = vsel %vm5067_vm1, %v5049_v58, %v5083_v17  ;;  %v5739_v58 = vld [vmem:[%s12287_s18 + $0x20] sm:$0xff]  ;;  %v5737_v17 = vld [vmem:[%s12287_s18 + $0x10] sm:$0xff] }
 0xb6c   : > { %v5115_v34 = vpack.c.bf16 %v5099_v5, %v5099_v5  ;;  %v5219_v55 = vunpack.c.l.b16 %v5106_v15 }
 0xb6e   : > { %v5050_v6 = vpop.f32.mrf.mxu0  ;;  %v5228_v57 = vunpack.c.l.b16 %v5115_v34  ;;  %v5232_v53 = vpack.c.b16 %v5219_v55, %v5218_v38  ;;  %v9473_v38 = vld [vmem:[%s12286_s17 + $0xc0] sm:$0xff] }
 0xb6f   : > { %v5051_v62 = vadd.f32 %v5050_v6, %v11421_v39  ;;  %v5736_v6 = vld [vmem:[%s12287_s18 + $0x8] sm:$0xff] }
 0xb71   : > { %vm5068_vm6 = vcmp.ge.f32.partialorder %v5051_v62, 0.0  ;;  %v5084_v47 = vmul.f32 0.2, %v5051_v62 }
 0xb72   : > { %5647 = vrot.lane.b32.xlu2 %v5236_v25, %s12357_s8 }
 0xb73   : > { %v5100_v59 = vsel %vm5068_vm6, %v5051_v62, %v5084_v47 }
 0xb74   : > { %v5116_v26 = vpack.c.bf16 %v5100_v59, %v5100_v59  ;;  %v9449_v59 = vld [vmem:[%s12286_s17] sm:$0xff] }
 0xb76   : > { %v5229_v39 = vunpack.c.l.b16 %v5116_v26 }
 0xb78   : > { %v5237_v4 = vpack.c.b16 %v5229_v39, %v5228_v57  ;;  %v9450_v39 = vld [vmem:[%s12286_s17 + $0x8] sm:$0xff] }
 0xb7a   : > { %5367 = vmatpush.bf16.msra.mxu2 %v5237_v4  ;;  %5649 = vrot.lane.b32.xlu2 %v5237_v4, %s12357_s8 }
 0xb7b   : > { %5495 = vrot.lane.b32.xlu0 %v5237_v4, %s12353_s7  ;;  %5252 = vrot.lane.b32.xlu1 %v5237_v4, %s12352_s1 }
 0xb7e   : > { %5368 = vmatpush.bf16.msra.mxu2 %v5236_v25 }
 0xb82   : > { %5369 = vmatpush.bf16.msra.mxu2 %v11433_v29  ;;  %5643 = vrot.lane.b32.xlu2 %v11427_v49, %s12357_s8  ;;  %v5215_v29 = vunpack.c.l.b16 %v5102_v37  ;;  %v9476_v37 = vld [vmem:[%s12286_s17 + $0xd8] sm:$0xff] }
 0xb83   : > { %5244 = vrot.lane.b32.xlu0 %v11423_v2, %s12352_s1  ;;  %5485 = vrot.lane.b32.xlu1 %v5232_v53, %s12353_s7 }
 0xb84   : > { %v5230_v35 = vpack.c.b16 %v5215_v29, %v5214_v40  ;;  %v9461_v29 = vld [vmem:[%s12286_s17 + $0x60] sm:$0xff] }
 0xb85   : > { %v9477_v40 = vld [vmem:[%s12286_s17 + $0xe0] sm:$0xff] }
 0xb86   : > { %5370 = vmatpush.bf16.msra.mxu2 %v11427_v49  ;;  %v5749_v49 = vld [vmem:[%s12287_s18 + $0x70] sm:$0xff] }
 0xb8a   : > { %5641 = vrot.lane.b32.xlu2 %v11423_v2, %s12357_s8  ;;  %5371 = vmatpush.bf16.msra.mxu2 %v11423_v2  ;;  %v5747_v2 = vld [vmem:[%s12287_s18 + $0x60] sm:$0xff] }
 0xb8b   : > { %5242 = vrot.lane.b32.xlu0 %v5232_v53, %s12352_s1  ;;  %5483 = vrot.lane.b32.xlu1 %v5231_v1, %s12353_s7 }
 0xb8e   : > { %5372 = vmatpush.bf16.msra.mxu2 %v5232_v53 }
 0xb92   : > { %5639 = vrot.lane.b32.xlu2 %v5232_v53, %s12357_s8  ;;  %5373 = vmatpush.bf16.msra.mxu2 %v5231_v1  ;;  %v9474_v53 = vld [vmem:[%s12286_s17 + $0xc8] sm:$0xff] }
 0xb93   : > { %5240 = vrot.lane.b32.xlu0 %v5231_v1, %s12352_s1  ;;  %5481 = vrot.lane.b32.xlu1 %v5230_v35, %s12353_s7 }
 0xb96   : > { %5374 = vmatpush.bf16.msra.mxu2 %v5230_v35 }
 0xb99   : > { %5375 = vmatmul.bf16.vlgmr.msra.gmra.mxu2 %v9449_v59 }
 0xb9a   : > { %5635 = vrot.lane.b32.xlu2 %v5230_v35, %s12357_s8 }
 0xb9b   : > { %5238 = vrot.lane.b32.xlu0 %v5230_v35, %s12352_s1  ;;  %5637 = vrot.lane.b32.xlu1 %v5231_v1, %s12357_s8  ;;  %v9455_v1 = vld [vmem:[%s12286_s17 + $0x30] sm:$0xff]  ;;  %v9456_v35 = vld [vmem:[%s12286_s17 + $0x38] sm:$0xff] }
 0xba2   : > { %5813 = vperm.xlu2 %9571, %v5747_v2   ;;  %v9470_v2 = vld [vmem:[%s12286_s17 + $0xa8] sm:$0xff] }
 0xba3   : > { %5823 = vperm.xlu0 %9569, %v5749_v49   ;;  %5828 = vperm.xlu1 %9570, %v5750_v10   ;;  %v9462_v49 = vld [vmem:[%s12286_s17 + $0x68] sm:$0xff] }
 0xba4   : > { %v5734_v10 = vld [vmem:[%s12288_s19 + $0x8] sm:$0x3] }
 0xba9   : > { %5380 = vmatmul.bf16.gmra.mxu2 %v9450_v39 }
 0xbaa   : > { %5808 = vperm.xlu2 %9571, %v5746_v50   ;;  %v5836_v50 = vunpack.c.l.b16 %v5734_v10 }
 0xbab   : > { %5818 = vperm.xlu0 %9569, %v5748_v48   ;;  %5803 = vperm.xlu1 %9570, %v5745_v61   ;;  %v5867_v48 = vsel %vm5865_vm5, 4294967295, %v9585_v41 }
 0xbac   : > { %v5488_v18 = vpop.permute.xlu1 %5487  ;;  %v5868_v61 = vsel %vm5866_vm7, %v5867_v48, 0 }
 0xbb2   : > { %5783 = vperm.xlu2 %9571, %v5741_v16   ;;  %v5838_v16 = vpack.c.b16 %v5836_v50, %v5836_v50 }
 0xbb3   : > { %5793 = vperm.xlu0 %9569, %v5743_v12   ;;  %5798 = vperm.xlu1 %9570, %v5744_v30   ;;  %v9478_v12 = vld [vmem:[%s12286_s17 + $0xe8] sm:$0xff] }
 0xbb4   : > { %v5646_v25 = vpop.permute.xlu2 %5645  ;;  %v5870_v30 = vand.u32 %v5868_v61, %v5838_v16 }
 0xbb9   : > { %5385 = vmatmul.bf16.gmra.mxu2 %v9451_v36 }
 0xbba   : > { %5778 = vperm.xlu2 %9571, %v5740_v13   ;;  %v9471_v13 = vld [vmem:[%s12286_s17 + $0xb0] sm:$0xff] }
 0xbbb   : > { %5788 = vperm.xlu0 %9569, %v5742_v19   ;;  %5773 = vperm.xlu1 %9570, %v5739_v58   ;;  %v9463_v19 = vld [vmem:[%s12286_s17 + $0x70] sm:$0xff] }
 0xbbc   : > { %v5247_v47 = vpop.permute.xlu0 %5246  ;;  %v5490_v34 = vpop.permute.xlu1 %5489 }
 0xbc2   : > { %5753 = vperm.xlu2 %9571, %v5735_v3   ;;  %v9472_v3 = vld [vmem:[%s12286_s17 + $0xb8] sm:$0xff] }
 0xbc3   : > { %5763 = vperm.xlu0 %9569, %v5737_v17   ;;  %5768 = vperm.xlu1 %9570, %v5738_v7   ;;  %v9481_v7 = vld [vmem:[%s12288_s19] sm:$0xff] }
 0xbc4   : > { %v5494_v46 = vpop.permute.xlu2 %5493 }
 0xbc9   : > { %5390 = vmatmul.bf16.gmra.mxu2 %v9452_v32 }
 0xbcb   : > { %5758 = vperm.xlu0 %9569, %v5736_v6   ;;  %v9480_v6 = vld [vmem:[%s12286_s17 + $0xf8] sm:$0xff] }
 0xbcc   : > { %v5648_v5 = vpop.permute.xlu2 %5647  ;;  %v5249_v45 = vpop.permute.xlu0 %5248 }
 0xbcd   : > { %v5492_v26 = vpop.permute.xlu1 %5491 }
 0xbd4   : > { %v5650_v62 = vpop.permute.xlu2 %5649 }
 0xbd5   : > { %5659 = vmatpush.bf16.msrb.mxu0 %v5650_v62 }
 0xbd9   : > { %5660 = vmatpush.bf16.msrb.mxu0 %v5648_v5  ;;  %5395 = vmatmul.bf16.gmra.mxu2 %v9453_v20 }
 0xbdc   : > { %v5644_v51 = vpop.permute.xlu2 %5643  ;;  %v5251_v52 = vpop.permute.xlu0 %5250 }
 0xbdd   : > { %5661 = vmatpush.bf16.msrb.mxu0 %v5646_v25  ;;  %v9479_v25 = vld [vmem:[%s12286_s17 + $0xf0] sm:$0xff] }
 0xbe1   : > { %5662 = vmatpush.bf16.msrb.mxu0 %v5644_v51 }
 0xbe4   : > { %v5642_v23 = vpop.permute.xlu2 %5641 }
 0xbe5   : > { %5663 = vmatpush.bf16.msrb.mxu0 %v5642_v23 }
 0xbe9   : > { %5400 = vmatmul.bf16.gmra.mxu2 %v9454_v54 }
 0xbec   : > { %v5640_v33 = vpop.permute.xlu2 %5639 }
 0xbed   : > { %v5496_v28 = vpop.permute.xlu0 %5495  ;;  %v5253_v57 = vpop.permute.xlu1 %5252  ;;  %5664 = vmatpush.bf16.msrb.mxu0 %v5640_v33 }
 0xbee   : > { %5262 = vmatpush.bf16.msra.mxu1 %v5253_v57  ;;  %5505 = vmatpush.bf16.msra.mxu3 %v5496_v28 }
 0xbf2   : > { %5263 = vmatpush.bf16.msra.mxu1 %v5251_v52  ;;  %5506 = vmatpush.bf16.msra.mxu3 %v5494_v46  ;;  %v9464_v46 = vld [vmem:[%s12286_s17 + $0x78] sm:$0xff] }
 0xbf4   : > { %v5636_v63 = vpop.permute.xlu2 %5635 }
 0xbf5   : > { %v5245_v42 = vpop.permute.xlu0 %5244  ;;  %v5486_v8 = vpop.permute.xlu1 %5485 }
 0xbf6   : > { %5264 = vmatpush.bf16.msra.mxu1 %v5249_v45  ;;  %5507 = vmatpush.bf16.msra.mxu3 %v5492_v26 }
 0xbf9   : > { %5405 = vmatmul.bf16.gmra.mxu2 %v9455_v1 }
 0xbfa   : > { %5265 = vmatpush.bf16.msra.mxu1 %v5247_v47  ;;  %5508 = vmatpush.bf16.msra.mxu3 %v5490_v34 }
 0xbfd   : > { %v5243_v4 = vpop.permute.xlu0 %5242  ;;  %v5484_v15 = vpop.permute.xlu1 %5483 }
 0xbfe   : > { %5266 = vmatpush.bf16.msra.mxu1 %v5245_v42  ;;  %5509 = vmatpush.bf16.msra.mxu3 %v5488_v18 }
 0xc02   : > { %5267 = vmatpush.bf16.msra.mxu1 %v5243_v4  ;;  %5510 = vmatpush.bf16.msra.mxu3 %v5486_v8 }
 0xc05   : > { %v5241_v0 = vpop.permute.xlu0 %5240  ;;  %v5482_v60 = vpop.permute.xlu1 %5481 }
 0xc06   : > { %5268 = vmatpush.bf16.msra.mxu1 %v5241_v0  ;;  %5511 = vmatpush.bf16.msra.mxu3 %v5484_v15 }
 0xc09   : > { %5410 = vmatmul.bf16.gmra.mxu2 %v9456_v35 }
 0xc0a   : > { %5512 = vmatpush.bf16.msra.mxu3 %v5482_v60 }
 0xc0d   : > { %v5239_v55 = vpop.permute.xlu0 %5238  ;;  %5513 = vmatmul.bf16.vlgmr.msra.gmra.mxu3 %v9465_v14  ;;  %v5638_v44 = vpop.permute.xlu1 %5637 }
 0xc0e   : > { %5269 = vmatpush.bf16.msra.mxu1 %v5239_v55  ;;  %5665 = vmatpush.bf16.msrb.mxu0 %v5638_v44 }
 0xc11   : > { %5270 = vmatmul.bf16.vlgmr.msra.gmra.mxu1 %v9457_v43 }
 0xc12   : > { %5666 = vmatpush.bf16.msrb.mxu0 %v5636_v63  ;;  %5878 = vmatpush.bf16.msrb.mxu1 %v5870_v30 }
 0xc15   : > { %5667 = vmatmul.bf16.vlgmr.msrb.gmra.mxu0 %v9473_v38 }
 0xc16   : > { %5879 = vmatpush.bf16.msrb.mxu1 %v9481_v7 }
 0xc1c   : > { %v5376_v58 = vpop.f32.mrf.mxu2 }
 0xc1d   : > { %5518 = vmatmul.bf16.gmra.mxu3 %v9466_v27 }
 0xc21   : > { %5275 = vmatmul.bf16.gmra.mxu1 %v9458_v22 }
 0xc24   : > { %v5378_v17 = vpop.f32.mrf.mxu2 }
 0xc25   : > { %5672 = vmatmul.bf16.gmra.mxu0 %v9474_v53 }
 0xc2c   : > { %v5381_v5 = vpop.f32.mrf.mxu2 }
 0xc2d   : > { %5523 = vmatmul.bf16.gmra.mxu3 %v9467_v9 }
 0xc31   : > { %5280 = vmatmul.bf16.gmra.mxu1 %v9459_v24 }
 0xc34   : > { %v5383_v18 = vpop.f32.mrf.mxu2 }
 0xc35   : > { %5677 = vmatmul.bf16.gmra.mxu0 %v9475_v11 }
 0xc3c   : > { %v5386_v52 = vpop.f32.mrf.mxu2 }
 0xc3d   : > { %5528 = vmatmul.bf16.gmra.mxu3 %v9468_v56 }
 0xc41   : > { %5285 = vmatmul.bf16.gmra.mxu1 %v9460_v21 }
 0xc44   : > { %v5388_v36 = vpop.f32.mrf.mxu2 }
 0xc45   : > { %5682 = vmatmul.bf16.gmra.mxu0 %v9476_v37 }
 0xc4c   : > { %v5391_v27 = vpop.f32.mrf.mxu2 }
 0xc4d   : > { %5533 = vmatmul.bf16.gmra.mxu3 %v9469_v31 }
 0xc51   : > { %5290 = vmatmul.bf16.gmra.mxu1 %v9461_v29 }
 0xc54   : > { %v5393_v54 = vpop.f32.mrf.mxu2 }
 0xc55   : > { %5687 = vmatmul.bf16.gmra.mxu0 %v9477_v40 }
 0xc5c   : > { %v5396_v10 = vpop.f32.mrf.mxu2 }
 0xc5d   : > { %5538 = vmatmul.bf16.gmra.mxu3 %v9470_v2 }
 0xc61   : > { %5295 = vmatmul.bf16.gmra.mxu1 %v9462_v49 }
 0xc65   : > { %5692 = vmatmul.bf16.gmra.mxu0 %v9478_v12 }
 0xc6d   : > { %5543 = vmatmul.bf16.gmra.mxu3 %v9471_v13 }
 0xc71   : > { %5300 = vmatmul.bf16.gmra.mxu1 %v9463_v19 }
 0xc75   : > { %5697 = vmatmul.bf16.gmra.mxu0 %v9479_v25 }
 0xc7d   : > { %5548 = vmatmul.bf16.gmra.mxu3 %v9472_v3 }
 0xc81   : > { %5305 = vmatmul.bf16.gmra.mxu1 %v9464_v46 }
 0xc85   : > { %5702 = vmatmul.bf16.gmra.mxu0 %v9480_v6 }
 0xc8e   : > { %v5271_v62 = vpop.f32.mrf.mxu1 }
 0xc8f   : > { %v5377_v34 = vadd.f32 %v5376_v58, %v5271_v62  ;;  %v5398_v58 = vpop.f32.mrf.mxu2 }
 0xc90   : > { %v5514_v47 = vpop.f32.mrf.mxu3 }
 0xc91   : > { %v5554_v59 = vadd.f32 %v5514_v47, %v5377_v34 }
 0xc92   : > { %v5668_v51 = vpop.f32.mrf.mxu0 }
 0xc93   : > { %v5708_v57 = vadd.f32 %v5668_v51, %v5554_v59 }
 0xc96   : > { %v5273_v45 = vpop.f32.mrf.mxu1 }
 0xc97   : > { %v5379_v23 = vadd.f32 %v5378_v17, %v5273_v45  ;;  %v5401_v62 = vpop.f32.mrf.mxu2 }
 0xc98   : > { %v5516_v26 = vpop.f32.mrf.mxu3 }
 0xc99   : > { %v5555_v33 = vadd.f32 %v5516_v26, %v5379_v23 }
 0xc9a   : > { %v5670_v28 = vpop.f32.mrf.mxu0 }
 0xc9b   : > { %v5709_v39 = vadd.f32 %v5670_v28, %v5555_v33 }
 0xc9d   : > { %v5724_v42 = vpack.c.bf16 %v5709_v39, %v5708_v57 }
 0xc9e   : > { %v5276_v8 = vpop.f32.mrf.mxu1 }
 0xc9f   : > { %8900 = vmatmul.msk.bf16.vlgmr.msrb.gmra.mxu1 %vm5840_vm8, %v5724_v42  ;;  %v5382_v0 = vadd.f32 %v5381_v5, %v5276_v8  ;;  %v5403_v28 = vpop.f32.mrf.mxu2 }
 0xca0   : > { %v5519_v4 = vpop.f32.mrf.mxu3 }
 0xca1   : > { %v5556_v14 = vadd.f32 %v5519_v4, %v5382_v0 }
 0xca2   : > { %v5673_v15 = vpop.f32.mrf.mxu0 }
 0xca3   : > { %v5710_v38 = vadd.f32 %v5673_v15, %v5556_v14 }
 0xca6   : > { %v5278_v60 = vpop.f32.mrf.mxu1 }
 0xca7   : > { %v5384_v55 = vadd.f32 %v5383_v18, %v5278_v60 }
 0xca8   : > { %v5521_v44 = vpop.f32.mrf.mxu3 }
 0xca9   : > { %v5557_v43 = vadd.f32 %v5521_v44, %v5384_v55 }
 0xcaa   : > { %v5675_v63 = vpop.f32.mrf.mxu0 }
 0xcab   : > { %v5711_v32 = vadd.f32 %v5675_v63, %v5557_v43 }
 0xcad   : > { %v5725_v22 = vpack.c.bf16 %v5711_v32, %v5710_v38 }
 0xcae   : > { %v5281_v53 = vpop.f32.mrf.mxu1 }
 0xcaf   : > { %8901 = vmatmul.msk.bf16.gmra.mxu1 %vm5840_vm8, %v5725_v22  ;;  %v5387_v24 = vadd.f32 %v5386_v52, %v5281_v53 }
 0xcb0   : > { %v5524_v20 = vpop.f32.mrf.mxu3 }
 0xcb1   : > { %v5558_v56 = vadd.f32 %v5524_v20, %v5387_v24 }
 0xcb2   : > { %v5678_v9 = vpop.f32.mrf.mxu0 }
 0xcb3   : > { %v5712_v29 = vadd.f32 %v5678_v9, %v5558_v56 }
 0xcb6   : > { %v5283_v11 = vpop.f32.mrf.mxu1 }
 0xcb7   : > { %v5389_v21 = vadd.f32 %v5388_v36, %v5283_v11  ;;  %v5406_v36 = vpop.f32.mrf.mxu2 }
 0xcb8   : > { %v5526_v37 = vpop.f32.mrf.mxu3 }
 0xcb9   : > { %v5559_v1 = vadd.f32 %v5526_v37, %v5389_v21 }
 0xcba   : > { %v5680_v31 = vpop.f32.mrf.mxu0 }
 0xcbb   : > { %v5713_v40 = vadd.f32 %v5680_v31, %v5559_v1 }
 0xcbd   : > { %v5726_v35 = vpack.c.bf16 %v5713_v40, %v5712_v29 }
 0xcbe   : > { %v5286_v2 = vpop.f32.mrf.mxu1 }
 0xcbf   : > { %8902 = vmatmul.msk.bf16.gmra.mxu1 %vm5840_vm8, %v5726_v35  ;;  %v5392_v48 = vadd.f32 %v5391_v27, %v5286_v2  ;;  %v5408_v32 = vpop.f32.mrf.mxu2 }
 0xcc0   : > { %v5529_v49 = vpop.f32.mrf.mxu3 }
 0xcc1   : > { %v5560_v16 = vadd.f32 %v5529_v49, %v5392_v48 }
 0xcc2   : > { %v5683_v50 = vpop.f32.mrf.mxu0 }
 0xcc3   : > { %v5714_v25 = vadd.f32 %v5683_v50, %v5560_v16 }
 0xcc6   : > { %v5288_v61 = vpop.f32.mrf.mxu1 }
 0xcc7   : > { %v5394_v12 = vadd.f32 %v5393_v54, %v5288_v61  ;;  %v5411_v37 = vpop.f32.mrf.mxu2 }
 0xcc8   : > { %v5531_v30 = vpop.f32.mrf.mxu3 }
 0xcc9   : > { %v5561_v13 = vadd.f32 %v5531_v30, %v5394_v12 }
 0xcca   : > { %v5685_v19 = vpop.f32.mrf.mxu0 }
 0xccb   : > { %v5715_v3 = vadd.f32 %v5685_v19, %v5561_v13 }
 0xccd   : > { %v5727_v17 = vpack.c.bf16 %v5715_v3, %v5714_v25 }
 0xcce   : > { %v5291_v7 = vpop.f32.mrf.mxu1 }
 0xccf   : > { %8903 = vmatmul.msk.bf16.gmra.mxu1 %vm5840_vm8, %v5727_v17  ;;  %v5397_v5 = vadd.f32 %v5396_v10, %v5291_v7  ;;  %v5413_v2 = vpop.f32.mrf.mxu2 }
 0xcd0   : > { %v5534_v46 = vpop.f32.mrf.mxu3 }
 0xcd1   : > { %v5562_v47 = vadd.f32 %v5534_v46, %v5397_v5 }
 0xcd2   : > { %v5688_v6 = vpop.f32.mrf.mxu0 }
 0xcd3   : > { %v5716_v23 = vadd.f32 %v5688_v6, %v5562_v47  ;;  %v5814_v6 = vpop.permute.xlu2 %5813 }
 0xcd6   : > { %v5293_v18 = vpop.f32.mrf.mxu1 }
 0xcd7   : > { %v5399_v51 = vadd.f32 %v5398_v58, %v5293_v18  ;;  %v11643_v18 = vpop.permute.xlu0 %5823 }
 0xcd8   : > { %v5536_v34 = vpop.f32.mrf.mxu3 }
 0xcd9   : > { %v5563_v45 = vadd.f32 %v5536_v34, %v5399_v51 }
 0xcda   : > { %v5690_v59 = vpop.f32.mrf.mxu0 }
 0xcdb   : > { %v5717_v26 = vadd.f32 %v5690_v59, %v5563_v45  ;;  %v5809_v51 = vpop.permute.xlu2 %5808 }
 0xcdd   : > { %v5728_v52 = vpack.c.bf16 %v5717_v26, %v5716_v23 }
 0xcde   : > { %v5296_v33 = vpop.f32.mrf.mxu1 }
 0xcdf   : > { %8904 = vmatmul.msk.bf16.gmra.mxu1 %vm5840_vm8, %v5728_v52  ;;  %v5402_v42 = vadd.f32 %v5401_v62, %v5296_v33  ;;  %v11641_v62 = vpop.permute.xlu1 %5828  ;;  %v5819_v45 = vpop.permute.xlu0 %5818 }
 0xce0   : > { %v5539_v57 = vpop.f32.mrf.mxu3 }
 0xce1   : > { %v5564_v4 = vadd.f32 %v5539_v57, %v5402_v42 }
 0xce2   : > { %v5693_v39 = vpop.f32.mrf.mxu0 }
 0xce3   : > { %v5718_v55 = vadd.f32 %v5693_v39, %v5564_v4  ;;  %v5784_v23 = vpop.permute.xlu2 %5783 }
 0xce6   : > { %v5298_v8 = vpop.f32.mrf.mxu1 }
 0xce7   : > { %v5404_v15 = vadd.f32 %v5403_v28, %v5298_v8  ;;  %v5804_v34 = vpop.permute.xlu1 %5803  ;;  %v11651_v33 = vpop.permute.xlu0 %5793 }
 0xce8   : > { %v5541_v0 = vpop.f32.mrf.mxu3 }
 0xce9   : > { %v5565_v60 = vadd.f32 %v5541_v0, %v5404_v15 }
 0xcea   : > { %v5695_v14 = vpop.f32.mrf.mxu0 }
 0xceb   : > { %v5719_v44 = vadd.f32 %v5695_v14, %v5565_v60  ;;  %v5779_v39 = vpop.permute.xlu2 %5778 }
 0xced   : > { %v5729_v43 = vpack.c.bf16 %v5719_v44, %v5718_v55 }
 0xcee   : > { %v5301_v63 = vpop.f32.mrf.mxu1 }
 0xcef   : > { %8905 = vmatmul.msk.bf16.gmra.mxu1 %vm5840_vm8, %v5729_v43  ;;  %v5407_v22 = vadd.f32 %v5406_v36, %v5301_v63  ;;  %v11649_v26 = vpop.permute.xlu1 %5798  ;;  %v5789_v60 = vpop.permute.xlu0 %5788 }
 0xcf0   : > { %v5544_v38 = vpop.f32.mrf.mxu3 }
 0xcf1   : > { %v5566_v20 = vadd.f32 %v5544_v38, %v5407_v22 }
 0xcf2   : > { %v5698_v27 = vpop.f32.mrf.mxu0 }
 0xcf3   : > { %v5720_v56 = vadd.f32 %v5698_v27, %v5566_v20 }
 0xcf6   : > { %v5303_v53 = vpop.f32.mrf.mxu1 }
 0xcf7   : > { %v5409_v9 = vadd.f32 %v5408_v32, %v5303_v53  ;;  %v5774_v8 = vpop.permute.xlu1 %5773 }
 0xcf8   : > { %v5546_v24 = vpop.f32.mrf.mxu3 }
 0xcf9   : > { %v5567_v11 = vadd.f32 %v5546_v24, %v5409_v9 }
 0xcfa   : > { %v5700_v54 = vpop.f32.mrf.mxu0 }
 0xcfb   : > { %v5721_v21 = vadd.f32 %v5700_v54, %v5567_v11 }
 0xcfd   : > { %v5730_v1 = vpack.c.bf16 %v5721_v21, %v5720_v56  ;;  %v11657_v56 = vpop.permute.xlu0 %5763 }
 0xcfe   : > { %v5306_v31 = vpop.f32.mrf.mxu1 }
 0xcff   : > { %8906 = vmatmul.msk.bf16.gmra.mxu1 %vm5840_vm8, %v5730_v1  ;;  %v5412_v35 = vadd.f32 %v5411_v37, %v5306_v31 }
 0xd00   : > { %v5549_v29 = vpop.f32.mrf.mxu3 }
 0xd01   : > { %v5568_v10 = vadd.f32 %v5549_v29, %v5412_v35 }
 0xd02   : > { %v5703_v40 = vpop.f32.mrf.mxu0 }
 0xd03   : > { %v5722_v12 = vadd.f32 %v5703_v40, %v5568_v10 }
 0xd06   : > { %v5308_v49 = vpop.f32.mrf.mxu1 }
 0xd07   : > { %v5414_v50 = vadd.f32 %v5413_v2, %v5308_v49 }
 0xd08   : > { %v5551_v48 = vpop.f32.mrf.mxu3 }
 0xd09   : > { %v5569_v61 = vadd.f32 %v5551_v48, %v5414_v50 }
 0xd0a   : > { %v5705_v16 = vpop.f32.mrf.mxu0 }
 0xd0b   : > { %v5723_v30 = vadd.f32 %v5705_v16, %v5569_v61 }
 0xd0d   : > { %v5731_v13 = vpack.c.bf16 %v5723_v30, %v5722_v12  ;;  %v5759_v30 = vpop.permute.xlu0 %5758 }
 0xd0f   : > { %8907 = vmatmul.msk.bf16.gmra.mxu1 %vm5840_vm8, %v5731_v13 }
 0xd1c   : > { %v11633_v19 = vpop.f32.mrf.mxu1 }
 0xd24   : > { %v11635_v58 = vpop.f32.mrf.mxu1 }
 0xd2c   : > { %v11637_v25 = vpop.f32.mrf.mxu1 }
 0xd34   : > { %v11639_v3 = vpop.f32.mrf.mxu1 }
 0xd3c   : > { %v5891_v17 = vpop.f32.mrf.mxu1 }
 0xd3d   : > { %v5892_v15 = vadd.f32 %v5891_v17, %v5774_v8  ;;  %v5884_v17 = vadd.f32 %v11635_v58, %v5759_v30  ;;  %v7058_v30 = vld [vmem:[%s12290_s21 + $0x8] sm:$0xff] }
 0xd3f   : > { %v5941_v43 = vmul.f32 0.2, %v5892_v15  ;;  %vm5925_vm12 = vcmp.ge.f32.partialorder %v5892_v15, 0.0  ;;  %vm5922_vm15 = vcmp.ge.f32.partialorder %v5884_v17, 0.0 }
 0xd41   : > { %v5957_v20 = vsel %vm5925_vm12, %v5892_v15, %v5941_v43  ;;  %vm7553_vm12 = vcmask 31744  }
 0xd42   : > { %v5973_v54 = vpack.c.bf16 %v5957_v20, %v5957_v20 }
 0xd44   : > { %v5893_v7 = vpop.f32.mrf.mxu1  ;;  %v6166_v31 = vunpack.c.l.b16 %v5973_v54 }
 0xd45   : > { %v5894_v42 = vadd.f32 %v5893_v7, %v5779_v39 }
 0xd47   : > { %v5942_v14 = vmul.f32 0.2, %v5894_v42  ;;  %vm5926_vm11 = vcmp.ge.f32.partialorder %v5894_v42, 0.0 }
 0xd49   : > { %v5958_v32 = vsel %vm5926_vm11, %v5894_v42, %v5942_v14 }
 0xd4a   : > { %v5974_v24 = vpack.c.bf16 %v5958_v32, %v5958_v32  ;;  %v5769_v32 = vpop.permute.xlu1 %5768 }
 0xd4c   : > { %v5896_v46 = vpop.f32.mrf.mxu1  ;;  %v6167_v37 = vunpack.c.l.b16 %v5974_v24 }
 0xd4d   : > { %v5897_v40 = vadd.f32 %v5896_v46, %v5784_v23 }
 0xd4e   : > { %v11659_v49 = vpack.c.b16 %v6167_v37, %v6166_v31 }
 0xd4f   : > { %v5943_v61 = vmul.f32 0.2, %v5897_v40  ;;  %vm5927_vm14 = vcmp.ge.f32.partialorder %v5897_v40, 0.0 }
 0xd54   : > { %v5898_v5 = vpop.f32.mrf.mxu1 }
 0xd55   : > { %v5899_v1 = vadd.f32 %v5898_v5, %v5789_v60  ;;  %v5754_v5 = vpop.permute.xlu2 %5753 }
 0xd57   : > { %v5944_v10 = vmul.f32 0.2, %v5899_v1  ;;  %vm5928_vm13 = vcmp.ge.f32.partialorder %v5899_v1, 0.0 }
 0xd59   : > { %v5960_v13 = vsel %vm5928_vm13, %v5899_v1, %v5944_v10 }
 0xd5a   : > { %v5976_v23 = vpack.c.bf16 %v5960_v13, %v5960_v13  ;;  %v7065_v13 = vld [vmem:[%s12290_s21 + $0x40] sm:$0xff] }
 0xd5c   : > { %v11645_v47 = vpop.f32.mrf.mxu1  ;;  %v6169_v42 = vunpack.c.l.b16 %v5976_v23  ;;  %v7074_v23 = vld [vmem:[%s12290_s21 + $0x88] sm:$0xff] }
 0xd5d   : > { %v5902_v15 = vadd.f32 %v11645_v47, %v11651_v33 }
 0xd5f   : > { %vm5929_vm7 = vcmp.ge.f32.partialorder %v5902_v15, 0.0 }
 0xd64   : > { %v11647_v59 = vpop.f32.mrf.mxu1 }
 0xd6c   : > { %v5906_v52 = vpop.f32.mrf.mxu1 }
 0xd6d   : > { %v5907_v28 = vadd.f32 %v5906_v52, %v5804_v34 }
 0xd6f   : > { %v5947_v57 = vmul.f32 0.2, %v5907_v28  ;;  %vm5931_vm9 = vcmp.ge.f32.partialorder %v5907_v28, 0.0 }
 0xd71   : > { %v5963_v36 = vsel %vm5931_vm9, %v5907_v28, %v5947_v57  ;;  %v5938_v28 = vmul.f32 0.2, %v5884_v17 }
 0xd72   : > { %v5979_v44 = vpack.c.bf16 %v5963_v36, %v5963_v36 }
 0xd74   : > { %v5908_v4 = vpop.f32.mrf.mxu1  ;;  %v6172_v27 = vunpack.c.l.b16 %v5979_v44 }
 0xd75   : > { %v5909_v0 = vadd.f32 %v5908_v4, %v5809_v51  ;;  %v5959_v51 = vsel %vm5927_vm14, %v5897_v40, %v5943_v61 }
 0xd76   : > { %v5975_v57 = vpack.c.bf16 %v5959_v51, %v5959_v51  ;;  %v7071_v51 = vld [vmem:[%s12290_s21 + $0x70] sm:$0xff] }
 0xd77   : > { %vm5932_vm10 = vcmp.ge.f32.partialorder %v5909_v0, 0.0  ;;  %v5948_v55 = vmul.f32 0.2, %v5909_v0 }
 0xd78   : > { %v6168_v8 = vunpack.c.l.b16 %v5975_v57  ;;  %v7066_v57 = vld [vmem:[%s12290_s21 + $0x48] sm:$0xff] }
 0xd79   : > { %v5964_v63 = vsel %vm5932_vm10, %v5909_v0, %v5948_v55  ;;  %vm7298_vm10 = vcmask 1043456  }
 0xd7a   : > { %v5980_v38 = vpack.c.bf16 %v5964_v63, %v5964_v63  ;;  %v11677_v14 = vpack.c.b16 %v6169_v42, %v6168_v8  ;;  %v7073_v42 = vld [vmem:[%s12290_s21 + $0x80] sm:$0xff]  ;;  %v7080_v8 = vld [vmem:[%s12290_s21 + $0xb8] sm:$0xff] }
 0xd7c   : > { %v6173_v22 = vunpack.c.l.b16 %v5980_v38  ;;  %v5911_v53 = vpop.f32.mrf.mxu1 }
 0xd7d   : > { %v5912_v9 = vadd.f32 %v5911_v53, %v5814_v6 }
 0xd7e   : > { %v11653_v11 = vpack.c.b16 %v6173_v22, %v6172_v27 }
 0xd7f   : > { %v5949_v21 = vmul.f32 0.2, %v5912_v9  ;;  %vm5933_vm1 = vcmp.ge.f32.partialorder %v5912_v9, 0.0 }
 0xd80   : > { %6196 = vrot.lane.b32.xlu0 %v11653_v11, %s12352_s1 }
 0xd81   : > { %v5965_v35 = vsel %vm5933_vm1, %v5912_v9, %v5949_v21  ;;  %v5887_v9 = vadd.f32 %v11637_v25, %v11657_v56 }
 0xd82   : > { %v5981_v48 = vpack.c.bf16 %v5965_v35, %v5965_v35 }
 0xd83   : > { %vm5923_vm9 = vcmp.ge.f32.partialorder %v5887_v9, 0.0 }
 0xd84   : > { %v5913_v29 = vpop.f32.mrf.mxu1  ;;  %v6174_v7 = vunpack.c.l.b16 %v5981_v48 }
 0xd85   : > { %v5914_v2 = vadd.f32 %v5913_v29, %v5819_v45  ;;  %v5882_v45 = vadd.f32 %v11633_v19, %v5754_v5  ;;  %v5904_v19 = vadd.f32 %v11647_v59, %v11649_v26  ;;  %v5945_v26 = vmul.f32 0.2, %v5902_v15  ;;  %v7060_v5 = vld [vmem:[%s12290_s21 + $0x18] sm:$0xff] }
 0xd87   : > { %vm5934_vm6 = vcmp.ge.f32.partialorder %v5914_v2, 0.0  ;;  %v5950_v50 = vmul.f32 0.2, %v5914_v2  ;;  %v5937_v39 = vmul.f32 0.2, %v5882_v45  ;;  %vm5921_vm0 = vcmp.ge.f32.partialorder %v5882_v45, 0.0 }
 0xd88   : > { %6190 = vrot.lane.b32.xlu0 %v11659_v49, %s12352_s1  ;;  %v5946_v44 = vmul.f32 0.2, %v5904_v19  ;;  %vm5930_vm5 = vcmp.ge.f32.partialorder %v5904_v19, 0.0  ;;  %v5961_v24 = vsel %vm5929_vm7, %v5902_v15, %v5945_v26  ;;  %v7082_v26 = vld [vmem:[%s12290_s21 + $0xc8] sm:$0xff] }
 0xd89   : > { %v5966_v16 = vsel %vm5934_vm6, %v5914_v2, %v5950_v50  ;;  %v5953_v60 = vsel %vm5921_vm0, %v5882_v45, %v5937_v39  ;;  %v5977_v31 = vpack.c.bf16 %v5961_v24, %v5961_v24  ;;  %v7063_v45 = vld [vmem:[%s12290_s21 + $0x30] sm:$0xff] }
 0xd8a   : > { %v5982_v12 = vpack.c.bf16 %v5966_v16, %v5966_v16  ;;  %v5969_v59 = vpack.c.bf16 %v5953_v60, %v5953_v60  ;;  %v5962_v27 = vsel %vm5930_vm5, %v5904_v19, %v5946_v44  ;;  %v7059_v16 = vld [vmem:[%s12290_s21 + $0x10] sm:$0xff] }
 0xd8b   : > { %v5978_v54 = vpack.c.bf16 %v5962_v27, %v5962_v27  ;;  %v6170_v29 = vunpack.c.l.b16 %v5977_v31  ;;  %v7083_v60 = vld [vmem:[%s12290_s21 + $0xd0] sm:$0xff] }
 0xd8c   : > { %v6175_v46 = vunpack.c.l.b16 %v5982_v12  ;;  %v5916_v6 = vpop.f32.mrf.mxu1  ;;  %v6162_v20 = vunpack.c.l.b16 %v5969_v59  ;;  %v7062_v12 = vld [vmem:[%s12290_s21 + $0x28] sm:$0xff] }
 0xd8d   : > { %v5917_v34 = vadd.f32 %v5916_v6, %v11643_v18  ;;  %v5954_v18 = vsel %vm5922_vm15, %v5884_v17, %v5938_v28  ;;  %v6171_v25 = vunpack.c.l.b16 %v5978_v54  ;;  %v7061_v17 = vld [vmem:[%s12290_s21 + $0x20] sm:$0xff]  ;;  %v7064_v6 = vld [vmem:[%s12290_s21 + $0x38] sm:$0xff]  ;;  %v7070_v28 = vld [vmem:[%s12290_s21 + $0x68] sm:$0xff] }
 0xd8e   : > { %v11666_v52 = vpack.c.b16 %v6175_v46, %v6174_v7  ;;  %v5970_v55 = vpack.c.bf16 %v5954_v18, %v5954_v18  ;;  %v7057_v7 = vld [vmem:[%s12290_s21] sm:$0xff]  ;;  %v7068_v46 = vld [vmem:[%s12290_s21 + $0x58] sm:$0xff]  ;;  %v7086_v59 = vld [vmem:[%s12290_s21 + $0xe8] sm:$0xff] }
 0xd8f   : > { %v5951_v58 = vmul.f32 0.2, %v5917_v34  ;;  %vm5935_vm3 = vcmp.ge.f32.partialorder %v5917_v34, 0.0  ;;  %v11694_v2 = vpack.c.b16 %v6171_v25, %v6170_v29  ;;  %v7069_v18 = vld [vmem:[%s12290_s21 + $0x60] sm:$0xff]  ;;  %v7087_v54 = vld [vmem:[%s12290_s21 + $0xf0] sm:$0xff] }
 0xd90   : > { %6198 = vrot.lane.b32.xlu2 %v11666_v52, %s12352_s1  ;;  %6907 = vrot.lane.b32.xlu0 %v11666_v52, %s12357_s8  ;;  %v6163_v33 = vunpack.c.l.b16 %v5970_v55  ;;  %v7079_v55 = vld [vmem:[%s12290_s21 + $0xb0] sm:$0xff] }
 0xd91   : > { %v5967_v36 = vsel %vm5935_vm3, %v5917_v34, %v5951_v58  ;;  %v7067_v34 = vld [vmem:[%s12290_s21 + $0x50] sm:$0xff]  ;;  %v7077_v58 = vld [vmem:[%s12290_s21 + $0xa0] sm:$0xff] }
 0xd92   : > { %v5983_v63 = vpack.c.bf16 %v5967_v36, %v5967_v36  ;;  %v11686_v1 = vpack.c.b16 %v6163_v33, %v6162_v20  ;;  %v7085_v33 = vld [vmem:[%s12290_s21 + $0xe0] sm:$0xff]  ;;  %v7084_v20 = vld [vmem:[%s12290_s21 + $0xd8] sm:$0xff] }
 0xd94   : > { %v5918_v4 = vpop.f32.mrf.mxu1  ;;  %v6176_v22 = vunpack.c.l.b16 %v5983_v63  ;;  %v7075_v63 = vld [vmem:[%s12290_s21 + $0x90] sm:$0xff] }
 0xd95   : > { %v5919_v0 = vadd.f32 %v5918_v4, %v11641_v62  ;;  %v5889_v62 = vadd.f32 %v11639_v3, %v5769_v32  ;;  %v5939_v3 = vmul.f32 0.2, %v5887_v9  ;;  %v7076_v4 = vld [vmem:[%s12290_s21 + $0x98] sm:$0xff] }
 0xd97   : > { %vm5936_vm4 = vcmp.ge.f32.partialorder %v5919_v0, 0.0  ;;  %v5952_v43 = vmul.f32 0.2, %v5919_v0  ;;  %v5940_v37 = vmul.f32 0.2, %v5889_v62  ;;  %vm5924_vm8 = vcmp.ge.f32.partialorder %v5889_v62, 0.0 }
 0xd98   : > { %6192 = vrot.lane.b32.xlu2 %v11677_v14, %s12352_s1  ;;  %v5955_v40 = vsel %vm5923_vm9, %v5887_v9, %v5939_v3 }
 0xd99   : > { %v5968_v38 = vsel %vm5936_vm4, %v5919_v0, %v5952_v43  ;;  %v5956_v56 = vsel %vm5924_vm8, %v5889_v62, %v5940_v37  ;;  %v5971_v10 = vpack.c.bf16 %v5955_v40, %v5955_v40  ;;  %v7072_v0 = vld [vmem:[%s12290_s21 + $0x78] sm:$0xff]  ;;  %v9507_v37 = vld [vmem:[%s12289_s20 + $0xc8] sm:$0xff]  ;;  %v9508_v40 = vld [vmem:[%s12289_s20 + $0xd0] sm:$0xff] }
 0xd9a   : > { %v5984_v47 = vpack.c.bf16 %v5968_v38, %v5968_v38  ;;  %v5972_v35 = vpack.c.bf16 %v5956_v56, %v5956_v56 }
 0xd9b   : > { %v6164_v48 = vunpack.c.l.b16 %v5971_v10 }
 0xd9c   : > { %v6177_v53 = vunpack.c.l.b16 %v5984_v47  ;;  %v6165_v50 = vunpack.c.l.b16 %v5972_v35  ;;  %v7078_v47 = vld [vmem:[%s12290_s21 + $0xa8] sm:$0xff] }
 0xd9e   : > { %v11684_v21 = vpack.c.b16 %v6177_v53, %v6176_v22  ;;  %v11702_v61 = vpack.c.b16 %v6165_v50, %v6164_v48  ;;  %v7081_v22 = vld [vmem:[%s12290_s21 + $0xc0] sm:$0xff]  ;;  %v9511_v50 = vld [vmem:[%s12289_s20 + $0xe8] sm:$0xff]  ;;  %v9512_v48 = vld [vmem:[%s12289_s20 + $0xf0] sm:$0xff] }
 0xda0   : > { %6200 = vrot.lane.b32.xlu1 %v11684_v21, %s12352_s1  ;;  %6635 = vrot.lane.b32.xlu0 %v11684_v21, %s12353_s7 }
 0xda1   : > { %6186 = vrot.lane.b32.xlu2 %v11686_v1, %s12352_s1 }
 0xda8   : > { %6194 = vrot.lane.b32.xlu1 %v11694_v2, %s12352_s1  ;;  %6629 = vrot.lane.b32.xlu0 %v11694_v2, %s12353_s7 }
 0xda9   : > { %6633 = vrot.lane.b32.xlu2 %v11666_v52, %s12353_s7 }
 0xdb0   : > { %6901 = vrot.lane.b32.xlu0 %v11677_v14, %s12357_s8  ;;  %6188 = vrot.lane.b32.xlu1 %v11702_v61, %s12352_s1 }
 0xdb1   : > { %6905 = vrot.lane.b32.xlu2 %v11653_v11, %s12357_s8 }
 0xdb8   : > { %6623 = vrot.lane.b32.xlu0 %v11702_v61, %s12353_s7  ;;  %6631 = vrot.lane.b32.xlu1 %v11653_v11, %s12353_s7 }
 0xdb9   : > { %6627 = vrot.lane.b32.xlu2 %v11677_v14, %s12353_s7 }
 0xdc0   : > { %6909 = vrot.lane.b32.xlu1 %v11684_v21, %s12357_s8  ;;  %6895 = vrot.lane.b32.xlu0 %v11686_v1, %s12357_s8 }
 0xdc1   : > { %6899 = vrot.lane.b32.xlu2 %v11659_v49, %s12357_s8 }
 0xdc8   : > { %6903 = vrot.lane.b32.xlu1 %v11694_v2, %s12357_s8  ;;  %7101 = vperm.xlu0 %9569, %v7059_v16   ;;  %v9530_v16 = vld [vmem:[%s12289_s20 + $0x180] sm:$0xff] }
 0xdc9   : > { %6621 = vrot.lane.b32.xlu2 %v11686_v1, %s12353_s7 }
 0xdd0   : > { %6625 = vrot.lane.b32.xlu1 %v11659_v49, %s12353_s7  ;;  %7116 = vperm.xlu0 %9569, %v7062_v12   ;;  %v9499_v12 = vld [vmem:[%s12289_s20 + $0x88] sm:$0xff] }
 0xdd1   : > { %7096 = vperm.xlu2 %9571, %v7058_v30   ;;  %v9513_v30 = vld [vmem:[%s12289_s20 + $0xf8] sm:$0xff] }
 0xdd8   : > { %6897 = vrot.lane.b32.xlu1 %v11702_v61, %s12357_s8  ;;  %7131 = vperm.xlu0 %9569, %v7065_v13   ;;  %v9515_v13 = vld [vmem:[%s12289_s20 + $0x108] sm:$0xff] }
 0xdd9   : > { %7111 = vperm.xlu2 %9571, %v7061_v17   ;;  %v9531_v17 = vld [vmem:[%s12289_s20 + $0x188] sm:$0xff] }
 0xde0   : > { %7091 = vperm.xlu1 %9570, %v7057_v7   ;;  %7146 = vperm.xlu0 %9569, %v7068_v46   ;;  %v9500_v7 = vld [vmem:[%s12289_s20 + $0x90] sm:$0xff]  ;;  %v9482_v46 = vld [vmem:[%s12289_s20] sm:$0xff] }
 0xde1   : > { %7126 = vperm.xlu2 %9571, %v7064_v6   ;;  %v9516_v6 = vld [vmem:[%s12289_s20 + $0x110] sm:$0xff] }
 0xde8   : > { %7106 = vperm.xlu1 %9570, %v7060_v5   ;;  %7161 = vperm.xlu0 %9569, %v7071_v51   ;;  %v9532_v5 = vld [vmem:[%s12289_s20 + $0x190] sm:$0xff]  ;;  %v9501_v51 = vld [vmem:[%s12289_s20 + $0x98] sm:$0xff] }
 0xde9   : > { %7141 = vperm.xlu2 %9571, %v7067_v34   ;;  %v9483_v34 = vld [vmem:[%s12289_s20 + $0x8] sm:$0xff] }
 0xdea   : > { %v6199_v19 = vpop.permute.xlu2 %6198 }
 0xdf0   : > { %7121 = vperm.xlu1 %9570, %v7063_v45   ;;  %7176 = vperm.xlu0 %9569, %v7074_v23   ;;  %v9517_v45 = vld [vmem:[%s12289_s20 + $0x118] sm:$0xff] }
 0xdf1   : > { %7156 = vperm.xlu2 %9571, %v7070_v28   ;;  %v9533_v23 = vld [vmem:[%s12289_s20 + $0x198] sm:$0xff] }
 0xdf2   : > { %v6197_v39 = vpop.permute.xlu0 %6196  ;;  %v6193_v36 = vpop.permute.xlu2 %6192 }
 0xdf8   : > { %7136 = vperm.xlu1 %9570, %v7066_v57   ;;  %7191 = vperm.xlu0 %9569, %v7077_v58   ;;  %v9502_v57 = vld [vmem:[%s12289_s20 + $0xa0] sm:$0xff] }
 0xdf9   : > { %7171 = vperm.xlu2 %9571, %v7073_v42   ;;  %v9518_v42 = vld [vmem:[%s12289_s20 + $0x120] sm:$0xff] }
 0xdfa   : > { %v6191_v15 = vpop.permute.xlu0 %6190 }
 0xdfb   : > { %v6187_v43 = vpop.permute.xlu2 %6186 }
 0xe00   : > { %7151 = vperm.xlu1 %9570, %v7069_v18   ;;  %7206 = vperm.xlu0 %9569, %v7080_v8   ;;  %v9503_v8 = vld [vmem:[%s12289_s20 + $0xa8] sm:$0xff] }
 0xe01   : > { %7186 = vperm.xlu2 %9571, %v7076_v4  }
 0xe02   : > { %v6908_v44 = vpop.permute.xlu0 %6907 }
 0xe03   : > { %v6634_v62 = vpop.permute.xlu2 %6633 }
 0xe08   : > { %7166 = vperm.xlu1 %9570, %v7072_v0   ;;  %7221 = vperm.xlu0 %9569, %v7083_v60   ;;  %v9535_v0 = vld [vmem:[%s12289_s20 + $0x1a8] sm:$0xff] }
 0xe09   : > { %7201 = vperm.xlu2 %9571, %v7079_v55   ;;  %v9504_v55 = vld [vmem:[%s12289_s20 + $0xb0] sm:$0xff] }
 0xe0b   : > { %v6906_v9 = vpop.permute.xlu2 %6905 }
 0xe10   : > { %7181 = vperm.xlu1 %9570, %v7075_v63   ;;  %7236 = vperm.xlu0 %9569, %v7086_v59   ;;  %v9520_v63 = vld [vmem:[%s12289_s20 + $0x130] sm:$0xff]  ;;  %v7299_v59 = vsel %vm889_vm2, 4294967295, %v9585_v41  ;;  %v9505_v41 = vld [vmem:[%s12289_s20 + $0xb8] sm:$0xff]  ;;  %vm7249_vm2 = vcmask 56320  }
 0xe11   : > { %7216 = vperm.xlu2 %9571, %v7082_v26   ;;  %v9536_v26 = vld [vmem:[%s12289_s20 + $0x1b0] sm:$0xff] }
 0xe12   : > { %v6201_v38 = vpop.permute.xlu1 %6200  ;;  %v6636_v32 = vpop.permute.xlu0 %6635 }
 0xe13   : > { %6210 = vmatpush.bf16.msrb.mxu2 %v6201_v38  ;;  %9546 = vmatpush.bf16.msrb.mxu3 %v6201_v38  ;;  %v6628_v25 = vpop.permute.xlu2 %6627 }
 0xe14   : > { %6645 = vmatpush.bf16.msra.mxu0 %v6636_v32  ;;  %v7056_v32 = vld [vmem:[%s12291_s22] sm:$0xf] }
 0xe17   : > { %6211 = vmatpush.bf16.msrb.mxu2 %v6199_v19  ;;  %9547 = vmatpush.bf16.msrb.mxu3 %v6199_v19  ;;  %v9534_v19 = vld [vmem:[%s12289_s20 + $0x1a0] sm:$0xff] }
 0xe18   : > { %6646 = vmatpush.bf16.msra.mxu0 %v6634_v62  ;;  %7196 = vperm.xlu1 %9570, %v7078_v47   ;;  %v7300_v47 = vsel %vm7298_vm10, %v7299_v59, 0 }
 0xe19   : > { %7231 = vperm.xlu2 %9571, %v7085_v33   ;;  %v7302_v33 = vand.u32 %v7300_v47, %v7056_v32 }
 0xe1a   : > { %v6195_v27 = vpop.permute.xlu1 %6194  ;;  %v6630_v31 = vpop.permute.xlu0 %6629 }
 0xe1b   : > { %6212 = vmatpush.bf16.msrb.mxu2 %v6197_v39  ;;  %9548 = vmatpush.bf16.msrb.mxu3 %v6197_v39  ;;  %v9484_v39 = vld [vmem:[%s12289_s20 + $0x10] sm:$0xff] }
 0xe1f   : > { %6213 = vmatpush.bf16.msrb.mxu2 %v6195_v27  ;;  %9549 = vmatpush.bf16.msrb.mxu3 %v6195_v27  ;;  %v9487_v27 = vld [vmem:[%s12289_s20 + $0x28] sm:$0xff] }
 0xe20   : > { %7211 = vperm.xlu1 %9570, %v7081_v22   ;;  %v9521_v22 = vld [vmem:[%s12289_s20 + $0x138] sm:$0xff] }
 0xe22   : > { %v6189_v53 = vpop.permute.xlu1 %6188  ;;  %v6902_v56 = vpop.permute.xlu0 %6901 }
 0xe23   : > { %6214 = vmatpush.bf16.msrb.mxu2 %v6193_v36  ;;  %9550 = vmatpush.bf16.msrb.mxu3 %v6193_v36  ;;  %v9519_v36 = vld [vmem:[%s12289_s20 + $0x128] sm:$0xff] }
 0xe27   : > { %6215 = vmatpush.bf16.msrb.mxu2 %v6191_v15  ;;  %9551 = vmatpush.bf16.msrb.mxu3 %v6191_v15  ;;  %v9485_v15 = vld [vmem:[%s12289_s20 + $0x18] sm:$0xff] }
 0xe28   : > { %7226 = vperm.xlu1 %9570, %v7084_v20  }
 0xe2a   : > { %v6632_v24 = vpop.permute.xlu1 %6631 }
 0xe2b   : > { %6216 = vmatpush.bf16.msrb.mxu2 %v6189_v53  ;;  %9552 = vmatpush.bf16.msrb.mxu3 %v6189_v53  ;;  %v9537_v53 = vld [vmem:[%s12289_s20 + $0x1b8] sm:$0xff] }
 0xe2c   : > { %6647 = vmatpush.bf16.msra.mxu0 %v6632_v24 }
 0xe2f   : > { %6217 = vmatpush.bf16.msrb.mxu2 %v6187_v43  ;;  %9553 = vmatpush.bf16.msrb.mxu3 %v6187_v43  ;;  %v9486_v43 = vld [vmem:[%s12289_s20 + $0x20] sm:$0xff] }
 0xe30   : > { %6648 = vmatpush.bf16.msra.mxu0 %v6630_v31  ;;  %7241 = vperm.xlu1 %9570, %v7087_v54   ;;  %v9488_v54 = vld [vmem:[%s12289_s20 + $0x30] sm:$0xff]  ;;  %v9522_v31 = vld [vmem:[%s12289_s20 + $0x140] sm:$0xff] }
 0xe32   : > { %v6910_v3 = vpop.permute.xlu1 %6909  ;;  %6263 = vmatmul.bf16.vlgmr.msrb.gmra.mxu3 %v9507_v37 }
 0xe33   : > { %6403 = vmatpush.bf16.msra.mxu3 %v11684_v21  ;;  %6919 = vmatpush.bf16.msra.mxu1 %v6910_v3  ;;  %v6900_v21 = vpop.permute.xlu2 %6899 }
 0xe34   : > { %6649 = vmatpush.bf16.msra.mxu0 %v6628_v25  ;;  %7311 = vmatpush.bf16.msra.mxu2 %v7302_v33 }
 0xe37   : > { %6404 = vmatpush.bf16.msra.mxu3 %v11666_v52  ;;  %6920 = vmatpush.bf16.msra.mxu1 %v6908_v44  ;;  %v6624_v52 = vpop.permute.xlu0 %6623 }
 0xe3a   : > { %v6904_v29 = vpop.permute.xlu1 %6903 }
 0xe3b   : > { %6405 = vmatpush.bf16.msra.mxu3 %v11653_v11  ;;  %6921 = vmatpush.bf16.msra.mxu1 %v6906_v9  ;;  %v6622_v11 = vpop.permute.xlu2 %6621  ;;  %v9506_v9 = vld [vmem:[%s12289_s20 + $0xc0] sm:$0xff] }
 0xe3f   : > { %6406 = vmatpush.bf16.msra.mxu3 %v11694_v2  ;;  %6922 = vmatpush.bf16.msra.mxu1 %v6904_v29  ;;  %v6896_v10 = vpop.permute.xlu0 %6895 }
 0xe42   : > { %v6626_v35 = vpop.permute.xlu1 %6625  ;;  %6268 = vmatmul.bf16.gmra.mxu3 %v9508_v40 }
 0xe43   : > { %6407 = vmatpush.bf16.msra.mxu3 %v11677_v14  ;;  %6650 = vmatpush.bf16.msra.mxu0 %v6626_v35  ;;  %v9509_v14 = vld [vmem:[%s12289_s20 + $0xd8] sm:$0xff] }
 0xe44   : > { %6923 = vmatpush.bf16.msra.mxu1 %v6902_v56  ;;  %v9538_v56 = vld [vmem:[%s12289_s20 + $0x1c0] sm:$0xff] }
 0xe47   : > { %6408 = vmatpush.bf16.msra.mxu3 %v11659_v49  ;;  %6651 = vmatpush.bf16.msra.mxu0 %v6624_v52  ;;  %v9510_v49 = vld [vmem:[%s12289_s20 + $0xe0] sm:$0xff] }
 0xe48   : > { %6924 = vmatpush.bf16.msra.mxu1 %v6900_v21 }
 0xe4a   : > { %v6898_v2 = vpop.permute.xlu1 %6897 }
 0xe4b   : > { %6409 = vmatpush.bf16.msra.mxu3 %v11702_v61  ;;  %6652 = vmatpush.bf16.msra.mxu0 %v6622_v11  ;;  %v9514_v61 = vld [vmem:[%s12289_s20 + $0x100] sm:$0xff]  ;;  %v9489_v11 = vld [vmem:[%s12289_s20 + $0x38] sm:$0xff] }
 0xe4c   : > { %6925 = vmatpush.bf16.msra.mxu1 %v6898_v2 }
 0xe4e   : > { %6653 = vmatmul.bf16.vlgmr.msra.gmra.mxu0 %v9514_v61 }
 0xe4f   : > { %6410 = vmatpush.bf16.msra.mxu3 %v11686_v1  ;;  %v9498_v1 = vld [vmem:[%s12289_s20 + $0x80] sm:$0xff] }
 0xe50   : > { %6926 = vmatpush.bf16.msra.mxu1 %v6896_v10  ;;  %6218 = vmatmul.bf16.vlgmr.msrb.gmra.mxu2 %v9498_v1  ;;  %v9523_v10 = vld [vmem:[%s12289_s20 + $0x148] sm:$0xff] }
 0xe52   : > { %6273 = vmatmul.bf16.gmra.mxu3 %v9509_v14 }
 0xe53   : > { %6927 = vmatmul.bf16.vlgmr.msra.gmra.mxu1 %v9530_v16 }
 0xe5e   : > { %6658 = vmatmul.bf16.gmra.mxu0 %v9515_v13 }
 0xe60   : > { %6223 = vmatmul.bf16.gmra.mxu2 %v9499_v12  ;;  %v9490_v12 = vld [vmem:[%s12289_s20 + $0x40] sm:$0xff] }
 0xe62   : > { %6278 = vmatmul.bf16.gmra.mxu3 %v9510_v49  ;;  %v9539_v49 = vld [vmem:[%s12289_s20 + $0x1c8] sm:$0xff] }
 0xe63   : > { %6932 = vmatmul.bf16.gmra.mxu1 %v9531_v17  ;;  %v9524_v17 = vld [vmem:[%s12289_s20 + $0x150] sm:$0xff] }
 0xe6e   : > { %6663 = vmatmul.bf16.gmra.mxu0 %v9516_v6 }
 0xe70   : > { %6228 = vmatmul.bf16.gmra.mxu2 %v9500_v7 }
 0xe72   : > { %6283 = vmatmul.bf16.gmra.mxu3 %v9511_v50 }
 0xe73   : > { %6937 = vmatmul.bf16.gmra.mxu1 %v9532_v5 }
 0xe7e   : > { %6668 = vmatmul.bf16.gmra.mxu0 %v9517_v45 }
 0xe80   : > { %6233 = vmatmul.bf16.gmra.mxu2 %v9501_v51 }
 0xe82   : > { %6288 = vmatmul.bf16.gmra.mxu3 %v9512_v48 }
 0xe83   : > { %6942 = vmatmul.bf16.gmra.mxu1 %v9533_v23 }
 0xe8e   : > { %6673 = vmatmul.bf16.gmra.mxu0 %v9518_v42  ;;  %v9491_v42 = vld [vmem:[%s12289_s20 + $0x48] sm:$0xff] }
 0xe90   : > { %6238 = vmatmul.bf16.gmra.mxu2 %v9502_v57 }
 0xe92   : > { %6293 = vmatmul.bf16.gmra.mxu3 %v9513_v30 }
 0xe93   : > { %6947 = vmatmul.bf16.gmra.mxu1 %v9534_v19 }
 0xe9e   : > { %6678 = vmatmul.bf16.gmra.mxu0 %v9519_v36 }
 0xea0   : > { %6243 = vmatmul.bf16.gmra.mxu2 %v9503_v8 }
 0xea2   : > { %6411 = vmatmul.bf16.vlgmr.msra.gmra.mxu3 %v9482_v46  ;;  %v9540_v46 = vld [vmem:[%s12289_s20 + $0x1d0] sm:$0xff] }
 0xea3   : > { %6952 = vmatmul.bf16.gmra.mxu1 %v9535_v0 }
 0xeae   : > { %6683 = vmatmul.bf16.gmra.mxu0 %v9520_v63 }
 0xeb0   : > { %6248 = vmatmul.bf16.gmra.mxu2 %v9504_v55 }
 0xeb2   : > { %6416 = vmatmul.bf16.gmra.mxu3 %v9483_v34 }
 0xeb3   : > { %6957 = vmatmul.bf16.gmra.mxu1 %v9536_v26 }
 0xeb5   : > { %v11894_v28 = vpop.f32.mrf.mxu3 }
 0xebd   : > { %v11899_v58 = vpop.f32.mrf.mxu3 }
 0xebe   : > { %6688 = vmatmul.bf16.gmra.mxu0 %v9521_v22 }
 0xec0   : > { %6253 = vmatmul.bf16.gmra.mxu2 %v9505_v41 }
 0xec2   : > { %6421 = vmatmul.bf16.gmra.mxu3 %v9484_v39 }
 0xec3   : > { %6962 = vmatmul.bf16.gmra.mxu1 %v9537_v53  ;;  %v9492_v53 = vld [vmem:[%s12289_s20 + $0x50] sm:$0xff] }
 0xec5   : > { %v11910_v18 = vpop.f32.mrf.mxu3 }
 0xecb   : > { %v6654_v37 = vpop.f32.mrf.mxu0 }
 0xecd   : > { %v11915_v4 = vpop.f32.mrf.mxu3 }
 0xece   : > { %6693 = vmatmul.bf16.gmra.mxu0 %v9522_v31  ;;  %v9526_v31 = vld [vmem:[%s12289_s20 + $0x160] sm:$0xff] }
 0xed0   : > { %6258 = vmatmul.bf16.gmra.mxu2 %v9506_v9  ;;  %v6928_v3 = vpop.f32.mrf.mxu1 }
 0xed2   : > { %6426 = vmatmul.bf16.gmra.mxu3 %v9485_v15  ;;  %v9525_v15 = vld [vmem:[%s12289_s20 + $0x158] sm:$0xff] }
 0xed3   : > { %v6219_v25 = vpop.f32.mrf.mxu2  ;;  %6967 = vmatmul.bf16.gmra.mxu1 %v9538_v56  ;;  %v6656_v40 = vpop.f32.mrf.mxu0 }
 0xed5   : > { %v11926_v60 = vpop.f32.mrf.mxu3 }
 0xed8   : > { %v6930_v21 = vpop.f32.mrf.mxu1 }
 0xedb   : > { %v6221_v52 = vpop.f32.mrf.mxu2  ;;  %v6659_v2 = vpop.f32.mrf.mxu0 }
 0xedd   : > { %v11931_v44 = vpop.f32.mrf.mxu3 }
 0xede   : > { %6698 = vmatmul.bf16.gmra.mxu0 %v9523_v10 }
 0xee0   : > { %v6933_v14 = vpop.f32.mrf.mxu1 }
 0xee2   : > { %6431 = vmatmul.bf16.gmra.mxu3 %v9486_v43  ;;  %v9541_v43 = vld [vmem:[%s12289_s20 + $0x1d8] sm:$0xff] }
 0xee3   : > { %6972 = vmatmul.bf16.gmra.mxu1 %v9539_v49  ;;  %v6224_v1 = vpop.f32.mrf.mxu2  ;;  %v6661_v48 = vpop.f32.mrf.mxu0 }
 0xee5   : > { %v11944_v38 = vpop.f32.mrf.mxu3 }
 0xee8   : > { %v6935_v61 = vpop.f32.mrf.mxu1 }
 0xeeb   : > { %v6664_v30 = vpop.f32.mrf.mxu0  ;;  %v6226_v13 = vpop.f32.mrf.mxu2 }
 0xeed   : > { %v11952_v62 = vpop.f32.mrf.mxu3 }
 0xeee   : > { %6703 = vmatmul.bf16.gmra.mxu0 %v9524_v17  ;;  %v9527_v17 = vld [vmem:[%s12289_s20 + $0x168] sm:$0xff] }
 0xef0   : > { %v6938_v7 = vpop.f32.mrf.mxu1 }
 0xef2   : > { %6436 = vmatmul.bf16.gmra.mxu3 %v9487_v27 }
 0xef3   : > { %6977 = vmatmul.bf16.gmra.mxu1 %v9540_v46  ;;  %v6666_v5 = vpop.f32.mrf.mxu0  ;;  %v6229_v45 = vpop.f32.mrf.mxu2 }
 0xef5   : > { %v11963_v20 = vpop.f32.mrf.mxu3 }
 0xef8   : > { %v6940_v34 = vpop.f32.mrf.mxu1 }
 0xefb   : > { %v6669_v8 = vpop.f32.mrf.mxu0  ;;  %v6231_v26 = vpop.f32.mrf.mxu2 }
 0xefd   : > { %v11968_v24 = vpop.f32.mrf.mxu3 }
 0xefe   : > { %6708 = vmatmul.bf16.gmra.mxu0 %v9525_v15 }
 0xf00   : > { %v12011_v55 = vpop.f32.mrf.mxu1 }
 0xf02   : > { %6441 = vmatmul.bf16.gmra.mxu3 %v9488_v54 }
 0xf03   : > { %6982 = vmatmul.bf16.gmra.mxu1 %v9541_v43  ;;  %v6671_v32 = vpop.f32.mrf.mxu0  ;;  %v6234_v9 = vpop.f32.mrf.mxu2 }
 0xf05   : > { %v11979_v29 = vpop.f32.mrf.mxu3 }
 0xf08   : > { %v6945_v33 = vpop.f32.mrf.mxu1 }
 0xf0d   : > { %v11981_v35 = vpop.f32.mrf.mxu3 }
 0xf0e   : > { %6713 = vmatmul.bf16.gmra.mxu0 %v9526_v31 }
 0xf10   : > { %v6948_v56 = vpop.f32.mrf.mxu1 }
 0xf12   : > { %6446 = vmatmul.bf16.gmra.mxu3 %v9489_v11 }
 0xf15   : > { %v11992_v50 = vpop.f32.mrf.mxu3 }
 0xf18   : > { %v6950_v49 = vpop.f32.mrf.mxu1 }
 0xf1d   : > { %v11994_v16 = vpop.f32.mrf.mxu3 }
 0xf1e   : > { %6718 = vmatmul.bf16.gmra.mxu0 %v9527_v17 }
 0xf22   : > { %6451 = vmatmul.bf16.gmra.mxu3 %v9490_v12 }
 0xf25   : > { %v6412_v6 = vpop.f32.mrf.mxu3 }
 0xf26   : > { %v6413_v51 = vadd.f32 %v6412_v6, %v6219_v25 }
 0xf28   : > { %v6734_v57 = vadd.f32 %v6654_v37, %v6413_v51  ;;  %v6674_v37 = vpop.f32.mrf.mxu0  ;;  %v6953_v51 = vpop.f32.mrf.mxu1 }
 0xf2a   : > { %v7008_v36 = vadd.f32 %v6928_v3, %v6734_v57 }
 0xf2d   : > { %v6414_v23 = vpop.f32.mrf.mxu3 }
 0xf2e   : > { %v6415_v39 = vadd.f32 %v6414_v23, %v6221_v52 }
 0xf30   : > { %v6735_v19 = vadd.f32 %v6656_v40, %v6415_v39  ;;  %v9542_v40 = vld [vmem:[%s12289_s20 + $0x1e0] sm:$0xff]  ;;  %v6676_v11 = vpop.f32.mrf.mxu0 }
 0xf31   : > { %6987 = vmatmul.bf16.gmra.mxu1 %v9542_v40  ;;  %v9529_v40 = vld [vmem:[%s12289_s20 + $0x178] sm:$0xff] }
 0xf32   : > { %v7009_v0 = vadd.f32 %v6930_v21, %v6735_v19  ;;  %6456 = vmatmul.bf16.gmra.mxu3 %v9491_v42  ;;  %v6955_v42 = vpop.f32.mrf.mxu1 }
 0xf34   : > { %v7040_v63 = vpack.c.bf16 %v7009_v0, %v7008_v36  ;;  %v9494_v36 = vld [vmem:[%s12289_s20 + $0x60] sm:$0xff] }
 0xf35   : > { %v6417_v59 = vpop.f32.mrf.mxu3 }
 0xf36   : > { %9260 = vmatmul.msk.bf16.vlgmr.msra.gmra.mxu2 %vm7249_vm2, %v7040_v63  ;;  %v6418_v47 = vadd.f32 %v6417_v59, %v6224_v1  ;;  %v9528_v63 = vld [vmem:[%s12289_s20 + $0x170] sm:$0xff] }
 0xf37   : > { %6723 = vmatmul.bf16.gmra.mxu0 %v9528_v63 }
 0xf38   : > { %v6736_v27 = vadd.f32 %v6659_v2, %v6418_v47  ;;  %v6236_v2 = vpop.f32.mrf.mxu2 }
 0xf3a   : > { %v7010_v3 = vadd.f32 %v6933_v14, %v6736_v27  ;;  %v6958_v47 = vpop.f32.mrf.mxu1 }
 0xf3d   : > { %v6419_v41 = vpop.f32.mrf.mxu3 }
 0xf3e   : > { %v6420_v22 = vadd.f32 %v6419_v41, %v6226_v13  ;;  %v6679_v13 = vpop.f32.mrf.mxu0 }
 0xf40   : > { %v6737_v54 = vadd.f32 %v6661_v48, %v6420_v22  ;;  %v6239_v23 = vpop.f32.mrf.mxu2 }
 0xf42   : > { %v7011_v25 = vadd.f32 %v6935_v61, %v6737_v54  ;;  %6461 = vmatmul.bf16.gmra.mxu3 %v9492_v53  ;;  %v9493_v61 = vld [vmem:[%s12289_s20 + $0x58] sm:$0xff]  ;;  %v6960_v54 = vpop.f32.mrf.mxu1 }
 0xf44   : > { %v7041_v21 = vpack.c.bf16 %v7011_v25, %v7010_v3 }
 0xf45   : > { %v6422_v52 = vpop.f32.mrf.mxu3 }
 0xf46   : > { %9261 = vmatmul.msk.bf16.gmra.mxu2 %vm7249_vm2, %v7041_v21  ;;  %v6423_v10 = vadd.f32 %v6422_v52, %v6229_v45 }
 0xf47   : > { %6728 = vmatmul.bf16.gmra.mxu0 %v9529_v40 }
 0xf48   : > { %v6738_v48 = vadd.f32 %v6664_v30, %v6423_v10  ;;  %v9543_v30 = vld [vmem:[%s12289_s20 + $0x1e8] sm:$0xff]  ;;  %v6241_v15 = vpop.f32.mrf.mxu2 }
 0xf49   : > { %6992 = vmatmul.bf16.gmra.mxu1 %v9543_v30 }
 0xf4a   : > { %v7012_v46 = vadd.f32 %v6938_v7, %v6738_v48 }
 0xf4d   : > { %v6424_v1 = vpop.f32.mrf.mxu3 }
 0xf4e   : > { %v6425_v14 = vadd.f32 %v6424_v1, %v6231_v26 }
 0xf50   : > { %v6739_v12 = vadd.f32 %v6666_v5, %v6425_v14  ;;  %v6681_v5 = vpop.f32.mrf.mxu0 }
 0xf52   : > { %v7013_v6 = vadd.f32 %v6940_v34, %v6739_v12  ;;  %6466 = vmatmul.bf16.gmra.mxu3 %v9493_v61 }
 0xf54   : > { %v7042_v45 = vpack.c.bf16 %v7013_v6, %v7012_v46 }
 0xf55   : > { %v6427_v57 = vpop.f32.mrf.mxu3 }
 0xf56   : > { %9262 = vmatmul.msk.bf16.gmra.mxu2 %vm7249_vm2, %v7042_v45  ;;  %v6428_v39 = vadd.f32 %v6427_v57, %v6234_v9 }
 0xf58   : > { %v6740_v7 = vadd.f32 %v6669_v8, %v6428_v39  ;;  %v6684_v43 = vpop.f32.mrf.mxu0  ;;  %v9544_v8 = vld [vmem:[%s12289_s20 + $0x1f0] sm:$0xff] }
 0xf59   : > { %6997 = vmatmul.bf16.gmra.mxu1 %v9544_v8 }
 0xf5a   : > { %v7014_v59 = vadd.f32 %v12011_v55, %v6740_v7 }
 0xf5d   : > { %v6429_v19 = vpop.f32.mrf.mxu3 }
 0xf5e   : > { %v6430_v34 = vadd.f32 %v6429_v19, %v6236_v2  ;;  %v9545_v2 = vld [vmem:[%s12289_s20 + $0x1f8] sm:$0xff] }
 0xf60   : > { %v6741_v0 = vadd.f32 %v6671_v32, %v6430_v34  ;;  %v6244_v32 = vpop.f32.mrf.mxu2  ;;  %v6686_v53 = vpop.f32.mrf.mxu0 }
 0xf62   : > { %v7015_v26 = vadd.f32 %v6945_v33, %v6741_v0  ;;  %6471 = vmatmul.bf16.gmra.mxu3 %v9494_v36  ;;  %v9495_v33 = vld [vmem:[%s12289_s20 + $0x68] sm:$0xff]  ;;  %v9497_v0 = vld [vmem:[%s12289_s20 + $0x78] sm:$0xff] }
 0xf64   : > { %v7043_v41 = vpack.c.bf16 %v7015_v26, %v7014_v59 }
 0xf65   : > { %v6432_v27 = vpop.f32.mrf.mxu3 }
 0xf66   : > { %9263 = vmatmul.msk.bf16.gmra.mxu2 %vm7249_vm2, %v7043_v41  ;;  %v6433_v22 = vadd.f32 %v6432_v27, %v6239_v23 }
 0xf68   : > { %v6742_v31 = vadd.f32 %v6674_v37, %v6433_v22  ;;  %v6246_v25 = vpop.f32.mrf.mxu2  ;;  %v6689_v1 = vpop.f32.mrf.mxu0 }
 0xf69   : > { %7002 = vmatmul.bf16.gmra.mxu1 %v9545_v2 }
 0xf6a   : > { %v7016_v21 = vadd.f32 %v6948_v56, %v6742_v31  ;;  %v9496_v56 = vld [vmem:[%s12289_s20 + $0x70] sm:$0xff] }
 0xf6d   : > { %v6434_v9 = vpop.f32.mrf.mxu3 }
 0xf6e   : > { %v6435_v55 = vadd.f32 %v6434_v9, %v6241_v15 }
 0xf70   : > { %v6743_v3 = vadd.f32 %v6676_v11, %v6435_v55  ;;  %v6963_v11 = vpop.f32.mrf.mxu1  ;;  %v6249_v14 = vpop.f32.mrf.mxu2 }
 0xf72   : > { %v7017_v52 = vadd.f32 %v6950_v49, %v6743_v3  ;;  %6476 = vmatmul.bf16.gmra.mxu3 %v9495_v33  ;;  %v6691_v49 = vpop.f32.mrf.mxu0 }
 0xf74   : > { %v7044_v37 = vpack.c.bf16 %v7017_v52, %v7016_v21 }
 0xf75   : > { %v6437_v10 = vpop.f32.mrf.mxu3 }
 0xf76   : > { %9264 = vmatmul.msk.bf16.gmra.mxu2 %vm7249_vm2, %v7044_v37  ;;  %v6438_v48 = vadd.f32 %v6437_v10, %v6244_v32 }
 0xf78   : > { %v6744_v12 = vadd.f32 %v6679_v13, %v6438_v48  ;;  %v6965_v6 = vpop.f32.mrf.mxu1  ;;  %v6251_v39 = vpop.f32.mrf.mxu2 }
 0xf7a   : > { %v7018_v23 = vadd.f32 %v6953_v51, %v6744_v12  ;;  %v6694_v19 = vpop.f32.mrf.mxu0 }
 0xf7d   : > { %v6439_v61 = vpop.f32.mrf.mxu3 }
 0xf7e   : > { %v6440_v17 = vadd.f32 %v6439_v61, %v6246_v25 }
 0xf80   : > { %v6745_v46 = vadd.f32 %v6681_v5, %v6440_v17  ;;  %v6968_v7 = vpop.f32.mrf.mxu1  ;;  %v6254_v5 = vpop.f32.mrf.mxu2 }
 0xf82   : > { %v7019_v30 = vadd.f32 %v6955_v42, %v6745_v46  ;;  %6481 = vmatmul.bf16.gmra.mxu3 %v9496_v56  ;;  %v6696_v59 = vpop.f32.mrf.mxu0 }
 0xf84   : > { %v7045_v45 = vpack.c.bf16 %v7019_v30, %v7018_v23 }
 0xf85   : > { %v6442_v57 = vpop.f32.mrf.mxu3 }
 0xf86   : > { %9265 = vmatmul.msk.bf16.gmra.mxu2 %vm7249_vm2, %v7045_v45  ;;  %v6443_v15 = vadd.f32 %v6442_v57, %v6249_v14  ;;  %v7489_v57 = vld [vmem:[%s12292_s23] sm:$0xff] }
 0xf88   : > { %v6746_v34 = vadd.f32 %v6684_v43, %v6443_v15  ;;  %v6970_v41 = vpop.f32.mrf.mxu1  ;;  %v6256_v27 = vpop.f32.mrf.mxu2 }
 0xf8a   : > { %v7020_v51 = vadd.f32 %v6958_v47, %v6746_v34  ;;  %v6699_v43 = vpop.f32.mrf.mxu0 }
 0xf8d   : > { %v6444_v13 = vpop.f32.mrf.mxu3 }
 0xf8e   : > { %v6445_v36 = vadd.f32 %v6444_v13, %v6251_v39 }
 0xf90   : > { %v6747_v63 = vadd.f32 %v6686_v53, %v6445_v36  ;;  %v6973_v55 = vpop.f32.mrf.mxu1  ;;  %v6259_v53 = vpop.f32.mrf.mxu2 }
 0xf92   : > { %v7021_v42 = vadd.f32 %v6960_v54, %v6747_v63  ;;  %6486 = vmatmul.bf16.gmra.mxu3 %v9497_v0  ;;  %v6701_v40 = vpop.f32.mrf.mxu0  ;;  %v7097_v0 = vpop.permute.xlu2 %7096 }
 0xf94   : > { %v7046_v26 = vpack.c.bf16 %v7021_v42, %v7020_v51 }
 0xf95   : > { %v6447_v8 = vpop.f32.mrf.mxu3 }
 0xf96   : > { %9266 = vmatmul.msk.bf16.gmra.mxu2 %vm7249_vm2, %v7046_v26  ;;  %v6448_v32 = vadd.f32 %v6447_v8, %v6254_v5  ;;  %v7490_v8 = vld [vmem:[%s12292_s23 + $0x8] sm:$0xff] }
 0xf98   : > { %v6748_v9 = vadd.f32 %v6689_v1, %v6448_v32  ;;  %v6975_v21 = vpop.f32.mrf.mxu1  ;;  %v6261_v2 = vpop.f32.mrf.mxu2 }
 0xf9a   : > { %v7022_v3 = vadd.f32 %v6963_v11, %v6748_v9  ;;  %v6704_v61 = vpop.f32.mrf.mxu0 }
 0xf9d   : > { %v6449_v22 = vpop.f32.mrf.mxu3 }
 0xf9e   : > { %v6450_v31 = vadd.f32 %v6449_v22, %v6256_v27 }
 0xfa0   : > { %v6749_v33 = vadd.f32 %v6691_v49, %v6450_v31  ;;  %v6978_v17 = vpop.f32.mrf.mxu1  ;;  %v7092_v49 = vpop.permute.xlu1 %7091 }
 0xfa2   : > { %v7023_v25 = vadd.f32 %v6965_v6, %v6749_v33  ;;  %v6706_v30 = vpop.f32.mrf.mxu0 }
 0xfa4   : > { %v7047_v47 = vpack.c.bf16 %v7023_v25, %v7022_v3  ;;  %v7491_v25 = vld [vmem:[%s12292_s23 + $0x10] sm:$0xff] }
 0xfa5   : > { %v6452_v54 = vpop.f32.mrf.mxu3 }
 0xfa6   : > { %9267 = vmatmul.msk.bf16.gmra.mxu2 %vm7249_vm2, %v7047_v47  ;;  %v6453_v52 = vadd.f32 %v6452_v54, %v6259_v53 }
 0xfa8   : > { %v6750_v10 = vadd.f32 %v6694_v19, %v6453_v52  ;;  %v6980_v19 = vpop.f32.mrf.mxu1 }
 0xfaa   : > { %v7024_v1 = vadd.f32 %v6968_v7, %v6750_v10 }
 0xfad   : > { %v6454_v37 = vpop.f32.mrf.mxu3 }
 0xfae   : > { %v6455_v48 = vadd.f32 %v6454_v37, %v6261_v2  ;;  %v7107_v2 = vpop.permute.xlu1 %7106 }
 0xfb0   : > { %v6751_v14 = vadd.f32 %v6696_v59, %v6455_v48  ;;  %v6983_v22 = vpop.f32.mrf.mxu1 }
 0xfb2   : > { %v7025_v12 = vadd.f32 %v6970_v41, %v6751_v14  ;;  %v6709_v41 = vpop.f32.mrf.mxu0 }
 0xfb4   : > { %v7048_v56 = vpack.c.bf16 %v7025_v12, %v7024_v1 }
 0xfb5   : > { %v6457_v11 = vpop.f32.mrf.mxu3 }
 0xfb6   : > { %9268 = vmatmul.msk.bf16.gmra.mxu2 %vm7249_vm2, %v7048_v56  ;;  %v6458_v6 = vadd.f32 %v6457_v11, %v11894_v28 }
 0xfb8   : > { %v6752_v15 = vadd.f32 %v6699_v43, %v6458_v6  ;;  %v7102_v43 = vpop.permute.xlu0 %7101  ;;  %v6985_v48 = vpop.f32.mrf.mxu1 }
 0xfb9   : > { %v7313_v46 = vpop.f32.mrf.mxu2  ;;  %v7112_v6 = vpop.permute.xlu2 %7111 }
 0xfba   : > { %v7314_v23 = vadd.f32 %v7313_v46, %v7092_v49  ;;  %v7026_v63 = vadd.f32 %v6973_v55, %v6752_v15  ;;  %v6711_v52 = vpop.f32.mrf.mxu0  ;;  %v7493_v15 = vld [vmem:[%s12292_s23 + $0x20] sm:$0xff] }
 0xfbc   : > { %vm7393_vm11 = vcmp.ge.f32.partialorder %v7314_v23, 0.0  ;;  %v7425_v45 = vmul.f32 0.2, %v7314_v23 }
 0xfbd   : > { %v6459_v39 = vpop.f32.mrf.mxu3 }
 0xfbe   : > { %v6460_v7 = vadd.f32 %v6459_v39, %v11899_v58  ;;  %v7457_v13 = vsel %vm7393_vm11, %v7314_v23, %v7425_v45 }
 0xfbf   : > { %v7521_v34 = vmul.f32 %v7489_v57, %v7457_v13 }
 0xfc0   : > { %v6753_v36 = vadd.f32 %v6701_v40, %v6460_v7  ;;  %v6988_v39 = vpop.f32.mrf.mxu1 }
 0xfc1   : > { %v7315_v5 = vpop.f32.mrf.mxu2  ;;  %v7554_v28 = vsel %vm7553_vm12, %v7521_v34, 0.0 }
 0xfc2   : > { %v7027_v51 = vadd.f32 %v6975_v21, %v6753_v36  ;;  %v7316_v42 = vadd.f32 %v7315_v5, %v7097_v0  ;;  %7555 = vadd.xlane.f32.xlu2 %v7554_v28  ;;  %v7117_v28 = vpop.permute.xlu0 %7116 }
 0xfc4   : > { %v7049_v59 = vpack.c.bf16 %v7027_v51, %v7026_v63  ;;  %vm7394_vm1 = vcmp.ge.f32.partialorder %v7316_v42, 0.0  ;;  %v7426_v26 = vmul.f32 0.2, %v7316_v42 }
 0xfc5   : > { %v6462_v58 = vpop.f32.mrf.mxu3 }
 0xfc6   : > { %9269 = vmatmul.msk.bf16.gmra.mxu2 %vm7249_vm2, %v7049_v59  ;;  %v7458_v27 = vsel %vm7394_vm1, %v7316_v42, %v7426_v26  ;;  %v6463_v55 = vadd.f32 %v6462_v58, %v11910_v18 }
 0xfc7   : > { %v7522_v32 = vmul.f32 %v7490_v8, %v7458_v27 }
 0xfc8   : > { %v6754_v47 = vadd.f32 %v6704_v61, %v6463_v55  ;;  %v6990_v27 = vpop.f32.mrf.mxu1 }
 0xfc9   : > { %v7318_v9 = vpop.f32.mrf.mxu2  ;;  %v7557_v31 = vsel %vm7553_vm12, %v7522_v32, 0.0 }
 0xfca   : > { %v7319_v33 = vadd.f32 %v7318_v9, %v7102_v43  ;;  %7558 = vadd.xlane.f32.xlu0 %v7557_v31  ;;  %v7028_v14 = vadd.f32 %v6978_v17, %v6754_v47  ;;  %v6714_v17 = vpop.f32.mrf.mxu0  ;;  %v7122_v9 = vpop.permute.xlu1 %7121 }
 0xfcc   : > { %vm7395_vm6 = vcmp.ge.f32.partialorder %v7319_v33, 0.0  ;;  %v7427_v3 = vmul.f32 0.2, %v7319_v33 }
 0xfcd   : > { %v6464_v53 = vpop.f32.mrf.mxu3 }
 0xfce   : > { %v6465_v54 = vadd.f32 %v6464_v53, %v11915_v4  ;;  %v7459_v40 = vsel %vm7395_vm6, %v7319_v33, %v7427_v3  ;;  %v7492_v4 = vld [vmem:[%s12292_s23 + $0x18] sm:$0xff] }
 0xfcf   : > { %v7523_v21 = vmul.f32 %v7491_v25, %v7459_v40  ;;  %v7495_v25 = vld [vmem:[%s12292_s23 + $0x30] sm:$0xff] }
 0xfd0   : > { %v6755_v37 = vadd.f32 %v6706_v30, %v6465_v54 }
 0xfd1   : > { %v7320_v10 = vpop.f32.mrf.mxu2  ;;  %v7560_v18 = vsel %vm7553_vm12, %v7523_v21, 0.0 }
 0xfd2   : > { %v7029_v1 = vadd.f32 %v6980_v19, %v6755_v37  ;;  %v7321_v12 = vadd.f32 %v7320_v10, %v7107_v2  ;;  %7561 = vadd.xlane.f32.xlu1 %v7560_v18  ;;  %v6716_v26 = vpop.f32.mrf.mxu0  ;;  %v6993_v2 = vpop.f32.mrf.mxu1 }
 0xfd3   : > { %v7127_v10 = vpop.permute.xlu2 %7126 }
 0xfd4   : > { %v7050_v56 = vpack.c.bf16 %v7029_v1, %v7028_v14  ;;  %vm7396_vm13 = vcmp.ge.f32.partialorder %v7321_v12, 0.0  ;;  %v7428_v11 = vmul.f32 0.2, %v7321_v12 }
 0xfd5   : > { %v6467_v61 = vpop.f32.mrf.mxu3 }
 0xfd6   : > { %9270 = vmatmul.msk.bf16.gmra.mxu2 %vm7249_vm2, %v7050_v56  ;;  %v7460_v49 = vsel %vm7396_vm13, %v7321_v12, %v7428_v11  ;;  %v6468_v45 = vadd.f32 %v6467_v61, %v11926_v60  ;;  %v7496_v11 = vld [vmem:[%s12292_s23 + $0x38] sm:$0xff] }
 0xfd7   : > { %v7524_v46 = vmul.f32 %v7492_v4, %v7460_v49 }
 0xfd8   : > { %v6756_v13 = vadd.f32 %v6709_v41, %v6468_v45  ;;  %v7494_v41 = vld [vmem:[%s12292_s23 + $0x28] sm:$0xff] }
 0xfd9   : > { %v7323_v23 = vpop.f32.mrf.mxu2  ;;  %v7563_v30 = vsel %vm7553_vm12, %v7524_v46, 0.0  ;;  %v7132_v46 = vpop.permute.xlu0 %7131 }
 0xfda   : > { %v7324_v57 = vadd.f32 %v7323_v23, %v7112_v6  ;;  %7564 = vadd.xlane.f32.xlu2 %v7563_v30  ;;  %v7030_v51 = vadd.f32 %v6983_v22, %v6756_v13  ;;  %v6719_v47 = vpop.f32.mrf.mxu0  ;;  %v6995_v30 = vpop.f32.mrf.mxu1 }
 0xfdc   : > { %vm7397_vm14 = vcmp.ge.f32.partialorder %v7324_v57, 0.0  ;;  %v7429_v19 = vmul.f32 0.2, %v7324_v57 }
 0xfdd   : > { %v6469_v7 = vpop.f32.mrf.mxu3 }
 0xfde   : > { %v6470_v34 = vadd.f32 %v6469_v7, %v11931_v44  ;;  %v7461_v36 = vsel %vm7397_vm14, %v7324_v57, %v7429_v19  ;;  %v7088_v57 = vld [vmem:[%s12290_s21 + $0xf8] sm:$0xff]  ;;  %v7497_v19 = vld [vmem:[%s12292_s23 + $0x40] sm:$0xff] }
 0xfdf   : > { %v7525_v0 = vmul.f32 %v7493_v15, %v7461_v36 }
 0xfe0   : > { %v6757_v5 = vadd.f32 %v6711_v52, %v6470_v34 }
 0xfe1   : > { %v7325_v63 = vpop.f32.mrf.mxu2  ;;  %v7566_v60 = vsel %vm7553_vm12, %v7525_v0, 0.0 }
 0xfe2   : > { %v7031_v42 = vadd.f32 %v6985_v48, %v6757_v5  ;;  %v7326_v59 = vadd.f32 %v7325_v63, %v7117_v28  ;;  %7567 = vadd.xlane.f32.xlu2 %v7566_v60  ;;  %v6721_v49 = vpop.f32.mrf.mxu0  ;;  %v7142_v60 = vpop.permute.xlu2 %7141 }
 0xfe4   : > { %v7051_v8 = vpack.c.bf16 %v7031_v42, %v7030_v51  ;;  %vm7398_vm15 = vcmp.ge.f32.partialorder %v7326_v59, 0.0  ;;  %v7430_v58 = vmul.f32 0.2, %v7326_v59 }
 0xfe5   : > { %v6472_v44 = vpop.f32.mrf.mxu3 }
 0xfe6   : > { %9271 = vmatmul.msk.bf16.gmra.mxu2 %vm7249_vm2, %v7051_v8  ;;  %v7462_v32 = vsel %vm7398_vm15, %v7326_v59, %v7430_v58  ;;  %v6473_v55 = vadd.f32 %v6472_v44, %v11944_v38 }
 0xfe7   : > { %v7526_v43 = vmul.f32 %v7494_v41, %v7462_v32 }
 0xfe8   : > { %v6758_v54 = vadd.f32 %v6714_v17, %v6473_v55 }
 0xfe9   : > { %v7328_v31 = vpop.f32.mrf.mxu2  ;;  %v7569_v22 = vsel %vm7553_vm12, %v7526_v43, 0.0 }
 0xfea   : > { %v7329_v33 = vadd.f32 %v7328_v31, %v7122_v9  ;;  %7570 = vadd.xlane.f32.xlu0 %v7569_v22  ;;  %v7032_v48 = vadd.f32 %v6988_v39, %v6758_v54  ;;  %v6724_v63 = vpop.f32.mrf.mxu0  ;;  %v7157_v55 = vpop.permute.xlu2 %7156 }
 0xfec   : > { %vm7399_vm3 = vcmp.ge.f32.partialorder %v7329_v33, 0.0  ;;  %v7431_v3 = vmul.f32 0.2, %v7329_v33 }
 0xfed   : > { %v6474_v53 = vpop.f32.mrf.mxu3 }
 0xfee   : > { %v6475_v40 = vadd.f32 %v6474_v53, %v11952_v62  ;;  %v7463_v21 = vsel %vm7399_vm3, %v7329_v33, %v7431_v3  ;;  %v7499_v3 = vld [vmem:[%s12292_s23 + $0x50] sm:$0xff] }
 0xfef   : > { %v7527_v52 = vmul.f32 %v7495_v25, %v7463_v21  ;;  %v7147_v21 = vpop.permute.xlu0 %7146 }
 0xff0   : > { %v6759_v37 = vadd.f32 %v6716_v26, %v6475_v40  ;;  %v6998_v26 = vpop.f32.mrf.mxu1 }
 0xff1   : > { %v7330_v18 = vpop.f32.mrf.mxu2  ;;  %v7572_v38 = vsel %vm7553_vm12, %v7527_v52, 0.0 }
 0xff2   : > { %v7033_v14 = vadd.f32 %v6990_v27, %v6759_v37  ;;  %v7331_v1 = vadd.f32 %v7330_v18, %v7127_v10  ;;  %7573 = vadd.xlane.f32.xlu1 %v7572_v38  ;;  %v6726_v22 = vpop.f32.mrf.mxu0 }
 0xff4   : > { %v7052_v12 = vpack.c.bf16 %v7033_v14, %v7032_v48  ;;  %vm7400_vm0 = vcmp.ge.f32.partialorder %v7331_v1, 0.0  ;;  %v7432_v56 = vmul.f32 0.2, %v7331_v1 }
 0xff5   : > { %v6477_v62 = vpop.f32.mrf.mxu3 }
 0xff6   : > { %9272 = vmatmul.msk.bf16.gmra.mxu2 %vm7249_vm2, %v7052_v12  ;;  %v7464_v4 = vsel %vm7400_vm0, %v7331_v1, %v7432_v56  ;;  %v6478_v17 = vadd.f32 %v6477_v62, %v11963_v20  ;;  %v7137_v20 = vpop.permute.xlu1 %7136  ;;  %v7500_v12 = vld [vmem:[%s12292_s23 + $0x58] sm:$0xff] }
 0xff7   : > { %v7528_v61 = vmul.f32 %v7496_v11, %v7464_v4  ;;  %v12135_v11 = vpop.permute.xlu2 %7171 }
 0xff8   : > { %v6760_v7 = vadd.f32 %v6719_v47, %v6478_v17  ;;  %v7000_v53 = vpop.f32.mrf.mxu1 }
 0xff9   : > { %v7333_v6 = vpop.f32.mrf.mxu2  ;;  %v7575_v23 = vsel %vm7553_vm12, %v7528_v61, 0.0 }
 0xffa   : > { %v7334_v45 = vadd.f32 %v7333_v6, %v7132_v46  ;;  %7576 = vadd.xlane.f32.xlu2 %v7575_v23  ;;  %v7034_v51 = vadd.f32 %v6993_v2, %v6760_v7  ;;  %v6729_v56 = vpop.f32.mrf.mxu0 }
 0xffc   : > { %vm7401_vm4 = vcmp.ge.f32.partialorder %v7334_v45, 0.0  ;;  %v7433_v39 = vmul.f32 0.2, %v7334_v45 }
 0xffd   : > { %v6479_v15 = vpop.f32.mrf.mxu3 }
 0xffe   : > { %v6480_v13 = vadd.f32 %v6479_v15, %v11968_v24  ;;  %7246 = vperm.xlu0 %9569, %v7088_v57   ;;  %v7465_v34 = vsel %vm7401_vm4, %v7334_v45, %v7433_v39  ;;  %v7498_v24 = vld [vmem:[%s12292_s23 + $0x48] sm:$0xff]  ;;  %v7501_v57 = vld [vmem:[%s12292_s23 + $0x60] sm:$0xff] }
 0xfff   : > { %v7529_v36 = vmul.f32 %v7497_v19, %v7465_v34 }
0x1000   : > { %v6761_v0 = vadd.f32 %v6721_v49, %v6480_v13  ;;  %v7003_v4 = vpop.f32.mrf.mxu1  ;;  %v7162_v49 = vpop.permute.xlu0 %7161 }
0x1001   : > { %v7335_v5 = vpop.f32.mrf.mxu2  ;;  %v7578_v28 = vsel %vm7553_vm12, %v7529_v36, 0.0  ;;  %v12144_v36 = vpop.permute.xlu2 %7186 }
0x1002   : > { %v7035_v42 = vadd.f32 %v6995_v30, %v6761_v0  ;;  %v7336_v59 = vadd.f32 %v7335_v5, %v7137_v20  ;;  %7579 = vadd.xlane.f32.xlu1 %v7578_v28  ;;  %v6731_v13 = vpop.f32.mrf.mxu0 }
0x1004   : > { %v7053_v8 = vpack.c.bf16 %v7035_v42, %v7034_v51  ;;  %vm7402_vm5 = vcmp.ge.f32.partialorder %v7336_v59, 0.0  ;;  %v7434_v58 = vmul.f32 0.2, %v7336_v59 }
0x1005   : > { %v6482_v41 = vpop.f32.mrf.mxu3 }
0x1006   : > { %9273 = vmatmul.msk.bf16.gmra.mxu2 %vm7249_vm2, %v7053_v8  ;;  %v7466_v44 = vsel %vm7402_vm5, %v7336_v59, %v7434_v58  ;;  %v6483_v9 = vadd.f32 %v6482_v41, %v11979_v29  ;;  %v7152_v29 = vpop.permute.xlu1 %7151 }
0x1007   : > { %v7530_v27 = vmul.f32 %v7498_v24, %v7466_v44 }
0x1008   : > { %v6762_v47 = vadd.f32 %v6724_v63, %v6483_v9  ;;  %v7177_v51 = vpop.permute.xlu0 %7176 }
0x1009   : > { %v7338_v32 = vpop.f32.mrf.mxu2  ;;  %v7581_v43 = vsel %vm7553_vm12, %v7530_v27, 0.0  ;;  %v12152_v27 = vpop.permute.xlu2 %7201 }
0x100a   : > { %v7339_v31 = vadd.f32 %v7338_v32, %v7142_v60  ;;  %7582 = vadd.xlane.f32.xlu2 %v7581_v43  ;;  %v7036_v18 = vadd.f32 %v6998_v26, %v6762_v47  ;;  %v7503_v43 = vld [vmem:[%s12292_s23 + $0x70] sm:$0xff]  ;;  %v7504_v47 = vld [vmem:[%s12292_s23 + $0x78] sm:$0xff] }
0x100c   : > { %vm7403_vm7 = vcmp.ge.f32.partialorder %v7339_v31, 0.0  ;;  %v7435_v33 = vmul.f32 0.2, %v7339_v31 }
0x100d   : > { %v6484_v25 = vpop.f32.mrf.mxu3 }
0x100e   : > { %v6485_v54 = vadd.f32 %v6484_v25, %v11981_v35  ;;  %v7467_v40 = vsel %vm7403_vm7, %v7339_v31, %v7435_v33  ;;  %v7167_v17 = vpop.permute.xlu1 %7166 }
0x100f   : > { %v7531_v52 = vmul.f32 %v7499_v3, %v7467_v40 }
0x1010   : > { %v6763_v2 = vadd.f32 %v6726_v22, %v6485_v54  ;;  %v12157_v9 = vpop.permute.xlu0 %7191 }
0x1011   : > { %v7340_v37 = vpop.f32.mrf.mxu2  ;;  %v7584_v10 = vsel %vm7553_vm12, %v7531_v52, 0.0  ;;  %v12165_v54 = vpop.permute.xlu2 %7216 }
0x1012   : > { %v7037_v38 = vadd.f32 %v7000_v53, %v6763_v2  ;;  %v7341_v48 = vadd.f32 %v7340_v37, %v7147_v21  ;;  %7585 = vadd.xlane.f32.xlu1 %v7584_v10 }
0x1014   : > { %v7054_v14 = vpack.c.bf16 %v7037_v38, %v7036_v18  ;;  %vm7404_vm8 = vcmp.ge.f32.partialorder %v7341_v48, 0.0  ;;  %v7436_v1 = vmul.f32 0.2, %v7341_v48  ;;  %v7505_v38 = vld [vmem:[%s12292_s23 + $0x80] sm:$0xff] }
0x1015   : > { %v6487_v35 = vpop.f32.mrf.mxu3 }
0x1016   : > { %9274 = vmatmul.msk.bf16.gmra.mxu2 %vm7249_vm2, %v7054_v14  ;;  %v7468_v62 = vsel %vm7404_vm8, %v7341_v48, %v7436_v1  ;;  %v6488_v23 = vadd.f32 %v6487_v35, %v11992_v50  ;;  %v7005_v50 = vpop.f32.mrf.mxu1  ;;  %v7182_v26 = vpop.permute.xlu1 %7181 }
0x1017   : > { %v7532_v61 = vmul.f32 %v7500_v12, %v7468_v62 }
0x1018   : > { %v6764_v19 = vadd.f32 %v6729_v56, %v6488_v23  ;;  %v12167_v21 = vpop.permute.xlu0 %7206 }
0x1019   : > { %v7343_v46 = vpop.f32.mrf.mxu2  ;;  %v7587_v6 = vsel %vm7553_vm12, %v7532_v61, 0.0  ;;  %v12176_v14 = vpop.permute.xlu2 %7231  ;;  %v7506_v61 = vld [vmem:[%s12292_s23 + $0x88] sm:$0xff] }
0x101a   : > { %v7344_v30 = vadd.f32 %v7343_v46, %v7152_v29  ;;  %7588 = vadd.xlane.f32.xlu2 %v7587_v6  ;;  %v7038_v28 = vadd.f32 %v7003_v4, %v6764_v19 }
0x101c   : > { %vm7405_vm9 = vcmp.ge.f32.partialorder %v7344_v30, 0.0  ;;  %v7437_v45 = vmul.f32 0.2, %v7344_v30 }
0x101d   : > { %v6489_v39 = vpop.f32.mrf.mxu3 }
0x101e   : > { %v6490_v15 = vadd.f32 %v6489_v39, %v11994_v16  ;;  %v7469_v7 = vsel %vm7405_vm9, %v7344_v30, %v7437_v45  ;;  %v7502_v16 = vld [vmem:[%s12292_s23 + $0x68] sm:$0xff]  ;;  %v12159_v22 = vpop.permute.xlu1 %7196  ;;  %v7507_v39 = vld [vmem:[%s12292_s23 + $0x90] sm:$0xff] }
0x101f   : > { %v7533_v34 = vmul.f32 %v7501_v57, %v7469_v7 }
0x1020   : > { %v6765_v20 = vadd.f32 %v6731_v13, %v6490_v15  ;;  %v12178_v12 = vpop.permute.xlu0 %7221 }
0x1021   : > { %v7345_v0 = vpop.f32.mrf.mxu2  ;;  %v7590_v5 = vsel %vm7553_vm12, %v7533_v34, 0.0 }
0x1022   : > { %v7039_v63 = vadd.f32 %v7005_v50, %v6765_v20  ;;  %v7346_v60 = vadd.f32 %v7345_v0, %v7157_v55  ;;  %7591 = vadd.xlane.f32.xlu1 %v7590_v5 }
0x1024   : > { %v7055_v42 = vpack.c.bf16 %v7039_v63, %v7038_v28  ;;  %vm7406_vm10 = vcmp.ge.f32.partialorder %v7346_v60, 0.0  ;;  %v7438_v59 = vmul.f32 0.2, %v7346_v60  ;;  %v7508_v28 = vld [vmem:[%s12292_s23 + $0x98] sm:$0xff] }
0x1026   : > { %9275 = vmatmul.msk.bf16.gmra.mxu2 %vm7249_vm2, %v7055_v42  ;;  %v7470_v8 = vsel %vm7406_vm10, %v7346_v60, %v7438_v59  ;;  %v12169_v2 = vpop.permute.xlu1 %7211 }
0x1027   : > { %v7534_v58 = vmul.f32 %v7502_v16, %v7470_v8 }
0x1028   : > { %v12187_v45 = vpop.permute.xlu0 %7236 }
0x1029   : > { %v7348_v24 = vpop.f32.mrf.mxu2  ;;  %v7593_v41 = vsel %vm7553_vm12, %v7534_v58, 0.0 }
0x102a   : > { %v7349_v44 = vadd.f32 %v7348_v24, %v7162_v49  ;;  %7594 = vadd.xlane.f32.xlu0 %v7593_v41 }
0x102c   : > { %vm7407_vm11 = vcmp.ge.f32.partialorder %v7349_v44, 0.0  ;;  %v7439_v32 = vmul.f32 0.2, %v7349_v44 }
0x102e   : > { %v7471_v31 = vsel %vm7407_vm11, %v7349_v44, %v7439_v32  ;;  %v12181_v4 = vpop.permute.xlu1 %7226  ;;  %v7509_v44 = vld [vmem:[%s12292_s23 + $0xa0] sm:$0xff] }
0x102f   : > { %v7535_v55 = vmul.f32 %v7503_v43, %v7471_v31 }
0x1031   : > { %v7350_v33 = vpop.f32.mrf.mxu2  ;;  %v7596_v3 = vsel %vm7553_vm12, %v7535_v55, 0.0 }
0x1032   : > { %v7351_v25 = vadd.f32 %v7350_v33, %v7167_v17  ;;  %7597 = vadd.xlane.f32.xlu2 %v7596_v3 }
0x1034   : > { %vm7408_vm2 = vcmp.ge.f32.partialorder %v7351_v25, 0.0  ;;  %v7440_v53 = vmul.f32 0.2, %v7351_v25 }
0x1035   : > { %v7556_v46 = vpop.xlane.xlu2 %7555 }
0x1036   : > { %v7472_v40 = vsel %vm7408_vm2, %v7351_v25, %v7440_v53  ;;  %v12192_v19 = vpop.permute.xlu1 %7241  ;;  %v7510_v53 = vld [vmem:[%s12292_s23 + $0xa8] sm:$0xff] }
0x1037   : > { %v7536_v52 = vmul.f32 %v7504_v47, %v7472_v40 }
0x1039   : > { %v7353_v29 = vpop.f32.mrf.mxu2  ;;  %v7599_v37 = vsel %vm7553_vm12, %v7536_v52, 0.0 }
0x103a   : > { %v7354_v10 = vadd.f32 %v7353_v29, %v12135_v11  ;;  %7600 = vadd.xlane.f32.xlu1 %v7599_v37 }
0x103c   : > { %vm7409_vm1 = vcmp.ge.f32.partialorder %v7354_v10, 0.0  ;;  %v7441_v18 = vmul.f32 0.2, %v7354_v10 }
0x103d   : > { %v7559_v0 = vpop.xlane.xlu0 %7558 }
0x103e   : > { %v7473_v48 = vsel %vm7409_vm1, %v7354_v10, %v7441_v18  ;;  %v7650_v60 = vadd.f32 %v7559_v0, %v7556_v46 }
0x103f   : > { %v7537_v1 = vmul.f32 %v7505_v38, %v7473_v48 }
0x1041   : > { %v7355_v35 = vpop.f32.mrf.mxu2  ;;  %v7602_v56 = vsel %vm7553_vm12, %v7537_v1, 0.0 }
0x1042   : > { %v7356_v62 = vadd.f32 %v7355_v35, %v7177_v51  ;;  %7603 = vadd.xlane.f32.xlu2 %v7602_v56 }
0x1044   : > { %vm7410_vm6 = vcmp.ge.f32.partialorder %v7356_v62, 0.0  ;;  %v7442_v11 = vmul.f32 0.2, %v7356_v62 }
0x1045   : > { %v7562_v63 = vpop.xlane.xlu1 %7561 }
0x1046   : > { %v7474_v49 = vsel %vm7410_vm6, %v7356_v62, %v7442_v11  ;;  %v7651_v59 = vadd.f32 %v7650_v60, %v7562_v63 }
0x1047   : > { %v7538_v6 = vmul.f32 %v7506_v61, %v7474_v49 }
0x1049   : > { %v7358_v23 = vpop.f32.mrf.mxu2  ;;  %v7605_v30 = vsel %vm7553_vm12, %v7538_v6, 0.0 }
0x104a   : > { %v7359_v17 = vadd.f32 %v7358_v23, %v7182_v26  ;;  %7606 = vadd.xlane.f32.xlu1 %v7605_v30 }
0x104c   : > { %vm7411_vm13 = vcmp.ge.f32.partialorder %v7359_v17, 0.0  ;;  %v7443_v57 = vmul.f32 0.2, %v7359_v17 }
0x104d   : > { %v7565_v7 = vpop.xlane.xlu2 %7564 }
0x104e   : > { %v7475_v15 = vsel %vm7411_vm13, %v7359_v17, %v7443_v57  ;;  %v7652_v58 = vadd.f32 %v7651_v59, %v7565_v7 }
0x104f   : > { %v7539_v13 = vmul.f32 %v7507_v39, %v7475_v15 }
0x1051   : > { %v7360_v34 = vpop.f32.mrf.mxu2  ;;  %v7608_v20 = vsel %vm7553_vm12, %v7539_v13, 0.0 }
0x1052   : > { %v7361_v50 = vadd.f32 %v7360_v34, %v12144_v36  ;;  %7609 = vadd.xlane.f32.xlu2 %v7608_v20 }
0x1054   : > { %vm7412_vm14 = vcmp.ge.f32.partialorder %v7361_v50, 0.0  ;;  %v7444_v5 = vmul.f32 0.2, %v7361_v50 }
0x1055   : > { %v7568_v16 = vpop.xlane.xlu2 %7567 }
0x1056   : > { %v7476_v51 = vsel %vm7412_vm14, %v7361_v50, %v7444_v5  ;;  %v7653_v24 = vadd.f32 %v7652_v58, %v7568_v16 }
0x1057   : > { %v7540_v42 = vmul.f32 %v7508_v28, %v7476_v51 }
0x1059   : > { %v7363_v26 = vpop.f32.mrf.mxu2  ;;  %v7611_v8 = vsel %vm7553_vm12, %v7540_v42, 0.0 }
0x105a   : > { %v7364_v36 = vadd.f32 %v7363_v26, %v12157_v9  ;;  %7612 = vadd.xlane.f32.xlu1 %v7611_v8 }
0x105c   : > { %vm7413_vm15 = vcmp.ge.f32.partialorder %v7364_v36, 0.0  ;;  %v7445_v41 = vmul.f32 0.2, %v7364_v36 }
0x105d   : > { %v7571_v32 = vpop.xlane.xlu0 %7570 }
0x105e   : > { %v12204_v43 = vadd.f32 %v7653_v24, %v7571_v32  ;;  %v7477_v31 = vsel %vm7413_vm15, %v7364_v36, %v7445_v41 }
0x105f   : > { %v7541_v55 = vmul.f32 %v7509_v44, %v7477_v31 }
0x1061   : > { %v7365_v33 = vpop.f32.mrf.mxu2  ;;  %v7614_v3 = vsel %vm7553_vm12, %v7541_v55, 0.0 }
0x1062   : > { %v7366_v25 = vadd.f32 %v7365_v33, %v12159_v22  ;;  %7615 = vadd.xlane.f32.xlu2 %v7614_v3  ;;  %v7511_v22 = vld [vmem:[%s12292_s23 + $0xb0] sm:$0xff] }
0x1064   : > { %vm7414_vm3 = vcmp.ge.f32.partialorder %v7366_v25, 0.0  ;;  %v7446_v9 = vmul.f32 0.2, %v7366_v25 }
0x1066   : > { %v7478_v47 = vsel %vm7414_vm3, %v7366_v25, %v7446_v9 }
0x1067   : > { %v7542_v40 = vmul.f32 %v7510_v53, %v7478_v47 }
0x1069   : > { %v7368_v52 = vpop.f32.mrf.mxu2  ;;  %v7617_v29 = vsel %vm7553_vm12, %v7542_v40, 0.0 }
0x106a   : > { %v7369_v37 = vadd.f32 %v7368_v52, %v12152_v27  ;;  %7618 = vadd.xlane.f32.xlu1 %v7617_v29  ;;  %v7512_v27 = vld [vmem:[%s12292_s23 + $0xb8] sm:$0xff] }
0x106c   : > { %vm7415_vm0 = vcmp.ge.f32.partialorder %v7369_v37, 0.0  ;;  %v7447_v10 = vmul.f32 0.2, %v7369_v37 }
0x106e   : > { %v7479_v18 = vsel %vm7415_vm0, %v7369_v37, %v7447_v10 }
0x106f   : > { %v7543_v38 = vmul.f32 %v7511_v22, %v7479_v18 }
0x1070   : > { %v7247_v29 = vpop.permute.xlu0 %7246 }
0x1071   : > { %v7370_v48 = vpop.f32.mrf.mxu2  ;;  %v7620_v1 = vsel %vm7553_vm12, %v7543_v38, 0.0 }
0x1072   : > { %v7371_v35 = vadd.f32 %v7370_v48, %v12167_v21  ;;  %7621 = vadd.xlane.f32.xlu2 %v7620_v1  ;;  %v7513_v21 = vld [vmem:[%s12292_s23 + $0xc0] sm:$0xff] }
0x1074   : > { %vm7416_vm4 = vcmp.ge.f32.partialorder %v7371_v35, 0.0  ;;  %v7448_v56 = vmul.f32 0.2, %v7371_v35 }
0x1076   : > { %v7480_v62 = vsel %vm7416_vm4, %v7371_v35, %v7448_v56  ;;  %v7574_v35 = vpop.xlane.xlu1 %7573  ;;  %v7577_v56 = vpop.xlane.xlu2 %7576 }
0x1077   : > { %v7544_v11 = vmul.f32 %v7512_v27, %v7480_v62 }
0x1079   : > { %v7373_v61 = vpop.f32.mrf.mxu2  ;;  %v7623_v49 = vsel %vm7553_vm12, %v7544_v11, 0.0 }
0x107a   : > { %v7374_v46 = vadd.f32 %v7373_v61, %v12169_v2  ;;  %7624 = vadd.xlane.f32.xlu1 %v7623_v49  ;;  %v7514_v2 = vld [vmem:[%s12292_s23 + $0xc8] sm:$0xff] }
0x107c   : > { %vm7417_vm5 = vcmp.ge.f32.partialorder %v7374_v46, 0.0  ;;  %v7449_v6 = vmul.f32 0.2, %v7374_v46 }
0x107e   : > { %v7481_v23 = vsel %vm7417_vm5, %v7374_v46, %v7449_v6  ;;  %v7580_v27 = vpop.xlane.xlu1 %7579  ;;  %v7583_v62 = vpop.xlane.xlu2 %7582 }
0x107f   : > { %v7545_v30 = vmul.f32 %v7513_v21, %v7481_v23  ;;  %v7655_v21 = vadd.f32 %v12204_v43, %v7574_v35 }
0x1081   : > { %v7375_v17 = vpop.f32.mrf.mxu2  ;;  %v7626_v57 = vsel %vm7553_vm12, %v7545_v30, 0.0  ;;  %v7656_v30 = vadd.f32 %v7655_v21, %v7577_v56 }
0x1082   : > { %v7376_v39 = vadd.f32 %v7375_v17, %v12165_v54  ;;  %7627 = vadd.xlane.f32.xlu0 %v7626_v57  ;;  %v7515_v54 = vld [vmem:[%s12292_s23 + $0xd0] sm:$0xff] }
0x1083   : > { %v7657_v57 = vadd.f32 %v7656_v30, %v7580_v27 }
0x1084   : > { %vm7418_vm7 = vcmp.ge.f32.partialorder %v7376_v39, 0.0  ;;  %v7450_v15 = vmul.f32 0.2, %v7376_v39 }
0x1086   : > { %v7482_v7 = vsel %vm7418_vm7, %v7376_v39, %v7450_v15  ;;  %v7586_v11 = vpop.xlane.xlu1 %7585  ;;  %v7658_v39 = vadd.f32 %v7657_v57, %v7583_v62 }
0x1087   : > { %v7546_v13 = vmul.f32 %v7514_v2, %v7482_v7 }
0x1088   : > { %v7659_v15 = vadd.f32 %v7658_v39, %v7586_v11 }
0x1089   : > { %v7378_v34 = vpop.f32.mrf.mxu2  ;;  %v7629_v20 = vsel %vm7553_vm12, %v7546_v13, 0.0 }
0x108a   : > { %v7379_v50 = vadd.f32 %v7378_v34, %v12178_v12  ;;  %7630 = vadd.xlane.f32.xlu2 %v7629_v20  ;;  %v7516_v12 = vld [vmem:[%s12292_s23 + $0xd8] sm:$0xff] }
0x108c   : > { %vm7419_vm8 = vcmp.ge.f32.partialorder %v7379_v50, 0.0  ;;  %v7451_v0 = vmul.f32 0.2, %v7379_v50 }
0x108d   : > { %v7589_v61 = vpop.xlane.xlu2 %7588 }
0x108e   : > { %v7483_v5 = vsel %vm7419_vm8, %v7379_v50, %v7451_v0  ;;  %v7660_v7 = vadd.f32 %v7659_v15, %v7589_v61 }
0x108f   : > { %v7547_v28 = vmul.f32 %v7515_v54, %v7483_v5 }
0x1091   : > { %v7380_v63 = vpop.f32.mrf.mxu2  ;;  %v7632_v60 = vsel %vm7553_vm12, %v7547_v28, 0.0 }
0x1092   : > { %v7381_v51 = vadd.f32 %v7380_v63, %v12181_v4  ;;  %7633 = vadd.xlane.f32.xlu1 %v7632_v60  ;;  %v7517_v4 = vld [vmem:[%s12292_s23 + $0xe0] sm:$0xff] }
0x1094   : > { %vm7420_vm9 = vcmp.ge.f32.partialorder %v7381_v51, 0.0  ;;  %v7452_v42 = vmul.f32 0.2, %v7381_v51 }
0x1095   : > { %v7592_v49 = vpop.xlane.xlu1 %7591 }
0x1096   : > { %v7484_v59 = vsel %vm7420_vm9, %v7381_v51, %v7452_v42  ;;  %v7661_v20 = vadd.f32 %v7660_v7, %v7592_v49 }
0x1097   : > { %v7548_v16 = vmul.f32 %v7516_v12, %v7484_v59 }
0x1099   : > { %v7383_v26 = vpop.f32.mrf.mxu2  ;;  %v7635_v8 = vsel %vm7553_vm12, %v7548_v16, 0.0 }
0x109a   : > { %v7384_v58 = vadd.f32 %v7383_v26, %v12176_v14  ;;  %7636 = vadd.xlane.f32.xlu0 %v7635_v8  ;;  %v7518_v14 = vld [vmem:[%s12292_s23 + $0xe8] sm:$0xff] }
0x109c   : > { %vm7421_vm10 = vcmp.ge.f32.partialorder %v7384_v58, 0.0  ;;  %v7453_v36 = vmul.f32 0.2, %v7384_v58 }
0x109d   : > { %v7595_v13 = vpop.xlane.xlu0 %7594 }
0x109e   : > { %v7485_v24 = vsel %vm7421_vm10, %v7384_v58, %v7453_v36  ;;  %v7662_v50 = vadd.f32 %v7661_v20, %v7595_v13 }
0x109f   : > { %v7549_v41 = vmul.f32 %v7517_v4, %v7485_v24 }
0x10a1   : > { %v7385_v44 = vpop.f32.mrf.mxu2  ;;  %v7638_v32 = vsel %vm7553_vm12, %v7549_v41, 0.0 }
0x10a2   : > { %v7386_v31 = vadd.f32 %v7385_v44, %v12187_v45  ;;  %7639 = vadd.xlane.f32.xlu2 %v7638_v32  ;;  %v7519_v45 = vld [vmem:[%s12292_s23 + $0xf0] sm:$0xff] }
0x10a4   : > { %vm7422_vm11 = vcmp.ge.f32.partialorder %v7386_v31, 0.0  ;;  %v7454_v55 = vmul.f32 0.2, %v7386_v31 }
0x10a5   : > { %v7598_v46 = vpop.xlane.xlu2 %7597 }
0x10a6   : > { %v7486_v33 = vsel %vm7422_vm11, %v7386_v31, %v7454_v55  ;;  %v7663_v0 = vadd.f32 %v7662_v50, %v7598_v46 }
0x10a7   : > { %v7550_v3 = vmul.f32 %v7518_v14, %v7486_v33 }
0x10a9   : > { %v7388_v25 = vpop.f32.mrf.mxu2  ;;  %v7641_v9 = vsel %vm7553_vm12, %v7550_v3, 0.0 }
0x10aa   : > { %v7389_v53 = vadd.f32 %v7388_v25, %v12192_v19  ;;  %7642 = vadd.xlane.f32.xlu1 %v7641_v9  ;;  %v7520_v19 = vld [vmem:[%s12292_s23 + $0xf8] sm:$0xff] }
0x10ac   : > { %vm7423_vm2 = vcmp.ge.f32.partialorder %v7389_v53, 0.0  ;;  %v7455_v47 = vmul.f32 0.2, %v7389_v53 }
0x10ad   : > { %v7601_v6 = vpop.xlane.xlu1 %7600 }
0x10ae   : > { %v7487_v40 = vsel %vm7423_vm2, %v7389_v53, %v7455_v47  ;;  %v7664_v5 = vadd.f32 %v7663_v0, %v7601_v6 }
0x10af   : > { %v7551_v52 = vmul.f32 %v7519_v45, %v7487_v40 }
0x10b1   : > { %v7390_v37 = vpop.f32.mrf.mxu2  ;;  %v7644_v10 = vsel %vm7553_vm12, %v7551_v52, 0.0 }
0x10b2   : > { %v7391_v22 = vadd.f32 %v7390_v37, %v7247_v29  ;;  %7645 = vadd.xlane.f32.xlu0 %v7644_v10  ;;  %v7687_v10 = vld [vmem:[#allocation2] sm:$0x1] }
0x10b4   : > { %vm7424_vm1 = vcmp.ge.f32.partialorder %v7391_v22, 0.0  ;;  %v7456_v18 = vmul.f32 0.2, %v7391_v22 }
0x10b5   : > { %v7604_v23 = vpop.xlane.xlu2 %7603 }
0x10b6   : > { %v7488_v38 = vsel %vm7424_vm1, %v7391_v22, %v7456_v18  ;;  %v7665_v63 = vadd.f32 %v7664_v5, %v7604_v23 }
0x10b7   : > { %v7552_v48 = vmul.f32 %v7520_v19, %v7488_v38 }
0x10b9   : > { %v7647_v1 = vsel %vm7553_vm12, %v7552_v48, 0.0  ;;  %vm7689_vm12 = vcmask 0  }
0x10ba   : > { %7648 = vadd.xlane.f32.xlu2 %v7647_v1 }
0x10bd   : > { %v7607_v17 = vpop.xlane.xlu1 %7606 }
0x10be   : > { %v7666_v60 = vadd.f32 %v7665_v63, %v7607_v17 }
0x10c5   : > { %v7610_v2 = vpop.xlane.xlu2 %7609 }
0x10c6   : > { %v7667_v51 = vadd.f32 %v7666_v60, %v7610_v2 }
0x10cd   : > { %v7613_v34 = vpop.xlane.xlu1 %7612 }
0x10ce   : > { %v7668_v42 = vadd.f32 %v7667_v51, %v7613_v34 }
0x10d5   : > { %v7616_v54 = vpop.xlane.xlu2 %7615 }
0x10d6   : > { %v7669_v59 = vadd.f32 %v7668_v42, %v7616_v54 }
0x10dd   : > { %v7619_v28 = vpop.xlane.xlu1 %7618 }
0x10de   : > { %v7670_v26 = vadd.f32 %v7669_v59, %v7619_v28 }
0x10e5   : > { %v7622_v43 = vpop.xlane.xlu2 %7621 }
0x10e6   : > { %v7671_v8 = vadd.f32 %v7670_v26, %v7622_v43 }
0x10ed   : > { %v7625_v12 = vpop.xlane.xlu1 %7624 }
0x10ee   : > { %v7672_v36 = vadd.f32 %v7671_v8, %v7625_v12 }
0x10f5   : > { %v7628_v16 = vpop.xlane.xlu0 %7627 }
0x10f6   : > { %v7673_v24 = vadd.f32 %v7672_v36, %v7628_v16 }
0x10fd   : > { %v7631_v58 = vpop.xlane.xlu2 %7630 }
0x10fe   : > { %v7674_v44 = vadd.f32 %v7673_v24, %v7631_v58 }
0x1105   : > { %v7634_v4 = vpop.xlane.xlu1 %7633 }
0x1106   : > { %v7675_v32 = vadd.f32 %v7674_v44, %v7634_v4 }
0x110d   : > { %v7637_v41 = vpop.xlane.xlu0 %7636 }
0x110e   : > { %v7676_v55 = vadd.f32 %v7675_v32, %v7637_v41 }
0x1115   : > { %v7640_v31 = vpop.xlane.xlu2 %7639 }
0x1116   : > { %v7677_v33 = vadd.f32 %v7676_v55, %v7640_v31 }
0x111d   : > { %v7643_v14 = vpop.xlane.xlu1 %7642 }
0x111e   : > { %v7678_v25 = vadd.f32 %v7677_v33, %v7643_v14 }
0x1125   : > { %v7646_v3 = vpop.xlane.xlu0 %7645 }
0x1126   : > { %v7679_v9 = vadd.f32 %v7678_v25, %v7646_v3 }
0x112d   : > { %v7649_v53 = vpop.xlane.xlu2 %7648 }
0x112e   : > { %v7680_v47 = vadd.f32 %v7679_v9, %v7649_v53 }
0x1130   : > { %v7681_v45 = vrot.slane %v7680_v47, 4 }
0x1132   : > { %v7682_v40 = vadd.f32 %v7681_v45, %v7680_v47 }
0x1134   : > { %v7683_v52 = vrot.slane %v7682_v40, 2 }
0x1136   : > { %v7684_v29 = vadd.f32 %v7683_v52, %v7682_v40 }
0x1138   : > { %v7685_v37 = vrot.slane %v7684_v29, 1 }
0x113a   : > { %v7686_v22 = vadd.f32 %v7685_v37, %v7684_v29 }
0x113c   : > { %v7688_v18 = vadd.f32 %v7687_v10, %v7686_v22 }
0x113e   : > { %7690 = vst.msk [vmem:[%s762_s10] sm:$0x1] %vm7689_vm12, %v7688_v18 }
0x113f PF: > { %s37_s6 = sadd.s32 1, %s9578_s6  }
0x1140   : > { %p34_p4 = scmp.ge.s32.totalorder %s37_s6, 4  }
0x1142   :  { %36 = sbr.rel (!%p34_p4) target bundleno = 12 (0xc), region = 169 }

</bundles_post_ra>
